<compile_context>
chip_gen: v7x
topology: tpu7x:2x2x1
jax: 0.10.0
libtpu: 0.0.40
codegen_flags: <defaults>
</compile_context>

<pallas_src>
import jax
import jax.numpy as jnp
from jax.experimental import pallas as pl
from jax.experimental.pallas import tpu as pltpu

# ----- module hyper-parameters (small, consistent with the torch module) -----
N_PART = 8          # n_particles
N_DIM = 3           # n_dimension
HID = 32            # hidden_nf
N_LAYERS = 4        # n_layers
BATCH = 2
E2 = N_PART * N_PART        # dense ordered pairs per batch element (diag masked)
BN = BATCH * N_PART         # 16 fused nodes
BE2 = BATCH * E2            # 128 fused edges


def _silu(x):
    return x * jax.nn.sigmoid(x)


# ---------------------------------------------------------------------------
# Pallas kernel: whole batch, full EGNN forward + velocity, one invocation.
# ---------------------------------------------------------------------------
def egnn_dynamics_kernel(
    h0_ref, x0_ref, adiff_ref, agather_ref, ascat_ref,
    we_ref, be_ref,
    we1_ref, we2_ref, wn1_ref, wn2_ref, wc1_ref, wc2_ref, bias_ref,
    vel_ref,
):
    dot = lambda a, b: jnp.dot(a, b, preferred_element_type=jnp.float32)

    h0 = h0_ref[...]              # (BN, 2)
    x0 = x0_ref[...]              # (BN, D)
    A_diff = adiff_ref[...]       # (BE2, BN)  = A_row - A_col  (block diagonal)
    A_gather = agather_ref[...]   # (2*BE2, BN) = [A_row ; A_col]
    A_scatT = ascat_ref[...]      # (BN, BE2)  = (A_row * diag_mask)^T

    # node embedding: Linear(2 -> hidden)
    h = dot(h0, we_ref[...]) + be_ref[...]        # (BN, H)
    x = x0

    # fixed edge_attr = squared distance of the *initial* coordinates
    d0 = dot(A_diff, x0)                          # (BE2, D)
    edge_attr = jnp.sum(d0 * d0, axis=-1, keepdims=True)   # (BE2, 1)

    for l in range(N_LAYERS):
        bl = bias_ref[l]                          # (5, H): [b1, b2, bn1, bn2, bc1]
        b1, b2, bn1, bn2, bc1 = bl[0:1], bl[1:2], bl[2:3], bl[3:4], bl[4:5]

        # ---- coord2radial (norm_diff=True) ----
        diff = dot(A_diff, x)                                   # (BE2, D)
        radial = jnp.sum(diff * diff, axis=-1, keepdims=True)   # (BE2, 1)
        inv_norm = pl.reciprocal(jnp.sqrt(radial) + 1.0, approx=True)

        # ---- gather h for both edge endpoints with ONE matmul ----
        hg = dot(A_gather, h)                                   # (2*BE2, H)
        h_src = hg[:BE2]                                        # (BE2, H)
        h_tgt = hg[BE2:]

        # ---- edge model: fused first layer on [h_i | h_j | radial | edge_attr] ----
        e_in = jnp.concatenate([h_src, h_tgt, radial, edge_attr], axis=-1)  # (BE2, 2H+2)
        m = _silu(dot(e_in, we1_ref[l]) + b1)
        m = _silu(dot(m, we2_ref[l]) + b2)                      # (BE2, H)

        # ---- coord model: x += masked_segsum_i( coord_diff * coord_mlp(m) ) ----
        c = _silu(dot(m, wc1_ref[l]) + bc1)
        s = dot(c, wc2_ref[l])                                  # (BE2, 1)
        trans = diff * (s * inv_norm)                           # (BE2, D)
        x = x + dot(A_scatT, trans)                             # agg='sum', mask folded in

        # ---- node model (recurrent): h += MLP([h, masked_segsum_i(m)]) ----
        agg = dot(A_scatT, m)                                   # (BN, H)
        n_in = jnp.concatenate([h, agg], axis=-1)               # (BN, 2H)
        o = _silu(dot(n_in, wn1_ref[l]) + bn1)
        h = h + dot(o, wn2_ref[l]) + bn2

    # vel = x_final - x0, then remove per-molecule mean
    vel = x - x0
    for b in range(BATCH):
        blk = vel[b * N_PART:(b + 1) * N_PART]                  # (N, D), sublane-aligned
        vel_ref[b * N_PART:(b + 1) * N_PART] = blk - jnp.mean(blk, axis=0, keepdims=True)
    # TODO(synk): EGNN's embedding_out / returned node features h are unused by
    # this forward (only coordinates feed `vel`), so they are not computed here.


# ---------------------------------------------------------------------------
# Parameters (deterministic synthetic init, weights pre-stacked for fusion)
# ---------------------------------------------------------------------------
def init_params(seed=0):
    keys = iter(jax.random.split(jax.random.PRNGKey(seed), 64))

    def lin(shape, fan_in, scale=None):
        s = scale if scale is not None else float(fan_in) ** -0.5
        return jax.random.normal(next(keys), shape, jnp.float32) * s

    L, H = N_LAYERS, HID
    fin_e = 2 * H + 2            # edge-MLP input: [h_i, h_j, radial, edge_attr]
    b_scale = 0.02
    return dict(
        We=lin((2, H), 2), be=lin((1, H), 1, b_scale),
        We1=lin((L, fin_e, H), fin_e),     # fused [W1s; W1t; w1r; w1e]
        We2=lin((L, H, H), H),
        Wn1=lin((L, 2 * H, H), 2 * H),     # fused [Wn1_h; Wn1_agg]
        Wn2=lin((L, H, H), H),
        Wc1=lin((L, H, H), H),
        Wc2=lin((L, H, 1), H, scale=1e-3),  # xavier gain=0.001 analogue, no bias
        Bias=lin((L, 5, H), 1, b_scale),    # rows: [b1, b2, bn1, bn2, bc1]
    )


# Block-diagonal incidence matrices for the batch-fused all-pairs edge set.
def make_edge_constants():
    e = jnp.arange(BE2)
    b = e // E2
    p = e % E2
    i = p // N_PART
    j = p % N_PART
    row_node = b * N_PART + i
    col_node = b * N_PART + j
    A_row = jax.nn.one_hot(row_node, BN, dtype=jnp.float32)     # (BE2, BN)
    A_col = jax.nn.one_hot(col_node, BN, dtype=jnp.float32)     # (BE2, BN)
    dmask = (i != j).astype(jnp.float32)[:, None]               # (BE2, 1)
    A_diff = A_row - A_col                                      # (BE2, BN)
    A_gather = jnp.concatenate([A_row, A_col], axis=0)          # (2*BE2, BN)
    A_scatT = (A_row * dmask).T                                 # (BN, BE2)
    return A_diff, A_gather, A_scatT


# ---------------------------------------------------------------------------
# Wrapper = EGNN_dynamics_consistency.forward
# ---------------------------------------------------------------------------
def egnn_dynamics_forward(t, xs, params, d=None):
    B = xs.shape[0]
    assert B == BATCH, "constants are built for BATCH"
    x0 = xs.reshape(B * N_PART, N_DIM).astype(jnp.float32)

    # condition_time: h = ones(B, N, 2) * [t, d]
    t_arr = jnp.full((B, 1), t, dtype=jnp.float32)
    d_arr = jnp.zeros_like(t_arr) if d is None else jnp.asarray(d, jnp.float32).reshape(B, 1)
    td = jnp.concatenate([t_arr, d_arr], axis=-1)               # (B, 2)
    h0 = (jnp.ones((B, N_PART, 2), jnp.float32) * td[:, None, :]).reshape(B * N_PART, 2)

    A_diff, A_gather, A_scatT = make_edge_constants()

    args = [h0, x0, A_diff, A_gather, A_scatT,
            params["We"], params["be"],
            params["We1"], params["We2"], params["Wn1"], params["Wn2"],
            params["Wc1"], params["Wc2"], params["Bias"]]

    def _full_spec(a):
        nd = a.ndim
        return pl.BlockSpec(a.shape, lambda i, _n=nd: (0,) * _n)

    vel = pl.pallas_call(
        egnn_dynamics_kernel,
        out_shape=jax.ShapeDtypeStruct((B * N_PART, N_DIM), jnp.float32),
        grid=(1,),                                   # whole batch in one step
        in_specs=[_full_spec(a) for a in args],
        out_specs=pl.BlockSpec((B * N_PART, N_DIM), lambda i: (0, 0)),
        compiler_params=pltpu.CompilerParams(dimension_semantics=("arbitrary",)),
    )(*args)

    return vel.reshape(B, N_PART * N_DIM)


# ---------------------------------------------------------------------------
# Pure-JAX reference (edge-list + segment_sum, mirrors the torch code path)
# ---------------------------------------------------------------------------
def reference_forward(t, xs, params, d=None):
    B = xs.shape[0]
    rows, cols = [], []
    for i in range(N_PART):
        for j in range(i + 1, N_PART):
            rows += [i, j]
            cols += [j, i]
    rows = jnp.array(rows, jnp.int32)
    cols = jnp.array(cols, jnp.int32)
    rows_b = jnp.concatenate([rows + b * N_PART for b in range(B)])
    cols_b = jnp.concatenate([cols + b * N_PART for b in range(B)])

    x = xs.reshape(B * N_PART, N_DIM).astype(jnp.float32)
    x0 = x
    t_arr = jnp.full((B, 1), t, jnp.float32)
    d_arr = jnp.zeros_like(t_arr) if d is None else jnp.asarray(d, jnp.float32).reshape(B, 1)
    td = jnp.concatenate([t_arr, d_arr], axis=-1)
    h = (jnp.ones((B, N_PART, 2), jnp.float32) * td[:, None, :]).reshape(B * N_PART, 2)

    h = h @ params["We"] + params["be"]
    edge_attr = jnp.sum((x[rows_b] - x[cols_b]) ** 2, axis=1, keepdims=True)
    nseg = B * N_PART
    for l in range(N_LAYERS):
        b1, b2, bn1, bn2, bc1 = [params["Bias"][l][k:k + 1] for k in range(5)]
        diff = x[rows_b] - x[cols_b]
        radial = jnp.sum(diff * diff, axis=1, keepdims=True)
        coord_diff = diff / (jnp.sqrt(radial) + 1.0)
        e_in = jnp.concatenate([h[rows_b], h[cols_b], radial, edge_attr], axis=1)
        m = _silu(e_in @ params["We1"][l] + b1)
        m = _silu(m @ params["We2"][l] + b2)
        s = _silu(m @ params["Wc1"][l] + bc1) @ params["Wc2"][l]
        x = x + jax.ops.segment_sum(coord_diff * s, rows_b, num_segments=nseg)
        agg = jax.ops.segment_sum(m, rows_b, num_segments=nseg)
        o = _silu(jnp.concatenate([h, agg], axis=1) @ params["Wn1"][l] + bn1)
        h = h + (o @ params["Wn2"][l] + bn2)

    vel = (x - x0).reshape(B, N_PART, N_DIM)
    vel = vel - jnp.mean(vel, axis=1, keepdims=True)
    return vel.reshape(B, N_PART * N_DIM)


if __name__ == "__main__":
    key = jax.random.PRNGKey(0)
    xs = jax.random.normal(key, (BATCH, N_PART * N_DIM), jnp.float32)
    t = 0.5
    params = init_params(0)

    vel = egnn_dynamics_forward(t, xs, params)
    vel = jax.block_until_ready(vel)
    assert vel.shape == (BATCH, N_PART * N_DIM)

    ref = reference_forward(t, xs, params)
    err = float(jnp.max(jnp.abs(vel - ref)))
    assert err < 1e-3, f"kernel/reference mismatch, max abs err = {err}"
    print("KERNEL_OK")
</pallas_src>

<mosaic_0001>
module attributes {stable_mosaic.version = 11 : i64} {
  func.func @egnn_dynamics_kernel(%arg0: i32, %arg1: memref<16x2xf32, #tpu.memory_space<vmem>>, %arg2: memref<16x3xf32, #tpu.memory_space<vmem>>, %arg3: memref<128x16xf32, #tpu.memory_space<vmem>>, %arg4: memref<256x16xf32, #tpu.memory_space<vmem>>, %arg5: memref<16x128xf32, #tpu.memory_space<vmem>>, %arg6: memref<2x32xf32, #tpu.memory_space<vmem>>, %arg7: memref<1x32xf32, #tpu.memory_space<vmem>>, %arg8: memref<4x66x32xf32, #tpu.memory_space<vmem>>, %arg9: memref<4x32x32xf32, #tpu.memory_space<vmem>>, %arg10: memref<4x64x32xf32, #tpu.memory_space<vmem>>, %arg11: memref<4x32x32xf32, #tpu.memory_space<vmem>>, %arg12: memref<4x32x32xf32, #tpu.memory_space<vmem>>, %arg13: memref<4x32x1xf32, #tpu.memory_space<vmem>>, %arg14: memref<4x5x32xf32, #tpu.memory_space<vmem>>, %arg15: memref<16x3xf32, #tpu.memory_space<vmem>>) attributes {dimension_semantics = [#tpu.dimension_semantics<arbitrary>], iteration_bounds = array<i64: 1>, scalar_prefetch = 0 : i64, scratch_operands = 0 : i64, tpu.core_type = #tpu.core_type<tc>, window_params = [{pipeline_mode = #tpu.pipeline_mode<synchronous>, transform_indices = @transform_0, window_bounds = array<i64: 16, 2>}, {pipeline_mode = #tpu.pipeline_mode<synchronous>, transform_indices = @transform_1, window_bounds = array<i64: 16, 3>}, {pipeline_mode = #tpu.pipeline_mode<synchronous>, transform_indices = @transform_2, window_bounds = array<i64: 128, 16>}, {pipeline_mode = #tpu.pipeline_mode<synchronous>, transform_indices = @transform_3, window_bounds = array<i64: 256, 16>}, {pipeline_mode = #tpu.pipeline_mode<synchronous>, transform_indices = @transform_4, window_bounds = array<i64: 16, 128>}, {pipeline_mode = #tpu.pipeline_mode<synchronous>, transform_indices = @transform_5, window_bounds = array<i64: 2, 32>}, {pipeline_mode = #tpu.pipeline_mode<synchronous>, transform_indices = @transform_6, window_bounds = array<i64: 1, 32>}, {pipeline_mode = #tpu.pipeline_mode<synchronous>, transform_indices = @transform_7, window_bounds = array<i64: 4, 66, 32>}, {pipeline_mode = #tpu.pipeline_mode<synchronous>, transform_indices = @transform_8, window_bounds = array<i64: 4, 32, 32>}, {pipeline_mode = #tpu.pipeline_mode<synchronous>, transform_indices = @transform_9, window_bounds = array<i64: 4, 64, 32>}, {pipeline_mode = #tpu.pipeline_mode<synchronous>, transform_indices = @transform_10, window_bounds = array<i64: 4, 32, 32>}, {pipeline_mode = #tpu.pipeline_mode<synchronous>, transform_indices = @transform_11, window_bounds = array<i64: 4, 32, 32>}, {pipeline_mode = #tpu.pipeline_mode<synchronous>, transform_indices = @transform_12, window_bounds = array<i64: 4, 32, 1>}, {pipeline_mode = #tpu.pipeline_mode<synchronous>, transform_indices = @transform_13, window_bounds = array<i64: 4, 5, 32>}, {pipeline_mode = #tpu.pipeline_mode<synchronous>, transform_indices = @transform_14, window_bounds = array<i64: 16, 3>}]} {
    %c0 = arith.constant 0 : index
    %c0_0 = arith.constant 0 : index
    %0 = vector.load %arg1[%c0, %c0_0] : memref<16x2xf32, #tpu.memory_space<vmem>>, vector<16x2xf32>
    %c0_1 = arith.constant 0 : index
    %c0_2 = arith.constant 0 : index
    %1 = vector.load %arg2[%c0_1, %c0_2] : memref<16x3xf32, #tpu.memory_space<vmem>>, vector<16x3xf32>
    %c0_3 = arith.constant 0 : index
    %c0_4 = arith.constant 0 : index
    %2 = vector.load %arg3[%c0_3, %c0_4] : memref<128x16xf32, #tpu.memory_space<vmem>>, vector<128x16xf32>
    %c0_5 = arith.constant 0 : index
    %c0_6 = arith.constant 0 : index
    %3 = vector.load %arg4[%c0_5, %c0_6] : memref<256x16xf32, #tpu.memory_space<vmem>>, vector<256x16xf32>
    %c0_7 = arith.constant 0 : index
    %c0_8 = arith.constant 0 : index
    %4 = vector.load %arg5[%c0_7, %c0_8] : memref<16x128xf32, #tpu.memory_space<vmem>>, vector<16x128xf32>
    %c0_9 = arith.constant 0 : index
    %c0_10 = arith.constant 0 : index
    %5 = vector.load %arg6[%c0_9, %c0_10] : memref<2x32xf32, #tpu.memory_space<vmem>>, vector<2x32xf32>
    %cst = arith.constant dense<0.000000e+00> : vector<16x32xf32>
    %6 = tpu.matmul %0, %5, %cst {dimension_numbers = #tpu.dot_dimension_numbers<[1], [0], [0], [1], [0, 0, 1, 1], [], []>} : vector<16x2xf32>, vector<2x32xf32>, vector<16x32xf32> -> vector<16x32xf32>
    %c0_11 = arith.constant 0 : index
    %c0_12 = arith.constant 0 : index
    %7 = vector.load %arg7[%c0_11, %c0_12] : memref<1x32xf32, #tpu.memory_space<vmem>>, vector<1x32xf32>
    %8 = vector.broadcast %7 : vector<1x32xf32> to vector<16x32xf32>
    %9 = arith.addf %6, %8 : vector<16x32xf32>
    %cst_13 = arith.constant dense<0.000000e+00> : vector<128x3xf32>
    %10 = tpu.matmul %2, %1, %cst_13 {dimension_numbers = #tpu.dot_dimension_numbers<[1], [0], [0], [1], [0, 0, 1, 1], [], []>} : vector<128x16xf32>, vector<16x3xf32>, vector<128x3xf32> -> vector<128x3xf32>
    %11 = arith.mulf %10, %10 : vector<128x3xf32>
    %cst_14 = arith.constant dense<0.000000e+00> : vector<128xf32>
    %12 = vector.multi_reduction <add>, %11, %cst_14 [1] : vector<128x3xf32> to vector<128xf32>
    %13 = vector.shape_cast %12 : vector<128xf32> to vector<128x1xf32>
    %c0_15 = arith.constant 0 : index
    %c0_16 = arith.constant 0 : index
    %c0_17 = arith.constant 0 : index
    %14 = vector.load %arg14[%c0_15, %c0_16, %c0_17] : memref<4x5x32xf32, #tpu.memory_space<vmem>>, vector<1x5x32xf32>
    %15 = vector.shape_cast %14 : vector<1x5x32xf32> to vector<5x32xf32>
    %16 = vector.extract_strided_slice %15 {offsets = [0, 0], sizes = [1, 32], strides = [1, 1]} : vector<5x32xf32> to vector<1x32xf32>
    %17 = vector.extract_strided_slice %15 {offsets = [1, 0], sizes = [1, 32], strides = [1, 1]} : vector<5x32xf32> to vector<1x32xf32>
    %18 = vector.extract_strided_slice %15 {offsets = [2, 0], sizes = [1, 32], strides = [1, 1]} : vector<5x32xf32> to vector<1x32xf32>
    %19 = vector.extract_strided_slice %15 {offsets = [3, 0], sizes = [1, 32], strides = [1, 1]} : vector<5x32xf32> to vector<1x32xf32>
    %20 = vector.extract_strided_slice %15 {offsets = [4, 0], sizes = [1, 32], strides = [1, 1]} : vector<5x32xf32> to vector<1x32xf32>
    %cst_18 = arith.constant dense<0.000000e+00> : vector<128x3xf32>
    %21 = tpu.matmul %2, %1, %cst_18 {dimension_numbers = #tpu.dot_dimension_numbers<[1], [0], [0], [1], [0, 0, 1, 1], [], []>} : vector<128x16xf32>, vector<16x3xf32>, vector<128x3xf32> -> vector<128x3xf32>
    %22 = arith.mulf %21, %21 : vector<128x3xf32>
    %cst_19 = arith.constant dense<0.000000e+00> : vector<128xf32>
    %23 = vector.multi_reduction <add>, %22, %cst_19 [1] : vector<128x3xf32> to vector<128xf32>
    %24 = vector.shape_cast %23 : vector<128xf32> to vector<128x1xf32>
    %25 = math.sqrt %24 : vector<128x1xf32>
    %cst_20 = arith.constant 1.000000e+00 : f32
    %26 = vector.broadcast %cst_20 : f32 to vector<128x1xf32>
    %27 = arith.addf %25, %26 : vector<128x1xf32>
    %28 = tpu.reciprocal %27 {approx = true} : vector<128x1xf32> -> vector<128x1xf32>
    %cst_21 = arith.constant dense<0.000000e+00> : vector<256x32xf32>
    %29 = tpu.matmul %3, %9, %cst_21 {dimension_numbers = #tpu.dot_dimension_numbers<[1], [0], [0], [1], [0, 0, 1, 1], [], []>} : vector<256x16xf32>, vector<16x32xf32>, vector<256x32xf32> -> vector<256x32xf32>
    %30 = vector.extract_strided_slice %29 {offsets = [0, 0], sizes = [128, 32], strides = [1, 1]} : vector<256x32xf32> to vector<128x32xf32>
    %31 = vector.extract_strided_slice %29 {offsets = [128, 0], sizes = [128, 32], strides = [1, 1]} : vector<256x32xf32> to vector<128x32xf32>
    %32 = tpu.concatenate %30, %31, %24, %13 in 1 : vector<128x32xf32>, vector<128x32xf32>, vector<128x1xf32>, vector<128x1xf32> -> vector<128x66xf32>
    %c0_22 = arith.constant 0 : index
    %c0_23 = arith.constant 0 : index
    %c0_24 = arith.constant 0 : index
    %33 = vector.load %arg8[%c0_22, %c0_23, %c0_24] : memref<4x66x32xf32, #tpu.memory_space<vmem>>, vector<1x66x32xf32>
    %34 = vector.shape_cast %33 : vector<1x66x32xf32> to vector<66x32xf32>
    %cst_25 = arith.constant dense<0.000000e+00> : vector<128x32xf32>
    %35 = tpu.matmul %32, %34, %cst_25 {dimension_numbers = #tpu.dot_dimension_numbers<[1], [0], [0], [1], [0, 0, 1, 1], [], []>} : vector<128x66xf32>, vector<66x32xf32>, vector<128x32xf32> -> vector<128x32xf32>
    %36 = vector.broadcast %16 : vector<1x32xf32> to vector<128x32xf32>
    %37 = arith.addf %35, %36 : vector<128x32xf32>
    %38 = arith.negf %37 : vector<128x32xf32>
    %39 = math.exp %38 : vector<128x32xf32>
    %cst_26 = arith.constant 1.000000e+00 : f32
    %40 = vector.broadcast %cst_26 : f32 to vector<128x32xf32>
    %41 = arith.addf %40, %39 : vector<128x32xf32>
    %42 = arith.divf %40, %41 : vector<128x32xf32>
    %43 = arith.mulf %37, %42 : vector<128x32xf32>
    %c0_27 = arith.constant 0 : index
    %c0_28 = arith.constant 0 : index
    %c0_29 = arith.constant 0 : index
    %44 = vector.load %arg9[%c0_27, %c0_28, %c0_29] : memref<4x32x32xf32, #tpu.memory_space<vmem>>, vector<1x32x32xf32>
    %45 = vector.shape_cast %44 : vector<1x32x32xf32> to vector<32x32xf32>
    %cst_30 = arith.constant dense<0.000000e+00> : vector<128x32xf32>
    %46 = tpu.matmul %43, %45, %cst_30 {dimension_numbers = #tpu.dot_dimension_numbers<[1], [0], [0], [1], [0, 0, 1, 1], [], []>} : vector<128x32xf32>, vector<32x32xf32>, vector<128x32xf32> -> vector<128x32xf32>
    %47 = vector.broadcast %17 : vector<1x32xf32> to vector<128x32xf32>
    %48 = arith.addf %46, %47 : vector<128x32xf32>
    %49 = arith.negf %48 : vector<128x32xf32>
    %50 = math.exp %49 : vector<128x32xf32>
    %cst_31 = arith.constant 1.000000e+00 : f32
    %51 = vector.broadcast %cst_31 : f32 to vector<128x32xf32>
    %52 = arith.addf %51, %50 : vector<128x32xf32>
    %53 = arith.divf %51, %52 : vector<128x32xf32>
    %54 = arith.mulf %48, %53 : vector<128x32xf32>
    %c0_32 = arith.constant 0 : index
    %c0_33 = arith.constant 0 : index
    %c0_34 = arith.constant 0 : index
    %55 = vector.load %arg12[%c0_32, %c0_33, %c0_34] : memref<4x32x32xf32, #tpu.memory_space<vmem>>, vector<1x32x32xf32>
    %56 = vector.shape_cast %55 : vector<1x32x32xf32> to vector<32x32xf32>
    %cst_35 = arith.constant dense<0.000000e+00> : vector<128x32xf32>
    %57 = tpu.matmul %54, %56, %cst_35 {dimension_numbers = #tpu.dot_dimension_numbers<[1], [0], [0], [1], [0, 0, 1, 1], [], []>} : vector<128x32xf32>, vector<32x32xf32>, vector<128x32xf32> -> vector<128x32xf32>
    %58 = vector.broadcast %20 : vector<1x32xf32> to vector<128x32xf32>
    %59 = arith.addf %57, %58 : vector<128x32xf32>
    %60 = arith.negf %59 : vector<128x32xf32>
    %61 = math.exp %60 : vector<128x32xf32>
    %cst_36 = arith.constant 1.000000e+00 : f32
    %62 = vector.broadcast %cst_36 : f32 to vector<128x32xf32>
    %63 = arith.addf %62, %61 : vector<128x32xf32>
    %64 = arith.divf %62, %63 : vector<128x32xf32>
    %65 = arith.mulf %59, %64 : vector<128x32xf32>
    %c0_37 = arith.constant 0 : index
    %c0_38 = arith.constant 0 : index
    %c0_39 = arith.constant 0 : index
    %66 = vector.load %arg13[%c0_37, %c0_38, %c0_39] : memref<4x32x1xf32, #tpu.memory_space<vmem>>, vector<1x32x1xf32>
    %67 = vector.shape_cast %66 : vector<1x32x1xf32> to vector<32x1xf32>
    %cst_40 = arith.constant dense<0.000000e+00> : vector<128x1xf32>
    %68 = tpu.matmul %65, %67, %cst_40 {dimension_numbers = #tpu.dot_dimension_numbers<[1], [0], [0], [1], [0, 0, 1, 1], [], []>} : vector<128x32xf32>, vector<32x1xf32>, vector<128x1xf32> -> vector<128x1xf32>
    %69 = arith.mulf %68, %28 : vector<128x1xf32>
    %70 = vector.broadcast %69 : vector<128x1xf32> to vector<128x3xf32>
    %71 = arith.mulf %21, %70 : vector<128x3xf32>
    %cst_41 = arith.constant dense<0.000000e+00> : vector<16x3xf32>
    %72 = tpu.matmul %4, %71, %cst_41 {dimension_numbers = #tpu.dot_dimension_numbers<[1], [0], [0], [1], [0, 0, 1, 1], [], []>} : vector<16x128xf32>, vector<128x3xf32>, vector<16x3xf32> -> vector<16x3xf32>
    %73 = arith.addf %1, %72 : vector<16x3xf32>
    %cst_42 = arith.constant dense<0.000000e+00> : vector<16x32xf32>
    %74 = tpu.matmul %4, %54, %cst_42 {dimension_numbers = #tpu.dot_dimension_numbers<[1], [0], [0], [1], [0, 0, 1, 1], [], []>} : vector<16x128xf32>, vector<128x32xf32>, vector<16x32xf32> -> vector<16x32xf32>
    %75 = tpu.concatenate %9, %74 in 1 : vector<16x32xf32>, vector<16x32xf32> -> vector<16x64xf32>
    %c0_43 = arith.constant 0 : index
    %c0_44 = arith.constant 0 : index
    %c0_45 = arith.constant 0 : index
    %76 = vector.load %arg10[%c0_43, %c0_44, %c0_45] : memref<4x64x32xf32, #tpu.memory_space<vmem>>, vector<1x64x32xf32>
    %77 = vector.shape_cast %76 : vector<1x64x32xf32> to vector<64x32xf32>
    %cst_46 = arith.constant dense<0.000000e+00> : vector<16x32xf32>
    %78 = tpu.matmul %75, %77, %cst_46 {dimension_numbers = #tpu.dot_dimension_numbers<[1], [0], [0], [1], [0, 0, 1, 1], [], []>} : vector<16x64xf32>, vector<64x32xf32>, vector<16x32xf32> -> vector<16x32xf32>
    %79 = vector.broadcast %18 : vector<1x32xf32> to vector<16x32xf32>
    %80 = arith.addf %78, %79 : vector<16x32xf32>
    %81 = arith.negf %80 : vector<16x32xf32>
    %82 = math.exp %81 : vector<16x32xf32>
    %cst_47 = arith.constant 1.000000e+00 : f32
    %83 = vector.broadcast %cst_47 : f32 to vector<16x32xf32>
    %84 = arith.addf %83, %82 : vector<16x32xf32>
    %85 = arith.divf %83, %84 : vector<16x32xf32>
    %86 = arith.mulf %80, %85 : vector<16x32xf32>
    %c0_48 = arith.constant 0 : index
    %c0_49 = arith.constant 0 : index
    %c0_50 = arith.constant 0 : index
    %87 = vector.load %arg11[%c0_48, %c0_49, %c0_50] : memref<4x32x32xf32, #tpu.memory_space<vmem>>, vector<1x32x32xf32>
    %88 = vector.shape_cast %87 : vector<1x32x32xf32> to vector<32x32xf32>
    %cst_51 = arith.constant dense<0.000000e+00> : vector<16x32xf32>
    %89 = tpu.matmul %86, %88, %cst_51 {dimension_numbers = #tpu.dot_dimension_numbers<[1], [0], [0], [1], [0, 0, 1, 1], [], []>} : vector<16x32xf32>, vector<32x32xf32>, vector<16x32xf32> -> vector<16x32xf32>
    %90 = arith.addf %9, %89 : vector<16x32xf32>
    %91 = vector.broadcast %19 : vector<1x32xf32> to vector<16x32xf32>
    %92 = arith.addf %90, %91 : vector<16x32xf32>
    %c1 = arith.constant 1 : index
    %c0_52 = arith.constant 0 : index
    %c0_53 = arith.constant 0 : index
    %93 = vector.load %arg14[%c1, %c0_52, %c0_53] : memref<4x5x32xf32, #tpu.memory_space<vmem>>, vector<1x5x32xf32>
    %94 = vector.shape_cast %93 : vector<1x5x32xf32> to vector<5x32xf32>
    %95 = vector.extract_strided_slice %94 {offsets = [0, 0], sizes = [1, 32], strides = [1, 1]} : vector<5x32xf32> to vector<1x32xf32>
    %96 = vector.extract_strided_slice %94 {offsets = [1, 0], sizes = [1, 32], strides = [1, 1]} : vector<5x32xf32> to vector<1x32xf32>
    %97 = vector.extract_strided_slice %94 {offsets = [2, 0], sizes = [1, 32], strides = [1, 1]} : vector<5x32xf32> to vector<1x32xf32>
    %98 = vector.extract_strided_slice %94 {offsets = [3, 0], sizes = [1, 32], strides = [1, 1]} : vector<5x32xf32> to vector<1x32xf32>
    %99 = vector.extract_strided_slice %94 {offsets = [4, 0], sizes = [1, 32], strides = [1, 1]} : vector<5x32xf32> to vector<1x32xf32>
    %cst_54 = arith.constant dense<0.000000e+00> : vector<128x3xf32>
    %100 = tpu.matmul %2, %73, %cst_54 {dimension_numbers = #tpu.dot_dimension_numbers<[1], [0], [0], [1], [0, 0, 1, 1], [], []>} : vector<128x16xf32>, vector<16x3xf32>, vector<128x3xf32> -> vector<128x3xf32>
    %101 = arith.mulf %100, %100 : vector<128x3xf32>
    %cst_55 = arith.constant dense<0.000000e+00> : vector<128xf32>
    %102 = vector.multi_reduction <add>, %101, %cst_55 [1] : vector<128x3xf32> to vector<128xf32>
    %103 = vector.shape_cast %102 : vector<128xf32> to vector<128x1xf32>
    %104 = math.sqrt %103 : vector<128x1xf32>
    %cst_56 = arith.constant 1.000000e+00 : f32
    %105 = vector.broadcast %cst_56 : f32 to vector<128x1xf32>
    %106 = arith.addf %104, %105 : vector<128x1xf32>
    %107 = tpu.reciprocal %106 {approx = true} : vector<128x1xf32> -> vector<128x1xf32>
    %cst_57 = arith.constant dense<0.000000e+00> : vector<256x32xf32>
    %108 = tpu.matmul %3, %92, %cst_57 {dimension_numbers = #tpu.dot_dimension_numbers<[1], [0], [0], [1], [0, 0, 1, 1], [], []>} : vector<256x16xf32>, vector<16x32xf32>, vector<256x32xf32> -> vector<256x32xf32>
    %109 = vector.extract_strided_slice %108 {offsets = [0, 0], sizes = [128, 32], strides = [1, 1]} : vector<256x32xf32> to vector<128x32xf32>
    %110 = vector.extract_strided_slice %108 {offsets = [128, 0], sizes = [128, 32], strides = [1, 1]} : vector<256x32xf32> to vector<128x32xf32>
    %111 = tpu.concatenate %109, %110, %103, %13 in 1 : vector<128x32xf32>, vector<128x32xf32>, vector<128x1xf32>, vector<128x1xf32> -> vector<128x66xf32>
    %c1_58 = arith.constant 1 : index
    %c0_59 = arith.constant 0 : index
    %c0_60 = arith.constant 0 : index
    %112 = vector.load %arg8[%c1_58, %c0_59, %c0_60] : memref<4x66x32xf32, #tpu.memory_space<vmem>>, vector<1x66x32xf32>
    %113 = vector.shape_cast %112 : vector<1x66x32xf32> to vector<66x32xf32>
    %cst_61 = arith.constant dense<0.000000e+00> : vector<128x32xf32>
    %114 = tpu.matmul %111, %113, %cst_61 {dimension_numbers = #tpu.dot_dimension_numbers<[1], [0], [0], [1], [0, 0, 1, 1], [], []>} : vector<128x66xf32>, vector<66x32xf32>, vector<128x32xf32> -> vector<128x32xf32>
    %115 = vector.broadcast %95 : vector<1x32xf32> to vector<128x32xf32>
    %116 = arith.addf %114, %115 : vector<128x32xf32>
    %117 = arith.negf %116 : vector<128x32xf32>
    %118 = math.exp %117 : vector<128x32xf32>
    %cst_62 = arith.constant 1.000000e+00 : f32
    %119 = vector.broadcast %cst_62 : f32 to vector<128x32xf32>
    %120 = arith.addf %119, %118 : vector<128x32xf32>
    %121 = arith.divf %119, %120 : vector<128x32xf32>
    %122 = arith.mulf %116, %121 : vector<128x32xf32>
    %c1_63 = arith.constant 1 : index
    %c0_64 = arith.constant 0 : index
    %c0_65 = arith.constant 0 : index
    %123 = vector.load %arg9[%c1_63, %c0_64, %c0_65] : memref<4x32x32xf32, #tpu.memory_space<vmem>>, vector<1x32x32xf32>
    %124 = vector.shape_cast %123 : vector<1x32x32xf32> to vector<32x32xf32>
    %cst_66 = arith.constant dense<0.000000e+00> : vector<128x32xf32>
    %125 = tpu.matmul %122, %124, %cst_66 {dimension_numbers = #tpu.dot_dimension_numbers<[1], [0], [0], [1], [0, 0, 1, 1], [], []>} : vector<128x32xf32>, vector<32x32xf32>, vector<128x32xf32> -> vector<128x32xf32>
    %126 = vector.broadcast %96 : vector<1x32xf32> to vector<128x32xf32>
    %127 = arith.addf %125, %126 : vector<128x32xf32>
    %128 = arith.negf %127 : vector<128x32xf32>
    %129 = math.exp %128 : vector<128x32xf32>
    %cst_67 = arith.constant 1.000000e+00 : f32
    %130 = vector.broadcast %cst_67 : f32 to vector<128x32xf32>
    %131 = arith.addf %130, %129 : vector<128x32xf32>
    %132 = arith.divf %130, %131 : vector<128x32xf32>
    %133 = arith.mulf %127, %132 : vector<128x32xf32>
    %c1_68 = arith.constant 1 : index
    %c0_69 = arith.constant 0 : index
    %c0_70 = arith.constant 0 : index
    %134 = vector.load %arg12[%c1_68, %c0_69, %c0_70] : memref<4x32x32xf32, #tpu.memory_space<vmem>>, vector<1x32x32xf32>
    %135 = vector.shape_cast %134 : vector<1x32x32xf32> to vector<32x32xf32>
    %cst_71 = arith.constant dense<0.000000e+00> : vector<128x32xf32>
    %136 = tpu.matmul %133, %135, %cst_71 {dimension_numbers = #tpu.dot_dimension_numbers<[1], [0], [0], [1], [0, 0, 1, 1], [], []>} : vector<128x32xf32>, vector<32x32xf32>, vector<128x32xf32> -> vector<128x32xf32>
    %137 = vector.broadcast %99 : vector<1x32xf32> to vector<128x32xf32>
    %138 = arith.addf %136, %137 : vector<128x32xf32>
    %139 = arith.negf %138 : vector<128x32xf32>
    %140 = math.exp %139 : vector<128x32xf32>
    %cst_72 = arith.constant 1.000000e+00 : f32
    %141 = vector.broadcast %cst_72 : f32 to vector<128x32xf32>
    %142 = arith.addf %141, %140 : vector<128x32xf32>
    %143 = arith.divf %141, %142 : vector<128x32xf32>
    %144 = arith.mulf %138, %143 : vector<128x32xf32>
    %c1_73 = arith.constant 1 : index
    %c0_74 = arith.constant 0 : index
    %c0_75 = arith.constant 0 : index
    %145 = vector.load %arg13[%c1_73, %c0_74, %c0_75] : memref<4x32x1xf32, #tpu.memory_space<vmem>>, vector<1x32x1xf32>
    %146 = vector.shape_cast %145 : vector<1x32x1xf32> to vector<32x1xf32>
    %cst_76 = arith.constant dense<0.000000e+00> : vector<128x1xf32>
    %147 = tpu.matmul %144, %146, %cst_76 {dimension_numbers = #tpu.dot_dimension_numbers<[1], [0], [0], [1], [0, 0, 1, 1], [], []>} : vector<128x32xf32>, vector<32x1xf32>, vector<128x1xf32> -> vector<128x1xf32>
    %148 = arith.mulf %147, %107 : vector<128x1xf32>
    %149 = vector.broadcast %148 : vector<128x1xf32> to vector<128x3xf32>
    %150 = arith.mulf %100, %149 : vector<128x3xf32>
    %cst_77 = arith.constant dense<0.000000e+00> : vector<16x3xf32>
    %151 = tpu.matmul %4, %150, %cst_77 {dimension_numbers = #tpu.dot_dimension_numbers<[1], [0], [0], [1], [0, 0, 1, 1], [], []>} : vector<16x128xf32>, vector<128x3xf32>, vector<16x3xf32> -> vector<16x3xf32>
    %152 = arith.addf %73, %151 : vector<16x3xf32>
    %cst_78 = arith.constant dense<0.000000e+00> : vector<16x32xf32>
    %153 = tpu.matmul %4, %133, %cst_78 {dimension_numbers = #tpu.dot_dimension_numbers<[1], [0], [0], [1], [0, 0, 1, 1], [], []>} : vector<16x128xf32>, vector<128x32xf32>, vector<16x32xf32> -> vector<16x32xf32>
    %154 = tpu.concatenate %92, %153 in 1 : vector<16x32xf32>, vector<16x32xf32> -> vector<16x64xf32>
    %c1_79 = arith.constant 1 : index
    %c0_80 = arith.constant 0 : index
    %c0_81 = arith.constant 0 : index
    %155 = vector.load %arg10[%c1_79, %c0_80, %c0_81] : memref<4x64x32xf32, #tpu.memory_space<vmem>>, vector<1x64x32xf32>
    %156 = vector.shape_cast %155 : vector<1x64x32xf32> to vector<64x32xf32>
    %cst_82 = arith.constant dense<0.000000e+00> : vector<16x32xf32>
    %157 = tpu.matmul %154, %156, %cst_82 {dimension_numbers = #tpu.dot_dimension_numbers<[1], [0], [0], [1], [0, 0, 1, 1], [], []>} : vector<16x64xf32>, vector<64x32xf32>, vector<16x32xf32> -> vector<16x32xf32>
    %158 = vector.broadcast %97 : vector<1x32xf32> to vector<16x32xf32>
    %159 = arith.addf %157, %158 : vector<16x32xf32>
    %160 = arith.negf %159 : vector<16x32xf32>
    %161 = math.exp %160 : vector<16x32xf32>
    %cst_83 = arith.constant 1.000000e+00 : f32
    %162 = vector.broadcast %cst_83 : f32 to vector<16x32xf32>
    %163 = arith.addf %162, %161 : vector<16x32xf32>
    %164 = arith.divf %162, %163 : vector<16x32xf32>
    %165 = arith.mulf %159, %164 : vector<16x32xf32>
    %c1_84 = arith.constant 1 : index
    %c0_85 = arith.constant 0 : index
    %c0_86 = arith.constant 0 : index
    %166 = vector.load %arg11[%c1_84, %c0_85, %c0_86] : memref<4x32x32xf32, #tpu.memory_space<vmem>>, vector<1x32x32xf32>
    %167 = vector.shape_cast %166 : vector<1x32x32xf32> to vector<32x32xf32>
    %cst_87 = arith.constant dense<0.000000e+00> : vector<16x32xf32>
    %168 = tpu.matmul %165, %167, %cst_87 {dimension_numbers = #tpu.dot_dimension_numbers<[1], [0], [0], [1], [0, 0, 1, 1], [], []>} : vector<16x32xf32>, vector<32x32xf32>, vector<16x32xf32> -> vector<16x32xf32>
    %169 = arith.addf %92, %168 : vector<16x32xf32>
    %170 = vector.broadcast %98 : vector<1x32xf32> to vector<16x32xf32>
    %171 = arith.addf %169, %170 : vector<16x32xf32>
    %c2 = arith.constant 2 : index
    %c0_88 = arith.constant 0 : index
    %c0_89 = arith.constant 0 : index
    %172 = vector.load %arg14[%c2, %c0_88, %c0_89] : memref<4x5x32xf32, #tpu.memory_space<vmem>>, vector<1x5x32xf32>
    %173 = vector.shape_cast %172 : vector<1x5x32xf32> to vector<5x32xf32>
    %174 = vector.extract_strided_slice %173 {offsets = [0, 0], sizes = [1, 32], strides = [1, 1]} : vector<5x32xf32> to vector<1x32xf32>
    %175 = vector.extract_strided_slice %173 {offsets = [1, 0], sizes = [1, 32], strides = [1, 1]} : vector<5x32xf32> to vector<1x32xf32>
    %176 = vector.extract_strided_slice %173 {offsets = [2, 0], sizes = [1, 32], strides = [1, 1]} : vector<5x32xf32> to vector<1x32xf32>
    %177 = vector.extract_strided_slice %173 {offsets = [3, 0], sizes = [1, 32], strides = [1, 1]} : vector<5x32xf32> to vector<1x32xf32>
    %178 = vector.extract_strided_slice %173 {offsets = [4, 0], sizes = [1, 32], strides = [1, 1]} : vector<5x32xf32> to vector<1x32xf32>
    %cst_90 = arith.constant dense<0.000000e+00> : vector<128x3xf32>
    %179 = tpu.matmul %2, %152, %cst_90 {dimension_numbers = #tpu.dot_dimension_numbers<[1], [0], [0], [1], [0, 0, 1, 1], [], []>} : vector<128x16xf32>, vector<16x3xf32>, vector<128x3xf32> -> vector<128x3xf32>
    %180 = arith.mulf %179, %179 : vector<128x3xf32>
    %cst_91 = arith.constant dense<0.000000e+00> : vector<128xf32>
    %181 = vector.multi_reduction <add>, %180, %cst_91 [1] : vector<128x3xf32> to vector<128xf32>
    %182 = vector.shape_cast %181 : vector<128xf32> to vector<128x1xf32>
    %183 = math.sqrt %182 : vector<128x1xf32>
    %cst_92 = arith.constant 1.000000e+00 : f32
    %184 = vector.broadcast %cst_92 : f32 to vector<128x1xf32>
    %185 = arith.addf %183, %184 : vector<128x1xf32>
    %186 = tpu.reciprocal %185 {approx = true} : vector<128x1xf32> -> vector<128x1xf32>
    %cst_93 = arith.constant dense<0.000000e+00> : vector<256x32xf32>
    %187 = tpu.matmul %3, %171, %cst_93 {dimension_numbers = #tpu.dot_dimension_numbers<[1], [0], [0], [1], [0, 0, 1, 1], [], []>} : vector<256x16xf32>, vector<16x32xf32>, vector<256x32xf32> -> vector<256x32xf32>
    %188 = vector.extract_strided_slice %187 {offsets = [0, 0], sizes = [128, 32], strides = [1, 1]} : vector<256x32xf32> to vector<128x32xf32>
    %189 = vector.extract_strided_slice %187 {offsets = [128, 0], sizes = [128, 32], strides = [1, 1]} : vector<256x32xf32> to vector<128x32xf32>
    %190 = tpu.concatenate %188, %189, %182, %13 in 1 : vector<128x32xf32>, vector<128x32xf32>, vector<128x1xf32>, vector<128x1xf32> -> vector<128x66xf32>
    %c2_94 = arith.constant 2 : index
    %c0_95 = arith.constant 0 : index
    %c0_96 = arith.constant 0 : index
    %191 = vector.load %arg8[%c2_94, %c0_95, %c0_96] : memref<4x66x32xf32, #tpu.memory_space<vmem>>, vector<1x66x32xf32>
    %192 = vector.shape_cast %191 : vector<1x66x32xf32> to vector<66x32xf32>
    %cst_97 = arith.constant dense<0.000000e+00> : vector<128x32xf32>
    %193 = tpu.matmul %190, %192, %cst_97 {dimension_numbers = #tpu.dot_dimension_numbers<[1], [0], [0], [1], [0, 0, 1, 1], [], []>} : vector<128x66xf32>, vector<66x32xf32>, vector<128x32xf32> -> vector<128x32xf32>
    %194 = vector.broadcast %174 : vector<1x32xf32> to vector<128x32xf32>
    %195 = arith.addf %193, %194 : vector<128x32xf32>
    %196 = arith.negf %195 : vector<128x32xf32>
    %197 = math.exp %196 : vector<128x32xf32>
    %cst_98 = arith.constant 1.000000e+00 : f32
    %198 = vector.broadcast %cst_98 : f32 to vector<128x32xf32>
    %199 = arith.addf %198, %197 : vector<128x32xf32>
    %200 = arith.divf %198, %199 : vector<128x32xf32>
    %201 = arith.mulf %195, %200 : vector<128x32xf32>
    %c2_99 = arith.constant 2 : index
    %c0_100 = arith.constant 0 : index
    %c0_101 = arith.constant 0 : index
    %202 = vector.load %arg9[%c2_99, %c0_100, %c0_101] : memref<4x32x32xf32, #tpu.memory_space<vmem>>, vector<1x32x32xf32>
    %203 = vector.shape_cast %202 : vector<1x32x32xf32> to vector<32x32xf32>
    %cst_102 = arith.constant dense<0.000000e+00> : vector<128x32xf32>
    %204 = tpu.matmul %201, %203, %cst_102 {dimension_numbers = #tpu.dot_dimension_numbers<[1], [0], [0], [1], [0, 0, 1, 1], [], []>} : vector<128x32xf32>, vector<32x32xf32>, vector<128x32xf32> -> vector<128x32xf32>
    %205 = vector.broadcast %175 : vector<1x32xf32> to vector<128x32xf32>
    %206 = arith.addf %204, %205 : vector<128x32xf32>
    %207 = arith.negf %206 : vector<128x32xf32>
    %208 = math.exp %207 : vector<128x32xf32>
    %cst_103 = arith.constant 1.000000e+00 : f32
    %209 = vector.broadcast %cst_103 : f32 to vector<128x32xf32>
    %210 = arith.addf %209, %208 : vector<128x32xf32>
    %211 = arith.divf %209, %210 : vector<128x32xf32>
    %212 = arith.mulf %206, %211 : vector<128x32xf32>
    %c2_104 = arith.constant 2 : index
    %c0_105 = arith.constant 0 : index
    %c0_106 = arith.constant 0 : index
    %213 = vector.load %arg12[%c2_104, %c0_105, %c0_106] : memref<4x32x32xf32, #tpu.memory_space<vmem>>, vector<1x32x32xf32>
    %214 = vector.shape_cast %213 : vector<1x32x32xf32> to vector<32x32xf32>
    %cst_107 = arith.constant dense<0.000000e+00> : vector<128x32xf32>
    %215 = tpu.matmul %212, %214, %cst_107 {dimension_numbers = #tpu.dot_dimension_numbers<[1], [0], [0], [1], [0, 0, 1, 1], [], []>} : vector<128x32xf32>, vector<32x32xf32>, vector<128x32xf32> -> vector<128x32xf32>
    %216 = vector.broadcast %178 : vector<1x32xf32> to vector<128x32xf32>
    %217 = arith.addf %215, %216 : vector<128x32xf32>
    %218 = arith.negf %217 : vector<128x32xf32>
    %219 = math.exp %218 : vector<128x32xf32>
    %cst_108 = arith.constant 1.000000e+00 : f32
    %220 = vector.broadcast %cst_108 : f32 to vector<128x32xf32>
    %221 = arith.addf %220, %219 : vector<128x32xf32>
    %222 = arith.divf %220, %221 : vector<128x32xf32>
    %223 = arith.mulf %217, %222 : vector<128x32xf32>
    %c2_109 = arith.constant 2 : index
    %c0_110 = arith.constant 0 : index
    %c0_111 = arith.constant 0 : index
    %224 = vector.load %arg13[%c2_109, %c0_110, %c0_111] : memref<4x32x1xf32, #tpu.memory_space<vmem>>, vector<1x32x1xf32>
    %225 = vector.shape_cast %224 : vector<1x32x1xf32> to vector<32x1xf32>
    %cst_112 = arith.constant dense<0.000000e+00> : vector<128x1xf32>
    %226 = tpu.matmul %223, %225, %cst_112 {dimension_numbers = #tpu.dot_dimension_numbers<[1], [0], [0], [1], [0, 0, 1, 1], [], []>} : vector<128x32xf32>, vector<32x1xf32>, vector<128x1xf32> -> vector<128x1xf32>
    %227 = arith.mulf %226, %186 : vector<128x1xf32>
    %228 = vector.broadcast %227 : vector<128x1xf32> to vector<128x3xf32>
    %229 = arith.mulf %179, %228 : vector<128x3xf32>
    %cst_113 = arith.constant dense<0.000000e+00> : vector<16x3xf32>
    %230 = tpu.matmul %4, %229, %cst_113 {dimension_numbers = #tpu.dot_dimension_numbers<[1], [0], [0], [1], [0, 0, 1, 1], [], []>} : vector<16x128xf32>, vector<128x3xf32>, vector<16x3xf32> -> vector<16x3xf32>
    %231 = arith.addf %152, %230 : vector<16x3xf32>
    %cst_114 = arith.constant dense<0.000000e+00> : vector<16x32xf32>
    %232 = tpu.matmul %4, %212, %cst_114 {dimension_numbers = #tpu.dot_dimension_numbers<[1], [0], [0], [1], [0, 0, 1, 1], [], []>} : vector<16x128xf32>, vector<128x32xf32>, vector<16x32xf32> -> vector<16x32xf32>
    %233 = tpu.concatenate %171, %232 in 1 : vector<16x32xf32>, vector<16x32xf32> -> vector<16x64xf32>
    %c2_115 = arith.constant 2 : index
    %c0_116 = arith.constant 0 : index
    %c0_117 = arith.constant 0 : index
    %234 = vector.load %arg10[%c2_115, %c0_116, %c0_117] : memref<4x64x32xf32, #tpu.memory_space<vmem>>, vector<1x64x32xf32>
    %235 = vector.shape_cast %234 : vector<1x64x32xf32> to vector<64x32xf32>
    %cst_118 = arith.constant dense<0.000000e+00> : vector<16x32xf32>
    %236 = tpu.matmul %233, %235, %cst_118 {dimension_numbers = #tpu.dot_dimension_numbers<[1], [0], [0], [1], [0, 0, 1, 1], [], []>} : vector<16x64xf32>, vector<64x32xf32>, vector<16x32xf32> -> vector<16x32xf32>
    %237 = vector.broadcast %176 : vector<1x32xf32> to vector<16x32xf32>
    %238 = arith.addf %236, %237 : vector<16x32xf32>
    %239 = arith.negf %238 : vector<16x32xf32>
    %240 = math.exp %239 : vector<16x32xf32>
    %cst_119 = arith.constant 1.000000e+00 : f32
    %241 = vector.broadcast %cst_119 : f32 to vector<16x32xf32>
    %242 = arith.addf %241, %240 : vector<16x32xf32>
    %243 = arith.divf %241, %242 : vector<16x32xf32>
    %244 = arith.mulf %238, %243 : vector<16x32xf32>
    %c2_120 = arith.constant 2 : index
    %c0_121 = arith.constant 0 : index
    %c0_122 = arith.constant 0 : index
    %245 = vector.load %arg11[%c2_120, %c0_121, %c0_122] : memref<4x32x32xf32, #tpu.memory_space<vmem>>, vector<1x32x32xf32>
    %246 = vector.shape_cast %245 : vector<1x32x32xf32> to vector<32x32xf32>
    %cst_123 = arith.constant dense<0.000000e+00> : vector<16x32xf32>
    %247 = tpu.matmul %244, %246, %cst_123 {dimension_numbers = #tpu.dot_dimension_numbers<[1], [0], [0], [1], [0, 0, 1, 1], [], []>} : vector<16x32xf32>, vector<32x32xf32>, vector<16x32xf32> -> vector<16x32xf32>
    %248 = arith.addf %171, %247 : vector<16x32xf32>
    %249 = vector.broadcast %177 : vector<1x32xf32> to vector<16x32xf32>
    %250 = arith.addf %248, %249 : vector<16x32xf32>
    %c3 = arith.constant 3 : index
    %c0_124 = arith.constant 0 : index
    %c0_125 = arith.constant 0 : index
    %251 = vector.load %arg14[%c3, %c0_124, %c0_125] : memref<4x5x32xf32, #tpu.memory_space<vmem>>, vector<1x5x32xf32>
    %252 = vector.shape_cast %251 : vector<1x5x32xf32> to vector<5x32xf32>
    %253 = vector.extract_strided_slice %252 {offsets = [0, 0], sizes = [1, 32], strides = [1, 1]} : vector<5x32xf32> to vector<1x32xf32>
    %254 = vector.extract_strided_slice %252 {offsets = [1, 0], sizes = [1, 32], strides = [1, 1]} : vector<5x32xf32> to vector<1x32xf32>
    %255 = vector.extract_strided_slice %252 {offsets = [4, 0], sizes = [1, 32], strides = [1, 1]} : vector<5x32xf32> to vector<1x32xf32>
    %cst_126 = arith.constant dense<0.000000e+00> : vector<128x3xf32>
    %256 = tpu.matmul %2, %231, %cst_126 {dimension_numbers = #tpu.dot_dimension_numbers<[1], [0], [0], [1], [0, 0, 1, 1], [], []>} : vector<128x16xf32>, vector<16x3xf32>, vector<128x3xf32> -> vector<128x3xf32>
    %257 = arith.mulf %256, %256 : vector<128x3xf32>
    %cst_127 = arith.constant dense<0.000000e+00> : vector<128xf32>
    %258 = vector.multi_reduction <add>, %257, %cst_127 [1] : vector<128x3xf32> to vector<128xf32>
    %259 = vector.shape_cast %258 : vector<128xf32> to vector<128x1xf32>
    %260 = math.sqrt %259 : vector<128x1xf32>
    %cst_128 = arith.constant 1.000000e+00 : f32
    %261 = vector.broadcast %cst_128 : f32 to vector<128x1xf32>
    %262 = arith.addf %260, %261 : vector<128x1xf32>
    %263 = tpu.reciprocal %262 {approx = true} : vector<128x1xf32> -> vector<128x1xf32>
    %cst_129 = arith.constant dense<0.000000e+00> : vector<256x32xf32>
    %264 = tpu.matmul %3, %250, %cst_129 {dimension_numbers = #tpu.dot_dimension_numbers<[1], [0], [0], [1], [0, 0, 1, 1], [], []>} : vector<256x16xf32>, vector<16x32xf32>, vector<256x32xf32> -> vector<256x32xf32>
    %265 = vector.extract_strided_slice %264 {offsets = [0, 0], sizes = [128, 32], strides = [1, 1]} : vector<256x32xf32> to vector<128x32xf32>
    %266 = vector.extract_strided_slice %264 {offsets = [128, 0], sizes = [128, 32], strides = [1, 1]} : vector<256x32xf32> to vector<128x32xf32>
    %267 = tpu.concatenate %265, %266, %259, %13 in 1 : vector<128x32xf32>, vector<128x32xf32>, vector<128x1xf32>, vector<128x1xf32> -> vector<128x66xf32>
    %c3_130 = arith.constant 3 : index
    %c0_131 = arith.constant 0 : index
    %c0_132 = arith.constant 0 : index
    %268 = vector.load %arg8[%c3_130, %c0_131, %c0_132] : memref<4x66x32xf32, #tpu.memory_space<vmem>>, vector<1x66x32xf32>
    %269 = vector.shape_cast %268 : vector<1x66x32xf32> to vector<66x32xf32>
    %cst_133 = arith.constant dense<0.000000e+00> : vector<128x32xf32>
    %270 = tpu.matmul %267, %269, %cst_133 {dimension_numbers = #tpu.dot_dimension_numbers<[1], [0], [0], [1], [0, 0, 1, 1], [], []>} : vector<128x66xf32>, vector<66x32xf32>, vector<128x32xf32> -> vector<128x32xf32>
    %271 = vector.broadcast %253 : vector<1x32xf32> to vector<128x32xf32>
    %272 = arith.addf %270, %271 : vector<128x32xf32>
    %273 = arith.negf %272 : vector<128x32xf32>
    %274 = math.exp %273 : vector<128x32xf32>
    %cst_134 = arith.constant 1.000000e+00 : f32
    %275 = vector.broadcast %cst_134 : f32 to vector<128x32xf32>
    %276 = arith.addf %275, %274 : vector<128x32xf32>
    %277 = arith.divf %275, %276 : vector<128x32xf32>
    %278 = arith.mulf %272, %277 : vector<128x32xf32>
    %c3_135 = arith.constant 3 : index
    %c0_136 = arith.constant 0 : index
    %c0_137 = arith.constant 0 : index
    %279 = vector.load %arg9[%c3_135, %c0_136, %c0_137] : memref<4x32x32xf32, #tpu.memory_space<vmem>>, vector<1x32x32xf32>
    %280 = vector.shape_cast %279 : vector<1x32x32xf32> to vector<32x32xf32>
    %cst_138 = arith.constant dense<0.000000e+00> : vector<128x32xf32>
    %281 = tpu.matmul %278, %280, %cst_138 {dimension_numbers = #tpu.dot_dimension_numbers<[1], [0], [0], [1], [0, 0, 1, 1], [], []>} : vector<128x32xf32>, vector<32x32xf32>, vector<128x32xf32> -> vector<128x32xf32>
    %282 = vector.broadcast %254 : vector<1x32xf32> to vector<128x32xf32>
    %283 = arith.addf %281, %282 : vector<128x32xf32>
    %284 = arith.negf %283 : vector<128x32xf32>
    %285 = math.exp %284 : vector<128x32xf32>
    %cst_139 = arith.constant 1.000000e+00 : f32
    %286 = vector.broadcast %cst_139 : f32 to vector<128x32xf32>
    %287 = arith.addf %286, %285 : vector<128x32xf32>
    %288 = arith.divf %286, %287 : vector<128x32xf32>
    %289 = arith.mulf %283, %288 : vector<128x32xf32>
    %c3_140 = arith.constant 3 : index
    %c0_141 = arith.constant 0 : index
    %c0_142 = arith.constant 0 : index
    %290 = vector.load %arg12[%c3_140, %c0_141, %c0_142] : memref<4x32x32xf32, #tpu.memory_space<vmem>>, vector<1x32x32xf32>
    %291 = vector.shape_cast %290 : vector<1x32x32xf32> to vector<32x32xf32>
    %cst_143 = arith.constant dense<0.000000e+00> : vector<128x32xf32>
    %292 = tpu.matmul %289, %291, %cst_143 {dimension_numbers = #tpu.dot_dimension_numbers<[1], [0], [0], [1], [0, 0, 1, 1], [], []>} : vector<128x32xf32>, vector<32x32xf32>, vector<128x32xf32> -> vector<128x32xf32>
    %293 = vector.broadcast %255 : vector<1x32xf32> to vector<128x32xf32>
    %294 = arith.addf %292, %293 : vector<128x32xf32>
    %295 = arith.negf %294 : vector<128x32xf32>
    %296 = math.exp %295 : vector<128x32xf32>
    %cst_144 = arith.constant 1.000000e+00 : f32
    %297 = vector.broadcast %cst_144 : f32 to vector<128x32xf32>
    %298 = arith.addf %297, %296 : vector<128x32xf32>
    %299 = arith.divf %297, %298 : vector<128x32xf32>
    %300 = arith.mulf %294, %299 : vector<128x32xf32>
    %c3_145 = arith.constant 3 : index
    %c0_146 = arith.constant 0 : index
    %c0_147 = arith.constant 0 : index
    %301 = vector.load %arg13[%c3_145, %c0_146, %c0_147] : memref<4x32x1xf32, #tpu.memory_space<vmem>>, vector<1x32x1xf32>
    %302 = vector.shape_cast %301 : vector<1x32x1xf32> to vector<32x1xf32>
    %cst_148 = arith.constant dense<0.000000e+00> : vector<128x1xf32>
    %303 = tpu.matmul %300, %302, %cst_148 {dimension_numbers = #tpu.dot_dimension_numbers<[1], [0], [0], [1], [0, 0, 1, 1], [], []>} : vector<128x32xf32>, vector<32x1xf32>, vector<128x1xf32> -> vector<128x1xf32>
    %304 = arith.mulf %303, %263 : vector<128x1xf32>
    %305 = vector.broadcast %304 : vector<128x1xf32> to vector<128x3xf32>
    %306 = arith.mulf %256, %305 : vector<128x3xf32>
    %cst_149 = arith.constant dense<0.000000e+00> : vector<16x3xf32>
    %307 = tpu.matmul %4, %306, %cst_149 {dimension_numbers = #tpu.dot_dimension_numbers<[1], [0], [0], [1], [0, 0, 1, 1], [], []>} : vector<16x128xf32>, vector<128x3xf32>, vector<16x3xf32> -> vector<16x3xf32>
    %308 = arith.addf %231, %307 : vector<16x3xf32>
    %309 = arith.subf %308, %1 : vector<16x3xf32>
    %310 = vector.extract_strided_slice %309 {offsets = [0, 0], sizes = [8, 3], strides = [1, 1]} : vector<16x3xf32> to vector<8x3xf32>
    %cst_150 = arith.constant dense<0.000000e+00> : vector<3xf32>
    %311 = vector.multi_reduction <add>, %310, %cst_150 [0] : vector<8x3xf32> to vector<3xf32>
    %312 = vector.shape_cast %311 : vector<3xf32> to vector<1x3xf32>
    %cst_151 = arith.constant 8.000000e+00 : f32
    %313 = vector.broadcast %cst_151 : f32 to vector<1x3xf32>
    %314 = arith.divf %312, %313 : vector<1x3xf32>
    %315 = vector.broadcast %314 : vector<1x3xf32> to vector<8x3xf32>
    %316 = arith.subf %310, %315 : vector<8x3xf32>
    %c0_152 = arith.constant 0 : index
    %c0_153 = arith.constant 0 : index
    %317 = vector.load %arg15[%c0_152, %c0_153] : memref<16x3xf32, #tpu.memory_space<vmem>>, vector<8x3xf32>
    tpu.vector_store %arg15[%c0_152, %c0_153], %316 {strides = array<i32>} : memref<16x3xf32, #tpu.memory_space<vmem>>, vector<8x3xf32>,
    %318 = vector.extract_strided_slice %309 {offsets = [8, 0], sizes = [8, 3], strides = [1, 1]} : vector<16x3xf32> to vector<8x3xf32>
    %cst_154 = arith.constant dense<0.000000e+00> : vector<3xf32>
    %319 = vector.multi_reduction <add>, %318, %cst_154 [0] : vector<8x3xf32> to vector<3xf32>
    %320 = vector.shape_cast %319 : vector<3xf32> to vector<1x3xf32>
    %cst_155 = arith.constant 8.000000e+00 : f32
    %321 = vector.broadcast %cst_155 : f32 to vector<1x3xf32>
    %322 = arith.divf %320, %321 : vector<1x3xf32>
    %323 = vector.broadcast %322 : vector<1x3xf32> to vector<8x3xf32>
    %324 = arith.subf %318, %323 : vector<8x3xf32>
    %c8 = arith.constant 8 : index
    %c0_156 = arith.constant 0 : index
    %325 = vector.load %arg15[%c8, %c0_156] : memref<16x3xf32, #tpu.memory_space<vmem>>, vector<8x3xf32>
    tpu.vector_store %arg15[%c8, %c0_156], %324 {strides = array<i32>} : memref<16x3xf32, #tpu.memory_space<vmem>>, vector<8x3xf32>,
    return
  }
  func.func @transform_0(%arg0: i32) -> (i32, i32) {
    %c0_i32 = arith.constant 0 : i32
    %c0_i32_0 = arith.constant 0 : i32
    %c0_i32_1 = arith.constant 0 : i32
    return %c0_i32, %c0_i32_0 : i32, i32
  }
  func.func @transform_1(%arg0: i32) -> (i32, i32) {
    %c0_i32 = arith.constant 0 : i32
    %c0_i32_0 = arith.constant 0 : i32
    %c0_i32_1 = arith.constant 0 : i32
    return %c0_i32, %c0_i32_0 : i32, i32
  }
  func.func @transform_2(%arg0: i32) -> (i32, i32) {
    %c0_i32 = arith.constant 0 : i32
    %c0_i32_0 = arith.constant 0 : i32
    %c0_i32_1 = arith.constant 0 : i32
    return %c0_i32, %c0_i32_0 : i32, i32
  }
  func.func @transform_3(%arg0: i32) -> (i32, i32) {
    %c0_i32 = arith.constant 0 : i32
    %c0_i32_0 = arith.constant 0 : i32
    %c0_i32_1 = arith.constant 0 : i32
    return %c0_i32, %c0_i32_0 : i32, i32
  }
  func.func @transform_4(%arg0: i32) -> (i32, i32) {
    %c0_i32 = arith.constant 0 : i32
    %c0_i32_0 = arith.constant 0 : i32
    %c0_i32_1 = arith.constant 0 : i32
    return %c0_i32, %c0_i32_0 : i32, i32
  }
  func.func @transform_5(%arg0: i32) -> (i32, i32) {
    %c0_i32 = arith.constant 0 : i32
    %c0_i32_0 = arith.constant 0 : i32
    %c0_i32_1 = arith.constant 0 : i32
    return %c0_i32, %c0_i32_0 : i32, i32
  }
  func.func @transform_6(%arg0: i32) -> (i32, i32) {
    %c0_i32 = arith.constant 0 : i32
    %c0_i32_0 = arith.constant 0 : i32
    %c0_i32_1 = arith.constant 0 : i32
    return %c0_i32, %c0_i32_0 : i32, i32
  }
  func.func @transform_7(%arg0: i32) -> (i32, i32, i32) {
    %c0_i32 = arith.constant 0 : i32
    %c0_i32_0 = arith.constant 0 : i32
    %c0_i32_1 = arith.constant 0 : i32
    %c0_i32_2 = arith.constant 0 : i32
    return %c0_i32, %c0_i32_0, %c0_i32_1 : i32, i32, i32
  }
  func.func @transform_8(%arg0: i32) -> (i32, i32, i32) {
    %c0_i32 = arith.constant 0 : i32
    %c0_i32_0 = arith.constant 0 : i32
    %c0_i32_1 = arith.constant 0 : i32
    %c0_i32_2 = arith.constant 0 : i32
    return %c0_i32, %c0_i32_0, %c0_i32_1 : i32, i32, i32
  }
  func.func @transform_9(%arg0: i32) -> (i32, i32, i32) {
    %c0_i32 = arith.constant 0 : i32
    %c0_i32_0 = arith.constant 0 : i32
    %c0_i32_1 = arith.constant 0 : i32
    %c0_i32_2 = arith.constant 0 : i32
    return %c0_i32, %c0_i32_0, %c0_i32_1 : i32, i32, i32
  }
  func.func @transform_10(%arg0: i32) -> (i32, i32, i32) {
    %c0_i32 = arith.constant 0 : i32
    %c0_i32_0 = arith.constant 0 : i32
    %c0_i32_1 = arith.constant 0 : i32
    %c0_i32_2 = arith.constant 0 : i32
    return %c0_i32, %c0_i32_0, %c0_i32_1 : i32, i32, i32
  }
  func.func @transform_11(%arg0: i32) -> (i32, i32, i32) {
    %c0_i32 = arith.constant 0 : i32
    %c0_i32_0 = arith.constant 0 : i32
    %c0_i32_1 = arith.constant 0 : i32
    %c0_i32_2 = arith.constant 0 : i32
    return %c0_i32, %c0_i32_0, %c0_i32_1 : i32, i32, i32
  }
  func.func @transform_12(%arg0: i32) -> (i32, i32, i32) {
    %c0_i32 = arith.constant 0 : i32
    %c0_i32_0 = arith.constant 0 : i32
    %c0_i32_1 = arith.constant 0 : i32
    %c0_i32_2 = arith.constant 0 : i32
    return %c0_i32, %c0_i32_0, %c0_i32_1 : i32, i32, i32
  }
  func.func @transform_13(%arg0: i32) -> (i32, i32, i32) {
    %c0_i32 = arith.constant 0 : i32
    %c0_i32_0 = arith.constant 0 : i32
    %c0_i32_1 = arith.constant 0 : i32
    %c0_i32_2 = arith.constant 0 : i32
    return %c0_i32, %c0_i32_0, %c0_i32_1 : i32, i32, i32
  }
  func.func @transform_14(%arg0: i32) -> (i32, i32) {
    %c0_i32 = arith.constant 0 : i32
    %c0_i32_0 = arith.constant 0 : i32
    %c0_i32_1 = arith.constant 0 : i32
    return %c0_i32, %c0_i32_0 : i32, i32
  }
}

</mosaic_0001>

<bundles_post_ra>
// kernel: tpu_custom_call.1
= control target key start
LH: loop header
LB: loop body
LE: loop exit
PB: predicated region body
PF: predicated region fallthrough
CT: control target
= control target key end

     0   :  { %vm116_vm0 = vcmask 1041408   ;;  %vm109_vm1 = vcmask 15360   ;;  %vm195_vm2 = vcmask 130048   ;;  %vm405_vm3 = vcmask 23552   ;;  %s13734_s24 = smov 32   ;;  %s18029_s5 = inlined_call_operand.vmem [shape: f32[2,32], index: 5, kind: input, shape index: {}]   ;;  %s18030_s0 = inlined_call_operand.vmem [shape: f32[16,2], index: 0, kind: input, shape index: {}]   ;;  %s18031_s1 = inlined_call_operand.vmem [shape: f32[16,3], index: 1, kind: input, shape index: {}]   ;;  %s18032_s2 = inlined_call_operand.vmem [shape: f32[128,16], index: 2, kind: input, shape index: {}]   ;;  %s18033_s3 = inlined_call_operand.vmem [shape: f32[256,16], index: 3, kind: input, shape index: {}]   ;;  %s18034_s6 = inlined_call_operand.vmem [shape: f32[1,32], index: 6, kind: input, shape index: {}]   ;;  %s18035_s7 = inlined_call_operand.vmem [shape: f32[4,66,32], index: 7, kind: input, shape index: {}]   ;;  %s18036_s8 = inlined_call_operand.vmem [shape: f32[4,32,32], index: 8, kind: input, shape index: {}]   ;;  %s18037_s11 = inlined_call_operand.vmem [shape: f32[4,32,32], index: 11, kind: input, shape index: {}]   ;;  %s18038_s13 = inlined_call_operand.vmem [shape: f32[4,5,32], index: 13, kind: input, shape index: {}]   ;;  %s18039_s12 = inlined_call_operand.vmem [shape: f32[4,32,1], index: 12, kind: input, shape index: {}]   ;;  %s18040_s4 = inlined_call_operand.vmem [shape: f32[16,128], index: 4, kind: input, shape index: {}]   ;;  %s18041_s9 = inlined_call_operand.vmem [shape: f32[4,64,32], index: 9, kind: input, shape index: {}]   ;;  %s18042_s10 = inlined_call_operand.vmem [shape: f32[4,32,32], index: 10, kind: input, shape index: {}]   ;;  %s18043_s14 = inlined_call_operand.vmem [shape: f32[16,3], index: 14, kind: output, shape index: {}]  }
   0x1   :  { %v101_v0 = vld [vmem:[%s18029_s5] sm:$0x3]  ;;  %v48_v2 = vld [vmem:[%s18030_s0 + $0x8] sm:$0xff]  ;;  %v53_v8 = vld [vmem:[%s18032_s2 + $0x10] sm:$0xff]  ;;  %vm984_vm4 = vcmask 261120   ;;  %vm1001_vm5 = vcmask 523264  }
   0x2   :  { %v47_v1 = vld [vmem:[%s18030_s0] sm:$0xff]  ;;  %10823 = vmatprep.subr.msk.mxu0 %vm116_vm0, %v101_v0  ;;  %v50_v4 = vld [vmem:[%s18031_s1 + $0x8] sm:$0xff]  ;;  %v54_v9 = vld [vmem:[%s18032_s2 + $0x18] sm:$0xff]  ;;  %vm1018_vm6 = vcmask 531456   ;;  %vm1048_vm7 = vcmask 539648  }
   0x3   :  { %10825 = vmatprep.mubr.msk.f32.mxu0 %vm109_vm1, %v47_v1  ;;  %v49_v3 = vld [vmem:[%s18031_s1] sm:$0xff]  ;;  %10824 = vmatpush3.msk.msra.mxu0 %vm116_vm0, %v101_v0  ;;  %v52_v7 = vld [vmem:[%s18032_s2 + $0x8] sm:$0xff]  ;;  %v57_v12 = vld [vmem:[%s18032_s2 + $0x30] sm:$0xff] }
   0x4   :  { %v51_v5 = vld [vmem:[%s18032_s2] sm:$0xff]  ;;  %v12035_v6 = vpack.c.bf16 %v50_v4, %v49_v3  ;;  %10826 = vmatmul.mubr.msk.f32.vlgmr.msra.gmra.mrb[0].mxu0 %vm109_vm1, %v48_v2  ;;  %v56_v11 = vld [vmem:[%s18032_s2 + $0x28] sm:$0xff]  ;;  %v58_v13 = vld [vmem:[%s18032_s2 + $0x38] sm:$0xff] }
   0x5   :  { %10832 = vmatprep.mubr.msk.f32.mxu1 %vm195_vm2, %v51_v5  ;;  %v55_v10 = vld [vmem:[%s18032_s2 + $0x20] sm:$0xff]  ;;  %v60_v15 = vld [vmem:[%s18032_s2 + $0x48] sm:$0xff]  ;;  %v61_v16 = vld [vmem:[%s18032_s2 + $0x50] sm:$0xff] }
   0x6   :  { %12036 = vmatprep.subr.bf16.mxu1 %v12035_v6  ;;  %v59_v14 = vld [vmem:[%s18032_s2 + $0x40] sm:$0xff]  ;;  %v62_v17 = vld [vmem:[%s18032_s2 + $0x58] sm:$0xff]  ;;  %v64_v19 = vld [vmem:[%s18032_s2 + $0x68] sm:$0xff] }
   0x7   :  { %12038 = vmatpush3.bf16.msra.mxu1 %v12035_v6  ;;  %v63_v18 = vld [vmem:[%s18032_s2 + $0x60] sm:$0xff]  ;;  %v65_v20 = vld [vmem:[%s18032_s2 + $0x70] sm:$0xff]  ;;  %v66_v21 = vld [vmem:[%s18032_s2 + $0x78] sm:$0xff] }
   0x8   :  { %v67_v22 = vld [vmem:[%s18033_s3] sm:$0xff]  ;;  %v68_v32 = vld [vmem:[%s18033_s3 + $0x8] sm:$0xff]  ;;  %v69_v34 = vld [vmem:[%s18033_s3 + $0x10] sm:$0xff] }
   0x9   :  { %10860 = vmatprep.mubr.msk.f32.mxu0 %vm195_vm2, %v67_v22  ;;  %v9342_v23 = vld [vmem:[%s18034_s6] ss:$0 sm:$0xff]  ;;  %v70_v40 = vld [vmem:[%s18033_s3 + $0x18] sm:$0xff]  ;;  %v72_v48 = vld [vmem:[%s18033_s3 + $0x28] sm:$0xff] }
   0xa   :  { %10833 = vmatmul.mubr.msk.f32.vlgmr.msra.gmra.mrb[0].mxu1 %vm195_vm2, %v52_v7  ;;  %v71_v42 = vld [vmem:[%s18033_s3 + $0x20] sm:$0xff]  ;;  %v73_v50 = vld [vmem:[%s18033_s3 + $0x30] sm:$0xff]  ;;  %v74_v56 = vld [vmem:[%s18033_s3 + $0x38] sm:$0xff] }
   0xb   :  { %10835 = vmatprep.mubr.msk.f32.mxu1 %vm195_vm2, %v53_v8  ;;  %v75_v58 = vld [vmem:[%s18033_s3 + $0x40] sm:$0xff]  ;;  %v76_v0 = vld [vmem:[%s18033_s3 + $0x48] sm:$0xff]  ;;  %v77_v2 = vld [vmem:[%s18033_s3 + $0x50] sm:$0xff] }
   0xc   :  { %v78_v8 = vld [vmem:[%s18033_s3 + $0x58] sm:$0xff] }
   0xe   :  { %10836 = vmatmul.mubr.msk.f32.gmra.mrb[2].mxu1 %vm195_vm2, %v54_v9 }
   0xf   :  { %10838 = vmatprep.mubr.msk.f32.mxu1 %vm195_vm2, %v55_v10  ;;  %v79_v10 = vld [vmem:[%s18033_s3 + $0x60] sm:$0xff] }
  0x12   :  { %10839 = vmatmul.mubr.msk.f32.gmra.mrb[4].mxu1 %vm195_vm2, %v56_v11 }
  0x13   :  { %10841 = vmatprep.mubr.msk.f32.mxu1 %vm195_vm2, %v57_v12 }
  0x16   :  { %10842 = vmatmul.mubr.msk.f32.gmra.mrb[6].mxu1 %vm195_vm2, %v58_v13 }
  0x17   :  { %10844 = vmatprep.mubr.msk.f32.mxu1 %vm195_vm2, %v59_v14 }
  0x1a   :  { %10845 = vmatmul.mubr.msk.f32.gmra.mrb[8].mxu1 %vm195_vm2, %v60_v15 }
  0x1b   :  { %10847 = vmatprep.mubr.msk.f32.mxu1 %vm195_vm2, %v61_v16  ;;  %v80_v16 = vld [vmem:[%s18033_s3 + $0x68] sm:$0xff] }
  0x1e   :  { %10848 = vmatmul.mubr.msk.f32.gmra.mrb[10].mxu1 %vm195_vm2, %v62_v17 }
  0x1f   :  { %10850 = vmatprep.mubr.msk.f32.mxu1 %vm195_vm2, %v63_v18  ;;  %v81_v18 = vld [vmem:[%s18033_s3 + $0x70] sm:$0xff] }
  0x22   :  { %10851 = vmatmul.mubr.msk.f32.gmra.mrb[12].mxu1 %vm195_vm2, %v64_v19 }
  0x23   :  { %10853 = vmatprep.mubr.msk.f32.mxu1 %vm195_vm2, %v65_v20 }
  0x26   :  { %10854 = vmatmul.mubr.msk.f32.gmra.mrb[14].mxu1 %vm195_vm2, %v66_v21 }
  0xd7   :  { %v10827_v24 = vpop.f32.mrb[0].mxu0 }
  0xd8   :  { %v13899_v25 = vadd.f32 %v10827_v24, %v9342_v23  ;;  %v186_v26 = vpop.f32.mrb[1].mxu0  ;;  %v82_v24 = vld [vmem:[%s18033_s3 + $0x78] sm:$0xff] }
  0xd9   :  { %v13901_v27 = vadd.f32 %v9342_v23, %v186_v26 }
  0xda   :  { %18123 = vst [vmem:[#allocation2_spill] sm:$0xff] %v13899_v25 }
  0xdb   :  { %18124 = vst [vmem:[#allocation3_spill] sm:$0xff] %v13901_v27  ;;  %v12039_v28 = vpack.c.bf16 %v13899_v25, %v13901_v27 }
  0xdd   :  { %v13905_v29 = vpop.f32.mrb[0].mxu1  ;;  %12040 = vmatprep.subr.bf16.mxu0 %v12039_v28 }
  0xde   :  { %v13907_v30 = vpop.f32.mrb[1].mxu1  ;;  %v390_v31 = vmul.f32 %v13905_v29, %v13905_v29  ;;  %12042 = vmatpush3.bf16.msra.mxu0 %v12039_v28  ;;  %v83_v28 = vld [vmem:[%s18033_s3 + $0x80] sm:$0xff] }
  0xdf   :  { %v389_v33 = vmul.f32 %v13907_v30, %v13907_v30 }
  0xe0   :  { %v409_v35 = vsel %vm405_vm3, %v390_v31, 0.0 }
  0xe1   :  { %410 = vadd.xlane.f32.xlu0 %v409_v35  ;;  %v13920_v36 = vpop.f32.mrb[2].mxu1  ;;  %10861 = vmatmul.mubr.msk.f32.vlgmr.msra.gmra.mrb[2].mxu0 %vm195_vm2, %v68_v32  ;;  %v406_v37 = vsel %vm405_vm3, %v389_v33, 0.0  ;;  %v84_v33 = vld [vmem:[%s18033_s3 + $0x88] sm:$0xff]  ;;  %v86_v35 = vld [vmem:[%s18033_s3 + $0x98] sm:$0xff] }
  0xe2   :  { %v392_v38 = vmul.f32 %v13920_v36, %v13920_v36  ;;  %v13926_v39 = vpop.f32.mrb[3].mxu1  ;;  %10863 = vmatprep.mubr.msk.f32.mxu0 %vm195_vm2, %v69_v34  ;;  %v85_v34 = vld [vmem:[%s18033_s3 + $0x90] sm:$0xff] }
  0xe3   :  { %v391_v41 = vmul.f32 %v13926_v39, %v13926_v39 }
  0xe4   :  { %v415_v43 = vsel %vm405_vm3, %v392_v38, 0.0  ;;  %v88_v38 = vld [vmem:[%s18033_s3 + $0xa8] sm:$0xff] }
  0xe5   :  { %407 = vadd.xlane.f32.xlu0 %v406_v37  ;;  %416 = vadd.xlane.f32.xlu1 %v415_v43  ;;  %v13938_v44 = vpop.f32.mrb[4].mxu1  ;;  %v412_v45 = vsel %vm405_vm3, %v391_v41, 0.0  ;;  %v87_v37 = vld [vmem:[%s18033_s3 + $0xa0] sm:$0xff]  ;;  %v90_v41 = vld [vmem:[%s18033_s3 + $0xb8] sm:$0xff]  ;;  %v92_v43 = vld [vmem:[%s18033_s3 + $0xc8] sm:$0xff] }
  0xe6   :  { %10864 = vmatmul.mubr.msk.f32.gmra.mrb[4].mxu0 %vm195_vm2, %v70_v40  ;;  %v394_v46 = vmul.f32 %v13938_v44, %v13938_v44  ;;  %v13944_v47 = vpop.f32.mrb[5].mxu1  ;;  %v89_v40 = vld [vmem:[%s18033_s3 + $0xb0] sm:$0xff] }
  0xe7   :  { %10866 = vmatprep.mubr.msk.f32.mxu0 %vm195_vm2, %v71_v42  ;;  %v393_v49 = vmul.f32 %v13944_v47, %v13944_v47  ;;  %v91_v42 = vld [vmem:[%s18033_s3 + $0xc0] sm:$0xff] }
  0xe8   :  { %v421_v54 = vsel %vm405_vm3, %v394_v46, 0.0  ;;  %v94_v46 = vld [vmem:[%s18033_s3 + $0xd8] sm:$0xff] }
  0xe9   :  { %413 = vadd.xlane.f32.xlu1 %v412_v45  ;;  %v13955_v51 = vpop.f32.mrb[6].mxu1  ;;  %v418_v52 = vsel %vm405_vm3, %v393_v49, 0.0  ;;  %v93_v45 = vld [vmem:[%s18033_s3 + $0xd0] sm:$0xff]  ;;  %v96_v49 = vld [vmem:[%s18033_s3 + $0xe8] sm:$0xff] }
  0xea   :  { %10867 = vmatmul.mubr.msk.f32.gmra.mrb[6].mxu0 %vm195_vm2, %v72_v48  ;;  %v396_v53 = vmul.f32 %v13955_v51, %v13955_v51  ;;  %419 = vadd.xlane.f32.xlu0 %v418_v52  ;;  %v13962_v55 = vpop.f32.mrb[7].mxu1  ;;  %v95_v48 = vld [vmem:[%s18033_s3 + $0xe0] sm:$0xff]  ;;  %v98_v52 = vld [vmem:[%s18033_s3 + $0xf8] sm:$0xff] }
  0xeb   :  { %10869 = vmatprep.mubr.msk.f32.mxu0 %vm195_vm2, %v73_v50  ;;  %v395_v57 = vmul.f32 %v13962_v55, %v13962_v55  ;;  %v97_v50 = vld [vmem:[%s18033_s3 + $0xf0] sm:$0xff] }
  0xec   :  { %v427_v62 = vsel %vm405_vm3, %v396_v53, 0.0  ;;  %v1035_v53 = vld [vmem:[%s18035_s7] sm:$0xff] }
  0xed   :  { %422 = vadd.xlane.f32.xlu1 %v421_v54  ;;  %v13973_v59 = vpop.f32.mrb[8].mxu1  ;;  %v424_v60 = vsel %vm405_vm3, %v395_v57, 0.0  ;;  %v1036_v54 = vld [vmem:[%s18035_s7 + $0x8] sm:$0xff] }
  0xee   :  { %10870 = vmatmul.mubr.msk.f32.gmra.mrb[8].mxu0 %vm195_vm2, %v74_v56  ;;  %v398_v61 = vmul.f32 %v13973_v59, %v13973_v59  ;;  %425 = vadd.xlane.f32.xlu0 %v424_v60  ;;  %v13980_v63 = vpop.f32.mrb[9].mxu1  ;;  %v1037_v56 = vld [vmem:[%s18035_s7 + $0x10] sm:$0xff]  ;;  %v12043_v57 = vpack.c.bf16 %v1036_v54, %v1035_v53 }
  0xef   :  { %10872 = vmatprep.mubr.msk.f32.mxu0 %vm195_vm2, %v75_v58  ;;  %v397_v1 = vmul.f32 %v13980_v63, %v13980_v63  ;;  %v1038_v58 = vld [vmem:[%s18035_s7 + $0x18] sm:$0xff] }
  0xf0   :  { %v433_v3 = vsel %vm405_vm3, %v398_v61, 0.0  ;;  %v12047_v60 = vpack.c.bf16 %v1038_v58, %v1037_v56  ;;  %v1039_v61 = vld [vmem:[%s18035_s7 + $0x20] sm:$0xff]  ;;  %12044 = vmatprep.subr.bf16.mxu1 %v12043_v57 }
  0xf1   :  { %428 = vadd.xlane.f32.xlu1 %v427_v62  ;;  %v13992_v4 = vpop.f32.mrb[10].mxu1  ;;  %v430_v6 = vsel %vm405_vm3, %v397_v1, 0.0  ;;  %v1040_v62 = vld [vmem:[%s18035_s7 + $0x28] sm:$0xff]  ;;  %12046 = vmatpush3.bf16.msra.mxu1 %v12043_v57  ;;  %v1041_v1 = vld [vmem:[%s18035_s7 + $0x30] sm:$0xff] }
  0xf2   :  { %10873 = vmatmul.mubr.msk.f32.gmra.mrb[10].mxu0 %vm195_vm2, %v76_v0  ;;  %v400_v5 = vmul.f32 %v13992_v4, %v13992_v4  ;;  %434 = vadd.xlane.f32.xlu0 %v433_v3  ;;  %v13998_v7 = vpop.f32.mrb[11].mxu1  ;;  %v12051_v0 = vpack.c.bf16 %v1040_v62, %v1039_v61 }
  0xf3   :  { %18125 = vst [vmem:[#allocation4_spill] sm:$0xff] %v13998_v7  ;;  %10875 = vmatprep.mubr.msk.f32.mxu0 %vm195_vm2, %v77_v2  ;;  %v399_v9 = vmul.f32 %v13998_v7, %v13998_v7  ;;  %12048 = vmatprep.subr.bf16.mxu1 %v12047_v60  ;;  %v1042_v2 = vld [vmem:[%s18035_s7 + $0x38] sm:$0xff] }
  0xf4   :  { %v439_v11 = vsel %vm405_vm3, %v400_v5, 0.0  ;;  %v12055_v3 = vpack.c.bf16 %v1042_v2, %v1041_v1 }
  0xf5   :  { %431 = vadd.xlane.f32.xlu1 %v430_v6  ;;  %v14010_v12 = vpop.f32.mrb[12].mxu1  ;;  %v436_v14 = vsel %vm405_vm3, %v399_v9, 0.0  ;;  %12050 = vmatpush3.bf16.msra.mxu1 %v12047_v60 }
  0xf6   :  { %18126 = vst [vmem:[#allocation5_spill] sm:$0xff] %v14010_v12  ;;  %10876 = vmatmul.mubr.msk.f32.gmra.mrb[12].mxu0 %vm195_vm2, %v78_v8  ;;  %v402_v13 = vmul.f32 %v14010_v12, %v14010_v12  ;;  %440 = vadd.xlane.f32.xlu0 %v439_v11  ;;  %v14016_v15 = vpop.f32.mrb[13].mxu1 }
  0xf7   :  { %18127 = vst [vmem:[#allocation6_spill] sm:$0xff] %v14016_v15  ;;  %10878 = vmatprep.mubr.msk.f32.mxu0 %vm195_vm2, %v79_v10  ;;  %v401_v17 = vmul.f32 %v14016_v15, %v14016_v15  ;;  %12052 = vmatprep.subr.bf16.mxu1 %v12051_v0 }
  0xf8   :  { %v445_v19 = vsel %vm405_vm3, %v402_v13, 0.0 }
  0xf9   :  { %437 = vadd.xlane.f32.xlu1 %v436_v14  ;;  %v14028_v20 = vpop.f32.mrb[14].mxu1  ;;  %v442_v22 = vsel %vm405_vm3, %v401_v17, 0.0  ;;  %12054 = vmatpush3.bf16.msra.mxu1 %v12051_v0 }
  0xfa   :  { %18128 = vst [vmem:[#allocation7_spill] sm:$0xff] %v14028_v20  ;;  %10879 = vmatmul.mubr.msk.f32.gmra.mrb[14].mxu0 %vm195_vm2, %v80_v16  ;;  %v404_v21 = vmul.f32 %v14028_v20, %v14028_v20  ;;  %446 = vadd.xlane.f32.xlu0 %v445_v19  ;;  %v14034_v23 = vpop.f32.mrb[15].mxu1 }
  0xfb   :  { %18129 = vst [vmem:[#allocation8_spill] sm:$0xff] %v14034_v23  ;;  %10881 = vmatprep.mubr.msk.f32.mxu0 %vm195_vm2, %v81_v18  ;;  %v403_v26 = vmul.f32 %v14034_v23, %v14034_v23  ;;  %12056 = vmatprep.subr.bf16.mxu1 %v12055_v3 }
  0xfc   :  { %v451_v31 = vsel %vm405_vm3, %v404_v21, 0.0  ;;  %v1043_v21 = vld [vmem:[%s18035_s7 + $0x40] sm:$0x3] }
  0xfd   :  { %443 = vadd.xlane.f32.xlu1 %v442_v22  ;;  %v448_v32 = vsel %vm405_vm3, %v403_v26, 0.0  ;;  %12058 = vmatpush3.bf16.msra.mxu1 %v12055_v3 }
  0xfe   :  { %10882 = vmatmul.mubr.msk.f32.gmra.mrb[16].mxu0 %vm195_vm2, %v82_v24  ;;  %452 = vadd.xlane.f32.xlu0 %v451_v31 }
  0xff   :  { %10884 = vmatprep.mubr.msk.f32.mxu0 %vm195_vm2, %v83_v28  ;;  %10924 = vmatprep.subr.msk.mxu1 %vm116_vm0, %v1043_v21 }
 0x101   :  { %449 = vadd.xlane.f32.xlu1 %v448_v32  ;;  %10925 = vmatpush3.msk.msra.mxu1 %vm116_vm0, %v1043_v21 }
 0x102   :  { %10885 = vmatmul.mubr.msk.f32.gmra.mrb[18].mxu0 %vm195_vm2, %v84_v33 }
 0x103   :  { %10887 = vmatprep.mubr.msk.f32.mxu0 %vm195_vm2, %v85_v34 }
 0x106   :  { %10888 = vmatmul.mubr.msk.f32.gmra.mrb[20].mxu0 %vm195_vm2, %v86_v35 }
 0x107   :  { %10890 = vmatprep.mubr.msk.f32.mxu0 %vm195_vm2, %v87_v37 }
 0x10a   :  { %10891 = vmatmul.mubr.msk.f32.gmra.mrb[22].mxu0 %vm195_vm2, %v88_v38 }
 0x10b   :  { %10893 = vmatprep.mubr.msk.f32.mxu0 %vm195_vm2, %v89_v40 }
 0x10e   :  { %10894 = vmatmul.mubr.msk.f32.gmra.mrb[24].mxu0 %vm195_vm2, %v90_v41 }
 0x10f   :  { %10896 = vmatprep.mubr.msk.f32.mxu0 %vm195_vm2, %v91_v42 }
 0x112   :  { %10897 = vmatmul.mubr.msk.f32.gmra.mrb[26].mxu0 %vm195_vm2, %v92_v43 }
 0x113   :  { %10899 = vmatprep.mubr.msk.f32.mxu0 %vm195_vm2, %v93_v45 }
 0x116   :  { %10900 = vmatmul.mubr.msk.f32.gmra.mrb[28].mxu0 %vm195_vm2, %v94_v46 }
 0x117   :  { %10902 = vmatprep.mubr.msk.f32.mxu0 %vm195_vm2, %v95_v48 }
 0x11a   :  { %10903 = vmatmul.mubr.msk.f32.gmra.mrb[30].mxu0 %vm195_vm2, %v96_v49 }
 0x11b   :  { %10905 = vmatprep.mubr.msk.f32.mxu0 %vm195_vm2, %v97_v50 }
 0x11e   :  { %10906 = vmatmul.mubr.msk.f32.gmra.mrb[32].mxu0 %vm195_vm2, %v98_v52 }
 0x16e   :  { %v14188_v53 = vpop.xlane.xlu0 %410 }
 0x16f   :  { %18131 = vst [vmem:[#allocation10_spill] sm:$0xff] %v14188_v53  ;;  %vm464_vm8 = vcmp.eq.f32.partialorder %v14188_v53, inf  ;;  %vm466_vm9 = vcmp.eq.f32.partialorder %v14188_v53, 0.0 }
 0x172   :  { %v14186_v52 = vpop.xlane.xlu1 %416  ;;  %v14192_v56 = vpop.xlane.xlu0 %407 }
 0x173   :  { %18130 = vst [vmem:[#allocation9_spill] sm:$0xff] %v14186_v52  ;;  %18133 = vst [vmem:[#allocation12_spill] sm:$0xff] %v14192_v56  ;;  %vm457_vm10 = vcmp.eq.f32.partialorder %v14192_v56, inf  ;;  %vm478_vm11 = vcmp.eq.f32.partialorder %v14186_v52, inf  ;;  %vm459_vm12 = vcmp.eq.f32.partialorder %v14192_v56, 0.0  ;;  %vm480_vm13 = vcmp.eq.f32.partialorder %v14186_v52, 0.0 }
 0x176   :  { %v14190_v54 = vpop.xlane.xlu1 %413 }
 0x177   :  { %18132 = vst [vmem:[#allocation11_spill] sm:$0xff] %v14190_v54  ;;  %v14196_v58 = vpop.xlane.xlu0 %419  ;;  %vm471_vm14 = vcmp.eq.f32.partialorder %v14190_v54, inf  ;;  %vm473_vm1 = vcmp.eq.f32.partialorder %v14190_v54, 0.0 }
 0x178   :  { %18135 = vst [vmem:[#allocation14_spill] sm:$0xff] %v14196_v58 }
 0x17a   :  { %v14194_v57 = vpop.xlane.xlu1 %422 }
 0x17b   :  { %18134 = vst [vmem:[#allocation13_spill] sm:$0xff] %v14194_v57  ;;  %v14200_v61 = vpop.xlane.xlu0 %425  ;;  %vm492_vm15 = vcmp.eq.f32.partialorder %v14194_v57, inf }
 0x17c   :  { %18137 = vst [vmem:[#allocation16_spill] sm:$0xff] %v14200_v61 }
 0x17e   :  { %v14198_v60 = vpop.xlane.xlu1 %428 }
 0x17f   :  { %18136 = vst [vmem:[#allocation15_spill] sm:$0xff] %v14198_v60  ;;  %v14204_v0 = vpop.xlane.xlu0 %434 }
 0x180   :  { %18139 = vst [vmem:[#allocation18_spill] sm:$0xff] %v14204_v0 }
 0x182   :  { %v14202_v62 = vpop.xlane.xlu1 %431 }
 0x183   :  { %18138 = vst [vmem:[#allocation17_spill] sm:$0xff] %v14202_v62  ;;  %v14208_v2 = vpop.xlane.xlu0 %440 }
 0x184   :  { %18141 = vst [vmem:[#allocation20_spill] sm:$0xff] %v14208_v2 }
 0x186   :  { %v14206_v1 = vpop.xlane.xlu1 %437 }
 0x187   :  { %18140 = vst [vmem:[#allocation19_spill] sm:$0xff] %v14206_v1  ;;  %v14212_v21 = vpop.xlane.xlu0 %446 }
 0x188   :  { %18143 = vst [vmem:[#allocation22_spill] sm:$0xff] %v14212_v21 }
 0x18a   :  { %v14210_v3 = vpop.xlane.xlu1 %443 }
 0x18b   :  { %18142 = vst [vmem:[#allocation21_spill] sm:$0xff] %v14210_v3 }
 0x1b4   :  { %v14133_v5 = vpop.f32.mrb[2].mxu0 }
 0x1b5   :  { %v14135_v6 = vpop.f32.mrb[3].mxu0 }
 0x1b9   :  { %v14137_v8 = vpop.f32.mrb[4].mxu0 }
 0x1ba   :  { %v14139_v9 = vpop.f32.mrb[5].mxu0 }
 0x1bd   :  { %v14141_v10 = vpop.f32.mrb[6].mxu0 }
 0x1be   :  { %v14143_v11 = vpop.f32.mrb[7].mxu0 }
 0x1c1   :  { %v14145_v13 = vpop.f32.mrb[8].mxu0 }
 0x1c2   :  { %v14147_v14 = vpop.f32.mrb[9].mxu0 }
 0x1c5   :  { %v14149_v16 = vpop.f32.mrb[10].mxu0 }
 0x1c6   :  { %v14151_v17 = vpop.f32.mrb[11].mxu0 }
 0x1c9   :  { %v14153_v18 = vpop.f32.mrb[12].mxu0 }
 0x1ca   :  { %v14155_v19 = vpop.f32.mrb[13].mxu0 }
 0x1cd   :  { %v14161_v22 = vpop.f32.mrb[14].mxu0 }
 0x1ce   :  { %v14164_v24 = vpop.f32.mrb[15].mxu0 }
 0x1d1   :  { %v14166_v26 = vpop.f32.mrb[16].mxu0 }
 0x1d2   :  { %v14168_v28 = vpop.f32.mrb[17].mxu0 }
 0x1d5   :  { %v10886_v31 = vpop.f32.mrb[18].mxu0 }
 0x1d6   :  { %938 = vrot.lane.b32.xlu1 %v10886_v31, %s13734_s24  ;;  %v841_v32 = vpop.f32.mrb[19].mxu0  ;;  %v14214_v31 = vpop.xlane.xlu1 %449 }
 0x1d7   :  { %936 = vrot.lane.b32.xlu0 %v841_v32, %s13734_s24  ;;  %18144 = vst [vmem:[#allocation23_spill] sm:$0xff] %v14214_v31  ;;  %v14216_v32 = vpop.xlane.xlu0 %452 }
 0x1d8   :  { %18145 = vst [vmem:[#allocation24_spill] sm:$0xff] %v14216_v32 }
 0x1d9   :  { %v10889_v33 = vpop.f32.mrb[20].mxu0 }
 0x1da   :  { %942 = vrot.lane.b32.xlu1 %v10889_v33, %s13734_s24  ;;  %v851_v34 = vpop.f32.mrb[21].mxu0 }
 0x1db   :  { %940 = vrot.lane.b32.xlu0 %v851_v34, %s13734_s24 }
 0x1dd   :  { %v10892_v35 = vpop.f32.mrb[22].mxu0 }
 0x1de   :  { %946 = vrot.lane.b32.xlu1 %v10892_v35, %s13734_s24  ;;  %v861_v37 = vpop.f32.mrb[23].mxu0 }
 0x1df   :  { %944 = vrot.lane.b32.xlu0 %v861_v37, %s13734_s24 }
 0x1e1   :  { %v10895_v38 = vpop.f32.mrb[24].mxu0 }
 0x1e2   :  { %950 = vrot.lane.b32.xlu1 %v10895_v38, %s13734_s24  ;;  %v871_v40 = vpop.f32.mrb[25].mxu0 }
 0x1e3   :  { %948 = vrot.lane.b32.xlu0 %v871_v40, %s13734_s24 }
 0x1e5   :  { %v10898_v41 = vpop.f32.mrb[26].mxu0 }
 0x1e6   :  { %954 = vrot.lane.b32.xlu1 %v10898_v41, %s13734_s24  ;;  %v881_v42 = vpop.f32.mrb[27].mxu0 }
 0x1e7   :  { %952 = vrot.lane.b32.xlu0 %v881_v42, %s13734_s24 }
 0x1e9   :  { %v10901_v43 = vpop.f32.mrb[28].mxu0 }
 0x1ea   :  { %v891_v45 = vpop.f32.mrb[29].mxu0 }
 0x1eb   :  { %956 = vrot.lane.b32.xlu1 %v891_v45, %s13734_s24 }
 0x1ed   :  { %v10904_v46 = vpop.f32.mrb[30].mxu0 }
 0x1ee   :  { %v901_v48 = vpop.f32.mrb[31].mxu0 }
 0x1ef   :  { %958 = vrot.lane.b32.xlu1 %v10901_v43, %s13734_s24  ;;  %960 = vrot.lane.b32.xlu0 %v901_v48, %s13734_s24 }
 0x1f1   :  { %v10907_v49 = vpop.f32.mrb[32].mxu0 }
 0x1f2   :  { %v911_v50 = vpop.f32.mrb[33].mxu0 }
 0x1f3   :  { %962 = vrot.lane.b32.xlu1 %v10904_v46, %s13734_s24  ;;  %964 = vrot.lane.b32.xlu0 %v911_v50, %s13734_s24 }
 0x1f7   :  { %966 = vrot.lane.b32.xlu1 %v10907_v49, %s13734_s24 }
 0x248   :  { %v939_v33 = vpop.permute.xlu1 %938 }
 0x249   :  { %v986_v34 = vsel %vm984_vm4, %v14133_v5, %v939_v33  ;;  %v937_v35 = vpop.permute.xlu0 %936 }
 0x24a   :  { %v1003_v37 = vsel %vm1001_vm5, %v986_v34, %v14188_v53  ;;  %v985_v38 = vsel %vm984_vm4, %v14135_v6, %v937_v35 }
 0x24b   :  { %v1002_v40 = vsel %vm1001_vm5, %v985_v38, %v14192_v56  ;;  %v1020_v43 = vsel %vm1018_vm6, %v1003_v37, %v14188_v53 }
 0x24c   :  { %v943_v41 = vpop.permute.xlu1 %942  ;;  %v1019_v42 = vsel %vm1018_vm6, %v1002_v40, %v14192_v56 }
 0x24d   :  { %v988_v5 = vsel %vm984_vm4, %v14137_v8, %v943_v41  ;;  %10926 = vmatprep.mubr.msk.f32.mxu1 %vm1048_vm7, %v1019_v42  ;;  %v941_v45 = vpop.permute.xlu0 %940 }
 0x24e   :  { %v1005_v6 = vsel %vm1001_vm5, %v988_v5, %v14186_v52  ;;  %v987_v46 = vsel %vm984_vm4, %v14139_v9, %v941_v45  ;;  %10927 = vmatmul.mubr.msk.f32.vlgmr.msra.gmra.mrb[16].mxu1 %vm1048_vm7, %v1020_v43 }
 0x24f   :  { %v1004_v48 = vsel %vm1001_vm5, %v987_v46, %v14190_v54  ;;  %v1022_v34 = vsel %vm1018_vm6, %v1005_v6, %v14186_v52 }
 0x250   :  { %v947_v49 = vpop.permute.xlu1 %946  ;;  %v1021_v50 = vsel %vm1018_vm6, %v1004_v48, %v14190_v54 }
 0x251   :  { %v990_v8 = vsel %vm984_vm4, %v14141_v10, %v947_v49  ;;  %10929 = vmatprep.mubr.msk.f32.mxu1 %vm1048_vm7, %v1021_v50  ;;  %v945_v33 = vpop.permute.xlu0 %944 }
 0x252   :  { %v1007_v9 = vsel %vm1001_vm5, %v990_v8, %v14194_v57  ;;  %v989_v35 = vsel %vm984_vm4, %v14143_v11, %v945_v33  ;;  %10930 = vmatmul.mubr.msk.f32.gmra.mrb[18].mxu1 %vm1048_vm7, %v1022_v34 }
 0x253   :  { %v1006_v37 = vsel %vm1001_vm5, %v989_v35, %v14196_v58  ;;  %v1024_v42 = vsel %vm1018_vm6, %v1007_v9, %v14194_v57 }
 0x254   :  { %v951_v38 = vpop.permute.xlu1 %950  ;;  %v1023_v10 = vsel %vm1018_vm6, %v1006_v37, %v14196_v58 }
 0x255   :  { %v992_v40 = vsel %vm984_vm4, %v14145_v13, %v951_v38  ;;  %10932 = vmatprep.mubr.msk.f32.mxu1 %vm1048_vm7, %v1023_v10  ;;  %v949_v41 = vpop.permute.xlu0 %948 }
 0x256   :  { %v1009_v11 = vsel %vm1001_vm5, %v992_v40, %v14198_v60  ;;  %v991_v43 = vsel %vm984_vm4, %v14147_v14, %v949_v41  ;;  %10933 = vmatmul.mubr.msk.f32.gmra.mrb[20].mxu1 %vm1048_vm7, %v1024_v42 }
 0x257   :  { %v1008_v5 = vsel %vm1001_vm5, %v991_v43, %v14200_v61  ;;  %v1026_v48 = vsel %vm1018_vm6, %v1009_v11, %v14198_v60 }
 0x258   :  { %v955_v45 = vpop.permute.xlu1 %954  ;;  %v1025_v13 = vsel %vm1018_vm6, %v1008_v5, %v14200_v61 }
 0x259   :  { %v994_v6 = vsel %vm984_vm4, %v14149_v16, %v955_v45  ;;  %10935 = vmatprep.mubr.msk.f32.mxu1 %vm1048_vm7, %v1025_v13  ;;  %v953_v46 = vpop.permute.xlu0 %952 }
 0x25a   :  { %v1011_v14 = vsel %vm1001_vm5, %v994_v6, %v14204_v0  ;;  %v993_v49 = vsel %vm984_vm4, %v14151_v17, %v953_v46  ;;  %10936 = vmatmul.mubr.msk.f32.gmra.mrb[22].mxu1 %vm1048_vm7, %v1026_v48 }
 0x25b   :  { %v1010_v50 = vsel %vm1001_vm5, %v993_v49, %v14202_v62  ;;  %v1028_v33 = vsel %vm1018_vm6, %v1011_v14, %v14204_v0  ;;  %v1357_v14 = vld [vmem:[%s18036_s8] sm:$0xff]  ;;  %v1358_v49 = vld [vmem:[%s18036_s8 + $0x8] sm:$0xff] }
 0x25c   :  { %v1027_v16 = vsel %vm1018_vm6, %v1010_v50, %v14202_v62  ;;  %v12059_v50 = vpack.c.bf16 %v1358_v49, %v1357_v14 }
 0x25d   :  { %10938 = vmatprep.mubr.msk.f32.mxu1 %vm1048_vm7, %v1027_v16  ;;  %v957_v8 = vpop.permute.xlu1 %956  ;;  %v1360_v16 = vld [vmem:[%s18036_s8 + $0x18] sm:$0xff] }
 0x25e   :  { %v995_v34 = vsel %vm984_vm4, %v14155_v19, %v957_v8  ;;  %10939 = vmatmul.mubr.msk.f32.gmra.mrb[24].mxu1 %vm1048_vm7, %v1028_v33  ;;  %12060 = vmatprep.subr.bf16.mxu1 %v12059_v50  ;;  %v1670_v33 = vld [vmem:[%s18037_s11] sm:$0xff] }
 0x25f   :  { %v1012_v17 = vsel %vm1001_vm5, %v995_v34, %v14206_v1  ;;  %12062 = vmatpush3.bf16.msra.mxu1 %v12059_v50  ;;  %v1671_v34 = vld [vmem:[%s18037_s11 + $0x8] sm:$0xff] }
 0x260   :  { %v1029_v9 = vsel %vm1018_vm6, %v1012_v17, %v14206_v1  ;;  %v12067_v17 = vpack.c.bf16 %v1671_v34, %v1670_v33 }
 0x261   :  { %10941 = vmatprep.mubr.msk.f32.mxu1 %vm1048_vm7, %v1029_v9  ;;  %v959_v35 = vpop.permute.xlu1 %958  ;;  %v961_v37 = vpop.permute.xlu0 %960  ;;  %v1044_v9 = vlaneseq }
 0x262   :  { %v996_v38 = vsel %vm984_vm4, %v14153_v18, %v959_v35  ;;  %v997_v10 = vsel %vm984_vm4, %v14164_v24, %v961_v37  ;;  %12068 = vmatprep.subr.bf16.mxu0 %v12067_v17 }
 0x263   :  { %v1013_v19 = vsel %vm1001_vm5, %v996_v38, %v14208_v2  ;;  %v1014_v40 = vsel %vm1001_vm5, %v997_v10, %v14210_v3  ;;  %12070 = vmatpush3.bf16.msra.mxu0 %v12067_v17  ;;  %v14348_v35 = vshrl.u32 %v1044_v9, 7  ;;  %v14356_v38 = vld [vmem:[%s18038_s13] sm:$0x1f] }
 0x264   :  { %v1030_v41 = vsel %vm1018_vm6, %v1013_v19, %v14208_v2  ;;  %v1031_v42 = vsel %vm1018_vm6, %v1014_v40, %v14210_v3 }
 0x265   :  { %10942 = vmatmul.mubr.msk.f32.gmra.mrb[26].mxu1 %vm1048_vm7, %v1030_v41  ;;  %v963_v11 = vpop.permute.xlu1 %962  ;;  %v965_v43 = vpop.permute.xlu0 %964  ;;  %18146 = vst [vmem:[#allocation25_spill] sm:$0xff] %v14348_v35  ;;  %v14351_v37 = vsub.s32 0, %v14348_v35 }
 0x266   :  { %v998_v18 = vsel %vm984_vm4, %v14161_v22, %v963_v11  ;;  %v999_v24 = vsel %vm984_vm4, %v14168_v28, %v965_v43  ;;  %10944 = vmatprep.mubr.msk.f32.mxu1 %vm1048_vm7, %v1031_v42 }
 0x267   :  { %v1015_v5 = vsel %vm1001_vm5, %v998_v18, %v14212_v21  ;;  %v1016_v45 = vsel %vm1001_vm5, %v999_v24, %v14214_v31  ;;  %18147 = vst [vmem:[#allocation26_spill] sm:$0xff] %v14351_v37  ;;  %v14360_v10 = vrot.slane %v14356_v38, %v14351_v37 }
 0x268   :  { %v1032_v13 = vsel %vm1018_vm6, %v1015_v5, %v14212_v21  ;;  %v1033_v6 = vsel %vm1018_vm6, %v1016_v45, %v14214_v31 }
 0x269   :  { %10945 = vmatmul.mubr.msk.f32.gmra.mrb[28].mxu1 %vm1048_vm7, %v1032_v13  ;;  %v967_v22 = vpop.permute.xlu1 %966 }
 0x26a   :  { %v1000_v28 = vsel %vm984_vm4, %v14166_v26, %v967_v22  ;;  %10947 = vmatprep.mubr.msk.f32.mxu1 %vm1048_vm7, %v1033_v6  ;;  %v1359_v26 = vld [vmem:[%s18036_s8 + $0x10] sm:$0xff] }
 0x26b   :  { %v1017_v46 = vsel %vm1001_vm5, %v1000_v28, %v14216_v32  ;;  %v12063_v8 = vpack.c.bf16 %v1360_v16, %v1359_v26 }
 0x26c   :  { %v1034_v48 = vsel %vm1018_vm6, %v1017_v46, %v14216_v32 }
 0x26d   :  { %10948 = vmatmul.mubr.msk.f32.gmra.mrb[30].mxu1 %vm1048_vm7, %v1034_v48  ;;  %12064 = vmatprep.subr.bf16.mxu1 %v12063_v8 }
 0x26e   :  { %12066 = vmatpush3.bf16.msra.mxu1 %v12063_v8 }
 0x321   :  { %v10928_v19 = vpop.f32.mrb[16].mxu1 }
 0x322   :  { %v14363_v40 = vadd.f32 %v10928_v19, %v14360_v10  ;;  %v1166_v41 = vpop.f32.mrb[17].mxu1 }
 0x323   :  { %v14366_v42 = vadd.f32 %v1166_v41, %v14360_v10 }
 0x324   :  { %v9412_v11 = vmul.f32 -1.442695, %v14363_v40 }
 0x325   :  { %v9411_v43 = vmul.f32 -1.442695, %v14366_v42  ;;  %v10931_v18 = vpop.f32.mrb[18].mxu1 }
 0x326   :  { %12529 = vpow2.f32 %v9412_v11  ;;  %v14371_v24 = vadd.f32 %v10931_v18, %v14360_v10  ;;  %v1176_v5 = vpop.f32.mrb[19].mxu1 }
 0x327   :  { %12531 = vpow2.f32 %v9411_v43  ;;  %v14374_v45 = vadd.f32 %v1176_v5, %v14360_v10 }
 0x328   :  { %v9414_v13 = vmul.f32 -1.442695, %v14371_v24 }
 0x329   :  { %v9413_v6 = vmul.f32 -1.442695, %v14374_v45  ;;  %v10934_v22 = vpop.f32.mrb[20].mxu1 }
 0x32a   :  { %12533 = vpow2.f32 %v9414_v13  ;;  %v14379_v28 = vadd.f32 %v10934_v22, %v14360_v10  ;;  %v1186_v46 = vpop.f32.mrb[21].mxu1 }
 0x32b   :  { %12535 = vpow2.f32 %v9413_v6  ;;  %v14382_v48 = vadd.f32 %v1186_v46, %v14360_v10 }
 0x32c   :  { %v9416_v14 = vmul.f32 -1.442695, %v14379_v28 }
 0x32d   :  { %v9415_v49 = vmul.f32 -1.442695, %v14382_v48  ;;  %v10937_v50 = vpop.f32.mrb[22].mxu1 }
 0x32e   :  { %12537 = vpow2.f32 %v9416_v14  ;;  %v14387_v26 = vadd.f32 %v10937_v50, %v14360_v10  ;;  %v1196_v16 = vpop.f32.mrb[23].mxu1 }
 0x32f   :  { %12539 = vpow2.f32 %v9415_v49  ;;  %v14390_v8 = vadd.f32 %v1196_v16, %v14360_v10 }
 0x330   :  { %v12530_v33 = vpop.eup %12529  ;;  %v9418_v34 = vmul.f32 -1.442695, %v14387_v26 }
 0x331   :  { %v12532_v17 = vpop.eup %12531  ;;  %v1294_v9 = vadd.f32 1.0, %v12530_v33  ;;  %v9417_v19 = vmul.f32 -1.442695, %v14390_v8  ;;  %v10940_v41 = vpop.f32.mrb[24].mxu1 }
 0x332   :  { %v1293_v11 = vadd.f32 1.0, %v12532_v17  ;;  %12541 = vpow2.f32 %v9418_v34  ;;  %v14395_v43 = vadd.f32 %v10940_v41, %v14360_v10  ;;  %v1206_v18 = vpop.f32.mrb[25].mxu1 }
 0x333   :  { %12543 = vrcp.f32 %v1294_v9  ;;  %v14398_v5 = vadd.f32 %v1206_v18, %v14360_v10 }
 0x334   :  { %v12534_v13 = vpop.eup %12533  ;;  %12545 = vrcp.f32 %v1293_v11  ;;  %v9420_v6 = vmul.f32 -1.442695, %v14395_v43 }
 0x335   :  { %v12536_v22 = vpop.eup %12535  ;;  %v1296_v46 = vadd.f32 1.0, %v12534_v13  ;;  %12547 = vpow2.f32 %v9417_v19  ;;  %v9419_v14 = vmul.f32 -1.442695, %v14398_v5 }
 0x336   :  { %v1295_v49 = vadd.f32 1.0, %v12536_v22  ;;  %12549 = vpow2.f32 %v9420_v6 }
 0x337   :  { %12551 = vrcp.f32 %v1296_v46 }
 0x338   :  { %v12538_v50 = vpop.eup %12537  ;;  %12553 = vrcp.f32 %v1295_v49  ;;  %v10943_v16 = vpop.f32.mrb[26].mxu1 }
 0x339   :  { %v12540_v33 = vpop.eup %12539  ;;  %v1298_v34 = vadd.f32 1.0, %v12538_v50  ;;  %12555 = vpow2.f32 %v9419_v14  ;;  %v14403_v17 = vadd.f32 %v10943_v16, %v14360_v10  ;;  %v1216_v9 = vpop.f32.mrb[27].mxu1 }
 0x33a   :  { %v1297_v41 = vadd.f32 1.0, %v12540_v33  ;;  %v14406_v11 = vadd.f32 %v1216_v9, %v14360_v10 }
 0x33b   :  { %12557 = vrcp.f32 %v1298_v34  ;;  %v9422_v19 = vmul.f32 -1.442695, %v14403_v17 }
 0x33c   :  { %v12542_v18 = vpop.eup %12541  ;;  %12559 = vrcp.f32 %v1297_v41  ;;  %v9421_v13 = vmul.f32 -1.442695, %v14406_v11  ;;  %v10946_v6 = vpop.f32.mrb[28].mxu1 }
 0x33d   :  { %v12544_v22 = vpop.eup %12543  ;;  %v1300_v46 = vadd.f32 1.0, %v12542_v18  ;;  %12561 = vpow2.f32 %v9422_v19  ;;  %v14411_v14 = vadd.f32 %v10946_v6, %v14360_v10  ;;  %v1226_v49 = vpop.f32.mrb[29].mxu1 }
 0x33e   :  { %v12546_v50 = vpop.eup %12545  ;;  %12563 = vpow2.f32 %v9421_v13  ;;  %v14414_v16 = vadd.f32 %v1226_v49, %v14360_v10  ;;  %v1342_v37 = vmul.f32 %v12544_v22, %v14363_v40 }
 0x33f   :  { %v12548_v33 = vpop.eup %12547  ;;  %v1341_v34 = vmul.f32 %v12546_v50, %v14366_v42  ;;  %v9424_v9 = vmul.f32 -1.442695, %v14411_v14  ;;  %12565 = vrcp.f32 %v1300_v46 }
 0x340   :  { %v12550_v41 = vpop.eup %12549  ;;  %v1299_v18 = vadd.f32 1.0, %v12548_v33  ;;  %v9423_v19 = vmul.f32 -1.442695, %v14414_v16  ;;  %v10949_v6 = vpop.f32.mrb[30].mxu1 }
 0x341   :  { %v12552_v25 = vpop.eup %12551  ;;  %v1302_v27 = vadd.f32 1.0, %v12550_v41  ;;  %12567 = vpow2.f32 %v9424_v9  ;;  %v14421_v13 = vadd.f32 %v10949_v6, %v14360_v10  ;;  %v1236_v49 = vpop.f32.mrb[31].mxu1  ;;  %10958 = vmatprep.mubr.msk.f32.mxu1 %vm984_vm4, %v1341_v34 }
 0x342   :  { %v12554_v42 = vpop.eup %12553  ;;  %12569 = vrcp.f32 %v1299_v18  ;;  %v14425_v50 = vadd.f32 %v1236_v49, %v14360_v10  ;;  %10959 = vmatmul.mubr.msk.f32.vlgmr.msra.gmra.mrb[32].mxu1 %vm984_vm4, %v1342_v37  ;;  %v1344_v33 = vmul.f32 %v12552_v25, %v14371_v24 }
 0x343   :  { %v12556_v40 = vpop.eup %12555  ;;  %v1343_v22 = vmul.f32 %v12554_v42, %v14374_v45  ;;  %12571 = vrcp.f32 %v1302_v27  ;;  %v9426_v46 = vmul.f32 -1.442695, %v14421_v13 }
 0x344   :  { %v1301_v9 = vadd.f32 1.0, %v12556_v40  ;;  %12573 = vpow2.f32 %v9423_v19  ;;  %v9425_v41 = vmul.f32 -1.442695, %v14425_v50 }
 0x345   :  { %v12558_v34 = vpop.eup %12557  ;;  %12575 = vpow2.f32 %v9426_v46  ;;  %10961 = vmatprep.mubr.msk.f32.mxu1 %vm984_vm4, %v1343_v22 }
 0x346   :  { %v12560_v10 = vpop.eup %12559  ;;  %12577 = vrcp.f32 %v1301_v9  ;;  %10962 = vmatmul.mubr.msk.f32.gmra.mrb[34].mxu1 %vm984_vm4, %v1344_v33  ;;  %v1346_v18 = vmul.f32 %v12558_v34, %v14379_v28 }
 0x347   :  { %v12562_v37 = vpop.eup %12561  ;;  %v1345_v45 = vmul.f32 %v12560_v10, %v14382_v48  ;;  %12579 = vpow2.f32 %v9425_v41 }
 0x348   :  { %v12564_v27 = vpop.eup %12563  ;;  %v1304_v25 = vadd.f32 1.0, %v12562_v37 }
 0x349   :  { %v1303_v24 = vadd.f32 1.0, %v12564_v27  ;;  %10964 = vmatprep.mubr.msk.f32.mxu1 %vm984_vm4, %v1345_v45  ;;  %v12566_v19 = vpop.eup %12565 }
 0x34a   :  { %12581 = vrcp.f32 %v1304_v25  ;;  %10965 = vmatmul.mubr.msk.f32.gmra.mrb[36].mxu1 %vm984_vm4, %v1346_v18  ;;  %v1348_v46 = vmul.f32 %v12566_v19, %v14387_v26 }
 0x34b   :  { %v12568_v6 = vpop.eup %12567  ;;  %12583 = vrcp.f32 %v1303_v24 }
 0x34c   :  { %v12570_v49 = vpop.eup %12569  ;;  %v1306_v42 = vadd.f32 1.0, %v12568_v6 }
 0x34d   :  { %v12572_v40 = vpop.eup %12571  ;;  %v1347_v22 = vmul.f32 %v12570_v49, %v14390_v8 }
 0x34e   :  { %v12574_v48 = vpop.eup %12573  ;;  %12585 = vrcp.f32 %v1306_v42  ;;  %v1350_v37 = vmul.f32 %v12572_v40, %v14395_v43  ;;  %v1985_v40 = vld [vmem:[%s18039_s12 + $0x10] sm:$0xff] }
 0x34f   :  { %v12576_v33 = vpop.eup %12575  ;;  %v1305_v28 = vadd.f32 1.0, %v12574_v48  ;;  %10967 = vmatprep.mubr.msk.f32.mxu1 %vm984_vm4, %v1347_v22  ;;  %v1986_v22 = vld [vmem:[%s18039_s12 + $0x18] sm:$0xff] }
 0x350   :  { %v12578_v9 = vpop.eup %12577  ;;  %v1308_v41 = vadd.f32 1.0, %v12576_v33  ;;  %10968 = vmatmul.mubr.msk.f32.gmra.mrb[38].mxu1 %vm984_vm4, %v1348_v46  ;;  %v12079_v48 = vpack.c.bf16 %v1986_v22, %v1985_v40  ;;  %v14477_v46 = vsub.s32 1, %v14348_v35 }
 0x351   :  { %v12580_v34 = vpop.eup %12579  ;;  %v1349_v10 = vmul.f32 %v12578_v9, %v14398_v5  ;;  %12587 = vrcp.f32 %v1305_v28 }
 0x352   :  { %v1307_v45 = vadd.f32 1.0, %v12580_v34  ;;  %12589 = vrcp.f32 %v1308_v41  ;;  %18148 = vst [vmem:[#allocation27_spill] sm:$0xff] %v14477_v46  ;;  %v14481_v33 = vrot.slane %v14356_v38, %v14477_v46 }
 0x353   :  { %10970 = vmatprep.mubr.msk.f32.mxu1 %vm984_vm4, %v1349_v10 }
 0x354   :  { %v12582_v26 = vpop.eup %12581  ;;  %12591 = vrcp.f32 %v1307_v45  ;;  %10971 = vmatmul.mubr.msk.f32.gmra.mrb[40].mxu1 %vm984_vm4, %v1350_v37 }
 0x355   :  { %v12584_v8 = vpop.eup %12583  ;;  %v1352_v18 = vmul.f32 %v12582_v26, %v14403_v17 }
 0x356   :  { %v1351_v27 = vmul.f32 %v12584_v8, %v14406_v11  ;;  %v1983_v11 = vld [vmem:[%s18039_s12] sm:$0xff] }
 0x358   :  { %10973 = vmatprep.mubr.msk.f32.mxu1 %vm984_vm4, %v1351_v27  ;;  %v12586_v5 = vpop.eup %12585 }
 0x359   :  { %10974 = vmatmul.mubr.msk.f32.gmra.mrb[42].mxu1 %vm984_vm4, %v1352_v18  ;;  %v1354_v19 = vmul.f32 %v12586_v5, %v14411_v14  ;;  %v1984_v14 = vld [vmem:[%s18039_s12 + $0x8] sm:$0xff] }
 0x35b   :  { %v12588_v25 = vpop.eup %12587 }
 0x35c   :  { %v1353_v43 = vmul.f32 %v12588_v25, %v14414_v16  ;;  %v12590_v24 = vpop.eup %12589  ;;  %v1672_v16 = vld [vmem:[%s18037_s11 + $0x10] sm:$0xff] }
 0x35d   :  { %v1356_v17 = vmul.f32 %v12590_v24, %v14421_v13  ;;  %v1673_v13 = vld [vmem:[%s18037_s11 + $0x18] sm:$0xff] }
 0x35e   :  { %v12592_v6 = vpop.eup %12591  ;;  %10976 = vmatprep.mubr.msk.f32.mxu1 %vm984_vm4, %v1353_v43  ;;  %v12071_v42 = vpack.c.bf16 %v1673_v13, %v1672_v16 }
 0x35f   :  { %v1355_v49 = vmul.f32 %v12592_v6, %v14425_v50  ;;  %10977 = vmatmul.mubr.msk.f32.gmra.mrb[44].mxu1 %vm984_vm4, %v1354_v19  ;;  %v12075_v50 = vpack.c.bf16 %v1984_v14, %v1983_v11 }
 0x360   :  { %12072 = vmatprep.subr.bf16.mxu0 %v12071_v42 }
 0x361   :  { %10979 = vmatprep.mubr.msk.f32.mxu1 %vm984_vm4, %v1355_v49  ;;  %12076 = vmatprep.subr.bf16.mxu1 %v12075_v50 }
 0x362   :  { %12078 = vmatpush3.bf16.msra.mxu1 %v12075_v50  ;;  %12074 = vmatpush3.bf16.msra.mxu0 %v12071_v42 }
 0x363   :  { %10980 = vmatmul.mubr.msk.f32.gmra.mrb[46].mxu1 %vm984_vm4, %v1356_v17  ;;  %12080 = vmatprep.subr.bf16.mxu1 %v12079_v48 }
 0x366   :  { %12082 = vmatpush3.bf16.msra.mxu1 %v12079_v48 }
 0x415   :  { %v10960_v28 = vpop.f32.mrb[32].mxu1 }
 0x416   :  { %v14484_v9 = vadd.f32 %v10960_v28, %v14481_v33  ;;  %v1479_v41 = vpop.f32.mrb[33].mxu1 }
 0x417   :  { %v14487_v34 = vadd.f32 %v1479_v41, %v14481_v33 }
 0x418   :  { %v9444_v10 = vmul.f32 -1.442695, %v14484_v9 }
 0x419   :  { %v9443_v37 = vmul.f32 -1.442695, %v14487_v34  ;;  %v10963_v45 = vpop.f32.mrb[34].mxu1 }
 0x41a   :  { %12593 = vpow2.f32 %v9444_v10  ;;  %v14492_v26 = vadd.f32 %v10963_v45, %v14481_v33  ;;  %v1489_v8 = vpop.f32.mrb[35].mxu1 }
 0x41b   :  { %12595 = vpow2.f32 %v9443_v37  ;;  %v14495_v27 = vadd.f32 %v1489_v8, %v14481_v33 }
 0x41c   :  { %v9446_v18 = vmul.f32 -1.442695, %v14492_v26 }
 0x41d   :  { %v9445_v5 = vmul.f32 -1.442695, %v14495_v27  ;;  %v10966_v25 = vpop.f32.mrb[36].mxu1 }
 0x41e   :  { %12597 = vpow2.f32 %v9446_v18  ;;  %v14500_v43 = vadd.f32 %v10966_v25, %v14481_v33  ;;  %v1499_v24 = vpop.f32.mrb[37].mxu1 }
 0x41f   :  { %12599 = vpow2.f32 %v9445_v5  ;;  %v14503_v19 = vadd.f32 %v1499_v24, %v14481_v33 }
 0x420   :  { %v9448_v6 = vmul.f32 -1.442695, %v14500_v43 }
 0x421   :  { %v9447_v49 = vmul.f32 -1.442695, %v14503_v19 }
 0x422   :  { %12601 = vpow2.f32 %v9448_v6 }
 0x423   :  { %12603 = vpow2.f32 %v9447_v49  ;;  %v10969_v17 = vpop.f32.mrb[38].mxu1 }
 0x424   :  { %v12594_v11 = vpop.eup %12593  ;;  %v14508_v14 = vadd.f32 %v10969_v17, %v14481_v33  ;;  %v1509_v16 = vpop.f32.mrb[39].mxu1 }
 0x425   :  { %v12596_v13 = vpop.eup %12595  ;;  %v1607_v50 = vadd.f32 1.0, %v12594_v11  ;;  %v14511_v42 = vadd.f32 %v1509_v16, %v14481_v33 }
 0x426   :  { %v1606_v40 = vadd.f32 1.0, %v12596_v13  ;;  %v9450_v22 = vmul.f32 -1.442695, %v14508_v14 }
 0x427   :  { %12605 = vrcp.f32 %v1607_v50  ;;  %v9449_v48 = vmul.f32 -1.442695, %v14511_v42  ;;  %v10972_v28 = vpop.f32.mrb[40].mxu1 }
 0x428   :  { %v12598_v41 = vpop.eup %12597  ;;  %12607 = vrcp.f32 %v1606_v40  ;;  %v14516_v10 = vadd.f32 %v10972_v28, %v14481_v33  ;;  %v1519_v37 = vpop.f32.mrb[41].mxu1 }
 0x429   :  { %v12600_v45 = vpop.eup %12599  ;;  %v1609_v8 = vadd.f32 1.0, %v12598_v41  ;;  %12609 = vpow2.f32 %v9450_v22  ;;  %v14519_v18 = vadd.f32 %v1519_v37, %v14481_v33 }
 0x42a   :  { %v1608_v5 = vadd.f32 1.0, %v12600_v45  ;;  %12611 = vpow2.f32 %v9449_v48  ;;  %v9452_v25 = vmul.f32 -1.442695, %v14516_v10 }
 0x42b   :  { %12613 = vrcp.f32 %v1609_v8  ;;  %v9451_v24 = vmul.f32 -1.442695, %v14519_v18 }
 0x42c   :  { %v12602_v6 = vpop.eup %12601  ;;  %12615 = vrcp.f32 %v1608_v5  ;;  %v10975_v49 = vpop.f32.mrb[42].mxu1 }
 0x42d   :  { %v12604_v17 = vpop.eup %12603  ;;  %v1611_v11 = vadd.f32 1.0, %v12602_v6  ;;  %12617 = vpow2.f32 %v9452_v25  ;;  %v14524_v16 = vadd.f32 %v10975_v49, %v14481_v33  ;;  %v1529_v13 = vpop.f32.mrb[43].mxu1 }
 0x42e   :  { %v1610_v50 = vadd.f32 1.0, %v12604_v17  ;;  %12619 = vpow2.f32 %v9451_v24  ;;  %v14527_v40 = vadd.f32 %v1529_v13, %v14481_v33 }
 0x42f   :  { %12621 = vrcp.f32 %v1611_v11  ;;  %v9454_v22 = vmul.f32 -1.442695, %v14524_v16 }
 0x430   :  { %12623 = vrcp.f32 %v1610_v50  ;;  %v9453_v48 = vmul.f32 -1.442695, %v14527_v40 }
 0x431   :  { %v12606_v28 = vpop.eup %12605  ;;  %12625 = vpow2.f32 %v9454_v22 }
 0x432   :  { %v12608_v41 = vpop.eup %12607  ;;  %v1655_v37 = vmul.f32 %v12606_v28, %v14484_v9  ;;  %12627 = vpow2.f32 %v9453_v48  ;;  %v10978_v45 = vpop.f32.mrb[44].mxu1 }
 0x433   :  { %v12610_v8 = vpop.eup %12609  ;;  %v1654_v5 = vmul.f32 %v12608_v41, %v14487_v34  ;;  %v14534_v25 = vadd.f32 %v10978_v45, %v14481_v33  ;;  %v1539_v24 = vpop.f32.mrb[45].mxu1 }
 0x434   :  { %v12612_v6 = vpop.eup %12611  ;;  %v1613_v49 = vadd.f32 1.0, %v12610_v8  ;;  %v14537_v17 = vadd.f32 %v1539_v24, %v14481_v33 }
 0x435   :  { %v12614_v11 = vpop.eup %12613  ;;  %v1612_v13 = vadd.f32 1.0, %v12612_v6  ;;  %v9456_v50 = vmul.f32 -1.442695, %v14534_v25  ;;  %10990 = vmatprep.mubr.msk.f32.mxu0 %vm984_vm4, %v1654_v5  ;;  %v14541_v9 = vpack.c.bf16 %v1655_v37, %v1654_v5 }
 0x436   :  { %v12616_v22 = vpop.eup %12615  ;;  %v1657_v34 = vmul.f32 %v12614_v11, %v14492_v26  ;;  %12629 = vrcp.f32 %v1613_v49  ;;  %v9455_v48 = vmul.f32 -1.442695, %v14537_v17  ;;  %v10981_v28 = vpop.f32.mrb[46].mxu1  ;;  %10991 = vmatmul.mubr.msk.f32.vlgmr.msra.gmra.mrb[34].mxu0 %vm984_vm4, %v1655_v37 }
 0x437   :  { %v12618_v41 = vpop.eup %12617  ;;  %v1656_v45 = vmul.f32 %v12616_v22, %v14495_v27  ;;  %12631 = vrcp.f32 %v1612_v13  ;;  %v14548_v8 = vadd.f32 %v10981_v28, %v14481_v33  ;;  %v1549_v24 = vpop.f32.mrb[47].mxu1  ;;  %12116 = vmatprep.subr.bf16.mxu1 %v14541_v9 }
 0x438   :  { %v12620_v5 = vpop.eup %12619  ;;  %v1615_v6 = vadd.f32 1.0, %v12618_v41  ;;  %12633 = vpow2.f32 %v9456_v50  ;;  %v14552_v26 = vadd.f32 %v1549_v24, %v14481_v33 }
 0x439   :  { %v12622_v49 = vpop.eup %12621  ;;  %v1614_v11 = vadd.f32 1.0, %v12620_v5  ;;  %12635 = vpow2.f32 %v9455_v48  ;;  %v9458_v37 = vmul.f32 -1.442695, %v14548_v8  ;;  %10993 = vmatprep.mubr.msk.f32.mxu0 %vm984_vm4, %v1656_v45  ;;  %v14556_v27 = vpack.c.bf16 %v1657_v34, %v1656_v45 }
 0x43a   :  { %v12624_v13 = vpop.eup %12623  ;;  %v1659_v22 = vmul.f32 %v12622_v49, %v14500_v43  ;;  %12637 = vrcp.f32 %v1615_v6  ;;  %v9457_v28 = vmul.f32 -1.442695, %v14552_v26  ;;  %10994 = vmatmul.mubr.msk.f32.gmra.mrb[36].mxu0 %vm984_vm4, %v1657_v34 }
 0x43b   :  { %v12626_v50 = vpop.eup %12625  ;;  %v1658_v33 = vmul.f32 %v12624_v13, %v14503_v19  ;;  %12639 = vrcp.f32 %v1614_v11 }
 0x43c   :  { %v12628_v41 = vpop.eup %12627  ;;  %v1617_v48 = vadd.f32 1.0, %v12626_v50  ;;  %12641 = vpow2.f32 %v9458_v37 }
 0x43d   :  { %v1616_v24 = vadd.f32 1.0, %v12628_v41  ;;  %12643 = vpow2.f32 %v9457_v28  ;;  %10996 = vmatprep.mubr.msk.f32.mxu0 %vm984_vm4, %v1658_v33  ;;  %v14563_v45 = vpack.c.bf16 %v1659_v22, %v1658_v33 }
 0x43e   :  { %12645 = vrcp.f32 %v1617_v48  ;;  %10997 = vmatmul.mubr.msk.f32.gmra.mrb[38].mxu0 %vm984_vm4, %v1659_v22 }
 0x43f   :  { %12647 = vrcp.f32 %v1616_v24 }
 0x440   :  { %v12630_v43 = vpop.eup %12629 }
 0x441   :  { %v12632_v5 = vpop.eup %12631  ;;  %v1661_v34 = vmul.f32 %v12630_v43, %v14508_v14 }
 0x442   :  { %v12634_v6 = vpop.eup %12633  ;;  %v1660_v19 = vmul.f32 %v12632_v5, %v14511_v42 }
 0x443   :  { %v12636_v49 = vpop.eup %12635  ;;  %v1619_v11 = vadd.f32 1.0, %v12634_v6 }
 0x444   :  { %v12638_v37 = vpop.eup %12637  ;;  %v1618_v13 = vadd.f32 1.0, %v12636_v49  ;;  %10999 = vmatprep.mubr.msk.f32.mxu0 %vm984_vm4, %v1660_v19  ;;  %v14569_v28 = vpack.c.bf16 %v1661_v34, %v1660_v19 }
 0x445   :  { %v12640_v50 = vpop.eup %12639  ;;  %v1663_v33 = vmul.f32 %v12638_v37, %v14516_v10  ;;  %12649 = vrcp.f32 %v1619_v11  ;;  %11000 = vmatmul.mubr.msk.f32.gmra.mrb[40].mxu0 %vm984_vm4, %v1661_v34 }
 0x446   :  { %v12642_v22 = vpop.eup %12641  ;;  %v1662_v14 = vmul.f32 %v12640_v50, %v14519_v18  ;;  %12651 = vrcp.f32 %v1618_v13 }
 0x447   :  { %v12644_v41 = vpop.eup %12643  ;;  %v1621_v42 = vadd.f32 1.0, %v12642_v22 }
 0x448   :  { %v12646_v48 = vpop.eup %12645  ;;  %v1620_v24 = vadd.f32 1.0, %v12644_v41  ;;  %11002 = vmatprep.mubr.msk.f32.mxu0 %vm984_vm4, %v1662_v14  ;;  %v14575_v43 = vpack.c.bf16 %v1663_v33, %v1662_v14 }
 0x449   :  { %v12648_v5 = vpop.eup %12647  ;;  %v1665_v6 = vmul.f32 %v12646_v48, %v14524_v16  ;;  %12653 = vrcp.f32 %v1621_v42  ;;  %11003 = vmatmul.mubr.msk.f32.gmra.mrb[42].mxu0 %vm984_vm4, %v1663_v33 }
 0x44a   :  { %v1664_v10 = vmul.f32 %v12648_v5, %v14527_v40  ;;  %12655 = vrcp.f32 %v1620_v24 }
 0x44c   :  { %11005 = vmatprep.mubr.msk.f32.mxu0 %vm984_vm4, %v1664_v10  ;;  %v14581_v18 = vpack.c.bf16 %v1665_v6, %v1664_v10 }
 0x44d   :  { %11006 = vmatmul.mubr.msk.f32.gmra.mrb[44].mxu0 %vm984_vm4, %v1665_v6 }
 0x44f   :  { %v12650_v34 = vpop.eup %12649 }
 0x450   :  { %v12652_v19 = vpop.eup %12651  ;;  %v1667_v49 = vmul.f32 %v12650_v34, %v14534_v25  ;;  %v14599_v25 = vld [vmem:[%s18040_s4] sm:$0xff] }
 0x451   :  { %v1666_v11 = vmul.f32 %v12652_v19, %v14537_v17  ;;  %v14603_v17 = vsub.s32 4, %v14348_v35 }
 0x453   :  { %v12654_v37 = vpop.eup %12653  ;;  %11008 = vmatprep.mubr.msk.f32.mxu0 %vm984_vm4, %v1666_v11  ;;  %v14587_v16 = vpack.c.bf16 %v1667_v49, %v1666_v11  ;;  %18149 = vst [vmem:[#allocation28_spill] sm:$0xff] %v14603_v17 }
 0x454   :  { %v12656_v13 = vpop.eup %12655  ;;  %v1669_v40 = vmul.f32 %v12654_v37, %v14548_v8  ;;  %11009 = vmatmul.mubr.msk.f32.gmra.mrb[46].mxu0 %vm984_vm4, %v1667_v49  ;;  %v14607_v8 = vrot.slane %v14356_v38, %v14603_v17 }
 0x455   :  { %v1668_v50 = vmul.f32 %v12656_v13, %v14552_v26 }
 0x457   :  { %11011 = vmatprep.mubr.msk.f32.mxu0 %vm984_vm4, %v1668_v50  ;;  %v14593_v33 = vpack.c.bf16 %v1669_v40, %v1668_v50 }
 0x458   :  { %11012 = vmatmul.mubr.msk.f32.gmra.mrb[48].mxu0 %vm984_vm4, %v1669_v40 }
 0x459   :  { %11078 = vmatprep.mubr.f32.mxu0 %v14599_v25 }
 0x509   :  { %v10992_v26 = vpop.f32.mrb[34].mxu0 }
 0x50a   :  { %v14610_v22 = vadd.f32 %v10992_v26, %v14607_v8  ;;  %v1792_v14 = vpop.f32.mrb[35].mxu0 }
 0x50b   :  { %v14613_v41 = vadd.f32 %v1792_v14, %v14607_v8 }
 0x50c   :  { %v9476_v42 = vmul.f32 -1.442695, %v14610_v22 }
 0x50d   :  { %v9475_v48 = vmul.f32 -1.442695, %v14613_v41  ;;  %v10995_v24 = vpop.f32.mrb[36].mxu0 }
 0x50e   :  { %12657 = vpow2.f32 %v9476_v42  ;;  %v14618_v5 = vadd.f32 %v10995_v24, %v14607_v8  ;;  %v1802_v6 = vpop.f32.mrb[37].mxu0 }
 0x50f   :  { %12659 = vpow2.f32 %v9475_v48  ;;  %v14621_v38 = vadd.f32 %v1802_v6, %v14607_v8 }
 0x510   :  { %v9478_v10 = vmul.f32 -1.442695, %v14618_v5 }
 0x511   :  { %v9477_v34 = vmul.f32 -1.442695, %v14621_v38  ;;  %v10998_v19 = vpop.f32.mrb[38].mxu0 }
 0x512   :  { %12661 = vpow2.f32 %v9478_v10  ;;  %v14626_v49 = vadd.f32 %v10998_v19, %v14607_v8  ;;  %v1812_v11 = vpop.f32.mrb[39].mxu0 }
 0x513   :  { %12663 = vpow2.f32 %v9477_v34  ;;  %v14629_v37 = vadd.f32 %v1812_v11, %v14607_v8 }
 0x514   :  { %v9480_v13 = vmul.f32 -1.442695, %v14626_v49 }
 0x515   :  { %v9479_v40 = vmul.f32 -1.442695, %v14629_v37 }
 0x516   :  { %12665 = vpow2.f32 %v9480_v13 }
 0x517   :  { %12667 = vpow2.f32 %v9479_v40 }
 0x518   :  { %v12658_v50 = vpop.eup %12657  ;;  %v11001_v26 = vpop.f32.mrb[40].mxu0 }
 0x519   :  { %v12660_v14 = vpop.eup %12659  ;;  %v1920_v42 = vadd.f32 1.0, %v12658_v50  ;;  %v14634_v48 = vadd.f32 %v11001_v26, %v14607_v8  ;;  %v1822_v24 = vpop.f32.mrb[41].mxu0 }
 0x51a   :  { %v1919_v6 = vadd.f32 1.0, %v12660_v14  ;;  %v14637_v10 = vadd.f32 %v1822_v24, %v14607_v8 }
 0x51b   :  { %12669 = vrcp.f32 %v1920_v42  ;;  %v9482_v34 = vmul.f32 -1.442695, %v14634_v48 }
 0x51c   :  { %v12662_v19 = vpop.eup %12661  ;;  %12671 = vrcp.f32 %v1919_v6  ;;  %v9481_v11 = vmul.f32 -1.442695, %v14637_v10  ;;  %v11004_v13 = vpop.f32.mrb[42].mxu0 }
 0x51d   :  { %v12664_v40 = vpop.eup %12663  ;;  %v1922_v17 = vadd.f32 1.0, %v12662_v19  ;;  %12673 = vpow2.f32 %v9482_v34  ;;  %v14642_v50 = vadd.f32 %v11004_v13, %v14607_v8  ;;  %v1832_v26 = vpop.f32.mrb[43].mxu0 }
 0x51e   :  { %v1921_v46 = vadd.f32 1.0, %v12664_v40  ;;  %12675 = vpow2.f32 %v9481_v11  ;;  %v14645_v14 = vadd.f32 %v1832_v26, %v14607_v8 }
 0x51f   :  { %12677 = vrcp.f32 %v1922_v17  ;;  %v9484_v42 = vmul.f32 -1.442695, %v14642_v50 }
 0x520   :  { %v12666_v24 = vpop.eup %12665  ;;  %12679 = vrcp.f32 %v1921_v46  ;;  %v9483_v6 = vmul.f32 -1.442695, %v14645_v14  ;;  %v11007_v35 = vpop.f32.mrb[44].mxu0 }
 0x521   :  { %v12668_v23 = vpop.eup %12667  ;;  %v1924_v19 = vadd.f32 1.0, %v12666_v24  ;;  %12681 = vpow2.f32 %v9484_v42  ;;  %v14650_v34 = vadd.f32 %v11007_v35, %v14607_v8  ;;  %v1842_v13 = vpop.f32.mrb[45].mxu0 }
 0x522   :  { %v1923_v40 = vadd.f32 1.0, %v12668_v23  ;;  %12683 = vpow2.f32 %v9483_v6  ;;  %v14653_v11 = vadd.f32 %v1842_v13, %v14607_v8 }
 0x523   :  { %12685 = vrcp.f32 %v1924_v19  ;;  %v9486_v17 = vmul.f32 -1.442695, %v14650_v34 }
 0x524   :  { %12687 = vrcp.f32 %v1923_v40  ;;  %v9485_v46 = vmul.f32 -1.442695, %v14653_v11 }
 0x525   :  { %v12670_v26 = vpop.eup %12669  ;;  %12689 = vpow2.f32 %v9486_v17 }
 0x526   :  { %v12672_v20 = vpop.eup %12671  ;;  %12691 = vpow2.f32 %v9485_v46  ;;  %v1968_v23 = vmul.f32 %v12670_v26, %v14610_v22 }
 0x527   :  { %v12674_v42 = vpop.eup %12673  ;;  %v1967_v35 = vmul.f32 %v12672_v20, %v14613_v41  ;;  %v11010_v24 = vpop.f32.mrb[46].mxu0 }
 0x528   :  { %v12676_v15 = vpop.eup %12675  ;;  %v1926_v6 = vadd.f32 1.0, %v12674_v42  ;;  %v14660_v13 = vadd.f32 %v11010_v24, %v14607_v8  ;;  %v1852_v19 = vpop.f32.mrb[47].mxu0 }
 0x529   :  { %v12678_v12 = vpop.eup %12677  ;;  %v1925_v40 = vadd.f32 1.0, %v12676_v15  ;;  %v14663_v7 = vadd.f32 %v1852_v19, %v14607_v8  ;;  %11022 = vmatprep.mubr.msk.f32.mxu1 %vm984_vm4, %v1967_v35 }
 0x52a   :  { %v12680_v17 = vpop.eup %12679  ;;  %12693 = vrcp.f32 %v1926_v6  ;;  %v9488_v20 = vmul.f32 -1.442695, %v14660_v13  ;;  %11023 = vmatmul.mubr.msk.f32.vlgmr.msra.gmra.mrb[48].mxu1 %vm984_vm4, %v1968_v23  ;;  %v1970_v42 = vmul.f32 %v12678_v12, %v14618_v5 }
 0x52b   :  { %v12682_v41 = vpop.eup %12681  ;;  %v1969_v22 = vmul.f32 %v12680_v17, %v14621_v38  ;;  %12695 = vrcp.f32 %v1925_v40  ;;  %v9487_v46 = vmul.f32 -1.442695, %v14663_v7  ;;  %v11013_v26 = vpop.f32.mrb[48].mxu0  ;;  %12118 = vmatpush3.bf16.msra.mxu1 %v14541_v9 }
 0x52c   :  { %v12684_v15 = vpop.eup %12683  ;;  %v1928_v24 = vadd.f32 1.0, %v12682_v41  ;;  %12697 = vpow2.f32 %v9488_v20  ;;  %v14673_v35 = vadd.f32 %v11013_v26, %v14607_v8  ;;  %v1862_v6 = vpop.f32.mrb[49].mxu0  ;;  %12120 = vmatprep.subr.bf16.mxu1 %v14556_v27 }
 0x52d   :  { %v12686_v23 = vpop.eup %12685  ;;  %v1927_v19 = vadd.f32 1.0, %v12684_v15  ;;  %12699 = vpow2.f32 %v9487_v46  ;;  %v14677_v38 = vadd.f32 %v1862_v6, %v14607_v8  ;;  %11025 = vmatprep.mubr.msk.f32.mxu1 %vm984_vm4, %v1969_v22 }
 0x52e   :  { %v12688_v9 = vpop.eup %12687  ;;  %12701 = vrcp.f32 %v1928_v24  ;;  %v9490_v12 = vmul.f32 -1.442695, %v14673_v35  ;;  %11026 = vmatmul.mubr.msk.f32.gmra.mrb[50].mxu1 %vm984_vm4, %v1970_v42  ;;  %v1972_v8 = vmul.f32 %v12686_v23, %v14626_v49 }
 0x52f   :  { %v12690_v5 = vpop.eup %12689  ;;  %v1971_v40 = vmul.f32 %v12688_v9, %v14629_v37  ;;  %12703 = vrcp.f32 %v1927_v19  ;;  %v9489_v17 = vmul.f32 -1.442695, %v14677_v38  ;;  %12122 = vmatpush3.bf16.msra.mxu1 %v14556_v27 }
 0x530   :  { %v12692_v20 = vpop.eup %12691  ;;  %v1930_v41 = vadd.f32 1.0, %v12690_v5  ;;  %12705 = vpow2.f32 %v9490_v12  ;;  %12124 = vmatprep.subr.bf16.mxu1 %v14563_v45 }
 0x531   :  { %v1929_v22 = vadd.f32 1.0, %v12692_v20  ;;  %12707 = vpow2.f32 %v9489_v17  ;;  %11028 = vmatprep.mubr.msk.f32.mxu1 %vm984_vm4, %v1971_v40 }
 0x532   :  { %12709 = vrcp.f32 %v1930_v41  ;;  %11029 = vmatmul.mubr.msk.f32.gmra.mrb[52].mxu1 %vm984_vm4, %v1972_v8  ;;  %v467_v41 = vand.u32 2147483648, %v14188_v53 }
 0x533   :  { %12711 = vrcp.f32 %v1929_v22  ;;  %12126 = vmatpush3.bf16.msra.mxu1 %v14563_v45 }
 0x534   :  { %v12694_v37 = vpop.eup %12693  ;;  %12128 = vmatprep.subr.bf16.mxu1 %v14569_v28 }
 0x535   :  { %v12696_v27 = vpop.eup %12695  ;;  %v1974_v15 = vmul.f32 %v12694_v37, %v14634_v48 }
 0x536   :  { %v12698_v46 = vpop.eup %12697  ;;  %v1973_v49 = vmul.f32 %v12696_v27, %v14637_v10 }
 0x537   :  { %v12700_v26 = vpop.eup %12699  ;;  %v1932_v42 = vadd.f32 1.0, %v12698_v46  ;;  %12130 = vmatpush3.bf16.msra.mxu1 %v14569_v28 }
 0x538   :  { %v12702_v24 = vpop.eup %12701  ;;  %v1931_v6 = vadd.f32 1.0, %v12700_v26  ;;  %11031 = vmatprep.mubr.msk.f32.mxu1 %vm984_vm4, %v1973_v49  ;;  %12132 = vmatprep.subr.bf16.mxu1 %v14575_v43 }
 0x539   :  { %v12704_v45 = vpop.eup %12703  ;;  %12713 = vrcp.f32 %v1932_v42  ;;  %11032 = vmatmul.mubr.msk.f32.gmra.mrb[54].mxu1 %vm984_vm4, %v1974_v15  ;;  %v1976_v48 = vmul.f32 %v12702_v24, %v14642_v50  ;;  %v460_v42 = vand.u32 2147483648, %v14192_v56  ;;  %v481_v24 = vand.u32 2147483648, %v14186_v52 }
 0x53a   :  { %v12706_v23 = vpop.eup %12705  ;;  %v1975_v19 = vmul.f32 %v12704_v45, %v14645_v14  ;;  %12715 = vrcp.f32 %v1931_v6 }
 0x53b   :  { %v12708_v10 = vpop.eup %12707  ;;  %v1934_v9 = vadd.f32 1.0, %v12706_v23  ;;  %12134 = vmatpush3.bf16.msra.mxu1 %v14575_v43 }
 0x53c   :  { %v12710_v28 = vpop.eup %12709  ;;  %v1933_v12 = vadd.f32 1.0, %v12708_v10  ;;  %11034 = vmatprep.mubr.msk.f32.mxu1 %vm984_vm4, %v1975_v19  ;;  %12136 = vmatprep.subr.bf16.mxu1 %v14581_v18 }
 0x53d   :  { %v12712_v5 = vpop.eup %12711  ;;  %12717 = vrcp.f32 %v1934_v9  ;;  %11035 = vmatmul.mubr.msk.f32.gmra.mrb[56].mxu1 %vm984_vm4, %v1976_v48  ;;  %v1978_v14 = vmul.f32 %v12710_v28, %v14650_v34 }
 0x53e   :  { %v1977_v40 = vmul.f32 %v12712_v5, %v14653_v11  ;;  %12719 = vrcp.f32 %v1933_v12  ;;  %v474_v12 = vand.u32 2147483648, %v14190_v54  ;;  %v495_v5 = vand.u32 2147483648, %v14194_v57 }
 0x53f   :  { %12138 = vmatpush3.bf16.msra.mxu1 %v14581_v18  ;;  %12721 = vrsqrt.f32 %v14188_v53 }
 0x540   :  { %12140 = vmatprep.subr.bf16.mxu1 %v14587_v16  ;;  %11037 = vmatprep.mubr.msk.f32.mxu1 %vm984_vm4, %v1977_v40  ;;  %12723 = vrsqrt.f32 %v14192_v56 }
 0x541   :  { %11038 = vmatmul.mubr.msk.f32.gmra.mrb[58].mxu1 %vm984_vm4, %v1978_v14  ;;  %12725 = vrsqrt.f32 %v14186_v52 }
 0x542   :  { %12727 = vrsqrt.f32 %v14190_v54 }
 0x543   :  { %v12714_v43 = vpop.eup %12713  ;;  %12142 = vmatpush3.bf16.msra.mxu1 %v14587_v16  ;;  %v13577_v16 = vld [vmem:[%s18032_s2 + $0x50] sm:$0xff]  ;;  %12729 = vrsqrt.f32 %v14194_v57 }
 0x544   :  { %v12716_v50 = vpop.eup %12715  ;;  %12144 = vmatprep.subr.bf16.mxu1 %v14593_v33  ;;  %v1980_v11 = vmul.f32 %v12714_v43, %v14660_v13  ;;  %12731 = vrsqrt.f32 %v14196_v58 }
 0x545   :  { %v1979_v17 = vmul.f32 %v12716_v50, %v14663_v7  ;;  %v14724_v7 = vld [vmem:[%s18040_s4 + $0x8] sm:$0xff]  ;;  %12733 = vrsqrt.f32 %v14198_v60 }
 0x546   :  { %12735 = vrsqrt.f32 %v14200_v61 }
 0x547   :  { %v12718_v20 = vpop.eup %12717  ;;  %11040 = vmatprep.mubr.msk.f32.mxu1 %vm984_vm4, %v1979_v17  ;;  %12146 = vmatpush3.bf16.msra.mxu1 %v14593_v33  ;;  %v13735_v33 = vmov 0   ;;  %12737 = vrsqrt.f32 %v14204_v0 }
 0x548   :  { %v12720_v18 = vpop.eup %12719  ;;  %11041 = vmatmul.mubr.msk.f32.gmra.mrb[60].mxu1 %vm984_vm4, %v1980_v11  ;;  %v1982_v8 = vmul.f32 %v12718_v20, %v14673_v35  ;;  %12527 = vset.pattern.permute.xlu1 %v13735_v33  ;;  %12739 = vrsqrt.f32 %v14202_v62 }
 0x549   :  { %v1981_v34 = vmul.f32 %v12720_v18, %v14677_v38  ;;  %12528 = vset.pattern.permute.xlu0 %v13735_v33  ;;  %12741 = vrsqrt.f32 %v14208_v2 }
 0x54a   :  { %12743 = vrsqrt.f32 %v14206_v1 }
 0x54b   :  { %11043 = vmatprep.mubr.msk.f32.mxu1 %vm984_vm4, %v1981_v34  ;;  %v488_v34 = vand.u32 2147483648, %v14196_v58 }
 0x54c   :  { %11044 = vmatmul.mubr.msk.f32.gmra.mrb[62].mxu1 %vm984_vm4, %v1982_v8 }
 0x54d   :  { %11113 = vmatprep.mubr.f32.mxu1 %v14599_v25  ;;  %v12722_v25 = vpop.eup %12721 }
 0x54e   :  { %v12724_v13 = vpop.eup %12723  ;;  %v463_v35 = vmul.f32 %v12722_v25, %v14188_v53 }
 0x54f   :  { %v12726_v38 = vpop.eup %12725  ;;  %v456_v22 = vmul.f32 %v12724_v13, %v14192_v56 }
 0x550   :  { %11114 = vmatmul.mubr.f32.vlgmr.msra.gmra.mrb[64].mxu1 %v14724_v7  ;;  %v465_v37 = vsel %vm464_vm8, %v14188_v53, %v463_v35  ;;  %v477_v27 = vmul.f32 %v12726_v38, %v14186_v52  ;;  %v12728_v46 = vpop.eup %12727  ;;  %vm494_vm8 = vcmp.eq.f32.partialorder %v14194_v57, 0.0 }
 0x551   :  { %11165 = vmatprep.mubr.msk.f32.mxu1 %vm195_vm2, %v13577_v16  ;;  %v12730_v49 = vpop.eup %12729  ;;  %v468_v26 = vsel %vm466_vm9, %v467_v41, %v465_v37  ;;  %v458_v15 = vsel %vm457_vm10, %v14192_v56, %v456_v22  ;;  %v470_v45 = vmul.f32 %v12728_v46, %v14190_v54  ;;  %vm485_vm9 = vcmp.eq.f32.partialorder %v14196_v58, inf }
 0x552   :  { %v479_v6 = vsel %vm478_vm11, %v14186_v52, %v477_v27  ;;  %v491_v23 = vmul.f32 %v12730_v49, %v14194_v57  ;;  %v12732_v19 = vpop.eup %12731  ;;  %v568_v10 = vadd.f32 1.0, %v468_v26  ;;  %v461_v48 = vsel %vm459_vm12, %v460_v42, %v458_v15 }
 0x553   :  { %v482_v9 = vsel %vm480_vm13, %v481_v24, %v479_v6  ;;  %v472_v28 = vsel %vm471_vm14, %v14190_v54, %v470_v45  ;;  %v12734_v40 = vpop.eup %12733  ;;  %v484_v43 = vmul.f32 %v12732_v19, %v14196_v58  ;;  %v567_v50 = vadd.f32 1.0, %v461_v48 }
 0x554   :  { %v493_v14 = vsel %vm492_vm15, %v14194_v57, %v491_v23  ;;  %v12736_v17 = vpop.eup %12735  ;;  %v570_v11 = vadd.f32 1.0, %v482_v9  ;;  %v475_v20 = vsel %vm473_vm1, %v474_v12, %v472_v28  ;;  %v505_v8 = vmul.f32 %v12734_v40, %v14198_v60 }
 0x555   :  { %v496_v18 = vsel %vm494_vm8, %v495_v5, %v493_v14  ;;  %12745 = vrcp.f32 %v568_v10  ;;  %v486_v16 = vsel %vm485_vm9, %v14196_v58, %v484_v43  ;;  %vm487_vm10 = vcmp.eq.f32.partialorder %v14196_v58, 0.0  ;;  %v12738_v33 = vpop.eup %12737 }
 0x556   :  { %vm506_vm11 = vcmp.eq.f32.partialorder %v14198_v60, inf  ;;  %12747 = vrcp.f32 %v567_v50  ;;  %v498_v25 = vmul.f32 %v12736_v17, %v14200_v61  ;;  %v12740_v13 = vpop.eup %12739  ;;  %v569_v35 = vadd.f32 1.0, %v475_v20 }
 0x557   :  { %12749 = vrcp.f32 %v570_v11  ;;  %v572_v38 = vadd.f32 1.0, %v496_v18  ;;  %vm499_vm12 = vcmp.eq.f32.partialorder %v14200_v61, inf  ;;  %v489_v41 = vsel %vm487_vm10, %v488_v34, %v486_v16  ;;  %v12742_v15 = vpop.eup %12741 }
 0x558   :  { %v507_v22 = vsel %vm506_vm11, %v14198_v60, %v505_v8  ;;  %vm508_vm13 = vcmp.eq.f32.partialorder %v14198_v60, 0.0  ;;  %v509_v37 = vand.u32 2147483648, %v14198_v60  ;;  %vm501_vm14 = vcmp.eq.f32.partialorder %v14200_v61, 0.0  ;;  %v12744_v24 = vpop.eup %12743 }
 0x559   :  { %v502_v27 = vand.u32 2147483648, %v14200_v61  ;;  %v519_v46 = vmul.f32 %v12738_v33, %v14204_v0  ;;  %12751 = vrsqrt.f32 %v14212_v21  ;;  %v500_v49 = vsel %vm499_vm12, %v14200_v61, %v498_v25 }
 0x55a   :  { %vm520_vm15 = vcmp.eq.f32.partialorder %v14204_v0, inf  ;;  %v512_v26 = vmul.f32 %v12740_v13, %v14202_v62  ;;  %12753 = vrsqrt.f32 %v14210_v3  ;;  %v571_v42 = vadd.f32 1.0, %v489_v41 }
 0x55b   :  { %12755 = vrcp.f32 %v569_v35  ;;  %vm513_vm1 = vcmp.eq.f32.partialorder %v14202_v62, inf  ;;  %v510_v6 = vsel %vm508_vm13, %v509_v37, %v507_v22  ;;  %vm522_vm8 = vcmp.eq.f32.partialorder %v14204_v0, 0.0 }
 0x55c   :  { %12757 = vrcp.f32 %v572_v38  ;;  %v523_v45 = vand.u32 2147483648, %v14204_v0  ;;  %v503_v23 = vsel %vm501_vm14, %v502_v27, %v500_v49  ;;  %v521_v19 = vsel %vm520_vm15, %v14204_v0, %v519_v46 }
 0x55d   :  { %v516_v10 = vand.u32 2147483648, %v14202_v62  ;;  %12759 = vrsqrt.f32 %v14216_v32  ;;  %v514_v48 = vsel %vm513_vm1, %v14202_v62, %v512_v26  ;;  %vm515_vm9 = vcmp.eq.f32.partialorder %v14202_v62, 0.0 }
 0x55e   :  { %v533_v9 = vmul.f32 %v12742_v15, %v14208_v2  ;;  %12761 = vrsqrt.f32 %v14214_v31  ;;  %vm534_vm10 = vcmp.eq.f32.partialorder %v14208_v2, inf  ;;  %v526_v12 = vmul.f32 %v12744_v24, %v14206_v1 }
 0x55f   :  { %v12746_v28 = vpop.eup %12745  ;;  %12763 = vrcp.f32 %v571_v42  ;;  %v574_v14 = vadd.f32 1.0, %v510_v6  ;;  %v524_v43 = vsel %vm522_vm8, %v523_v45, %v521_v19  ;;  %vm527_vm11 = vcmp.eq.f32.partialorder %v14206_v1, inf }
 0x560   :  { %v12748_v5 = vpop.eup %12747  ;;  %v573_v20 = vadd.f32 1.0, %v503_v23  ;;  %v517_v18 = vsel %vm515_vm9, %v516_v10, %v514_v48  ;;  %v537_v34 = vand.u32 2147483648, %v14208_v2  ;;  %v535_v16 = vsel %vm534_vm10, %v14208_v2, %v533_v9 }
 0x561   :  { %v12750_v50 = vpop.eup %12749  ;;  %vm536_vm12 = vcmp.eq.f32.partialorder %v14208_v2, 0.0  ;;  %v530_v33 = vand.u32 2147483648, %v14206_v1  ;;  %v576_v13 = vadd.f32 1.0, %v524_v43  ;;  %v528_v35 = vsel %vm527_vm11, %v14206_v1, %v526_v12 }
 0x562   :  { %vm529_vm13 = vcmp.eq.f32.partialorder %v14206_v1, 0.0  ;;  %v575_v22 = vadd.f32 1.0, %v517_v18  ;;  %12765 = vrcp.f32 %v574_v14  ;;  %v538_v49 = vsel %vm536_vm12, %v537_v34, %v535_v16 }
 0x563   :  { %v12752_v25 = vpop.eup %12751  ;;  %12767 = vrcp.f32 %v573_v20  ;;  %v531_v42 = vsel %vm529_vm13, %v530_v33, %v528_v35  ;;  %vm548_vm14 = vcmp.eq.f32.partialorder %v14212_v21, inf  ;;  %v578_v10 = vadd.f32 1.0, %v538_v49 }
 0x564   :  { %v12754_v38 = vpop.eup %12753  ;;  %v547_v24 = vmul.f32 %v12752_v25, %v14212_v21  ;;  %12769 = vrcp.f32 %v576_v13  ;;  %vm541_vm15 = vcmp.eq.f32.partialorder %v14210_v3, inf  ;;  %v577_v12 = vadd.f32 1.0, %v531_v42 }
 0x565   :  { %v12756_v37 = vpop.eup %12755  ;;  %v540_v45 = vmul.f32 %v12754_v38, %v14210_v3  ;;  %12771 = vrcp.f32 %v575_v22  ;;  %vm550_vm1 = vcmp.eq.f32.partialorder %v14212_v21, 0.0  ;;  %v544_v43 = vand.u32 2147483648, %v14210_v3 }
 0x566   :  { %v12758_v26 = vpop.eup %12757  ;;  %v549_v14 = vsel %vm548_vm14, %v14212_v21, %v547_v24  ;;  %vm543_vm8 = vcmp.eq.f32.partialorder %v14210_v3, 0.0  ;;  %vm562_vm9 = vcmp.eq.f32.partialorder %v14216_v32, inf  ;;  %12773 = vrcp.f32 %v578_v10 }
 0x567   :  { %v12760_v6 = vpop.eup %12759  ;;  %vm555_vm10 = vcmp.eq.f32.partialorder %v14214_v31, inf  ;;  %12775 = vrcp.f32 %v577_v12  ;;  %v565_v18 = vand.u32 2147483648, %v14216_v32  ;;  %vm564_vm11 = vcmp.eq.f32.partialorder %v14216_v32, 0.0 }
 0x568   :  { %v12762_v23 = vpop.eup %12761  ;;  %v558_v16 = vand.u32 2147483648, %v14214_v31  ;;  %vm557_vm12 = vcmp.eq.f32.partialorder %v14214_v31, 0.0 }
 0x569   :  { %v12764_v48 = vpop.eup %12763 }
 0x56c   :  { %v12766_v33 = vpop.eup %12765 }
 0x56d   :  { %v12768_v35 = vpop.eup %12767 }
 0x5fd   :  { %v11024_v40 = vpop.f32.mrb[48].mxu1 }
 0x5fe   :  { %v2181_v17 = vmul.f32 %v12746_v28, %v11024_v40  ;;  %v2101_v11 = vpop.f32.mrb[49].mxu1 }
 0x5ff   :  { %v2180_v8 = vmul.f32 %v12748_v5, %v2101_v11  ;;  %v551_v5 = vand.u32 2147483648, %v14212_v21  ;;  %v554_v11 = vmul.f32 %v12762_v23, %v14214_v31 }
 0x600   :  { %2203 = vperm.xlu1 %12527, %v2181_v17   ;;  %v542_v17 = vsel %vm541_vm15, %v14210_v3, %v540_v45 }
 0x601   :  { %2198 = vperm.xlu0 %12528, %v2180_v8   ;;  %v11027_v41 = vpop.f32.mrb[50].mxu1  ;;  %v552_v20 = vsel %vm550_vm1, %v551_v5, %v549_v14  ;;  %v545_v34 = vsel %vm543_vm8, %v544_v43, %v542_v17  ;;  %v556_v13 = vsel %vm555_vm10, %v14214_v31, %v554_v11 }
 0x602   :  { %v2183_v27 = vmul.f32 %v12750_v50, %v11027_v41  ;;  %v2111_v46 = vpop.f32.mrb[51].mxu1  ;;  %v561_v50 = vmul.f32 %v12760_v6, %v14216_v32  ;;  %v580_v22 = vadd.f32 1.0, %v552_v20 }
 0x603   :  { %v2182_v15 = vmul.f32 %v12756_v37, %v2111_v46  ;;  %v12770_v37 = vpop.eup %12769  ;;  %v579_v46 = vadd.f32 1.0, %v545_v34 }
 0x604   :  { %v563_v8 = vsel %vm562_vm9, %v14216_v32, %v561_v50  ;;  %12777 = vrcp.f32 %v580_v22 }
 0x605   :  { %2213 = vperm.xlu0 %12528, %v2183_v27   ;;  %2208 = vperm.xlu1 %12527, %v2182_v15   ;;  %v11030_v19 = vpop.f32.mrb[52].mxu1  ;;  %v566_v49 = vsel %vm564_vm11, %v565_v18, %v563_v8  ;;  %v559_v15 = vsel %vm557_vm12, %v558_v16, %v556_v13  ;;  %12779 = vrcp.f32 %v579_v46 }
 0x606   :  { %v2185_v9 = vmul.f32 %v12758_v26, %v11030_v19  ;;  %v2121_v28 = vpop.f32.mrb[53].mxu1  ;;  %v12772_v26 = vpop.eup %12771  ;;  %v582_v45 = vadd.f32 1.0, %v566_v49  ;;  %v581_v19 = vadd.f32 1.0, %v559_v15 }
 0x607   :  { %v2184_v40 = vmul.f32 %v12764_v48, %v2121_v28  ;;  %v12774_v10 = vpop.eup %12773 }
 0x608   :  { %v12776_v48 = vpop.eup %12775  ;;  %12781 = vrcp.f32 %v582_v45 }
 0x609   :  { %2223 = vperm.xlu0 %12528, %v2185_v9   ;;  %2218 = vperm.xlu1 %12527, %v2184_v40   ;;  %12783 = vrcp.f32 %v581_v19 }
 0x60c   :  { %v11033_v25 = vpop.f32.mrb[54].mxu1 }
 0x60d   :  { %v2187_v38 = vmul.f32 %v12766_v33, %v11033_v25  ;;  %v2131_v41 = vpop.f32.mrb[55].mxu1 }
 0x60e   :  { %v2186_v27 = vmul.f32 %v12768_v35, %v2131_v41  ;;  %v12778_v40 = vpop.eup %12777 }
 0x60f   :  { %2233 = vperm.xlu0 %12528, %v2187_v38   ;;  %v12780_v43 = vpop.eup %12779 }
 0x610   :  { %2228 = vperm.xlu1 %12527, %v2186_v27   ;;  %v11036_v42 = vpop.f32.mrb[56].mxu1 }
 0x611   :  { %v2189_v24 = vmul.f32 %v12770_v37, %v11036_v42  ;;  %v2141_v6 = vpop.f32.mrb[57].mxu1 }
 0x612   :  { %v2188_v23 = vmul.f32 %v12772_v26, %v2141_v6  ;;  %v12782_v20 = vpop.eup %12781 }
 0x613   :  { %2243 = vperm.xlu0 %12528, %v2189_v24   ;;  %v12784_v34 = vpop.eup %12783 }
 0x614   :  { %2238 = vperm.xlu1 %12527, %v2188_v23   ;;  %v11039_v9 = vpop.f32.mrb[58].mxu1 }
 0x615   :  { %v2191_v28 = vmul.f32 %v12774_v10, %v11039_v9  ;;  %v2151_v12 = vpop.f32.mrb[59].mxu1 }
 0x616   :  { %v2190_v5 = vmul.f32 %v12776_v48, %v2151_v12 }
 0x617   :  { %2253 = vperm.xlu0 %12528, %v2191_v28  }
 0x618   :  { %2248 = vperm.xlu1 %12527, %v2190_v5  }
 0x61b   :  { %v11042_v14 = vpop.f32.mrb[60].mxu1 }
 0x61c   :  { %v2193_v50 = vmul.f32 %v12778_v40, %v11042_v14  ;;  %v2161_v17 = vpop.f32.mrb[61].mxu1  ;;  %v18150_v40 = vld [vmem:[#allocation4_spill] sm:$0xff] }
 0x61d   :  { %v2192_v11 = vmul.f32 %v12780_v43, %v2161_v17  ;;  %v18151_v43 = vld [vmem:[#allocation5_spill] sm:$0xff]  ;;  %v18152_v17 = vld [vmem:[#allocation6_spill] sm:$0xff] }
 0x61e   :  { %2263 = vperm.xlu0 %12528, %v2193_v50  }
 0x61f   :  { %2258 = vperm.xlu1 %12527, %v2192_v11   ;;  %v11045_v18 = vpop.f32.mrb[62].mxu1 }
 0x620   :  { %v2195_v8 = vmul.f32 %v12782_v20, %v11045_v18  ;;  %v2171_v16 = vpop.f32.mrb[63].mxu1  ;;  %v18153_v18 = vld [vmem:[#allocation7_spill] sm:$0xff] }
 0x621   :  { %v2194_v33 = vmul.f32 %v12784_v34, %v2171_v16  ;;  %v2455_v16 = vld [vmem:[%s18041_s9 + $0x8] sm:$0xff] }
 0x622   :  { %2273 = vperm.xlu0 %12528, %v2195_v8  }
 0x623   :  { %2268 = vperm.xlu1 %12527, %v2194_v33   ;;  %v11115_v25 = vpop.f32.mrb[64].mxu1  ;;  %v18154_v33 = vld [vmem:[#allocation8_spill] sm:$0xff] }
 0x624   :  { %v2435_v13 = vpop.f32.mrb[65].mxu1 }
 0x626   :  { %2448 = vrot.lane.b32.xlu0 %v11115_v25, %s13734_s24 }
 0x627   :  { %2446 = vrot.lane.b32.xlu1 %v2435_v13, %s13734_s24 }
 0x67f   :  { %v2204_v35 = vpop.permute.xlu1 %2203 }
 0x680   :  { %v2277_v38 = vmul.f32 %v13905_v29, %v2204_v35  ;;  %v2199_v41 = vpop.permute.xlu0 %2198 }
 0x681   :  { %v2276_v22 = vmul.f32 %v2199_v41, %v13907_v30  ;;  %v2457_v41 = vld [vmem:[%s18041_s9 + $0x18] sm:$0xff] }
 0x683   :  { %v12083_v37 = vpack.c.bf16 %v2277_v38, %v2276_v22  ;;  %v2456_v38 = vld [vmem:[%s18041_s9 + $0x10] sm:$0xff] }
 0x684   :  { %v2214_v27 = vpop.permute.xlu0 %2213  ;;  %v2209_v46 = vpop.permute.xlu1 %2208 }
 0x685   :  { %v2279_v49 = vmul.f32 %v13920_v36, %v2214_v27  ;;  %v2278_v26 = vmul.f32 %v2209_v46, %v13926_v39  ;;  %12084 = vmatprep.subr.bf16.mxu0 %v12083_v37  ;;  %v2458_v27 = vld [vmem:[%s18041_s9 + $0x20] sm:$0xff]  ;;  %v2459_v46 = vld [vmem:[%s18041_s9 + $0x28] sm:$0xff] }
 0x686   :  { %12086 = vmatpush3.bf16.msra.mxu0 %v12083_v37  ;;  %v12151_v37 = vpack.c.bf16 %v2457_v41, %v2456_v38 }
 0x687   :  { %v12087_v15 = vpack.c.bf16 %v2279_v49, %v2278_v26  ;;  %v18155_v49 = vld [vmem:[#allocation3_spill] sm:$0xff] }
 0x688   :  { %v2224_v42 = vpop.permute.xlu0 %2223  ;;  %v2219_v24 = vpop.permute.xlu1 %2218 }
 0x689   :  { %v2281_v6 = vmul.f32 %v13938_v44, %v2224_v42  ;;  %v2280_v45 = vmul.f32 %v2219_v24, %v13944_v47  ;;  %12088 = vmatprep.subr.bf16.mxu0 %v12087_v15  ;;  %v2460_v42 = vld [vmem:[%s18041_s9 + $0x30] sm:$0xff]  ;;  %v2461_v24 = vld [vmem:[%s18041_s9 + $0x38] sm:$0xff] }
 0x68a   :  { %12090 = vmatpush3.bf16.msra.mxu0 %v12087_v15  ;;  %v12155_v15 = vpack.c.bf16 %v2459_v46, %v2458_v27  ;;  %v13587_v27 = vld [vmem:[%s18032_s2] sm:$0xff]  ;;  %v13588_v46 = vld [vmem:[%s18032_s2 + $0x8] sm:$0xff] }
 0x68b   :  { %v12091_v29 = vpack.c.bf16 %v2281_v6, %v2280_v45  ;;  %v12159_v6 = vpack.c.bf16 %v2461_v24, %v2460_v42  ;;  %v13591_v42 = vld [vmem:[%s18032_s2 + $0x20] sm:$0xff]  ;;  %v13592_v24 = vld [vmem:[%s18032_s2 + $0x28] sm:$0xff] }
 0x68d   :  { %12092 = vmatprep.subr.bf16.mxu0 %v12091_v29 }
 0x68e   :  { %v2234_v30 = vpop.permute.xlu0 %2233  ;;  %12094 = vmatpush3.bf16.msra.mxu0 %v12091_v29 }
 0x68f   :  { %v2283_v23 = vmul.f32 %v13955_v51, %v2234_v30  ;;  %v2229_v36 = vpop.permute.xlu1 %2228  ;;  %v2561_v30 = vld [vmem:[%s18042_s10] sm:$0xff] }
 0x690   :  { %v2282_v39 = vmul.f32 %v2229_v36, %v13962_v55 }
 0x692   :  { %v12095_v19 = vpack.c.bf16 %v2283_v23, %v2282_v39  ;;  %v2244_v10 = vpop.permute.xlu0 %2243  ;;  %v2562_v23 = vld [vmem:[%s18042_s10 + $0x8] sm:$0xff]  ;;  %v2563_v39 = vld [vmem:[%s18042_s10 + $0x10] sm:$0xff] }
 0x693   :  { %v2285_v48 = vmul.f32 %v13973_v59, %v2244_v10  ;;  %v2239_v9 = vpop.permute.xlu1 %2238  ;;  %v12163_v36 = vpack.c.bf16 %v2562_v23, %v2561_v30  ;;  %v13596_v30 = vld [vmem:[%s18032_s2 + $0x48] sm:$0xff] }
 0x694   :  { %v2284_v44 = vmul.f32 %v2239_v9, %v13980_v63  ;;  %12096 = vmatprep.subr.bf16.mxu0 %v12095_v19  ;;  %v13578_v9 = vld [vmem:[%s18031_s1 + $0x8] sm:$0xff] }
 0x695   :  { %12098 = vmatpush3.bf16.msra.mxu0 %v12095_v19  ;;  %v2564_v19 = vld [vmem:[%s18042_s10 + $0x18] sm:$0xff] }
 0x696   :  { %v12099_v47 = vpack.c.bf16 %v2285_v48, %v2284_v44  ;;  %v2254_v28 = vpop.permute.xlu0 %2253  ;;  %v12167_v10 = vpack.c.bf16 %v2564_v19, %v2563_v39 }
 0x697   :  { %v2287_v12 = vmul.f32 %v13992_v4, %v2254_v28  ;;  %v2249_v5 = vpop.permute.xlu1 %2248  ;;  %v2454_v4 = vld [vmem:[%s18041_s9] sm:$0xff] }
 0x698   :  { %12100 = vmatprep.subr.bf16.mxu0 %v12099_v47  ;;  %v2286_v51 = vmul.f32 %v2249_v5, %v18150_v40  ;;  %v12147_v35 = vpack.c.bf16 %v2455_v16, %v2454_v4  ;;  %v13579_v28 = vld [vmem:[%s18031_s1] sm:$0xff]  ;;  %v18159_v40 = vld [vmem:[#allocation25_spill] sm:$0xff] }
 0x699   :  { %12102 = vmatpush3.bf16.msra.mxu0 %v12099_v47  ;;  %v13586_v4 = vld [vmem:[%s18033_s3] sm:$0xff] }
 0x69a   :  { %v12103_v14 = vpack.c.bf16 %v2287_v12, %v2286_v51  ;;  %v14911_v51 = vsub.s32 2, %v18159_v40 }
 0x69c   :  { %12104 = vmatprep.subr.bf16.mxu0 %v12103_v14  ;;  %18160 = vst [vmem:[#allocation6_spill] sm:$0xff] %v14911_v51 }
 0x69d   :  { %v2264_v55 = vpop.permute.xlu0 %2263  ;;  %12106 = vmatpush3.bf16.msra.mxu0 %v12103_v14  ;;  %v13580_v14 = vld [vmem:[%s18032_s2 + $0x58] sm:$0xff] }
 0x69e   :  { %v2289_v59 = vmul.f32 %v18151_v43, %v2264_v55  ;;  %v2259_v50 = vpop.permute.xlu1 %2258  ;;  %v13581_v55 = vld [vmem:[%s18032_s2 + $0x60] sm:$0xff] }
 0x69f   :  { %v2288_v63 = vmul.f32 %v2259_v50, %v18152_v17  ;;  %v14924_v43 = vld [vmem:[%s18038_s13] sm:$0x1f]  ;;  %v13583_v50 = vld [vmem:[%s18032_s2 + $0x68] sm:$0xff]  ;;  %v13584_v17 = vld [vmem:[%s18032_s2 + $0x70] sm:$0xff] }
 0x6a1   :  { %v12107_v11 = vpack.c.bf16 %v2289_v59, %v2288_v63  ;;  %v2274_v20 = vpop.permute.xlu0 %2273  ;;  %v2465_v59 = vrot.slane %v14924_v43, %v14911_v51 }
 0x6a2   :  { %v2291_v34 = vmul.f32 %v18153_v18, %v2274_v20  ;;  %v2269_v8 = vpop.permute.xlu1 %2268 }
 0x6a3   :  { %v2290_v25 = vmul.f32 %v2269_v8, %v18154_v33  ;;  %12108 = vmatprep.subr.bf16.mxu0 %v12107_v11 }
 0x6a4   :  { %12110 = vmatpush3.bf16.msra.mxu0 %v12107_v11 }
 0x6a5   :  { %v12111_v13 = vpack.c.bf16 %v2291_v34, %v2290_v25  ;;  %v2449_v45 = vpop.permute.xlu0 %2448  ;;  %v13585_v34 = vld [vmem:[%s18032_s2 + $0x78] sm:$0xff] }
 0x6a6   :  { %v2447_v22 = vpop.permute.xlu1 %2446 }
 0x6a7   :  { %12112 = vmatprep.subr.bf16.mxu0 %v12111_v13  ;;  %v2452_v26 = vsel %vm984_vm4, %v18155_v49, %v2447_v22 }
 0x6a8   :  { %12114 = vmatpush3.bf16.msra.mxu0 %v12111_v13 }
 0x6a9   :  { %12148 = vmatprep.subr.bf16.mxu0 %v12147_v35 }
 0x6ab   :  { %11079 = vmatmul.mubr.f32.vlgmr.msra.gmra.mrb[50].mxu0 %v14724_v7  ;;  %v18156_v7 = vld [vmem:[#allocation2_spill] sm:$0xff] }
 0x6ac   :  { %12150 = vmatpush3.bf16.msra.mxu0 %v12147_v35  ;;  %11132 = vmatprep.mubr.msk.f32.mxu0 %vm1001_vm5, %v2452_v26  ;;  %v2453_v29 = vsel %vm984_vm4, %v18156_v7, %v2449_v45  ;;  %v13589_v26 = vld [vmem:[%s18032_s2 + $0x10] sm:$0xff]  ;;  %v13594_v45 = vld [vmem:[%s18032_s2 + $0x38] sm:$0xff] }
 0x6ad   :  { %12152 = vmatprep.subr.bf16.mxu0 %v12151_v37 }
 0x6b0   :  { %12154 = vmatpush3.bf16.msra.mxu0 %v12151_v37 }
 0x6b1   :  { %12156 = vmatprep.subr.bf16.mxu0 %v12155_v15 }
 0x6b4   :  { %12158 = vmatpush3.bf16.msra.mxu0 %v12155_v15  ;;  %v13590_v15 = vld [vmem:[%s18032_s2 + $0x18] sm:$0xff] }
 0x6b5   :  { %12160 = vmatprep.subr.bf16.mxu0 %v12159_v6 }
 0x6b8   :  { %12162 = vmatpush3.bf16.msra.mxu0 %v12159_v6  ;;  %v13593_v6 = vld [vmem:[%s18032_s2 + $0x30] sm:$0xff] }
 0x6b9   :  { %12164 = vmatprep.subr.bf16.mxu0 %v12163_v36 }
 0x6bb   :  { %11133 = vmatmul.mubr.msk.f32.vlgmr.msra.gmra.mrb[52].mxu0 %vm1001_vm5, %v2453_v29  ;;  %v13595_v29 = vld [vmem:[%s18032_s2 + $0x40] sm:$0xff] }
 0x6bc   :  { %12166 = vmatpush3.bf16.msra.mxu0 %v12163_v36 }
 0x6bd   :  { %12168 = vmatprep.subr.bf16.mxu0 %v12167_v10 }
 0x6c0   :  { %12170 = vmatpush3.bf16.msra.mxu0 %v12167_v10 }
 0x77e   :  { %v11080_v48 = vpop.f32.mrb[50].mxu0 }
 0x77f   :  { %v14901_v44 = vadd.f32 %v13578_v9, %v11080_v48  ;;  %v2358_v47 = vpop.f32.mrb[51].mxu0 }
 0x780   :  { %v14906_v12 = vadd.f32 %v13579_v28, %v2358_v47 }
 0x781   :  { %18157 = vst [vmem:[#allocation4_spill] sm:$0xff] %v14901_v44 }
 0x782   :  { %18158 = vst [vmem:[#allocation5_spill] sm:$0xff] %v14906_v12  ;;  %v12171_v5 = vpack.c.bf16 %v14901_v44, %v14906_v12 }
 0x784   :  { %12172 = vmatprep.subr.bf16.mxu0 %v12171_v5  ;;  %12523 = vmatprep.subr.bf16.mxu1 %v12171_v5 }
 0x785   :  { %12524 = vmatpush3.bf16.msra.mxu1 %v12171_v5 }
 0x788   :  { %11166 = vmatmul.mubr.msk.f32.vlgmr.msra.gmra.mrb[66].mxu1 %vm195_vm2, %v13580_v14 }
 0x789   :  { %11168 = vmatprep.mubr.msk.f32.mxu1 %vm195_vm2, %v13581_v55 }
 0x78c   :  { %11169 = vmatmul.mubr.msk.f32.gmra.mrb[68].mxu1 %vm195_vm2, %v13583_v50 }
 0x78d   :  { %11171 = vmatprep.mubr.msk.f32.mxu1 %vm195_vm2, %v13584_v17 }
 0x78e   :  { %v11134_v63 = vpop.f32.mrb[52].mxu0 }
 0x78f   :  { %v2544_v11 = vadd.f32 %v11134_v63, %v2465_v59  ;;  %v2538_v20 = vpop.f32.mrb[53].mxu0 }
 0x790   :  { %v2539_v18 = vadd.f32 %v2538_v20, %v2465_v59  ;;  %11172 = vmatmul.mubr.msk.f32.gmra.mrb[70].mxu1 %vm195_vm2, %v13585_v34 }
 0x791   :  { %v9510_v8 = vmul.f32 -1.442695, %v2544_v11  ;;  %11178 = vmatprep.mubr.msk.f32.mxu1 %vm195_vm2, %v13586_v4 }
 0x792   :  { %v9509_v16 = vmul.f32 -1.442695, %v2539_v18 }
 0x793   :  { %12785 = vpow2.f32 %v9510_v8 }
 0x794   :  { %12787 = vpow2.f32 %v9509_v16 }
 0x79d   :  { %v12786_v33 = vpop.eup %12785 }
 0x79e   :  { %v12788_v25 = vpop.eup %12787  ;;  %v2554_v13 = vadd.f32 1.0, %v12786_v33 }
 0x79f   :  { %v2553_v35 = vadd.f32 1.0, %v12788_v25 }
 0x7a0   :  { %12789 = vrcp.f32 %v2554_v13 }
 0x7a1   :  { %12791 = vrcp.f32 %v2553_v35 }
 0x7aa   :  { %v12790_v38 = vpop.eup %12789 }
 0x7ab   :  { %v12792_v41 = vpop.eup %12791  ;;  %v2560_v37 = vmul.f32 %v12790_v38, %v2544_v11 }
 0x7ac   :  { %v2559_v22 = vmul.f32 %v12792_v41, %v2539_v18  ;;  %v15017_v18 = vsub.s32 3, %v18159_v40 }
 0x7ae   :  { %11143 = vmatprep.mubr.msk.f32.mxu0 %vm984_vm4, %v2559_v22  ;;  %18167 = vst [vmem:[#allocation30_spill] sm:$0xff] %v15017_v18  ;;  %v2651_v34 = vrot.slane %v14924_v43, %v15017_v18 }
 0x7af   :  { %11144 = vmatmul.mubr.msk.f32.vlgmr.msra.gmra.mrb[54].mxu0 %vm984_vm4, %v2560_v37 }
 0x7b0   :  { %12174 = vmatpush3.bf16.msra.mxu0 %v12171_v5  ;;  %11150 = vmatprep.mubr.msk.f32.mxu0 %vm195_vm2, %v13587_v27 }
 0x7b3   :  { %11151 = vmatmul.mubr.msk.f32.vlgmr.msra.gmra.mrb[56].mxu0 %vm195_vm2, %v13588_v46 }
 0x7b4   :  { %11153 = vmatprep.mubr.msk.f32.mxu0 %vm195_vm2, %v13589_v26 }
 0x7b7   :  { %11154 = vmatmul.mubr.msk.f32.gmra.mrb[58].mxu0 %vm195_vm2, %v13590_v15  ;;  %v13597_v15 = vld [vmem:[%s18033_s3 + $0x8] sm:$0xff] }
 0x7b8   :  { %11156 = vmatprep.mubr.msk.f32.mxu0 %vm195_vm2, %v13591_v42 }
 0x7bb   :  { %11157 = vmatmul.mubr.msk.f32.gmra.mrb[60].mxu0 %vm195_vm2, %v13592_v24  ;;  %v13598_v24 = vld [vmem:[%s18033_s3 + $0x10] sm:$0xff] }
 0x7bc   :  { %11159 = vmatprep.mubr.msk.f32.mxu0 %vm195_vm2, %v13593_v6 }
 0x7bf   :  { %11160 = vmatmul.mubr.msk.f32.gmra.mrb[62].mxu0 %vm195_vm2, %v13594_v45 }
 0x7c0   :  { %11162 = vmatprep.mubr.msk.f32.mxu0 %vm195_vm2, %v13595_v29 }
 0x7c3   :  { %11163 = vmatmul.mubr.msk.f32.gmra.mrb[64].mxu0 %vm195_vm2, %v13596_v30 }
 0x85b   :  { %v14986_v23 = vpop.f32.mrb[66].mxu1 }
 0x85c   :  { %18161 = vst [vmem:[#allocation7_spill] sm:$0xff] %v14986_v23  ;;  %v2812_v36 = vmul.f32 %v14986_v23, %v14986_v23  ;;  %v14990_v39 = vpop.f32.mrb[67].mxu1 }
 0x85d   :  { %18162 = vst [vmem:[#allocation8_spill] sm:$0xff] %v14990_v39  ;;  %v2811_v19 = vmul.f32 %v14990_v39, %v14990_v39 }
 0x85e   :  { %v2850_v10 = vsel %vm405_vm3, %v2812_v36, 0.0  ;;  %v13599_v36 = vld [vmem:[%s18033_s3 + $0x18] sm:$0xff] }
 0x85f   :  { %2851 = vadd.xlane.f32.xlu0 %v2850_v10  ;;  %v14995_v48 = vpop.f32.mrb[68].mxu1  ;;  %v2847_v9 = vsel %vm405_vm3, %v2811_v19, 0.0 }
 0x860   :  { %18163 = vst [vmem:[#allocation3_spill] sm:$0xff] %v14995_v48  ;;  %v2814_v47 = vmul.f32 %v14995_v48, %v14995_v48  ;;  %v15000_v28 = vpop.f32.mrb[69].mxu1  ;;  %2848 = vadd.xlane.f32.xlu1 %v2847_v9  ;;  %v13600_v9 = vld [vmem:[%s18033_s3 + $0x20] sm:$0xff] }
 0x861   :  { %18164 = vst [vmem:[#allocation2_spill] sm:$0xff] %v15000_v28  ;;  %v2813_v5 = vmul.f32 %v15000_v28, %v15000_v28 }
 0x862   :  { %v2856_v14 = vsel %vm405_vm3, %v2814_v47, 0.0 }
 0x863   :  { %2857 = vadd.xlane.f32.xlu0 %v2856_v14  ;;  %v15005_v55 = vpop.f32.mrb[70].mxu1  ;;  %v2853_v59 = vsel %vm405_vm3, %v2813_v5, 0.0 }
 0x864   :  { %18165 = vst [vmem:[#allocation25_spill] sm:$0xff] %v15005_v55  ;;  %v2816_v50 = vmul.f32 %v15005_v55, %v15005_v55  ;;  %2854 = vadd.xlane.f32.xlu1 %v2853_v59  ;;  %v15010_v17 = vpop.f32.mrb[71].mxu1 }
 0x865   :  { %18166 = vst [vmem:[#allocation29_spill] sm:$0xff] %v15010_v17  ;;  %v2815_v63 = vmul.f32 %v15010_v17, %v15010_v17 }
 0x866   :  { %v2862_v11 = vsel %vm405_vm3, %v2816_v50, 0.0  ;;  %v13601_v50 = vld [vmem:[%s18033_s3 + $0x28] sm:$0xff] }
 0x867   :  { %2863 = vadd.xlane.f32.xlu0 %v2862_v11  ;;  %v2859_v20 = vsel %vm405_vm3, %v2815_v63, 0.0 }
 0x868   :  { %2860 = vadd.xlane.f32.xlu1 %v2859_v20  ;;  %v13602_v20 = vld [vmem:[%s18033_s3 + $0x30] sm:$0xff] }
 0x882   :  { %v11145_v8 = vpop.f32.mrb[54].mxu0 }
 0x883   :  { %v2647_v4 = vadd.f32 %v11145_v8, %v18156_v7  ;;  %v2637_v16 = vpop.f32.mrb[55].mxu0 }
 0x884   :  { %v2646_v33 = vadd.f32 %v2637_v16, %v18155_v49 }
 0x885   :  { %v15023_v25 = vadd.f32 %v2651_v34, %v2647_v4 }
 0x886   :  { %v15025_v13 = vadd.f32 %v2651_v34, %v2646_v33  ;;  %v15027_v35 = vpop.f32.mrb[56].mxu0  ;;  %v13603_v33 = vld [vmem:[%s18033_s3 + $0x38] sm:$0xff] }
 0x887   :  { %18168 = vst [vmem:[#allocation31_spill] sm:$0xff] %v15023_v25  ;;  %v2802_v38 = vmul.f32 %v15027_v35, %v15027_v35  ;;  %v15031_v40 = vpop.f32.mrb[57].mxu0 }
 0x888   :  { %18169 = vst [vmem:[#allocation32_spill] sm:$0xff] %v15025_v13  ;;  %v12175_v43 = vpack.c.bf16 %v15023_v25, %v15025_v13  ;;  %v2801_v7 = vmul.f32 %v15031_v40, %v15031_v40 }
 0x889   :  { %v2820_v41 = vsel %vm405_vm3, %v2802_v38, 0.0 }
 0x88a   :  { %12176 = vmatprep.subr.bf16.mxu1 %v12175_v43  ;;  %2821 = vadd.xlane.f32.xlu0 %v2820_v41  ;;  %v15038_v49 = vpop.f32.mrb[58].mxu0  ;;  %v2817_v22 = vsel %vm405_vm3, %v2801_v7, 0.0  ;;  %v13605_v41 = vld [vmem:[%s18033_s3 + $0x48] sm:$0xff] }
 0x88b   :  { %12178 = vmatpush3.bf16.msra.mxu1 %v12175_v43  ;;  %v2804_v37 = vmul.f32 %v15038_v49, %v15038_v49  ;;  %2818 = vadd.xlane.f32.xlu1 %v2817_v22  ;;  %v15043_v27 = vpop.f32.mrb[59].mxu0  ;;  %v13604_v43 = vld [vmem:[%s18033_s3 + $0x40] sm:$0xff]  ;;  %v13606_v22 = vld [vmem:[%s18033_s3 + $0x50] sm:$0xff] }
 0x88c   :  { %v2803_v46 = vmul.f32 %v15043_v27, %v15043_v27 }
 0x88d   :  { %v2826_v26 = vsel %vm405_vm3, %v2804_v37, 0.0  ;;  %v13607_v37 = vld [vmem:[%s18033_s3 + $0x58] sm:$0xff] }
 0x88e   :  { %11179 = vmatmul.mubr.msk.f32.vlgmr.msra.gmra.mrb[72].mxu1 %vm195_vm2, %v13597_v15  ;;  %2827 = vadd.xlane.f32.xlu0 %v2826_v26  ;;  %v15052_v42 = vpop.f32.mrb[60].mxu0  ;;  %v2823_v45 = vsel %vm405_vm3, %v2803_v46, 0.0  ;;  %v13608_v46 = vld [vmem:[%s18033_s3 + $0x60] sm:$0xff]  ;;  %v13609_v26 = vld [vmem:[%s18033_s3 + $0x68] sm:$0xff]  ;;  %v13610_v15 = vld [vmem:[%s18033_s3 + $0x70] sm:$0xff] }
 0x88f   :  { %11181 = vmatprep.mubr.msk.f32.mxu1 %vm195_vm2, %v13598_v24  ;;  %v2806_v6 = vmul.f32 %v15052_v42, %v15052_v42  ;;  %v15061_v29 = vpop.f32.mrb[61].mxu0  ;;  %v13611_v24 = vld [vmem:[%s18033_s3 + $0x78] sm:$0xff] }
 0x890   :  { %v2805_v30 = vmul.f32 %v15061_v29, %v15061_v29 }
 0x891   :  { %v2832_v5 = vsel %vm405_vm3, %v2806_v6, 0.0  ;;  %v13612_v6 = vld [vmem:[%s18033_s3 + $0x80] sm:$0xff] }
 0x892   :  { %11182 = vmatmul.mubr.msk.f32.gmra.mrb[74].mxu1 %vm195_vm2, %v13599_v36  ;;  %2824 = vadd.xlane.f32.xlu0 %v2823_v45  ;;  %v15069_v19 = vpop.f32.mrb[62].mxu0  ;;  %v2829_v10 = vsel %vm405_vm3, %v2805_v30, 0.0  ;;  %v13613_v45 = vld [vmem:[%s18033_s3 + $0x88] sm:$0xff]  ;;  %v13614_v30 = vld [vmem:[%s18033_s3 + $0x90] sm:$0xff]  ;;  %v13615_v36 = vld [vmem:[%s18033_s3 + $0x98] sm:$0xff] }
 0x893   :  { %11184 = vmatprep.mubr.msk.f32.mxu1 %vm195_vm2, %v13600_v9  ;;  %v2808_v47 = vmul.f32 %v15069_v19, %v15069_v19  ;;  %2830 = vadd.xlane.f32.xlu1 %v2829_v10  ;;  %v15079_v14 = vpop.f32.mrb[63].mxu0  ;;  %v13616_v10 = vld [vmem:[%s18033_s3 + $0xa0] sm:$0xff]  ;;  %v13617_v9 = vld [vmem:[%s18033_s3 + $0xa8] sm:$0xff] }
 0x894   :  { %18170 = vst [vmem:[#allocation33_spill] sm:$0xff] %v15079_v14  ;;  %v2807_v59 = vmul.f32 %v15079_v14, %v15079_v14 }
 0x895   :  { %v2838_v8 = vsel %vm405_vm3, %v2808_v47, 0.0  ;;  %v13618_v47 = vld [vmem:[%s18033_s3 + $0xb0] sm:$0xff] }
 0x896   :  { %11185 = vmatmul.mubr.msk.f32.gmra.mrb[76].mxu1 %vm195_vm2, %v13601_v50  ;;  %2833 = vadd.xlane.f32.xlu0 %v2832_v5  ;;  %v15087_v63 = vpop.f32.mrb[64].mxu0  ;;  %v2835_v11 = vsel %vm405_vm3, %v2807_v59, 0.0  ;;  %v13619_v5 = vld [vmem:[%s18033_s3 + $0xb8] sm:$0xff]  ;;  %v13620_v59 = vld [vmem:[%s18033_s3 + $0xc0] sm:$0xff]  ;;  %v13621_v50 = vld [vmem:[%s18033_s3 + $0xc8] sm:$0xff] }
 0x897   :  { %18171 = vst [vmem:[#allocation34_spill] sm:$0xff] %v15087_v63  ;;  %11187 = vmatprep.mubr.msk.f32.mxu1 %vm195_vm2, %v13602_v20  ;;  %v2810_v34 = vmul.f32 %v15087_v63, %v15087_v63  ;;  %2836 = vadd.xlane.f32.xlu1 %v2835_v11  ;;  %v15097_v4 = vpop.f32.mrb[65].mxu0  ;;  %v13622_v11 = vld [vmem:[%s18033_s3 + $0xd0] sm:$0xff]  ;;  %v13623_v20 = vld [vmem:[%s18033_s3 + $0xd8] sm:$0xff] }
 0x898   :  { %18172 = vst [vmem:[#allocation35_spill] sm:$0xff] %v15097_v4  ;;  %v2809_v16 = vmul.f32 %v15097_v4, %v15097_v4 }
 0x899   :  { %v2844_v7 = vsel %vm405_vm3, %v2810_v34, 0.0  ;;  %v13624_v34 = vld [vmem:[%s18033_s3 + $0xe0] sm:$0xff] }
 0x89a   :  { %11188 = vmatmul.mubr.msk.f32.gmra.mrb[78].mxu1 %vm195_vm2, %v13603_v33  ;;  %2839 = vadd.xlane.f32.xlu0 %v2838_v8  ;;  %v2841_v38 = vsel %vm405_vm3, %v2809_v16, 0.0  ;;  %v13625_v8 = vld [vmem:[%s18033_s3 + $0xe8] sm:$0xff]  ;;  %v13626_v16 = vld [vmem:[%s18033_s3 + $0xf0] sm:$0xff]  ;;  %v13627_v33 = vld [vmem:[%s18033_s3 + $0xf8] sm:$0xff] }
 0x89b   :  { %11190 = vmatprep.mubr.msk.f32.mxu1 %vm195_vm2, %v13604_v43  ;;  %2842 = vadd.xlane.f32.xlu1 %v2841_v38  ;;  %v9562_v38 = vld [vmem:[%s18035_s7 + $0x48] sm:$0xff]  ;;  %v9563_v43 = vld [vmem:[%s18035_s7 + $0x50] sm:$0xff] }
 0x89e   :  { %11191 = vmatmul.mubr.msk.f32.gmra.mrb[80].mxu1 %vm195_vm2, %v13605_v41  ;;  %2845 = vadd.xlane.f32.xlu0 %v2844_v7  ;;  %v9564_v7 = vld [vmem:[%s18035_s7 + $0x58] sm:$0xff]  ;;  %v12179_v41 = vpack.c.bf16 %v9563_v43, %v9562_v38 }
 0x89f   :  { %11193 = vmatprep.mubr.msk.f32.mxu1 %vm195_vm2, %v13606_v22  ;;  %v9565_v22 = vld [vmem:[%s18035_s7 + $0x60] sm:$0xff] }
 0x8a0   :  { %12180 = vmatprep.subr.bf16.mxu0 %v12179_v41 }
 0x8a1   :  { %12182 = vmatpush3.bf16.msra.mxu0 %v12179_v41 }
 0x8a2   :  { %11194 = vmatmul.mubr.msk.f32.gmra.mrb[82].mxu1 %vm195_vm2, %v13607_v37  ;;  %v12183_v37 = vpack.c.bf16 %v9565_v22, %v9564_v7 }
 0x8a3   :  { %11196 = vmatprep.mubr.msk.f32.mxu1 %vm195_vm2, %v13608_v46  ;;  %v9566_v46 = vld [vmem:[%s18035_s7 + $0x68] sm:$0xff] }
 0x8a4   :  { %12184 = vmatprep.subr.bf16.mxu0 %v12183_v37 }
 0x8a5   :  { %12186 = vmatpush3.bf16.msra.mxu0 %v12183_v37 }
 0x8a6   :  { %11197 = vmatmul.mubr.msk.f32.gmra.mrb[84].mxu1 %vm195_vm2, %v13609_v26  ;;  %v9567_v26 = vld [vmem:[%s18035_s7 + $0x70] sm:$0xff] }
 0x8a7   :  { %11199 = vmatprep.mubr.msk.f32.mxu1 %vm195_vm2, %v13610_v15  ;;  %v12187_v15 = vpack.c.bf16 %v9567_v26, %v9566_v46 }
 0x8a9   :  { %12188 = vmatprep.subr.bf16.mxu0 %v12187_v15 }
 0x8aa   :  { %11200 = vmatmul.mubr.msk.f32.gmra.mrb[86].mxu1 %vm195_vm2, %v13611_v24  ;;  %v9568_v24 = vld [vmem:[%s18035_s7 + $0x78] sm:$0xff]  ;;  %12190 = vmatpush3.bf16.msra.mxu0 %v12187_v15 }
 0x8ab   :  { %11202 = vmatprep.mubr.msk.f32.mxu1 %vm195_vm2, %v13612_v6  ;;  %v9569_v6 = vld [vmem:[%s18035_s7 + $0x80] sm:$0xff] }
 0x8ae   :  { %11203 = vmatmul.mubr.msk.f32.gmra.mrb[88].mxu1 %vm195_vm2, %v13613_v45  ;;  %v12191_v45 = vpack.c.bf16 %v9569_v6, %v9568_v24 }
 0x8af   :  { %11205 = vmatprep.mubr.msk.f32.mxu1 %vm195_vm2, %v13614_v30 }
 0x8b0   :  { %12192 = vmatprep.subr.bf16.mxu0 %v12191_v45 }
 0x8b1   :  { %12194 = vmatpush3.bf16.msra.mxu0 %v12191_v45 }
 0x8b2   :  { %11206 = vmatmul.mubr.msk.f32.gmra.mrb[90].mxu1 %vm195_vm2, %v13615_v36 }
 0x8b3   :  { %11208 = vmatprep.mubr.msk.f32.mxu1 %vm195_vm2, %v13616_v10 }
 0x8b6   :  { %11209 = vmatmul.mubr.msk.f32.gmra.mrb[92].mxu1 %vm195_vm2, %v13617_v9 }
 0x8b7   :  { %11211 = vmatprep.mubr.msk.f32.mxu1 %vm195_vm2, %v13618_v47 }
 0x8ba   :  { %11212 = vmatmul.mubr.msk.f32.gmra.mrb[94].mxu1 %vm195_vm2, %v13619_v5 }
 0x8bb   :  { %11214 = vmatprep.mubr.msk.f32.mxu1 %vm195_vm2, %v13620_v59 }
 0x8be   :  { %11215 = vmatmul.mubr.msk.f32.gmra.mrb[96].mxu1 %vm195_vm2, %v13621_v50 }
 0x8bf   :  { %11217 = vmatprep.mubr.msk.f32.mxu1 %vm195_vm2, %v13622_v11 }
 0x8c2   :  { %11218 = vmatmul.mubr.msk.f32.gmra.mrb[98].mxu1 %vm195_vm2, %v13623_v20 }
 0x8c3   :  { %11220 = vmatprep.mubr.msk.f32.mxu1 %vm195_vm2, %v13624_v34 }
 0x8c6   :  { %11221 = vmatmul.mubr.msk.f32.gmra.mrb[100].mxu1 %vm195_vm2, %v13625_v8 }
 0x8c7   :  { %11223 = vmatprep.mubr.msk.f32.mxu1 %vm195_vm2, %v13626_v16  ;;  %v9570_v16 = vld [vmem:[%s18035_s7 + $0x88] sm:$0x3] }
 0x8c8   :  { %11242 = vmatprep.subr.msk.mxu0 %vm116_vm0, %v9570_v16 }
 0x8c9   :  { %11243 = vmatpush3.msk.msra.mxu0 %vm116_vm0, %v9570_v16 }
 0x8ca   :  { %11224 = vmatmul.mubr.msk.f32.gmra.mrb[102].mxu1 %vm195_vm2, %v13627_v33 }
 0x961   :  { %v15227_v30 = vpop.f32.mrb[72].mxu1 }
 0x962   :  { %v15229_v36 = vpop.f32.mrb[73].mxu1 }
 0x965   :  { %v15231_v10 = vpop.f32.mrb[74].mxu1 }
 0x966   :  { %v15233_v9 = vpop.f32.mrb[75].mxu1 }
 0x969   :  { %v15235_v47 = vpop.f32.mrb[76].mxu1 }
 0x96a   :  { %v15237_v5 = vpop.f32.mrb[77].mxu1 }
 0x96d   :  { %v15239_v59 = vpop.f32.mrb[78].mxu1 }
 0x96e   :  { %v15241_v50 = vpop.f32.mrb[79].mxu1 }
 0x971   :  { %v15243_v11 = vpop.f32.mrb[80].mxu1 }
 0x972   :  { %v15245_v20 = vpop.f32.mrb[81].mxu1 }
 0x975   :  { %v15247_v34 = vpop.f32.mrb[82].mxu1 }
 0x976   :  { %v15249_v8 = vpop.f32.mrb[83].mxu1 }
 0x979   :  { %v15255_v33 = vpop.f32.mrb[84].mxu1 }
 0x97a   :  { %v15258_v38 = vpop.f32.mrb[85].mxu1 }
 0x97d   :  { %v15260_v43 = vpop.f32.mrb[86].mxu1 }
 0x97e   :  { %v15262_v7 = vpop.f32.mrb[87].mxu1 }
 0x981   :  { %v11204_v41 = vpop.f32.mrb[88].mxu1 }
 0x982   :  { %3252 = vrot.lane.b32.xlu0 %v11204_v41, %s13734_s24  ;;  %v3155_v22 = vpop.f32.mrb[89].mxu1 }
 0x983   :  { %3250 = vrot.lane.b32.xlu1 %v3155_v22, %s13734_s24 }
 0x985   :  { %v11207_v37 = vpop.f32.mrb[90].mxu1 }
 0x986   :  { %3256 = vrot.lane.b32.xlu0 %v11207_v37, %s13734_s24  ;;  %v3165_v46 = vpop.f32.mrb[91].mxu1 }
 0x987   :  { %3254 = vrot.lane.b32.xlu1 %v3165_v46, %s13734_s24 }
 0x989   :  { %v11210_v26 = vpop.f32.mrb[92].mxu1 }
 0x98a   :  { %3260 = vrot.lane.b32.xlu0 %v11210_v26, %s13734_s24  ;;  %v3175_v15 = vpop.f32.mrb[93].mxu1 }
 0x98b   :  { %3258 = vrot.lane.b32.xlu1 %v3175_v15, %s13734_s24 }
 0x98d   :  { %v11213_v24 = vpop.f32.mrb[94].mxu1 }
 0x98e   :  { %3264 = vrot.lane.b32.xlu0 %v11213_v24, %s13734_s24  ;;  %v3185_v6 = vpop.f32.mrb[95].mxu1  ;;  %v15280_v24 = vpop.xlane.xlu0 %2851 }
 0x98f   :  { %3262 = vrot.lane.b32.xlu1 %v3185_v6, %s13734_s24 }
 0x991   :  { %v11216_v45 = vpop.f32.mrb[96].mxu1 }
 0x992   :  { %3268 = vrot.lane.b32.xlu0 %v11216_v45, %s13734_s24  ;;  %v3195_v16 = vpop.f32.mrb[97].mxu1  ;;  %v15282_v6 = vpop.xlane.xlu0 %2857 }
 0x993   :  { %3266 = vrot.lane.b32.xlu1 %v3195_v16, %s13734_s24  ;;  %v15286_v16 = vpop.xlane.xlu1 %2848 }
 0x995   :  { %v11219_v41 = vpop.f32.mrb[98].mxu1 }
 0x996   :  { %v3205_v22 = vpop.f32.mrb[99].mxu1  ;;  %v15284_v45 = vpop.xlane.xlu0 %2863 }
 0x997   :  { %3272 = vrot.lane.b32.xlu1 %v11219_v41, %s13734_s24 }
 0x999   :  { %v11222_v37 = vpop.f32.mrb[100].mxu1 }
 0x99a   :  { %3276 = vrot.lane.b32.xlu0 %v11222_v37, %s13734_s24  ;;  %v3215_v46 = vpop.f32.mrb[101].mxu1  ;;  %v15288_v41 = vpop.xlane.xlu0 %2821 }
 0x99b   :  { %3270 = vrot.lane.b32.xlu1 %v3205_v22, %s13734_s24  ;;  %v15290_v37 = vpop.xlane.xlu1 %2854  ;;  %vm2874_vm13 = vcmp.eq.f32.partialorder %v15288_v41, inf  ;;  %vm2876_vm15 = vcmp.eq.f32.partialorder %v15288_v41, 0.0 }
 0x99d   :  { %v11225_v26 = vpop.f32.mrb[102].mxu1 }
 0x99e   :  { %3280 = vrot.lane.b32.xlu0 %v11225_v26, %s13734_s24  ;;  %v3225_v15 = vpop.f32.mrb[103].mxu1  ;;  %v15292_v22 = vpop.xlane.xlu0 %2827 }
 0x99f   :  { %3274 = vrot.lane.b32.xlu1 %v3215_v46, %s13734_s24  ;;  %v15294_v26 = vpop.xlane.xlu1 %2860  ;;  %vm2888_vm8 = vcmp.eq.f32.partialorder %v15292_v22, inf  ;;  %vm2890_vm10 = vcmp.eq.f32.partialorder %v15292_v22, 0.0 }
 0x9a2   :  { %v15296_v18 = vpop.xlane.xlu0 %2824 }
 0x9a3   :  { %3278 = vrot.lane.b32.xlu1 %v3225_v15, %s13734_s24  ;;  %v15298_v46 = vpop.xlane.xlu1 %2818  ;;  %vm2881_vm9 = vcmp.eq.f32.partialorder %v15296_v18, inf  ;;  %vm2883_vm11 = vcmp.eq.f32.partialorder %v15296_v18, 0.0 }
 0x9a4   :  { %vm2867_vm14 = vcmp.eq.f32.partialorder %v15298_v46, inf  ;;  %vm2869_vm1 = vcmp.eq.f32.partialorder %v15298_v46, 0.0 }
 0x9a6   :  { %v15300_v15 = vpop.xlane.xlu0 %2833 }
 0x9a7   :  { %v15302_v51 = vpop.xlane.xlu1 %2830  ;;  %vm2902_vm12 = vcmp.eq.f32.partialorder %v15300_v15, inf }
 0x9aa   :  { %v15304_v12 = vpop.xlane.xlu0 %2839 }
 0x9ab   :  { %v15306_v44 = vpop.xlane.xlu1 %2836 }
 0x9ae   :  { %v15308_v25 = vpop.xlane.xlu0 %2845 }
 0x9af   :  { %v15310_v13 = vpop.xlane.xlu1 %2842 }
 0x9f4   :  { %v3253_v17 = vpop.permute.xlu0 %3252 }
 0x9f5   :  { %v3299_v55 = vsel %vm984_vm4, %v15227_v30, %v3253_v17  ;;  %v3251_v28 = vpop.permute.xlu1 %3250 }
 0x9f6   :  { %v3315_v48 = vsel %vm1001_vm5, %v3299_v55, %v15288_v41  ;;  %v3298_v39 = vsel %vm984_vm4, %v15229_v36, %v3251_v28 }
 0x9f7   :  { %v3314_v23 = vsel %vm1001_vm5, %v3298_v39, %v15298_v46  ;;  %v3331_v14 = vsel %vm1018_vm6, %v3315_v48, %v14188_v53 }
 0x9f8   :  { %v3257_v4 = vpop.permute.xlu0 %3256  ;;  %v3330_v63 = vsel %vm1018_vm6, %v3314_v23, %v14192_v56 }
 0x9f9   :  { %v3301_v17 = vsel %vm984_vm4, %v15231_v10, %v3257_v4  ;;  %11244 = vmatprep.mubr.msk.f32.mxu0 %vm1048_vm7, %v3330_v63  ;;  %v3255_v30 = vpop.permute.xlu1 %3254 }
 0x9fa   :  { %v3317_v55 = vsel %vm1001_vm5, %v3301_v17, %v15292_v22  ;;  %v3300_v28 = vsel %vm984_vm4, %v15233_v9, %v3255_v30  ;;  %11245 = vmatmul.mubr.msk.f32.vlgmr.msra.gmra.mrb[66].mxu0 %vm1048_vm7, %v3331_v14 }
 0x9fb   :  { %v3316_v23 = vsel %vm1001_vm5, %v3300_v28, %v15296_v18  ;;  %v3333_v36 = vsel %vm1018_vm6, %v3317_v55, %v14186_v52 }
 0x9fc   :  { %v3261_v39 = vpop.permute.xlu0 %3260  ;;  %v3332_v48 = vsel %vm1018_vm6, %v3316_v23, %v14190_v54 }
 0x9fd   :  { %v3303_v4 = vsel %vm984_vm4, %v15235_v47, %v3261_v39  ;;  %11247 = vmatprep.mubr.msk.f32.mxu0 %vm1048_vm7, %v3332_v48  ;;  %v3259_v63 = vpop.permute.xlu1 %3258 }
 0x9fe   :  { %v3319_v10 = vsel %vm1001_vm5, %v3303_v4, %v15300_v15  ;;  %v3302_v14 = vsel %vm984_vm4, %v15237_v5, %v3259_v63  ;;  %11248 = vmatmul.mubr.msk.f32.gmra.mrb[68].mxu0 %vm1048_vm7, %v3333_v36 }
 0x9ff   :  { %v3318_v9 = vsel %vm1001_vm5, %v3302_v14, %v15302_v51  ;;  %v3335_v28 = vsel %vm1018_vm6, %v3319_v10, %v14194_v57 }
 0xa00   :  { %v3265_v17 = vpop.permute.xlu0 %3264  ;;  %v3334_v47 = vsel %vm1018_vm6, %v3318_v9, %v14196_v58 }
 0xa01   :  { %v3305_v30 = vsel %vm984_vm4, %v15239_v59, %v3265_v17  ;;  %11250 = vmatprep.mubr.msk.f32.mxu0 %vm1048_vm7, %v3334_v47  ;;  %v3263_v55 = vpop.permute.xlu1 %3262 }
 0xa02   :  { %v3321_v5 = vsel %vm1001_vm5, %v3305_v30, %v15304_v12  ;;  %v3304_v23 = vsel %vm984_vm4, %v15241_v50, %v3263_v55  ;;  %11251 = vmatmul.mubr.msk.f32.gmra.mrb[70].mxu0 %vm1048_vm7, %v3335_v28 }
 0xa03   :  { %v3320_v39 = vsel %vm1001_vm5, %v3304_v23, %v15306_v44  ;;  %v3337_v36 = vsel %vm1018_vm6, %v3321_v5, %v14198_v60 }
 0xa04   :  { %v3269_v48 = vpop.permute.xlu0 %3268  ;;  %v3336_v59 = vsel %vm1018_vm6, %v3320_v39, %v14200_v61 }
 0xa05   :  { %v3307_v4 = vsel %vm984_vm4, %v15243_v11, %v3269_v48  ;;  %11253 = vmatprep.mubr.msk.f32.mxu0 %vm1048_vm7, %v3336_v59  ;;  %v3267_v63 = vpop.permute.xlu1 %3266 }
 0xa06   :  { %v3323_v50 = vsel %vm1001_vm5, %v3307_v4, %v15308_v25  ;;  %v3306_v10 = vsel %vm984_vm4, %v15245_v20, %v3267_v63  ;;  %11254 = vmatmul.mubr.msk.f32.gmra.mrb[72].mxu0 %vm1048_vm7, %v3337_v36 }
 0xa07   :  { %v3322_v14 = vsel %vm1001_vm5, %v3306_v10, %v15310_v13  ;;  %v3339_v17 = vsel %vm1018_vm6, %v3323_v50, %v14204_v0 }
 0xa08   :  { %v3338_v11 = vsel %vm1018_vm6, %v3322_v14, %v14202_v62 }
 0xa09   :  { %11256 = vmatprep.mubr.msk.f32.mxu0 %vm1048_vm7, %v3338_v11  ;;  %v3273_v9 = vpop.permute.xlu1 %3272 }
 0xa0a   :  { %11257 = vmatmul.mubr.msk.f32.gmra.mrb[74].mxu0 %vm1048_vm7, %v3339_v17  ;;  %v3309_v47 = vsel %vm984_vm4, %v15247_v34, %v3273_v9  ;;  %v9604_v17 = vld [vmem:[%s18036_s8 + $0x20] sm:$0xff] }
 0xa0b   :  { %v3325_v55 = vsel %vm1001_vm5, %v3309_v47, %v15280_v24 }
 0xa0c   :  { %v3277_v20 = vpop.permute.xlu0 %3276  ;;  %v3341_v59 = vsel %vm1018_vm6, %v3325_v55, %v14208_v2 }
 0xa0d   :  { %v3271_v30 = vpop.permute.xlu1 %3270  ;;  %v3311_v5 = vsel %vm984_vm4, %v15255_v33, %v3277_v20  ;;  %v9606_v20 = vld [vmem:[%s18036_s8 + $0x30] sm:$0xff] }
 0xa0e   :  { %v3308_v28 = vsel %vm984_vm4, %v15249_v8, %v3271_v30  ;;  %v3327_v4 = vsel %vm1001_vm5, %v3311_v5, %v15282_v6  ;;  %v9607_v30 = vld [vmem:[%s18036_s8 + $0x38] sm:$0xff]  ;;  %v9641_v5 = vld [vmem:[%s18037_s11 + $0x28] sm:$0xff] }
 0xa0f   :  { %v3324_v23 = vsel %vm1001_vm5, %v3308_v28, %v15286_v16  ;;  %v3343_v10 = vsel %vm1018_vm6, %v3327_v4, %v14212_v21  ;;  %v12199_v55 = vpack.c.bf16 %v9607_v30, %v9606_v20  ;;  %v9640_v28 = vld [vmem:[%s18037_s11 + $0x20] sm:$0xff] }
 0xa10   :  { %v3281_v39 = vpop.permute.xlu0 %3280  ;;  %v3340_v48 = vsel %vm1018_vm6, %v3324_v23, %v14206_v1  ;;  %v12203_v23 = vpack.c.bf16 %v9641_v5, %v9640_v28 }
 0xa11   :  { %11259 = vmatprep.mubr.msk.f32.mxu0 %vm1048_vm7, %v3340_v48  ;;  %v3275_v34 = vpop.permute.xlu1 %3274  ;;  %v3313_v33 = vsel %vm984_vm4, %v15260_v43, %v3281_v39  ;;  %v15445_v39 = vld [vmem:[%s18038_s13 + $0x8] sm:$0x1f]  ;;  %v18173_v48 = vld [vmem:[#allocation26_spill] sm:$0xff] }
 0xa12   :  { %v3310_v8 = vsel %vm984_vm4, %v15258_v38, %v3275_v34  ;;  %11260 = vmatmul.mubr.msk.f32.gmra.mrb[76].mxu0 %vm1048_vm7, %v3341_v59  ;;  %v3329_v38 = vsel %vm1001_vm5, %v3313_v33, %v15284_v45  ;;  %12204 = vmatprep.subr.bf16.mxu1 %v12203_v23  ;;  %v15449_v34 = vrot.slane %v15445_v39, %v18173_v48 }
 0xa13   :  { %v3326_v63 = vsel %vm1001_vm5, %v3310_v8, %v15290_v37  ;;  %v3345_v9 = vsel %vm1018_vm6, %v3329_v38, %v14216_v32  ;;  %12206 = vmatpush3.bf16.msra.mxu1 %v12203_v23 }
 0xa14   :  { %v3342_v36 = vsel %vm1018_vm6, %v3326_v63, %v14210_v3 }
 0xa15   :  { %11262 = vmatprep.mubr.msk.f32.mxu0 %vm1048_vm7, %v3342_v36  ;;  %v3279_v50 = vpop.permute.xlu1 %3278 }
 0xa16   :  { %v3312_v14 = vsel %vm984_vm4, %v15262_v7, %v3279_v50  ;;  %11263 = vmatmul.mubr.msk.f32.gmra.mrb[78].mxu0 %vm1048_vm7, %v3343_v10  ;;  %v9605_v7 = vld [vmem:[%s18036_s8 + $0x28] sm:$0xff] }
 0xa17   :  { %v3328_v43 = vsel %vm1001_vm5, %v3312_v14, %v15294_v26  ;;  %v12195_v47 = vpack.c.bf16 %v9605_v7, %v9604_v17 }
 0xa18   :  { %v3344_v11 = vsel %vm1018_vm6, %v3328_v43, %v14214_v31 }
 0xa19   :  { %11265 = vmatprep.mubr.msk.f32.mxu0 %vm1048_vm7, %v3344_v11  ;;  %12196 = vmatprep.subr.bf16.mxu0 %v12195_v47 }
 0xa1a   :  { %11266 = vmatmul.mubr.msk.f32.gmra.mrb[80].mxu0 %vm1048_vm7, %v3345_v9 }
 0xa1b   :  { %12198 = vmatpush3.bf16.msra.mxu0 %v12195_v47 }
 0xa1c   :  { %12200 = vmatprep.subr.bf16.mxu0 %v12199_v55 }
 0xa1f   :  { %12202 = vmatpush3.bf16.msra.mxu0 %v12199_v55 }
 0xacd   :  { %v11246_v59 = vpop.f32.mrb[66].mxu0 }
 0xace   :  { %v15452_v4 = vadd.f32 %v11246_v59, %v15449_v34  ;;  %v3477_v8 = vpop.f32.mrb[67].mxu0 }
 0xacf   :  { %v15455_v33 = vadd.f32 %v3477_v8, %v15449_v34 }
 0xad0   :  { %v9589_v63 = vmul.f32 -1.442695, %v15452_v4 }
 0xad1   :  { %v9588_v36 = vmul.f32 -1.442695, %v15455_v33  ;;  %v11249_v50 = vpop.f32.mrb[68].mxu0 }
 0xad2   :  { %12793 = vpow2.f32 %v9589_v63  ;;  %v15460_v10 = vadd.f32 %v11249_v50, %v15449_v34  ;;  %v3487_v38 = vpop.f32.mrb[69].mxu0 }
 0xad3   :  { %12795 = vpow2.f32 %v9588_v36  ;;  %v15463_v14 = vadd.f32 %v3487_v38, %v15449_v34 }
 0xad4   :  { %v9591_v43 = vmul.f32 -1.442695, %v15460_v10 }
 0xad5   :  { %v9590_v11 = vmul.f32 -1.442695, %v15463_v14  ;;  %v11252_v9 = vpop.f32.mrb[70].mxu0 }
 0xad6   :  { %12797 = vpow2.f32 %v9591_v43  ;;  %v15468_v17 = vadd.f32 %v11252_v9, %v15449_v34  ;;  %v3497_v7 = vpop.f32.mrb[71].mxu0 }
 0xad7   :  { %12799 = vpow2.f32 %v9590_v11  ;;  %v15471_v47 = vadd.f32 %v3497_v7, %v15449_v34 }
 0xad8   :  { %v9593_v20 = vmul.f32 -1.442695, %v15468_v17 }
 0xad9   :  { %v9592_v30 = vmul.f32 -1.442695, %v15471_v47  ;;  %v11255_v55 = vpop.f32.mrb[72].mxu0 }
 0xada   :  { %12801 = vpow2.f32 %v9593_v20  ;;  %v15476_v28 = vadd.f32 %v11255_v55, %v15449_v34  ;;  %v3507_v5 = vpop.f32.mrb[73].mxu0 }
 0xadb   :  { %12803 = vpow2.f32 %v9592_v30  ;;  %v15479_v23 = vadd.f32 %v3507_v5, %v15449_v34 }
 0xadc   :  { %v12794_v59 = vpop.eup %12793  ;;  %v9595_v8 = vmul.f32 -1.442695, %v15476_v28 }
 0xadd   :  { %v12796_v63 = vpop.eup %12795  ;;  %v3605_v36 = vadd.f32 1.0, %v12794_v59  ;;  %v9594_v50 = vmul.f32 -1.442695, %v15479_v23  ;;  %v11258_v38 = vpop.f32.mrb[74].mxu0 }
 0xade   :  { %v3604_v43 = vadd.f32 1.0, %v12796_v63  ;;  %12805 = vpow2.f32 %v9595_v8  ;;  %v15484_v11 = vadd.f32 %v11258_v38, %v15449_v34  ;;  %v3517_v9 = vpop.f32.mrb[75].mxu0 }
 0xadf   :  { %12807 = vrcp.f32 %v3605_v36  ;;  %v15487_v7 = vadd.f32 %v3517_v9, %v15449_v34 }
 0xae0   :  { %v12798_v20 = vpop.eup %12797  ;;  %12809 = vrcp.f32 %v3604_v43  ;;  %v9597_v30 = vmul.f32 -1.442695, %v15484_v11 }
 0xae1   :  { %v12800_v55 = vpop.eup %12799  ;;  %v3607_v5 = vadd.f32 1.0, %v12798_v20  ;;  %12811 = vpow2.f32 %v9594_v50  ;;  %v9596_v59 = vmul.f32 -1.442695, %v15487_v7 }
 0xae2   :  { %v3606_v48 = vadd.f32 1.0, %v12800_v55  ;;  %12813 = vpow2.f32 %v9597_v30 }
 0xae3   :  { %12815 = vrcp.f32 %v3607_v5 }
 0xae4   :  { %v12802_v8 = vpop.eup %12801  ;;  %12817 = vrcp.f32 %v3606_v48 }
 0xae5   :  { %v12804_v63 = vpop.eup %12803  ;;  %v3609_v38 = vadd.f32 1.0, %v12802_v8  ;;  %12819 = vpow2.f32 %v9596_v59  ;;  %v11261_v36 = vpop.f32.mrb[76].mxu0 }
 0xae6   :  { %v3608_v9 = vadd.f32 1.0, %v12804_v63  ;;  %v15492_v32 = vadd.f32 %v11261_v36, %v15449_v34  ;;  %v3527_v43 = vpop.f32.mrb[77].mxu0 }
 0xae7   :  { %12821 = vrcp.f32 %v3609_v38  ;;  %v15495_v20 = vadd.f32 %v3527_v43, %v15449_v34 }
 0xae8   :  { %v12806_v50 = vpop.eup %12805  ;;  %12823 = vrcp.f32 %v3608_v9  ;;  %v9599_v30 = vmul.f32 -1.442695, %v15492_v32 }
 0xae9   :  { %v12808_v55 = vpop.eup %12807  ;;  %v3611_v5 = vadd.f32 1.0, %v12806_v50  ;;  %v9598_v48 = vmul.f32 -1.442695, %v15495_v20  ;;  %v11264_v8 = vpop.f32.mrb[78].mxu0 }
 0xaea   :  { %v12810_v59 = vpop.eup %12809  ;;  %12825 = vpow2.f32 %v9599_v30  ;;  %v15500_v63 = vadd.f32 %v11264_v8, %v15449_v34  ;;  %v3537_v36 = vpop.f32.mrb[79].mxu0  ;;  %v3653_v21 = vmul.f32 %v12808_v55, %v15452_v4 }
 0xaeb   :  { %v12812_v31 = vpop.eup %12811  ;;  %v3652_v38 = vmul.f32 %v12810_v59, %v15455_v33  ;;  %v15504_v43 = vadd.f32 %v3537_v36, %v15449_v34  ;;  %12827 = vpow2.f32 %v9598_v48 }
 0xaec   :  { %v12814_v9 = vpop.eup %12813  ;;  %v3610_v3 = vadd.f32 1.0, %v12812_v31  ;;  %v9601_v50 = vmul.f32 -1.442695, %v15500_v63  ;;  %12829 = vrcp.f32 %v3611_v5 }
 0xaed   :  { %v12816_v2 = vpop.eup %12815  ;;  %v3613_v30 = vadd.f32 1.0, %v12814_v9  ;;  %v9600_v8 = vmul.f32 -1.442695, %v15504_v43  ;;  %v11267_v1 = vpop.f32.mrb[80].mxu0  ;;  %11276 = vmatprep.mubr.msk.f32.mxu0 %vm984_vm4, %v3652_v38 }
 0xaee   :  { %v12818_v0 = vpop.eup %12817  ;;  %12831 = vrcp.f32 %v3610_v3  ;;  %v15511_v33 = vadd.f32 %v11267_v1, %v15449_v34  ;;  %v3547_v59 = vpop.f32.mrb[81].mxu0  ;;  %11277 = vmatmul.mubr.msk.f32.vlgmr.msra.gmra.mrb[82].mxu0 %vm984_vm4, %v3653_v21  ;;  %v3655_v5 = vmul.f32 %v12816_v2, %v15460_v10 }
 0xaef   :  { %v12820_v31 = vpop.eup %12819  ;;  %v3654_v4 = vmul.f32 %v12818_v0, %v15463_v14  ;;  %12833 = vrcp.f32 %v3613_v30  ;;  %v3548_v55 = vadd.f32 %v3547_v59, %v15449_v34 }
 0xaf0   :  { %v3612_v48 = vadd.f32 1.0, %v12820_v31  ;;  %12835 = vpow2.f32 %v9601_v50  ;;  %v9603_v36 = vmul.f32 -1.442695, %v15511_v33 }
 0xaf1   :  { %v12822_v38 = vpop.eup %12821  ;;  %12837 = vpow2.f32 %v9600_v8  ;;  %v9602_v3 = vmul.f32 -1.442695, %v3548_v55  ;;  %11279 = vmatprep.mubr.msk.f32.mxu0 %vm984_vm4, %v3654_v4 }
 0xaf2   :  { %v12824_v1 = vpop.eup %12823  ;;  %12839 = vrcp.f32 %v3612_v48  ;;  %11280 = vmatmul.mubr.msk.f32.gmra.mrb[84].mxu0 %vm984_vm4, %v3655_v5  ;;  %v3657_v34 = vmul.f32 %v12822_v38, %v15468_v17 }
 0xaf3   :  { %v3656_v0 = vmul.f32 %v12824_v1, %v15471_v47  ;;  %12841 = vpow2.f32 %v9603_v36 }
 0xaf4   :  { %v12826_v21 = vpop.eup %12825  ;;  %12843 = vpow2.f32 %v9602_v3 }
 0xaf5   :  { %v3615_v2 = vadd.f32 1.0, %v12826_v21  ;;  %11282 = vmatprep.mubr.msk.f32.mxu0 %vm984_vm4, %v3656_v0  ;;  %v12828_v10 = vpop.eup %12827 }
 0xaf6   :  { %11283 = vmatmul.mubr.msk.f32.gmra.mrb[86].mxu0 %vm984_vm4, %v3657_v34  ;;  %v12830_v14 = vpop.eup %12829  ;;  %v3614_v9 = vadd.f32 1.0, %v12828_v10 }
 0xaf7   :  { %12845 = vrcp.f32 %v3615_v2  ;;  %v3659_v59 = vmul.f32 %v12830_v14, %v15476_v28 }
 0xaf8   :  { %v12832_v50 = vpop.eup %12831  ;;  %12847 = vrcp.f32 %v3614_v9 }
 0xaf9   :  { %v12834_v30 = vpop.eup %12833  ;;  %v3658_v8 = vmul.f32 %v12832_v50, %v15479_v23 }
 0xafa   :  { %v12836_v47 = vpop.eup %12835  ;;  %v3661_v3 = vmul.f32 %v12834_v30, %v15484_v11 }
 0xafb   :  { %v12838_v31 = vpop.eup %12837  ;;  %v3617_v17 = vadd.f32 1.0, %v12836_v47  ;;  %11285 = vmatprep.mubr.msk.f32.mxu0 %vm984_vm4, %v3658_v8  ;;  %v9678_v8 = vld [vmem:[%s18039_s12 + $0x30] sm:$0xff]  ;;  %v9679_v47 = vld [vmem:[%s18039_s12 + $0x38] sm:$0xff] }
 0xafc   :  { %v12840_v4 = vpop.eup %12839  ;;  %v3616_v5 = vadd.f32 1.0, %v12838_v31  ;;  %11286 = vmatmul.mubr.msk.f32.gmra.mrb[88].mxu0 %vm984_vm4, %v3659_v59  ;;  %v12215_v59 = vpack.c.bf16 %v9679_v47, %v9678_v8  ;;  %v18174_v31 = vld [vmem:[#allocation27_spill] sm:$0xff] }
 0xafd   :  { %v12842_v48 = vpop.eup %12841  ;;  %v3660_v36 = vmul.f32 %v12840_v4, %v15487_v7  ;;  %12849 = vrcp.f32 %v3617_v17  ;;  %v15563_v17 = vrot.slane %v15445_v39, %v18174_v31 }
 0xafe   :  { %v12844_v38 = vpop.eup %12843  ;;  %12851 = vrcp.f32 %v3616_v5  ;;  %v3619_v23 = vadd.f32 1.0, %v12842_v48 }
 0xaff   :  { %v3618_v1 = vadd.f32 1.0, %v12844_v38  ;;  %11288 = vmatprep.mubr.msk.f32.mxu0 %vm984_vm4, %v3660_v36 }
 0xb00   :  { %12853 = vrcp.f32 %v3619_v23  ;;  %11289 = vmatmul.mubr.msk.f32.gmra.mrb[90].mxu0 %vm984_vm4, %v3661_v3 }
 0xb01   :  { %12855 = vrcp.f32 %v3618_v1  ;;  %v12846_v28 = vpop.eup %12845 }
 0xb02   :  { %v12848_v0 = vpop.eup %12847  ;;  %v3663_v34 = vmul.f32 %v12846_v28, %v15492_v32  ;;  %v9676_v32 = vld [vmem:[%s18039_s12 + $0x20] sm:$0xff] }
 0xb03   :  { %v3662_v21 = vmul.f32 %v12848_v0, %v15495_v20 }
 0xb05   :  { %11291 = vmatprep.mubr.msk.f32.mxu0 %vm984_vm4, %v3662_v21 }
 0xb06   :  { %11292 = vmatmul.mubr.msk.f32.gmra.mrb[92].mxu0 %vm984_vm4, %v3663_v34 }
 0xb07   :  { %v12850_v7 = vpop.eup %12849 }
 0xb08   :  { %v12852_v11 = vpop.eup %12851  ;;  %v3665_v14 = vmul.f32 %v12850_v7, %v15500_v63  ;;  %v9677_v63 = vld [vmem:[%s18039_s12 + $0x28] sm:$0xff] }
 0xb09   :  { %v3664_v2 = vmul.f32 %v12852_v11, %v15504_v43  ;;  %v9642_v43 = vld [vmem:[%s18037_s11 + $0x30] sm:$0xff] }
 0xb0a   :  { %v12854_v10 = vpop.eup %12853 }
 0xb0b   :  { %v12856_v9 = vpop.eup %12855  ;;  %11294 = vmatprep.mubr.msk.f32.mxu0 %vm984_vm4, %v3664_v2  ;;  %v3667_v20 = vmul.f32 %v12854_v10, %v15511_v33  ;;  %v9643_v33 = vld [vmem:[%s18037_s11 + $0x38] sm:$0xff] }
 0xb0c   :  { %v3666_v50 = vmul.f32 %v12856_v9, %v3548_v55  ;;  %11295 = vmatmul.mubr.msk.f32.gmra.mrb[94].mxu0 %vm984_vm4, %v3665_v14  ;;  %v12211_v55 = vpack.c.bf16 %v9677_v63, %v9676_v32  ;;  %v12207_v30 = vpack.c.bf16 %v9643_v33, %v9642_v43 }
 0xb0e   :  { %11297 = vmatprep.mubr.msk.f32.mxu0 %vm984_vm4, %v3666_v50  ;;  %12212 = vmatprep.subr.bf16.mxu0 %v12211_v55 }
 0xb0f   :  { %12208 = vmatprep.subr.bf16.mxu1 %v12207_v30  ;;  %12214 = vmatpush3.bf16.msra.mxu0 %v12211_v55 }
 0xb10   :  { %11298 = vmatmul.mubr.msk.f32.gmra.mrb[96].mxu0 %vm984_vm4, %v3667_v20  ;;  %12210 = vmatpush3.bf16.msra.mxu1 %v12207_v30 }
 0xb11   :  { %12216 = vmatprep.subr.bf16.mxu0 %v12215_v59 }
 0xb13   :  { %12218 = vmatpush3.bf16.msra.mxu0 %v12215_v59 }
 0xbc1   :  { %v11278_v4 = vpop.f32.mrb[82].mxu0 }
 0xbc2   :  { %v15566_v5 = vadd.f32 %v11278_v4, %v15563_v17  ;;  %v3791_v48 = vpop.f32.mrb[83].mxu0 }
 0xbc3   :  { %v15569_v36 = vadd.f32 %v3791_v48, %v15563_v17 }
 0xbc4   :  { %v9625_v38 = vmul.f32 -1.442695, %v15566_v5 }
 0xbc5   :  { %v9624_v3 = vmul.f32 -1.442695, %v15569_v36  ;;  %v11281_v23 = vpop.f32.mrb[84].mxu0 }
 0xbc6   :  { %12857 = vpow2.f32 %v9625_v38  ;;  %v15574_v1 = vadd.f32 %v11281_v23, %v15563_v17  ;;  %v3801_v28 = vpop.f32.mrb[85].mxu0 }
 0xbc7   :  { %12859 = vpow2.f32 %v9624_v3  ;;  %v15577_v0 = vadd.f32 %v3801_v28, %v15563_v17 }
 0xbc8   :  { %v9627_v21 = vmul.f32 -1.442695, %v15574_v1 }
 0xbc9   :  { %v9626_v34 = vmul.f32 -1.442695, %v15577_v0  ;;  %v11284_v7 = vpop.f32.mrb[86].mxu0 }
 0xbca   :  { %12861 = vpow2.f32 %v9627_v21  ;;  %v15582_v11 = vadd.f32 %v11284_v7, %v15563_v17  ;;  %v3811_v2 = vpop.f32.mrb[87].mxu0 }
 0xbcb   :  { %12863 = vpow2.f32 %v9626_v34  ;;  %v15585_v10 = vadd.f32 %v3811_v2, %v15563_v17 }
 0xbcc   :  { %v9629_v14 = vmul.f32 -1.442695, %v15582_v11 }
 0xbcd   :  { %v9628_v9 = vmul.f32 -1.442695, %v15585_v10 }
 0xbce   :  { %12865 = vpow2.f32 %v9629_v14 }
 0xbcf   :  { %12867 = vpow2.f32 %v9628_v9  ;;  %v11287_v50 = vpop.f32.mrb[88].mxu0 }
 0xbd0   :  { %v12858_v20 = vpop.eup %12857  ;;  %v15590_v32 = vadd.f32 %v11287_v50, %v15563_v17  ;;  %v3821_v63 = vpop.f32.mrb[89].mxu0 }
 0xbd1   :  { %v12860_v43 = vpop.eup %12859  ;;  %v3919_v33 = vadd.f32 1.0, %v12858_v20  ;;  %v15593_v55 = vadd.f32 %v3821_v63, %v15563_v17 }
 0xbd2   :  { %v3918_v30 = vadd.f32 1.0, %v12860_v43  ;;  %v9631_v8 = vmul.f32 -1.442695, %v15590_v32 }
 0xbd3   :  { %12869 = vrcp.f32 %v3919_v33  ;;  %v9630_v47 = vmul.f32 -1.442695, %v15593_v55  ;;  %v11290_v59 = vpop.f32.mrb[90].mxu0 }
 0xbd4   :  { %v12862_v4 = vpop.eup %12861  ;;  %12871 = vrcp.f32 %v3918_v30  ;;  %v15598_v48 = vadd.f32 %v11290_v59, %v15563_v17  ;;  %v3831_v38 = vpop.f32.mrb[91].mxu0 }
 0xbd5   :  { %v12864_v3 = vpop.eup %12863  ;;  %v3921_v23 = vadd.f32 1.0, %v12862_v4  ;;  %12873 = vpow2.f32 %v9631_v8  ;;  %v15601_v28 = vadd.f32 %v3831_v38, %v15563_v17 }
 0xbd6   :  { %v3920_v21 = vadd.f32 1.0, %v12864_v3  ;;  %12875 = vpow2.f32 %v9630_v47  ;;  %v9633_v34 = vmul.f32 -1.442695, %v15598_v48 }
 0xbd7   :  { %12877 = vrcp.f32 %v3921_v23  ;;  %v9632_v7 = vmul.f32 -1.442695, %v15601_v28 }
 0xbd8   :  { %v12866_v2 = vpop.eup %12865  ;;  %12879 = vrcp.f32 %v3920_v21 }
 0xbd9   :  { %v12868_v14 = vpop.eup %12867  ;;  %v3923_v9 = vadd.f32 1.0, %v12866_v2  ;;  %12881 = vpow2.f32 %v9633_v34  ;;  %v11293_v20 = vpop.f32.mrb[92].mxu0 }
 0xbda   :  { %v3922_v50 = vadd.f32 1.0, %v12868_v14  ;;  %12883 = vpow2.f32 %v9632_v7  ;;  %v15606_v63 = vadd.f32 %v11293_v20, %v15563_v17  ;;  %v3841_v43 = vpop.f32.mrb[93].mxu0 }
 0xbdb   :  { %12885 = vrcp.f32 %v3923_v9  ;;  %v15609_v33 = vadd.f32 %v3841_v43, %v15563_v17 }
 0xbdc   :  { %12887 = vrcp.f32 %v3922_v50  ;;  %v9635_v8 = vmul.f32 -1.442695, %v15606_v63 }
 0xbdd   :  { %v12870_v30 = vpop.eup %12869  ;;  %v9634_v4 = vmul.f32 -1.442695, %v15609_v33 }
 0xbde   :  { %v12872_v47 = vpop.eup %12871  ;;  %v3967_v59 = vmul.f32 %v12870_v30, %v15566_v5  ;;  %12889 = vpow2.f32 %v9635_v8 }
 0xbdf   :  { %v12874_v38 = vpop.eup %12873  ;;  %v3966_v3 = vmul.f32 %v12872_v47, %v15569_v36  ;;  %v11296_v23 = vpop.f32.mrb[94].mxu0  ;;  %12891 = vpow2.f32 %v9634_v4 }
 0xbe0   :  { %v12876_v21 = vpop.eup %12875  ;;  %v3925_v34 = vadd.f32 1.0, %v12874_v38  ;;  %v15616_v7 = vadd.f32 %v11296_v23, %v15563_v17  ;;  %v3851_v2 = vpop.f32.mrb[95].mxu0 }
 0xbe1   :  { %v12878_v14 = vpop.eup %12877  ;;  %v3924_v9 = vadd.f32 1.0, %v12876_v21  ;;  %v15619_v50 = vadd.f32 %v3851_v2, %v15563_v17  ;;  %11308 = vmatprep.mubr.msk.f32.mxu1 %vm984_vm4, %v3966_v3  ;;  %v15622_v5 = vpack.c.bf16 %v3967_v59, %v3966_v3 }
 0xbe2   :  { %v12880_v20 = vpop.eup %12879  ;;  %v3969_v36 = vmul.f32 %v12878_v14, %v15574_v1  ;;  %12893 = vrcp.f32 %v3925_v34  ;;  %v9637_v43 = vmul.f32 -1.442695, %v15616_v7  ;;  %11309 = vmatmul.mubr.msk.f32.vlgmr.msra.gmra.mrb[104].mxu1 %vm984_vm4, %v3967_v59 }
 0xbe3   :  { %v12882_v30 = vpop.eup %12881  ;;  %v3968_v8 = vmul.f32 %v12880_v20, %v15577_v0  ;;  %12895 = vrcp.f32 %v3924_v9  ;;  %v9636_v47 = vmul.f32 -1.442695, %v15619_v50  ;;  %v11299_v4 = vpop.f32.mrb[96].mxu0  ;;  %12252 = vmatprep.subr.bf16.mxu0 %v15622_v5 }
 0xbe4   :  { %v12884_v38 = vpop.eup %12883  ;;  %v3927_v3 = vadd.f32 1.0, %v12882_v30  ;;  %12897 = vpow2.f32 %v9637_v43  ;;  %v15631_v23 = vadd.f32 %v11299_v4, %v15563_v17  ;;  %v3861_v1 = vpop.f32.mrb[97].mxu0 }
 0xbe5   :  { %v12886_v21 = vpop.eup %12885  ;;  %v3926_v34 = vadd.f32 1.0, %v12884_v38  ;;  %12899 = vpow2.f32 %v9636_v47  ;;  %v15634_v59 = vadd.f32 %v3861_v1, %v15563_v17  ;;  %11311 = vmatprep.mubr.msk.f32.mxu1 %vm984_vm4, %v3968_v8  ;;  %v15637_v0 = vpack.c.bf16 %v3969_v36, %v3968_v8 }
 0xbe6   :  { %v12888_v2 = vpop.eup %12887  ;;  %v3971_v14 = vmul.f32 %v12886_v21, %v15582_v11  ;;  %12901 = vrcp.f32 %v3927_v3  ;;  %v9639_v9 = vmul.f32 -1.442695, %v15631_v23  ;;  %11312 = vmatmul.mubr.msk.f32.gmra.mrb[106].mxu1 %vm984_vm4, %v3969_v36 }
 0xbe7   :  { %v3970_v20 = vmul.f32 %v12888_v2, %v15585_v10  ;;  %12903 = vrcp.f32 %v3926_v34  ;;  %v9638_v43 = vmul.f32 -1.442695, %v15634_v59 }
 0xbe8   :  { %12905 = vpow2.f32 %v9639_v9  ;;  %v12890_v17 = vpop.eup %12889 }
 0xbe9   :  { %12907 = vpow2.f32 %v9638_v43  ;;  %11314 = vmatprep.mubr.msk.f32.mxu1 %vm984_vm4, %v3970_v20  ;;  %v15645_v30 = vpack.c.bf16 %v3971_v14, %v3970_v20  ;;  %v12892_v8 = vpop.eup %12891  ;;  %v3929_v47 = vadd.f32 1.0, %v12890_v17 }
 0xbea   :  { %11315 = vmatmul.mubr.msk.f32.gmra.mrb[108].mxu1 %vm984_vm4, %v3971_v14  ;;  %v3928_v11 = vadd.f32 1.0, %v12892_v8 }
 0xbeb   :  { %12909 = vrcp.f32 %v3929_v47 }
 0xbec   :  { %v12894_v4 = vpop.eup %12893  ;;  %12911 = vrcp.f32 %v3928_v11 }
 0xbed   :  { %v12896_v36 = vpop.eup %12895  ;;  %v3973_v10 = vmul.f32 %v12894_v4, %v15590_v32 }
 0xbee   :  { %v12898_v38 = vpop.eup %12897  ;;  %v3972_v3 = vmul.f32 %v12896_v36, %v15593_v55 }
 0xbef   :  { %v12900_v1 = vpop.eup %12899  ;;  %v3931_v21 = vadd.f32 1.0, %v12898_v38 }
 0xbf0   :  { %v12902_v34 = vpop.eup %12901  ;;  %v3930_v2 = vadd.f32 1.0, %v12900_v1  ;;  %11317 = vmatprep.mubr.msk.f32.mxu1 %vm984_vm4, %v3972_v3  ;;  %v15651_v9 = vpack.c.bf16 %v3973_v10, %v3972_v3 }
 0xbf1   :  { %v12904_v20 = vpop.eup %12903  ;;  %v3975_v14 = vmul.f32 %v12902_v34, %v15598_v48  ;;  %12913 = vrcp.f32 %v3931_v21  ;;  %11318 = vmatmul.mubr.msk.f32.gmra.mrb[110].mxu1 %vm984_vm4, %v3973_v10 }
 0xbf2   :  { %v12906_v43 = vpop.eup %12905  ;;  %v3974_v32 = vmul.f32 %v12904_v20, %v15601_v28  ;;  %12915 = vrcp.f32 %v3930_v2 }
 0xbf3   :  { %v12908_v17 = vpop.eup %12907  ;;  %v3933_v55 = vadd.f32 1.0, %v12906_v43 }
 0xbf4   :  { %v3932_v8 = vadd.f32 1.0, %v12908_v17  ;;  %11320 = vmatprep.mubr.msk.f32.mxu1 %vm984_vm4, %v3974_v32  ;;  %v15657_v47 = vpack.c.bf16 %v3975_v14, %v3974_v32 }
 0xbf5   :  { %12917 = vrcp.f32 %v3933_v55  ;;  %11321 = vmatmul.mubr.msk.f32.gmra.mrb[112].mxu1 %vm984_vm4, %v3975_v14  ;;  %v12910_v11 = vpop.eup %12909 }
 0xbf6   :  { %12919 = vrcp.f32 %v3932_v8  ;;  %v12912_v48 = vpop.eup %12911  ;;  %v3977_v4 = vmul.f32 %v12910_v11, %v15606_v63 }
 0xbf7   :  { %v3976_v36 = vmul.f32 %v12912_v48, %v15609_v33 }
 0xbf9   :  { %11323 = vmatprep.mubr.msk.f32.mxu1 %vm984_vm4, %v3976_v36  ;;  %v15663_v28 = vpack.c.bf16 %v3977_v4, %v3976_v36 }
 0xbfa   :  { %11324 = vmatmul.mubr.msk.f32.gmra.mrb[114].mxu1 %vm984_vm4, %v3977_v4 }
 0xbfb   :  { %v12914_v10 = vpop.eup %12913 }
 0xbfc   :  { %v12916_v38 = vpop.eup %12915  ;;  %v3979_v3 = vmul.f32 %v12914_v10, %v15616_v7  ;;  %v15681_v7 = vld [vmem:[%s18040_s4] sm:$0xff] }
 0xbfd   :  { %v3978_v1 = vmul.f32 %v12916_v38, %v15619_v50  ;;  %v18175_v50 = vld [vmem:[#allocation28_spill] sm:$0xff] }
 0xbff   :  { %v12918_v21 = vpop.eup %12917  ;;  %11326 = vmatprep.mubr.msk.f32.mxu1 %vm984_vm4, %v3978_v1  ;;  %v15669_v34 = vpack.c.bf16 %v3979_v3, %v3978_v1 }
 0xc00   :  { %v12920_v63 = vpop.eup %12919  ;;  %v3981_v33 = vmul.f32 %v12918_v21, %v15631_v23  ;;  %11327 = vmatmul.mubr.msk.f32.gmra.mrb[116].mxu1 %vm984_vm4, %v3979_v3  ;;  %v15686_v23 = vrot.slane %v15445_v39, %v18175_v50 }
 0xc01   :  { %v3980_v2 = vmul.f32 %v12920_v63, %v15634_v59 }
 0xc03   :  { %11329 = vmatprep.mubr.msk.f32.mxu1 %vm984_vm4, %v3980_v2  ;;  %v15675_v20 = vpack.c.bf16 %v3981_v33, %v3980_v2 }
 0xc04   :  { %11330 = vmatmul.mubr.msk.f32.gmra.mrb[118].mxu1 %vm984_vm4, %v3981_v33 }
 0xc05   :  { %11396 = vmatprep.mubr.f32.mxu1 %v15681_v7 }
 0xcb5   :  { %v11310_v14 = vpop.f32.mrb[104].mxu1 }
 0xcb6   :  { %v15689_v59 = vadd.f32 %v11310_v14, %v15686_v23  ;;  %v4105_v43 = vpop.f32.mrb[105].mxu1 }
 0xcb7   :  { %v15692_v32 = vadd.f32 %v4105_v43, %v15686_v23 }
 0xcb8   :  { %v9661_v17 = vmul.f32 -1.442695, %v15689_v59 }
 0xcb9   :  { %v9660_v55 = vmul.f32 -1.442695, %v15692_v32  ;;  %v11313_v8 = vpop.f32.mrb[106].mxu1 }
 0xcba   :  { %12921 = vpow2.f32 %v9661_v17  ;;  %v15697_v11 = vadd.f32 %v11313_v8, %v15686_v23  ;;  %v4115_v48 = vpop.f32.mrb[107].mxu1 }
 0xcbb   :  { %12923 = vpow2.f32 %v9660_v55  ;;  %v15700_v39 = vadd.f32 %v4115_v48, %v15686_v23 }
 0xcbc   :  { %v9663_v4 = vmul.f32 -1.442695, %v15697_v11 }
 0xcbd   :  { %v9662_v36 = vmul.f32 -1.442695, %v15700_v39  ;;  %v11316_v10 = vpop.f32.mrb[108].mxu1 }
 0xcbe   :  { %12925 = vpow2.f32 %v9663_v4  ;;  %v15705_v38 = vadd.f32 %v11316_v10, %v15686_v23  ;;  %v4125_v3 = vpop.f32.mrb[109].mxu1 }
 0xcbf   :  { %12927 = vpow2.f32 %v9662_v36  ;;  %v15708_v1 = vadd.f32 %v4125_v3, %v15686_v23 }
 0xcc0   :  { %v9665_v21 = vmul.f32 -1.442695, %v15705_v38 }
 0xcc1   :  { %v9664_v63 = vmul.f32 -1.442695, %v15708_v1 }
 0xcc2   :  { %12929 = vpow2.f32 %v9665_v21 }
 0xcc3   :  { %12931 = vpow2.f32 %v9664_v63 }
 0xcc4   :  { %v12922_v33 = vpop.eup %12921  ;;  %v11319_v2 = vpop.f32.mrb[110].mxu1 }
 0xcc5   :  { %v12924_v14 = vpop.eup %12923  ;;  %v4233_v43 = vadd.f32 1.0, %v12922_v33  ;;  %v15713_v17 = vadd.f32 %v11319_v2, %v15686_v23  ;;  %v4135_v55 = vpop.f32.mrb[111].mxu1 }
 0xcc6   :  { %v4232_v8 = vadd.f32 1.0, %v12924_v14  ;;  %v15716_v48 = vadd.f32 %v4135_v55, %v15686_v23 }
 0xcc7   :  { %12933 = vrcp.f32 %v4233_v43  ;;  %v9667_v4 = vmul.f32 -1.442695, %v15713_v17 }
 0xcc8   :  { %v12926_v36 = vpop.eup %12925  ;;  %12935 = vrcp.f32 %v4232_v8  ;;  %v9666_v10 = vmul.f32 -1.442695, %v15716_v48  ;;  %v11322_v3 = vpop.f32.mrb[112].mxu1 }
 0xcc9   :  { %v12928_v21 = vpop.eup %12927  ;;  %v4235_v63 = vadd.f32 1.0, %v12926_v36  ;;  %12937 = vpow2.f32 %v9667_v4  ;;  %v15721_v33 = vadd.f32 %v11322_v3, %v15686_v23  ;;  %v4145_v2 = vpop.f32.mrb[113].mxu1 }
 0xcca   :  { %v4234_v50 = vadd.f32 1.0, %v12928_v21  ;;  %12939 = vpow2.f32 %v9666_v10  ;;  %v15724_v14 = vadd.f32 %v4145_v2, %v15686_v23 }
 0xccb   :  { %12941 = vrcp.f32 %v4235_v63  ;;  %v9669_v43 = vmul.f32 -1.442695, %v15721_v33 }
 0xccc   :  { %v12930_v55 = vpop.eup %12929  ;;  %12943 = vrcp.f32 %v4234_v50  ;;  %v9668_v8 = vmul.f32 -1.442695, %v15724_v14 }
 0xccd   :  { %v12932_v31 = vpop.eup %12931  ;;  %v4237_v62 = vadd.f32 1.0, %v12930_v55  ;;  %12945 = vpow2.f32 %v9669_v43  ;;  %v11325_v36 = vpop.f32.mrb[114].mxu1 }
 0xcce   :  { %v4236_v4 = vadd.f32 1.0, %v12932_v31  ;;  %12947 = vpow2.f32 %v9668_v8  ;;  %v15729_v3 = vadd.f32 %v11325_v36, %v15686_v23  ;;  %v4155_v10 = vpop.f32.mrb[115].mxu1 }
 0xccf   :  { %12949 = vrcp.f32 %v4237_v62  ;;  %v15732_v21 = vadd.f32 %v4155_v10, %v15686_v23 }
 0xcd0   :  { %12951 = vrcp.f32 %v4236_v4  ;;  %v9671_v50 = vmul.f32 -1.442695, %v15729_v3 }
 0xcd1   :  { %v12934_v63 = vpop.eup %12933  ;;  %v9670_v60 = vmul.f32 -1.442695, %v15732_v21 }
 0xcd2   :  { %v12936_v2 = vpop.eup %12935  ;;  %12953 = vpow2.f32 %v9671_v50  ;;  %v4281_v8 = vmul.f32 %v12934_v63, %v15689_v59 }
 0xcd3   :  { %v12938_v55 = vpop.eup %12937  ;;  %v4280_v31 = vmul.f32 %v12936_v2, %v15692_v32  ;;  %v11328_v43 = vpop.f32.mrb[116].mxu1  ;;  %12955 = vpow2.f32 %v9670_v60 }
 0xcd4   :  { %v12940_v62 = vpop.eup %12939  ;;  %v4239_v36 = vadd.f32 1.0, %v12938_v55  ;;  %v15739_v4 = vadd.f32 %v11328_v43, %v15686_v23  ;;  %v4165_v10 = vpop.f32.mrb[117].mxu1 }
 0xcd5   :  { %v12942_v61 = vpop.eup %12941  ;;  %v4238_v57 = vadd.f32 1.0, %v12940_v62  ;;  %v15742_v58 = vadd.f32 %v4165_v10, %v15686_v23  ;;  %11340 = vmatprep.mubr.msk.f32.mxu0 %vm984_vm4, %v4280_v31 }
 0xcd6   :  { %v12944_v52 = vpop.eup %12943  ;;  %12957 = vrcp.f32 %v4239_v36  ;;  %v9673_v32 = vmul.f32 -1.442695, %v15739_v4  ;;  %11341 = vmatmul.mubr.msk.f32.vlgmr.msra.gmra.mrb[98].mxu0 %vm984_vm4, %v4281_v8  ;;  %v4283_v55 = vmul.f32 %v12942_v61, %v15697_v11 }
 0xcd7   :  { %v12946_v59 = vpop.eup %12945  ;;  %v4282_v60 = vmul.f32 %v12944_v52, %v15700_v39  ;;  %12959 = vrcp.f32 %v4238_v57  ;;  %v9672_v63 = vmul.f32 -1.442695, %v15742_v58  ;;  %v11331_v50 = vpop.f32.mrb[118].mxu1  ;;  %12254 = vmatpush3.bf16.msra.mxu0 %v15622_v5 }
 0xcd8   :  { %v12948_v2 = vpop.eup %12947  ;;  %v4241_v43 = vadd.f32 1.0, %v12946_v59  ;;  %12961 = vpow2.f32 %v9673_v32  ;;  %v15752_v31 = vadd.f32 %v11331_v50, %v15686_v23  ;;  %v4175_v62 = vpop.f32.mrb[119].mxu1  ;;  %12256 = vmatprep.subr.bf16.mxu0 %v15637_v0 }
 0xcd9   :  { %v12950_v8 = vpop.eup %12949  ;;  %v4240_v36 = vadd.f32 1.0, %v12948_v2  ;;  %12963 = vpow2.f32 %v9672_v63  ;;  %v15756_v52 = vadd.f32 %v4175_v62, %v15686_v23  ;;  %11343 = vmatprep.mubr.msk.f32.mxu0 %vm984_vm4, %v4282_v60 }
 0xcda   :  { %v12952_v57 = vpop.eup %12951  ;;  %12965 = vrcp.f32 %v4241_v43  ;;  %v9675_v61 = vmul.f32 -1.442695, %v15752_v31  ;;  %11344 = vmatmul.mubr.msk.f32.gmra.mrb[100].mxu0 %vm984_vm4, %v4283_v55  ;;  %v4285_v39 = vmul.f32 %v12950_v8, %v15705_v38 }
 0xcdb   :  { %v4284_v5 = vmul.f32 %v12952_v57, %v15708_v1  ;;  %12967 = vrcp.f32 %v4240_v36  ;;  %v9674_v11 = vmul.f32 -1.442695, %v15756_v52  ;;  %12258 = vmatpush3.bf16.msra.mxu0 %v15637_v0 }
 0xcdc   :  { %12969 = vpow2.f32 %v9675_v61  ;;  %12260 = vmatprep.subr.bf16.mxu0 %v15645_v30  ;;  %v12954_v23 = vpop.eup %12953 }
 0xcdd   :  { %12971 = vpow2.f32 %v9674_v11  ;;  %11346 = vmatprep.mubr.msk.f32.mxu0 %vm984_vm4, %v4284_v5  ;;  %v12956_v10 = vpop.eup %12955  ;;  %v4243_v32 = vadd.f32 1.0, %v12954_v23 }
 0xcde   :  { %11347 = vmatmul.mubr.msk.f32.gmra.mrb[102].mxu0 %vm984_vm4, %v4285_v39  ;;  %v4242_v59 = vadd.f32 1.0, %v12956_v10 }
 0xcdf   :  { %12262 = vmatpush3.bf16.msra.mxu0 %v15645_v30  ;;  %12973 = vrcp.f32 %v4243_v32 }
 0xce0   :  { %v12958_v1 = vpop.eup %12957  ;;  %12264 = vmatprep.subr.bf16.mxu0 %v15651_v9  ;;  %12975 = vrcp.f32 %v4242_v59  ;;  %v2877_v59 = vand.u32 2147483648, %v15288_v41 }
 0xce1   :  { %v12960_v0 = vpop.eup %12959  ;;  %v4287_v50 = vmul.f32 %v12958_v1, %v15713_v17  ;;  %v2870_v1 = vand.u32 2147483648, %v15298_v46 }
 0xce2   :  { %v12962_v38 = vpop.eup %12961  ;;  %v4286_v60 = vmul.f32 %v12960_v0, %v15716_v48 }
 0xce3   :  { %v12964_v63 = vpop.eup %12963  ;;  %v4245_v2 = vadd.f32 1.0, %v12962_v38  ;;  %12266 = vmatpush3.bf16.msra.mxu0 %v15651_v9 }
 0xce4   :  { %v12966_v55 = vpop.eup %12965  ;;  %v4244_v43 = vadd.f32 1.0, %v12964_v63  ;;  %11349 = vmatprep.mubr.msk.f32.mxu0 %vm984_vm4, %v4286_v60  ;;  %12268 = vmatprep.subr.bf16.mxu0 %v15657_v47 }
 0xce5   :  { %v12968_v30 = vpop.eup %12967  ;;  %12977 = vrcp.f32 %v4245_v2  ;;  %11350 = vmatmul.mubr.msk.f32.gmra.mrb[104].mxu0 %vm984_vm4, %v4287_v50  ;;  %v4289_v17 = vmul.f32 %v12966_v55, %v15721_v33 }
 0xce6   :  { %v12970_v62 = vpop.eup %12969  ;;  %v4288_v8 = vmul.f32 %v12968_v30, %v15724_v14  ;;  %12979 = vrcp.f32 %v4244_v43  ;;  %v2884_v43 = vand.u32 2147483648, %v15296_v18 }
 0xce7   :  { %v12972_v48 = vpop.eup %12971  ;;  %v4247_v36 = vadd.f32 1.0, %v12970_v62  ;;  %12270 = vmatpush3.bf16.msra.mxu0 %v15657_v47 }
 0xce8   :  { %v4246_v9 = vadd.f32 1.0, %v12972_v48  ;;  %11352 = vmatprep.mubr.msk.f32.mxu0 %vm984_vm4, %v4288_v8  ;;  %12272 = vmatprep.subr.bf16.mxu0 %v15663_v28 }
 0xce9   :  { %12981 = vrcp.f32 %v4247_v36  ;;  %11353 = vmatmul.mubr.msk.f32.gmra.mrb[106].mxu0 %vm984_vm4, %v4289_v17  ;;  %v12974_v57 = vpop.eup %12973 }
 0xcea   :  { %12983 = vrcp.f32 %v4246_v9  ;;  %v12976_v61 = vpop.eup %12975  ;;  %v4291_v33 = vmul.f32 %v12974_v57, %v15729_v3  ;;  %v2905_v9 = vand.u32 2147483648, %v15300_v15 }
 0xceb   :  { %12274 = vmatpush3.bf16.msra.mxu0 %v15663_v28  ;;  %v4290_v14 = vmul.f32 %v12976_v61, %v15732_v21  ;;  %12985 = vrsqrt.f32 %v15288_v41 }
 0xcec   :  { %12276 = vmatprep.subr.bf16.mxu0 %v15669_v34  ;;  %12987 = vrsqrt.f32 %v15298_v46 }
 0xced   :  { %11355 = vmatprep.mubr.msk.f32.mxu0 %vm984_vm4, %v4290_v14  ;;  %12989 = vrsqrt.f32 %v15292_v22 }
 0xcee   :  { %11356 = vmatmul.mubr.msk.f32.gmra.mrb[108].mxu0 %vm984_vm4, %v4291_v33  ;;  %12991 = vrsqrt.f32 %v15296_v18 }
 0xcef   :  { %v12978_v47 = vpop.eup %12977  ;;  %12278 = vmatpush3.bf16.msra.mxu0 %v15669_v34  ;;  %v13630_v34 = vld [vmem:[%s18033_s3] sm:$0xff]  ;;  %12993 = vrsqrt.f32 %v15300_v15 }
 0xcf0   :  { %v12980_v5 = vpop.eup %12979  ;;  %12280 = vmatprep.subr.bf16.mxu0 %v15675_v20  ;;  %v4293_v28 = vmul.f32 %v12978_v47, %v15739_v4  ;;  %12995 = vrsqrt.f32 %v15302_v51 }
 0xcf1   :  { %v4292_v11 = vmul.f32 %v12980_v5, %v15742_v58  ;;  %v15803_v58 = vld [vmem:[%s18040_s4 + $0x8] sm:$0xff]  ;;  %12997 = vrsqrt.f32 %v15280_v24 }
 0xcf2   :  { %12999 = vrsqrt.f32 %v15306_v44 }
 0xcf3   :  { %v12982_v39 = vpop.eup %12981  ;;  %11358 = vmatprep.mubr.msk.f32.mxu0 %vm984_vm4, %v4292_v11  ;;  %12282 = vmatpush3.bf16.msra.mxu0 %v15675_v20  ;;  %13001 = vrsqrt.f32 %v15304_v12 }
 0xcf4   :  { %v12984_v21 = vpop.eup %12983  ;;  %11359 = vmatmul.mubr.msk.f32.gmra.mrb[110].mxu0 %vm984_vm4, %v4293_v28  ;;  %v4295_v23 = vmul.f32 %v12982_v39, %v15752_v31  ;;  %13003 = vrsqrt.f32 %v15286_v16 }
 0xcf5   :  { %v4294_v3 = vmul.f32 %v12984_v21, %v15756_v52  ;;  %v12986_v20 = vpop.eup %12985  ;;  %13005 = vrsqrt.f32 %v15310_v13 }
 0xcf6   :  { %v2873_v4 = vmul.f32 %v12986_v20, %v15288_v41  ;;  %13007 = vrsqrt.f32 %v15308_v25 }
 0xcf7   :  { %11361 = vmatprep.mubr.msk.f32.mxu0 %vm984_vm4, %v4294_v3  ;;  %13009 = vrsqrt.f32 %v15282_v6 }
 0xcf8   :  { %11362 = vmatmul.mubr.msk.f32.gmra.mrb[112].mxu0 %vm984_vm4, %v4295_v23  ;;  %v2875_v32 = vsel %vm2874_vm13, %v15288_v41, %v2873_v4  ;;  %vm2895_vm13 = vcmp.eq.f32.partialorder %v15302_v51, inf  ;;  %13011 = vrsqrt.f32 %v15290_v37 }
 0xcf9   :  { %11431 = vmatprep.mubr.f32.mxu0 %v15681_v7  ;;  %v12988_v7 = vpop.eup %12987  ;;  %v2878_v41 = vsel %vm2876_vm15, %v2877_v59, %v2875_v32  ;;  %vm2897_vm15 = vcmp.eq.f32.partialorder %v15302_v51, 0.0  ;;  %13013 = vrsqrt.f32 %v15284_v45 }
 0xcfa   :  { %v2866_v31 = vmul.f32 %v12988_v7, %v15298_v46  ;;  %v12990_v52 = vpop.eup %12989  ;;  %v2978_v17 = vadd.f32 1.0, %v2878_v41  ;;  %v2919_v7 = vand.u32 2147483648, %v15304_v12  ;;  %v2926_v41 = vand.u32 2147483648, %v15310_v13 }
 0xcfb   :  { %v12992_v10 = vpop.eup %12991  ;;  %v2887_v38 = vmul.f32 %v12990_v52, %v15292_v22  ;;  %v2912_v52 = vand.u32 2147483648, %v15306_v44 }
 0xcfc   :  { %11432 = vmatmul.mubr.f32.vlgmr.msra.gmra.mrb[114].mxu0 %v15803_v58  ;;  %v2868_v0 = vsel %vm2867_vm14, %v15298_v46, %v2866_v31  ;;  %v12994_v60 = vpop.eup %12993  ;;  %v2880_v63 = vmul.f32 %v12992_v10, %v15296_v18  ;;  %v2891_v46 = vand.u32 2147483648, %v15292_v22  ;;  %vm2904_vm14 = vcmp.eq.f32.partialorder %v15300_v15, 0.0 }
 0xcfd   :  { %11496 = vmatprep.mubr.msk.f32.mxu0 %vm195_vm2, %v13630_v34  ;;  %v12996_v50 = vpop.eup %12995  ;;  %v2871_v2 = vsel %vm2869_vm1, %v2870_v1, %v2868_v0  ;;  %v2889_v55 = vsel %vm2888_vm8, %v15292_v22, %v2887_v38  ;;  %v2901_v30 = vmul.f32 %v12994_v60, %v15300_v15  ;;  %13015 = vrcp.f32 %v2978_v17 }
 0xcfe   :  { %v2882_v62 = vsel %vm2881_vm9, %v15296_v18, %v2880_v63  ;;  %v2894_v8 = vmul.f32 %v12996_v50, %v15302_v51  ;;  %v12998_v48 = vpop.eup %12997  ;;  %v2977_v36 = vadd.f32 1.0, %v2871_v2  ;;  %v2892_v22 = vsel %vm2890_vm10, %v2891_v46, %v2889_v55 }
 0xcff   :  { %v13000_v57 = vpop.eup %12999  ;;  %v2885_v61 = vsel %vm2883_vm11, %v2884_v43, %v2882_v62  ;;  %v2903_v14 = vsel %vm2902_vm12, %v15300_v15, %v2901_v30  ;;  %v2898_v18 = vand.u32 2147483648, %v15302_v51  ;;  %v2980_v5 = vadd.f32 1.0, %v2892_v22 }
 0xd00   :  { %v13002_v33 = vpop.eup %13001  ;;  %v2896_v47 = vsel %vm2895_vm13, %v15302_v51, %v2894_v8  ;;  %v2979_v28 = vadd.f32 1.0, %v2885_v61  ;;  %v2906_v39 = vsel %vm2904_vm14, %v2905_v9, %v2903_v14  ;;  %13017 = vrcp.f32 %v2977_v36 }
 0xd01   :  { %v13004_v11 = vpop.eup %13003  ;;  %v2899_v3 = vsel %vm2897_vm15, %v2898_v18, %v2896_v47  ;;  %v2915_v15 = vmul.f32 %v13002_v33, %v15304_v12  ;;  %13019 = vrsqrt.f32 %v15294_v26  ;;  %vm2916_vm1 = vcmp.eq.f32.partialorder %v15304_v12, inf }
 0xd02   :  { %v13006_v21 = vpop.eup %13005  ;;  %v2908_v34 = vmul.f32 %v13000_v57, %v15306_v44  ;;  %13021 = vrcp.f32 %v2980_v5  ;;  %v2982_v51 = vadd.f32 1.0, %v2906_v39  ;;  %vm2909_vm8 = vcmp.eq.f32.partialorder %v15306_v44, inf }
 0xd03   :  { %v13008_v23 = vpop.eup %13007  ;;  %13023 = vrcp.f32 %v2979_v28  ;;  %v2981_v20 = vadd.f32 1.0, %v2899_v3  ;;  %v2917_v31 = vsel %vm2916_vm1, %v15304_v12, %v2915_v15  ;;  %vm2918_vm9 = vcmp.eq.f32.partialorder %v15304_v12, 0.0 }
 0xd04   :  { %v13010_v4 = vpop.eup %13009  ;;  %v2929_v10 = vmul.f32 %v13008_v23, %v15308_v25  ;;  %v2910_v32 = vsel %vm2909_vm8, %v15306_v44, %v2908_v34  ;;  %vm2911_vm10 = vcmp.eq.f32.partialorder %v15306_v44, 0.0  ;;  %vm2930_vm11 = vcmp.eq.f32.partialorder %v15308_v25, inf }
 0xd05   :  { %v2922_v59 = vmul.f32 %v13006_v21, %v15310_v13  ;;  %13025 = vrcp.f32 %v2982_v51  ;;  %vm2923_vm12 = vcmp.eq.f32.partialorder %v15310_v13, inf  ;;  %v2943_v1 = vmul.f32 %v12998_v48, %v15280_v24  ;;  %v13012_v12 = vpop.eup %13011 }
 0xd06   :  { %v2936_v0 = vmul.f32 %v13004_v11, %v15286_v16  ;;  %13027 = vrcp.f32 %v2981_v20  ;;  %v2920_v38 = vsel %vm2918_vm9, %v2919_v7, %v2917_v31  ;;  %v2933_v60 = vand.u32 2147483648, %v15308_v25  ;;  %v13014_v63 = vpop.eup %13013 }
 0xd07   :  { %vm2944_vm13 = vcmp.eq.f32.partialorder %v15280_v24, inf  ;;  %v2913_v44 = vsel %vm2911_vm10, %v2912_v52, %v2910_v32  ;;  %v2931_v50 = vsel %vm2930_vm11, %v15308_v25, %v2929_v10  ;;  %vm2932_vm14 = vcmp.eq.f32.partialorder %v15308_v25, 0.0  ;;  %v13016_v2 = vpop.eup %13015 }
 0xd08   :  { %v2924_v55 = vsel %vm2923_vm12, %v15310_v13, %v2922_v59  ;;  %vm2925_vm15 = vcmp.eq.f32.partialorder %v15310_v13, 0.0  ;;  %v2947_v43 = vand.u32 2147483648, %v15280_v24  ;;  %vm2937_vm1 = vcmp.eq.f32.partialorder %v15286_v16, inf }
 0xd09   :  { %v2984_v48 = vadd.f32 1.0, %v2920_v38  ;;  %v2945_v17 = vsel %vm2944_vm13, %v15280_v24, %v2943_v1  ;;  %vm2946_vm8 = vcmp.eq.f32.partialorder %v15280_v24, 0.0  ;;  %v2983_v9 = vadd.f32 1.0, %v2913_v44 }
 0xd0a   :  { %v13018_v30 = vpop.eup %13017  ;;  %v2934_v13 = vsel %vm2932_vm14, %v2933_v60, %v2931_v50  ;;  %v2927_v61 = vsel %vm2925_vm15, %v2926_v41, %v2924_v55  ;;  %v2948_v33 = vsel %vm2946_vm8, %v2947_v43, %v2945_v17  ;;  %v2938_v47 = vsel %vm2937_vm1, %v15286_v16, %v2936_v0 }
 0xd0b   :  { %v13020_v36 = vpop.eup %13019  ;;  %vm2939_vm9 = vcmp.eq.f32.partialorder %v15286_v16, 0.0  ;;  %v2940_v24 = vand.u32 2147483648, %v15286_v16  ;;  %13029 = vrcp.f32 %v2984_v48  ;;  %v2986_v25 = vadd.f32 1.0, %v2934_v13 }
 0xd0c   :  { %v13022_v57 = vpop.eup %13021  ;;  %v2957_v28 = vmul.f32 %v13010_v4, %v15282_v6  ;;  %13031 = vrcp.f32 %v2983_v9  ;;  %v2985_v21 = vadd.f32 1.0, %v2927_v61  ;;  %vm2958_vm10 = vcmp.eq.f32.partialorder %v15282_v6, inf }
 0xd0d   :  { %v13024_v14 = vpop.eup %13023  ;;  %v2950_v15 = vmul.f32 %v13012_v12, %v15290_v37  ;;  %v2988_v51 = vadd.f32 1.0, %v2948_v33  ;;  %v2941_v20 = vsel %vm2939_vm9, %v2940_v24, %v2938_v47  ;;  %v2961_v7 = vand.u32 2147483648, %v15282_v6 }
 0xd0e   :  { %vm2951_vm11 = vcmp.eq.f32.partialorder %v15290_v37, inf  ;;  %13033 = vrcp.f32 %v2986_v25  ;;  %v2959_v52 = vsel %vm2958_vm10, %v15282_v6, %v2957_v28  ;;  %v2954_v10 = vand.u32 2147483648, %v15290_v37 }
 0xd0f   :  { %v13026_v3 = vpop.eup %13025  ;;  %13035 = vrcp.f32 %v2985_v21  ;;  %vm2960_vm12 = vcmp.eq.f32.partialorder %v15282_v6, 0.0  ;;  %v2971_v59 = vmul.f32 %v13014_v63, %v15284_v45  ;;  %v2952_v16 = vsel %vm2951_vm11, %v15290_v37, %v2950_v15 }
 0xd10   :  { %v13028_v23 = vpop.eup %13027  ;;  %vm2953_vm13 = vcmp.eq.f32.partialorder %v15290_v37, 0.0  ;;  %vm2972_vm14 = vcmp.eq.f32.partialorder %v15284_v45, inf  ;;  %v2964_v1 = vmul.f32 %v13020_v36, %v15294_v26  ;;  %v2987_v0 = vadd.f32 1.0, %v2941_v20 }
 0xd11   :  { %vm2965_vm15 = vcmp.eq.f32.partialorder %v15294_v26, inf  ;;  %v2962_v12 = vsel %vm2960_vm12, %v2961_v7, %v2959_v52  ;;  %v2975_v38 = vand.u32 2147483648, %v15284_v45  ;;  %v2955_v60 = vsel %vm2953_vm13, %v2954_v10, %v2952_v16 }
 0xd12   :  { %v2973_v6 = vsel %vm2972_vm14, %v15284_v45, %v2971_v59  ;;  %vm2974_vm1 = vcmp.eq.f32.partialorder %v15284_v45, 0.0  ;;  %v2968_v63 = vand.u32 2147483648, %v15294_v26  ;;  %13037 = vrcp.f32 %v2988_v51 }
 0xd13   :  { %v2966_v50 = vsel %vm2965_vm15, %v15294_v26, %v2964_v1  ;;  %vm2967_vm8 = vcmp.eq.f32.partialorder %v15294_v26, 0.0  ;;  %13039 = vrcp.f32 %v2987_v0  ;;  %v2990_v55 = vadd.f32 1.0, %v2962_v12 }
 0xd15   :  { %v13030_v44 = vpop.eup %13029  ;;  %13041 = vrcp.f32 %v2990_v55 }
 0xd16   :  { %v13032_v41 = vpop.eup %13031 }
 0xd18   :  { %v13034_v45 = vpop.eup %13033 }
 0xd19   :  { %v13036_v17 = vpop.eup %13035 }
 0xda9   :  { %v11342_v46 = vpop.f32.mrb[98].mxu0 }
 0xdaa   :  { %v4495_v62 = vmul.f32 %v13016_v2, %v11342_v46  ;;  %v4415_v8 = vpop.f32.mrb[99].mxu0 }
 0xdab   :  { %v4494_v22 = vmul.f32 %v13018_v30, %v4415_v8  ;;  %v2989_v30 = vadd.f32 1.0, %v2955_v60  ;;  %v2969_v8 = vsel %vm2967_vm8, %v2968_v63, %v2966_v50 }
 0xdac   :  { %4517 = vperm.xlu0 %12528, %v4495_v62   ;;  %v2976_v62 = vsel %vm2974_vm1, %v2975_v38, %v2973_v6  ;;  %v2991_v26 = vadd.f32 1.0, %v2969_v8 }
 0xdad   :  { %4512 = vperm.xlu1 %12527, %v4494_v22   ;;  %v11345_v18 = vpop.f32.mrb[100].mxu0  ;;  %v2992_v9 = vadd.f32 1.0, %v2976_v62  ;;  %13043 = vrcp.f32 %v2989_v30  ;;  %v18179_v62 = vld [vmem:[#allocation7_spill] sm:$0xff] }
 0xdae   :  { %v4497_v5 = vmul.f32 %v13022_v57, %v11345_v18  ;;  %v4425_v11 = vpop.f32.mrb[101].mxu0  ;;  %v13038_v57 = vpop.eup %13037 }
 0xdaf   :  { %v4496_v39 = vmul.f32 %v13024_v14, %v4425_v11  ;;  %13045 = vrcp.f32 %v2992_v9  ;;  %v13040_v14 = vpop.eup %13039 }
 0xdb0   :  { %4527 = vperm.xlu0 %12528, %v4497_v5   ;;  %13047 = vrcp.f32 %v2991_v26  ;;  %v13042_v24 = vpop.eup %13041  ;;  %v18182_v26 = vld [vmem:[#allocation2_spill] sm:$0xff] }
 0xdb1   :  { %4522 = vperm.xlu1 %12527, %v4496_v39   ;;  %v11348_v34 = vpop.f32.mrb[102].mxu0 }
 0xdb2   :  { %v4499_v4 = vmul.f32 %v13026_v3, %v11348_v34  ;;  %v4435_v31 = vpop.f32.mrb[103].mxu0 }
 0xdb3   :  { %v4498_v32 = vmul.f32 %v13028_v23, %v4435_v31 }
 0xdb4   :  { %4537 = vperm.xlu0 %12528, %v4499_v4  }
 0xdb5   :  { %4532 = vperm.xlu1 %12527, %v4498_v32  }
 0xdb7   :  { %v13044_v11 = vpop.eup %13043 }
 0xdb8   :  { %v11351_v37 = vpop.f32.mrb[104].mxu0 }
 0xdb9   :  { %v4501_v2 = vmul.f32 %v13030_v44, %v11351_v37  ;;  %v4445_v46 = vpop.f32.mrb[105].mxu0  ;;  %v13046_v21 = vpop.eup %13045  ;;  %v18176_v37 = vld [vmem:[#allocation33_spill] sm:$0xff] }
 0xdba   :  { %v4500_v43 = vmul.f32 %v13032_v41, %v4445_v46  ;;  %v13048_v15 = vpop.eup %13047 }
 0xdbb   :  { %4547 = vperm.xlu0 %12528, %v4501_v2   ;;  %v18177_v2 = vld [vmem:[#allocation34_spill] sm:$0xff] }
 0xdbc   :  { %4542 = vperm.xlu1 %12527, %v4500_v43   ;;  %v11354_v48 = vpop.f32.mrb[106].mxu0 }
 0xdbd   :  { %v4503_v36 = vmul.f32 %v13034_v45, %v11354_v48  ;;  %v4455_v22 = vpop.f32.mrb[107].mxu0 }
 0xdbe   :  { %v4502_v13 = vmul.f32 %v13036_v17, %v4455_v22  ;;  %v18181_v22 = vld [vmem:[#allocation3_spill] sm:$0xff] }
 0xdbf   :  { %4557 = vperm.xlu0 %12528, %v4503_v36  }
 0xdc0   :  { %4552 = vperm.xlu1 %12527, %v4502_v13  }
 0xdc1   :  { %v11357_v61 = vpop.f32.mrb[108].mxu0 }
 0xdc2   :  { %v4505_v18 = vmul.f32 %v13038_v57, %v11357_v61  ;;  %v4465_v33 = vpop.f32.mrb[109].mxu0 }
 0xdc3   :  { %v4504_v47 = vmul.f32 %v13040_v14, %v4465_v33 }
 0xdc4   :  { %4567 = vperm.xlu0 %12528, %v4505_v18   ;;  %v18183_v18 = vld [vmem:[#allocation25_spill] sm:$0xff] }
 0xdc5   :  { %4562 = vperm.xlu1 %12527, %v4504_v47  }
 0xdc7   :  { %v11360_v5 = vpop.f32.mrb[110].mxu0 }
 0xdc8   :  { %v4507_v25 = vmul.f32 %v13042_v24, %v11360_v5  ;;  %v4475_v28 = vpop.f32.mrb[111].mxu0  ;;  %v9696_v24 = vld [vmem:[%s18041_s9 + $0x40] sm:$0xff]  ;;  %v9697_v5 = vld [vmem:[%s18041_s9 + $0x48] sm:$0xff] }
 0xdc9   :  { %v4506_v39 = vmul.f32 %v13044_v11, %v4475_v28  ;;  %v18184_v11 = vld [vmem:[#allocation29_spill] sm:$0xff] }
 0xdca   :  { %4577 = vperm.xlu0 %12528, %v4507_v25  }
 0xdcb   :  { %4572 = vperm.xlu1 %12527, %v4506_v39   ;;  %v11363_v3 = vpop.f32.mrb[112].mxu0  ;;  %v12283_v39 = vpack.c.bf16 %v9697_v5, %v9696_v24  ;;  %v13642_v24 = vld [vmem:[%s18032_s2 + $0x50] sm:$0xff]  ;;  %v13643_v5 = vld [vmem:[%s18032_s2 + $0x58] sm:$0xff] }
 0xdcc   :  { %v4509_v23 = vmul.f32 %v13046_v21, %v11363_v3  ;;  %v4485_v34 = vpop.f32.mrb[113].mxu0  ;;  %v9698_v21 = vld [vmem:[%s18041_s9 + $0x50] sm:$0xff]  ;;  %v9699_v3 = vld [vmem:[%s18041_s9 + $0x58] sm:$0xff] }
 0xdcd   :  { %v4508_v51 = vmul.f32 %v13048_v15, %v4485_v34  ;;  %v9700_v34 = vld [vmem:[%s18041_s9 + $0x60] sm:$0xff] }
 0xdce   :  { %4587 = vperm.xlu0 %12528, %v4509_v23   ;;  %v12287_v23 = vpack.c.bf16 %v9699_v3, %v9698_v21  ;;  %v18192_v21 = vld [vmem:[#allocation30_spill] sm:$0xff] }
 0xdcf   :  { %4582 = vperm.xlu1 %12527, %v4508_v51   ;;  %v11433_v20 = vpop.f32.mrb[114].mxu0  ;;  %v9701_v51 = vld [vmem:[%s18041_s9 + $0x68] sm:$0xff] }
 0xdd0   :  { %v4749_v7 = vpop.f32.mrb[115].mxu0 }
 0xdd2   :  { %4762 = vrot.lane.b32.xlu0 %v11433_v20, %s13734_s24  ;;  %v18185_v20 = vld [vmem:[#allocation32_spill] sm:$0xff] }
 0xdd3   :  { %4760 = vrot.lane.b32.xlu1 %v4749_v7, %s13734_s24 }
 0xe2b   :  { %v4518_v4 = vpop.permute.xlu0 %4517 }
 0xe2c   :  { %v4591_v31 = vmul.f32 %v15027_v35, %v4518_v4  ;;  %v4513_v52 = vpop.permute.xlu1 %4512  ;;  %v12291_v4 = vpack.c.bf16 %v9701_v51, %v9700_v34 }
 0xe2d   :  { %v4590_v10 = vmul.f32 %v4513_v52, %v15031_v40  ;;  %v9703_v52 = vld [vmem:[%s18041_s9 + $0x78] sm:$0xff] }
 0xe2f   :  { %v12219_v32 = vpack.c.bf16 %v4591_v31, %v4590_v10  ;;  %v4528_v59 = vpop.permute.xlu0 %4527  ;;  %v9702_v31 = vld [vmem:[%s18041_s9 + $0x70] sm:$0xff] }
 0xe30   :  { %v4593_v16 = vmul.f32 %v15038_v49, %v4528_v59  ;;  %v4523_v1 = vpop.permute.xlu1 %4522  ;;  %v12295_v10 = vpack.c.bf16 %v9703_v52, %v9702_v31 }
 0xe31   :  { %v4592_v0 = vmul.f32 %v4523_v1, %v15043_v27  ;;  %12220 = vmatprep.subr.bf16.mxu1 %v12219_v32  ;;  %v9709_v1 = vld [vmem:[%s18042_s10 + $0x28] sm:$0xff] }
 0xe32   :  { %12222 = vmatpush3.bf16.msra.mxu1 %v12219_v32 }
 0xe33   :  { %v12223_v12 = vpack.c.bf16 %v4593_v16, %v4592_v0  ;;  %v4538_v38 = vpop.permute.xlu0 %4537  ;;  %v9708_v16 = vld [vmem:[%s18042_s10 + $0x20] sm:$0xff] }
 0xe34   :  { %v4595_v60 = vmul.f32 %v15052_v42, %v4538_v38  ;;  %v4533_v6 = vpop.permute.xlu1 %4532  ;;  %v18178_v42 = vld [vmem:[#allocation35_spill] sm:$0xff]  ;;  %v12299_v0 = vpack.c.bf16 %v9709_v1, %v9708_v16  ;;  %v9711_v38 = vld [vmem:[%s18042_s10 + $0x38] sm:$0xff] }
 0xe35   :  { %v4594_v63 = vmul.f32 %v4533_v6, %v15061_v29  ;;  %12224 = vmatprep.subr.bf16.mxu1 %v12223_v12 }
 0xe36   :  { %12226 = vmatpush3.bf16.msra.mxu1 %v12223_v12  ;;  %v9710_v12 = vld [vmem:[%s18042_s10 + $0x30] sm:$0xff] }
 0xe37   :  { %v12227_v35 = vpack.c.bf16 %v4595_v60, %v4594_v63  ;;  %v12303_v60 = vpack.c.bf16 %v9711_v38, %v9710_v12  ;;  %v18187_v63 = vld [vmem:[#allocation4_spill] sm:$0xff] }
 0xe39   :  { %12228 = vmatprep.subr.bf16.mxu1 %v12227_v35 }
 0xe3a   :  { %v4548_v40 = vpop.permute.xlu0 %4547  ;;  %12230 = vmatpush3.bf16.msra.mxu1 %v12227_v35 }
 0xe3b   :  { %v4597_v49 = vmul.f32 %v15069_v19, %v4548_v40  ;;  %v4543_v44 = vpop.permute.xlu1 %4542  ;;  %v18180_v19 = vld [vmem:[#allocation8_spill] sm:$0xff] }
 0xe3c   :  { %v4596_v27 = vmul.f32 %v4543_v44, %v18176_v37 }
 0xe3e   :  { %v12231_v50 = vpack.c.bf16 %v4597_v49, %v4596_v27  ;;  %v4558_v41 = vpop.permute.xlu0 %4557  ;;  %v18189_v49 = vld [vmem:[#allocation5_spill] sm:$0xff]  ;;  %v13631_v27 = vld [vmem:[%s18038_s13 + $0x8] sm:$0x1f] }
 0xe3f   :  { %v4599_v46 = vmul.f32 %v18177_v2, %v4558_v41  ;;  %v4553_v55 = vpop.permute.xlu1 %4552  ;;  %v4967_v3 = vrot.slane %v13631_v27, %v18192_v21 }
 0xe40   :  { %v4598_v43 = vmul.f32 %v4553_v55, %v18178_v42  ;;  %12232 = vmatprep.subr.bf16.mxu1 %v12231_v50 }
 0xe41   :  { %12234 = vmatpush3.bf16.msra.mxu1 %v12231_v50  ;;  %v18191_v50 = vld [vmem:[#allocation6_spill] sm:$0xff] }
 0xe42   :  { %v12235_v29 = vpack.c.bf16 %v4599_v46, %v4598_v43  ;;  %v4780_v41 = vrot.slane %v13631_v27, %v18191_v50 }
 0xe43   :  { %v4568_v30 = vpop.permute.xlu0 %4567 }
 0xe44   :  { %12236 = vmatprep.subr.bf16.mxu1 %v12235_v29  ;;  %v4601_v8 = vmul.f32 %v18179_v62, %v4568_v30  ;;  %v4563_v45 = vpop.permute.xlu1 %4562 }
 0xe45   :  { %12238 = vmatpush3.bf16.msra.mxu1 %v12235_v29  ;;  %v4600_v48 = vmul.f32 %v4563_v45, %v18180_v19 }
 0xe47   :  { %v12239_v17 = vpack.c.bf16 %v4601_v8, %v4600_v48 }
 0xe49   :  { %v4578_v36 = vpop.permute.xlu0 %4577  ;;  %12240 = vmatprep.subr.bf16.mxu1 %v12239_v17 }
 0xe4a   :  { %v4603_v9 = vmul.f32 %v18181_v22, %v4578_v36  ;;  %v4573_v13 = vpop.permute.xlu1 %4572  ;;  %12242 = vmatpush3.bf16.msra.mxu1 %v12239_v17  ;;  %v13632_v22 = vld [vmem:[%s18032_s2] sm:$0xff] }
 0xe4b   :  { %v4602_v57 = vmul.f32 %v4573_v13, %v18182_v26  ;;  %v13634_v13 = vld [vmem:[%s18032_s2 + $0x10] sm:$0xff]  ;;  %v13635_v26 = vld [vmem:[%s18032_s2 + $0x18] sm:$0xff] }
 0xe4d   :  { %v12243_v61 = vpack.c.bf16 %v4603_v9, %v4602_v57  ;;  %v4588_v14 = vpop.permute.xlu0 %4587  ;;  %v13633_v9 = vld [vmem:[%s18032_s2 + $0x8] sm:$0xff]  ;;  %v13636_v57 = vld [vmem:[%s18032_s2 + $0x20] sm:$0xff] }
 0xe4e   :  { %v4605_v33 = vmul.f32 %v18183_v18, %v4588_v14  ;;  %v4583_v47 = vpop.permute.xlu1 %4582  ;;  %v13638_v14 = vld [vmem:[%s18032_s2 + $0x30] sm:$0xff]  ;;  %v13639_v18 = vld [vmem:[%s18032_s2 + $0x38] sm:$0xff] }
 0xe4f   :  { %v4604_v25 = vmul.f32 %v4583_v47, %v18184_v11  ;;  %12244 = vmatprep.subr.bf16.mxu1 %v12243_v61  ;;  %v13641_v47 = vld [vmem:[%s18032_s2 + $0x48] sm:$0xff]  ;;  %v13644_v11 = vld [vmem:[%s18032_s2 + $0x60] sm:$0xff] }
 0xe50   :  { %12246 = vmatpush3.bf16.msra.mxu1 %v12243_v61  ;;  %v13637_v61 = vld [vmem:[%s18032_s2 + $0x28] sm:$0xff] }
 0xe51   :  { %v12247_v28 = vpack.c.bf16 %v4605_v33, %v4604_v25  ;;  %v4763_v32 = vpop.permute.xlu0 %4762  ;;  %v13640_v33 = vld [vmem:[%s18032_s2 + $0x40] sm:$0xff]  ;;  %v13645_v25 = vld [vmem:[%s18032_s2 + $0x68] sm:$0xff] }
 0xe52   :  { %v4761_v15 = vpop.permute.xlu1 %4760 }
 0xe53   :  { %12248 = vmatprep.subr.bf16.mxu1 %v12247_v28  ;;  %v4766_v7 = vsel %vm984_vm4, %v18185_v20, %v4761_v15 }
 0xe54   :  { %12250 = vmatpush3.bf16.msra.mxu1 %v12247_v28  ;;  %v13646_v28 = vld [vmem:[%s18032_s2 + $0x70] sm:$0xff] }
 0xe55   :  { %12284 = vmatprep.subr.bf16.mxu1 %v12283_v39 }
 0xe57   :  { %11397 = vmatmul.mubr.f32.vlgmr.msra.gmra.mrb[120].mxu1 %v15803_v58  ;;  %v18186_v58 = vld [vmem:[#allocation31_spill] sm:$0xff] }
 0xe58   :  { %12286 = vmatpush3.bf16.msra.mxu1 %v12283_v39  ;;  %11450 = vmatprep.mubr.msk.f32.mxu1 %vm1001_vm5, %v4766_v7  ;;  %v4767_v59 = vsel %vm984_vm4, %v18186_v58, %v4763_v32  ;;  %v13647_v39 = vld [vmem:[%s18032_s2 + $0x78] sm:$0xff] }
 0xe59   :  { %12288 = vmatprep.subr.bf16.mxu1 %v12287_v23 }
 0xe5c   :  { %12290 = vmatpush3.bf16.msra.mxu1 %v12287_v23 }
 0xe5d   :  { %12292 = vmatprep.subr.bf16.mxu1 %v12291_v4 }
 0xe60   :  { %12294 = vmatpush3.bf16.msra.mxu1 %v12291_v4 }
 0xe61   :  { %12296 = vmatprep.subr.bf16.mxu1 %v12295_v10 }
 0xe64   :  { %12298 = vmatpush3.bf16.msra.mxu1 %v12295_v10 }
 0xe65   :  { %12300 = vmatprep.subr.bf16.mxu1 %v12299_v0 }
 0xe67   :  { %11451 = vmatmul.mubr.msk.f32.vlgmr.msra.gmra.mrb[122].mxu1 %vm1001_vm5, %v4767_v59 }
 0xe68   :  { %12302 = vmatpush3.bf16.msra.mxu1 %v12299_v0 }
 0xe69   :  { %12304 = vmatprep.subr.bf16.mxu1 %v12303_v60 }
 0xe6c   :  { %12306 = vmatpush3.bf16.msra.mxu1 %v12303_v60  ;;  %v13648_v60 = vld [vmem:[%s18033_s3 + $0x8] sm:$0xff] }
 0xf2a   :  { %v11398_v6 = vpop.f32.mrb[120].mxu1 }
 0xf2b   :  { %v15976_v35 = vadd.f32 %v11398_v6, %v18187_v63  ;;  %v4672_v40 = vpop.f32.mrb[121].mxu1  ;;  %v13649_v63 = vld [vmem:[%s18033_s3 + $0x10] sm:$0xff] }
 0xf2c   :  { %v15979_v44 = vadd.f32 %v4672_v40, %v18189_v49 }
 0xf2d   :  { %18188 = vst [vmem:[#allocation33_spill] sm:$0xff] %v15976_v35 }
 0xf2e   :  { %18190 = vst [vmem:[#allocation34_spill] sm:$0xff] %v15979_v44  ;;  %v12307_v37 = vpack.c.bf16 %v15976_v35, %v15979_v44 }
 0xf30   :  { %12308 = vmatprep.subr.bf16.mxu1 %v12307_v37 }
 0xf3a   :  { %v11452_v2 = vpop.f32.mrb[122].mxu1 }
 0xf3b   :  { %v4859_v46 = vadd.f32 %v11452_v2, %v4780_v41  ;;  %v4853_v55 = vpop.f32.mrb[123].mxu1 }
 0xf3c   :  { %v4854_v42 = vadd.f32 %v4853_v55, %v4780_v41  ;;  %v13650_v41 = vld [vmem:[%s18033_s3 + $0x18] sm:$0xff]  ;;  %v13651_v55 = vld [vmem:[%s18033_s3 + $0x20] sm:$0xff] }
 0xf3d   :  { %v9707_v43 = vmul.f32 -1.442695, %v4859_v46 }
 0xf3e   :  { %v9706_v29 = vmul.f32 -1.442695, %v4854_v42 }
 0xf3f   :  { %13049 = vpow2.f32 %v9707_v43 }
 0xf40   :  { %13051 = vpow2.f32 %v9706_v29 }
 0xf49   :  { %v13050_v30 = vpop.eup %13049 }
 0xf4a   :  { %v13052_v62 = vpop.eup %13051  ;;  %v4869_v8 = vadd.f32 1.0, %v13050_v30 }
 0xf4b   :  { %v4868_v45 = vadd.f32 1.0, %v13052_v62  ;;  %v13652_v62 = vld [vmem:[%s18033_s3 + $0x28] sm:$0xff] }
 0xf4c   :  { %13053 = vrcp.f32 %v4869_v8 }
 0xf4d   :  { %13055 = vrcp.f32 %v4868_v45 }
 0xf56   :  { %v13054_v19 = vpop.eup %13053 }
 0xf57   :  { %v13056_v48 = vpop.eup %13055  ;;  %v4875_v36 = vmul.f32 %v13054_v19, %v4859_v46  ;;  %v13653_v19 = vld [vmem:[%s18033_s3 + $0x30] sm:$0xff] }
 0xf58   :  { %v4874_v17 = vmul.f32 %v13056_v48, %v4854_v42 }
 0xf5a   :  { %11461 = vmatprep.mubr.msk.f32.mxu1 %vm984_vm4, %v4874_v17 }
 0xf5b   :  { %11462 = vmatmul.mubr.msk.f32.vlgmr.msra.gmra.mrb[124].mxu1 %vm984_vm4, %v4875_v36 }
 0xf5c   :  { %12310 = vmatpush3.bf16.msra.mxu1 %v12307_v37  ;;  %11468 = vmatprep.mubr.msk.f32.mxu1 %vm195_vm2, %v13632_v22 }
 0xf5f   :  { %11469 = vmatmul.mubr.msk.f32.vlgmr.msra.gmra.mrb[126].mxu1 %vm195_vm2, %v13633_v9  ;;  %v13654_v9 = vld [vmem:[%s18033_s3 + $0x38] sm:$0xff] }
 0xf60   :  { %11471 = vmatprep.mubr.msk.f32.mxu1 %vm195_vm2, %v13634_v13 }
 0xf63   :  { %11472 = vmatmul.mubr.msk.f32.gmra.mrb[128].mxu1 %vm195_vm2, %v13635_v26 }
 0xf64   :  { %11474 = vmatprep.mubr.msk.f32.mxu1 %vm195_vm2, %v13636_v57  ;;  %v13655_v57 = vld [vmem:[%s18033_s3 + $0x40] sm:$0xff] }
 0xf67   :  { %11475 = vmatmul.mubr.msk.f32.gmra.mrb[130].mxu1 %vm195_vm2, %v13637_v61 }
 0xf68   :  { %11477 = vmatprep.mubr.msk.f32.mxu1 %vm195_vm2, %v13638_v14 }
 0xf6b   :  { %11478 = vmatmul.mubr.msk.f32.gmra.mrb[132].mxu1 %vm195_vm2, %v13639_v18 }
 0xf6c   :  { %11480 = vmatprep.mubr.msk.f32.mxu1 %vm195_vm2, %v13640_v33 }
 0xf6f   :  { %11481 = vmatmul.mubr.msk.f32.gmra.mrb[134].mxu1 %vm195_vm2, %v13641_v47  ;;  %v13656_v47 = vld [vmem:[%s18033_s3 + $0x48] sm:$0xff] }
 0xf70   :  { %11483 = vmatprep.mubr.msk.f32.mxu1 %vm195_vm2, %v13642_v24 }
 0xf73   :  { %11484 = vmatmul.mubr.msk.f32.gmra.mrb[136].mxu1 %vm195_vm2, %v13643_v5 }
 0xf74   :  { %11486 = vmatprep.mubr.msk.f32.mxu1 %vm195_vm2, %v13644_v11  ;;  %v13657_v11 = vld [vmem:[%s18033_s3 + $0x50] sm:$0xff] }
 0xf77   :  { %11487 = vmatmul.mubr.msk.f32.gmra.mrb[138].mxu1 %vm195_vm2, %v13645_v25 }
 0xf78   :  { %11489 = vmatprep.mubr.msk.f32.mxu1 %vm195_vm2, %v13646_v28 }
 0xf7b   :  { %11490 = vmatmul.mubr.msk.f32.gmra.mrb[140].mxu1 %vm195_vm2, %v13647_v39 }
0x102e   :  { %v11463_v15 = vpop.f32.mrb[124].mxu1 }
0x102f   :  { %v4963_v23 = vadd.f32 %v11463_v15, %v18186_v58  ;;  %v4953_v34 = vpop.f32.mrb[125].mxu1  ;;  %v13658_v15 = vld [vmem:[%s18033_s3 + $0x58] sm:$0xff] }
0x1030   :  { %v4962_v51 = vadd.f32 %v4953_v34, %v18185_v20 }
0x1031   :  { %v16056_v7 = vadd.f32 %v4967_v3, %v4963_v23 }
0x1032   :  { %v16058_v4 = vadd.f32 %v4967_v3, %v4962_v51  ;;  %v16060_v31 = vpop.f32.mrb[126].mxu1  ;;  %v13659_v51 = vld [vmem:[%s18033_s3 + $0x60] sm:$0xff] }
0x1033   :  { %18193 = vst [vmem:[#allocation35_spill] sm:$0xff] %v16056_v7  ;;  %v5118_v52 = vmul.f32 %v16060_v31, %v16060_v31  ;;  %v16064_v10 = vpop.f32.mrb[127].mxu1 }
0x1034   :  { %18194 = vst [vmem:[#allocation7_spill] sm:$0xff] %v16058_v4  ;;  %v12311_v32 = vpack.c.bf16 %v16056_v7, %v16058_v4  ;;  %v5117_v58 = vmul.f32 %v16064_v10, %v16064_v10 }
0x1035   :  { %v5136_v59 = vsel %vm405_vm3, %v5118_v52, 0.0 }
0x1036   :  { %12312 = vmatprep.subr.bf16.mxu0 %v12311_v32  ;;  %5137 = vadd.xlane.f32.xlu0 %v5136_v59  ;;  %v16071_v20 = vpop.f32.mrb[128].mxu1  ;;  %v5133_v16 = vsel %vm405_vm3, %v5117_v58, 0.0 }
0x1037   :  { %12314 = vmatpush3.bf16.msra.mxu0 %v12311_v32  ;;  %v5120_v1 = vmul.f32 %v16071_v20, %v16071_v20  ;;  %5134 = vadd.xlane.f32.xlu1 %v5133_v16  ;;  %v16076_v0 = vpop.f32.mrb[129].mxu1  ;;  %v13660_v16 = vld [vmem:[%s18033_s3 + $0x68] sm:$0xff] }
0x1038   :  { %v5119_v12 = vmul.f32 %v16076_v0, %v16076_v0 }
0x1039   :  { %v5142_v38 = vsel %vm405_vm3, %v5120_v1, 0.0 }
0x103a   :  { %11497 = vmatmul.mubr.msk.f32.vlgmr.msra.gmra.mrb[116].mxu0 %vm195_vm2, %v13648_v60  ;;  %5143 = vadd.xlane.f32.xlu0 %v5142_v38  ;;  %v16085_v6 = vpop.f32.mrb[130].mxu1  ;;  %v5139_v49 = vsel %vm405_vm3, %v5119_v12, 0.0  ;;  %v13661_v12 = vld [vmem:[%s18033_s3 + $0x70] sm:$0xff]  ;;  %v13662_v60 = vld [vmem:[%s18033_s3 + $0x78] sm:$0xff] }
0x103b   :  { %11499 = vmatprep.mubr.msk.f32.mxu0 %vm195_vm2, %v13649_v63  ;;  %v5122_v40 = vmul.f32 %v16085_v6, %v16085_v6  ;;  %v16094_v37 = vpop.f32.mrb[131].mxu1  ;;  %v13663_v63 = vld [vmem:[%s18033_s3 + $0x80] sm:$0xff] }
0x103c   :  { %v5121_v27 = vmul.f32 %v16094_v37, %v16094_v37 }
0x103d   :  { %v5148_v43 = vsel %vm405_vm3, %v5122_v40, 0.0  ;;  %v13664_v40 = vld [vmem:[%s18033_s3 + $0x88] sm:$0xff] }
0x103e   :  { %11500 = vmatmul.mubr.msk.f32.gmra.mrb[118].mxu0 %vm195_vm2, %v13650_v41  ;;  %5140 = vadd.xlane.f32.xlu0 %v5139_v49  ;;  %v16102_v2 = vpop.f32.mrb[132].mxu1  ;;  %v5145_v46 = vsel %vm405_vm3, %v5121_v27, 0.0  ;;  %v13665_v49 = vld [vmem:[%s18033_s3 + $0x90] sm:$0xff]  ;;  %v13666_v27 = vld [vmem:[%s18033_s3 + $0x98] sm:$0xff]  ;;  %v13667_v41 = vld [vmem:[%s18033_s3 + $0xa0] sm:$0xff] }
0x103f   :  { %11502 = vmatprep.mubr.msk.f32.mxu0 %vm195_vm2, %v13651_v55  ;;  %v5124_v42 = vmul.f32 %v16102_v2, %v16102_v2  ;;  %5146 = vadd.xlane.f32.xlu1 %v5145_v46  ;;  %v16112_v29 = vpop.f32.mrb[133].mxu1  ;;  %v13668_v46 = vld [vmem:[%s18033_s3 + $0xa8] sm:$0xff]  ;;  %v13669_v55 = vld [vmem:[%s18033_s3 + $0xb0] sm:$0xff] }
0x1040   :  { %v5123_v30 = vmul.f32 %v16112_v29, %v16112_v29 }
0x1041   :  { %v5154_v17 = vsel %vm405_vm3, %v5124_v42, 0.0  ;;  %v13670_v42 = vld [vmem:[%s18033_s3 + $0xb8] sm:$0xff] }
0x1042   :  { %11503 = vmatmul.mubr.msk.f32.gmra.mrb[120].mxu0 %vm195_vm2, %v13652_v62  ;;  %5149 = vadd.xlane.f32.xlu0 %v5148_v43  ;;  %v16120_v8 = vpop.f32.mrb[134].mxu1  ;;  %v5151_v45 = vsel %vm405_vm3, %v5123_v30, 0.0  ;;  %v13671_v43 = vld [vmem:[%s18033_s3 + $0xc0] sm:$0xff]  ;;  %v13672_v30 = vld [vmem:[%s18033_s3 + $0xc8] sm:$0xff]  ;;  %v13673_v62 = vld [vmem:[%s18033_s3 + $0xd0] sm:$0xff] }
0x1043   :  { %11505 = vmatprep.mubr.msk.f32.mxu0 %vm195_vm2, %v13653_v19  ;;  %v5126_v48 = vmul.f32 %v16120_v8, %v16120_v8  ;;  %5152 = vadd.xlane.f32.xlu1 %v5151_v45  ;;  %v16130_v36 = vpop.f32.mrb[135].mxu1  ;;  %v13674_v45 = vld [vmem:[%s18033_s3 + $0xd8] sm:$0xff]  ;;  %v13675_v19 = vld [vmem:[%s18033_s3 + $0xe0] sm:$0xff] }
0x1044   :  { %v5125_v22 = vmul.f32 %v16130_v36, %v16130_v36 }
0x1045   :  { %v5160_v14 = vsel %vm405_vm3, %v5126_v48, 0.0  ;;  %v13676_v48 = vld [vmem:[%s18033_s3 + $0xe8] sm:$0xff] }
0x1046   :  { %11506 = vmatmul.mubr.msk.f32.gmra.mrb[122].mxu0 %vm195_vm2, %v13654_v9  ;;  %5155 = vadd.xlane.f32.xlu0 %v5154_v17  ;;  %v16138_v13 = vpop.f32.mrb[136].mxu1  ;;  %v5157_v26 = vsel %vm405_vm3, %v5125_v22, 0.0  ;;  %v13677_v17 = vld [vmem:[%s18033_s3 + $0xf0] sm:$0xff]  ;;  %v13678_v22 = vld [vmem:[%s18033_s3 + $0xf8] sm:$0xff] }
0x1047   :  { %18195 = vst [vmem:[#allocation8_spill] sm:$0xff] %v16138_v13  ;;  %11508 = vmatprep.mubr.msk.f32.mxu0 %vm195_vm2, %v13655_v57  ;;  %v5128_v61 = vmul.f32 %v16138_v13, %v16138_v13  ;;  %5158 = vadd.xlane.f32.xlu1 %v5157_v26  ;;  %v16148_v18 = vpop.f32.mrb[137].mxu1  ;;  %v9763_v9 = vld [vmem:[%s18035_s7 + $0x90] sm:$0xff]  ;;  %v9764_v26 = vld [vmem:[%s18035_s7 + $0x98] sm:$0xff]  ;;  %v9765_v57 = vld [vmem:[%s18035_s7 + $0xa0] sm:$0xff] }
0x1048   :  { %18196 = vst [vmem:[#allocation3_spill] sm:$0xff] %v16148_v18  ;;  %v5127_v33 = vmul.f32 %v16148_v18, %v16148_v18 }
0x1049   :  { %v5166_v28 = vsel %vm405_vm3, %v5128_v61, 0.0  ;;  %v9766_v61 = vld [vmem:[%s18035_s7 + $0xa8] sm:$0xff] }
0x104a   :  { %11509 = vmatmul.mubr.msk.f32.gmra.mrb[124].mxu0 %vm195_vm2, %v13656_v47  ;;  %5161 = vadd.xlane.f32.xlu0 %v5160_v14  ;;  %v16156_v24 = vpop.f32.mrb[138].mxu1  ;;  %v5163_v5 = vsel %vm405_vm3, %v5127_v33, 0.0  ;;  %v12315_v14 = vpack.c.bf16 %v9764_v26, %v9763_v9  ;;  %v12319_v33 = vpack.c.bf16 %v9766_v61, %v9765_v57  ;;  %v9767_v47 = vld [vmem:[%s18035_s7 + $0xb0] sm:$0xff] }
0x104b   :  { %18197 = vst [vmem:[#allocation2_spill] sm:$0xff] %v16156_v24  ;;  %11511 = vmatprep.mubr.msk.f32.mxu0 %vm195_vm2, %v13657_v11  ;;  %v5130_v25 = vmul.f32 %v16156_v24, %v16156_v24  ;;  %5164 = vadd.xlane.f32.xlu1 %v5163_v5  ;;  %v16166_v39 = vpop.f32.mrb[139].mxu1  ;;  %v9768_v5 = vld [vmem:[%s18035_s7 + $0xb8] sm:$0xff] }
0x104c   :  { %18198 = vst [vmem:[#allocation25_spill] sm:$0xff] %v16166_v39  ;;  %v5129_v3 = vmul.f32 %v16166_v39, %v16166_v39  ;;  %12316 = vmatprep.subr.bf16.mxu1 %v12315_v14  ;;  %v12323_v11 = vpack.c.bf16 %v9768_v5, %v9767_v47 }
0x104d   :  { %v5172_v32 = vsel %vm405_vm3, %v5130_v25, 0.0  ;;  %12318 = vmatpush3.bf16.msra.mxu1 %v12315_v14  ;;  %v9769_v25 = vld [vmem:[%s18035_s7 + $0xc0] sm:$0xff] }
0x104e   :  { %11512 = vmatmul.mubr.msk.f32.gmra.mrb[126].mxu0 %vm195_vm2, %v13658_v15  ;;  %5167 = vadd.xlane.f32.xlu0 %v5166_v28  ;;  %v16174_v23 = vpop.f32.mrb[140].mxu1  ;;  %v5169_v34 = vsel %vm405_vm3, %v5129_v3, 0.0  ;;  %v9770_v28 = vld [vmem:[%s18035_s7 + $0xc8] sm:$0xff] }
0x104f   :  { %18199 = vst [vmem:[#allocation29_spill] sm:$0xff] %v16174_v23  ;;  %11514 = vmatprep.mubr.msk.f32.mxu0 %vm195_vm2, %v13659_v51  ;;  %v5132_v52 = vmul.f32 %v16174_v23, %v16174_v23  ;;  %5170 = vadd.xlane.f32.xlu1 %v5169_v34  ;;  %v16184_v58 = vpop.f32.mrb[141].mxu1  ;;  %v12327_v3 = vpack.c.bf16 %v9770_v28, %v9769_v25 }
0x1050   :  { %18200 = vst [vmem:[#allocation32_spill] sm:$0xff] %v16184_v58  ;;  %v5131_v59 = vmul.f32 %v16184_v58, %v16184_v58  ;;  %12320 = vmatprep.subr.bf16.mxu1 %v12319_v33 }
0x1051   :  { %v5178_v38 = vsel %vm405_vm3, %v5132_v52, 0.0  ;;  %12322 = vmatpush3.bf16.msra.mxu1 %v12319_v33 }
0x1052   :  { %11515 = vmatmul.mubr.msk.f32.gmra.mrb[128].mxu0 %vm195_vm2, %v13660_v16  ;;  %5173 = vadd.xlane.f32.xlu0 %v5172_v32  ;;  %v5175_v1 = vsel %vm405_vm3, %v5131_v59, 0.0 }
0x1053   :  { %11517 = vmatprep.mubr.msk.f32.mxu0 %vm195_vm2, %v13661_v12  ;;  %5176 = vadd.xlane.f32.xlu1 %v5175_v1 }
0x1054   :  { %12324 = vmatprep.subr.bf16.mxu1 %v12323_v11 }
0x1055   :  { %12326 = vmatpush3.bf16.msra.mxu1 %v12323_v11 }
0x1056   :  { %11518 = vmatmul.mubr.msk.f32.gmra.mrb[130].mxu0 %vm195_vm2, %v13662_v60  ;;  %5179 = vadd.xlane.f32.xlu0 %v5178_v38 }
0x1057   :  { %11520 = vmatprep.mubr.msk.f32.mxu0 %vm195_vm2, %v13663_v63  ;;  %12328 = vmatprep.subr.bf16.mxu1 %v12327_v3 }
0x1059   :  { %12330 = vmatpush3.bf16.msra.mxu1 %v12327_v3 }
0x105a   :  { %11521 = vmatmul.mubr.msk.f32.gmra.mrb[132].mxu0 %vm195_vm2, %v13664_v40  ;;  %v9771_v40 = vld [vmem:[%s18035_s7 + $0xd0] sm:$0x3] }
0x105b   :  { %11523 = vmatprep.mubr.msk.f32.mxu0 %vm195_vm2, %v13665_v49  ;;  %11560 = vmatprep.subr.msk.mxu1 %vm116_vm0, %v9771_v40 }
0x105d   :  { %11561 = vmatpush3.msk.msra.mxu1 %vm116_vm0, %v9771_v40 }
0x105e   :  { %11524 = vmatmul.mubr.msk.f32.gmra.mrb[134].mxu0 %vm195_vm2, %v13666_v27 }
0x105f   :  { %11526 = vmatprep.mubr.msk.f32.mxu0 %vm195_vm2, %v13667_v41 }
0x1062   :  { %11527 = vmatmul.mubr.msk.f32.gmra.mrb[136].mxu0 %vm195_vm2, %v13668_v46 }
0x1063   :  { %11529 = vmatprep.mubr.msk.f32.mxu0 %vm195_vm2, %v13669_v55 }
0x1066   :  { %11530 = vmatmul.mubr.msk.f32.gmra.mrb[138].mxu0 %vm195_vm2, %v13670_v42 }
0x1067   :  { %11532 = vmatprep.mubr.msk.f32.mxu0 %vm195_vm2, %v13671_v43 }
0x106a   :  { %11533 = vmatmul.mubr.msk.f32.gmra.mrb[140].mxu0 %vm195_vm2, %v13672_v30 }
0x106b   :  { %11535 = vmatprep.mubr.msk.f32.mxu0 %vm195_vm2, %v13673_v62 }
0x106e   :  { %11536 = vmatmul.mubr.msk.f32.gmra.mrb[142].mxu0 %vm195_vm2, %v13674_v45 }
0x106f   :  { %11538 = vmatprep.mubr.msk.f32.mxu0 %vm195_vm2, %v13675_v19 }
0x1072   :  { %11539 = vmatmul.mubr.msk.f32.gmra.mrb[144].mxu0 %vm195_vm2, %v13676_v48 }
0x1073   :  { %11541 = vmatprep.mubr.msk.f32.mxu0 %vm195_vm2, %v13677_v17 }
0x1076   :  { %11542 = vmatmul.mubr.msk.f32.gmra.mrb[146].mxu0 %vm195_vm2, %v13678_v22 }
0x10c3   :  { %v16343_v47 = vpop.xlane.xlu0 %5137 }
0x10c4   :  { %v16349_v25 = vpop.xlane.xlu1 %5134  ;;  %vm5190_vm9 = vcmp.eq.f32.partialorder %v16343_v47, inf  ;;  %vm5192_vm11 = vcmp.eq.f32.partialorder %v16343_v47, 0.0 }
0x10c5   :  { %vm5183_vm10 = vcmp.eq.f32.partialorder %v16349_v25, inf  ;;  %vm5185_vm13 = vcmp.eq.f32.partialorder %v16349_v25, 0.0 }
0x10c7   :  { %v16345_v5 = vpop.xlane.xlu0 %5143 }
0x10c8   :  { %vm5204_vm12 = vcmp.eq.f32.partialorder %v16345_v5, inf  ;;  %vm5206_vm15 = vcmp.eq.f32.partialorder %v16345_v5, 0.0 }
0x10cb   :  { %v16347_v11 = vpop.xlane.xlu0 %5140 }
0x10cc   :  { %v16353_v3 = vpop.xlane.xlu1 %5146  ;;  %vm5197_vm14 = vcmp.eq.f32.partialorder %v16347_v11, inf  ;;  %vm5199_vm8 = vcmp.eq.f32.partialorder %v16347_v11, 0.0 }
0x10cf   :  { %v16351_v28 = vpop.xlane.xlu0 %5149 }
0x10d0   :  { %vm5218_vm1 = vcmp.eq.f32.partialorder %v16351_v28, inf }
0x10d3   :  { %v16355_v40 = vpop.xlane.xlu0 %5155 }
0x110d   :  { %v16290_v15 = vpop.f32.mrb[116].mxu0 }
0x110e   :  { %v16292_v34 = vpop.f32.mrb[117].mxu0 }
0x1111   :  { %v16294_v51 = vpop.f32.mrb[118].mxu0 }
0x1112   :  { %v16296_v52 = vpop.f32.mrb[119].mxu0 }
0x1115   :  { %v16298_v32 = vpop.f32.mrb[120].mxu0 }
0x1116   :  { %v16300_v59 = vpop.f32.mrb[121].mxu0 }
0x1119   :  { %v16302_v16 = vpop.f32.mrb[122].mxu0 }
0x111a   :  { %v16304_v1 = vpop.f32.mrb[123].mxu0 }
0x111d   :  { %v16306_v12 = vpop.f32.mrb[124].mxu0 }
0x111e   :  { %v16308_v38 = vpop.f32.mrb[125].mxu0 }
0x1121   :  { %v16310_v60 = vpop.f32.mrb[126].mxu0 }
0x1122   :  { %v16312_v63 = vpop.f32.mrb[127].mxu0 }
0x1125   :  { %v16318_v49 = vpop.f32.mrb[128].mxu0 }
0x1126   :  { %v16321_v27 = vpop.f32.mrb[129].mxu0 }
0x1129   :  { %v16323_v41 = vpop.f32.mrb[130].mxu0 }
0x112a   :  { %v16325_v46 = vpop.f32.mrb[131].mxu0 }
0x112d   :  { %v11522_v55 = vpop.f32.mrb[132].mxu0 }
0x112e   :  { %5568 = vrot.lane.b32.xlu0 %v11522_v55, %s13734_s24  ;;  %v5471_v42 = vpop.f32.mrb[133].mxu0  ;;  %v16357_v55 = vpop.xlane.xlu1 %5152 }
0x112f   :  { %5566 = vrot.lane.b32.xlu1 %v5471_v42, %s13734_s24  ;;  %v16359_v42 = vpop.xlane.xlu0 %5161 }
0x1131   :  { %v11525_v43 = vpop.f32.mrb[134].mxu0 }
0x1132   :  { %5572 = vrot.lane.b32.xlu0 %v11525_v43, %s13734_s24  ;;  %v5481_v30 = vpop.f32.mrb[135].mxu0  ;;  %v16361_v43 = vpop.xlane.xlu1 %5158 }
0x1133   :  { %5570 = vrot.lane.b32.xlu1 %v5481_v30, %s13734_s24  ;;  %v16363_v30 = vpop.xlane.xlu0 %5167 }
0x1135   :  { %v11528_v62 = vpop.f32.mrb[136].mxu0 }
0x1136   :  { %5576 = vrot.lane.b32.xlu0 %v11528_v62, %s13734_s24  ;;  %v5491_v45 = vpop.f32.mrb[137].mxu0  ;;  %v16365_v62 = vpop.xlane.xlu1 %5164 }
0x1137   :  { %5574 = vrot.lane.b32.xlu1 %v5491_v45, %s13734_s24  ;;  %v16367_v45 = vpop.xlane.xlu0 %5173 }
0x1139   :  { %v11531_v19 = vpop.f32.mrb[138].mxu0 }
0x113a   :  { %5580 = vrot.lane.b32.xlu0 %v11531_v19, %s13734_s24  ;;  %v5501_v48 = vpop.f32.mrb[139].mxu0  ;;  %v16369_v19 = vpop.xlane.xlu1 %5170 }
0x113b   :  { %5578 = vrot.lane.b32.xlu1 %v5501_v48, %s13734_s24  ;;  %v16371_v48 = vpop.xlane.xlu0 %5179 }
0x113d   :  { %v11534_v17 = vpop.f32.mrb[140].mxu0 }
0x113e   :  { %5584 = vrot.lane.b32.xlu0 %v11534_v17, %s13734_s24  ;;  %v5511_v22 = vpop.f32.mrb[141].mxu0  ;;  %v16373_v17 = vpop.xlane.xlu1 %5176 }
0x113f   :  { %5582 = vrot.lane.b32.xlu1 %v5511_v22, %s13734_s24 }
0x1141   :  { %v11537_v9 = vpop.f32.mrb[142].mxu0 }
0x1142   :  { %v5521_v26 = vpop.f32.mrb[143].mxu0 }
0x1143   :  { %5588 = vrot.lane.b32.xlu1 %v11537_v9, %s13734_s24 }
0x1145   :  { %v11540_v57 = vpop.f32.mrb[144].mxu0 }
0x1146   :  { %5592 = vrot.lane.b32.xlu0 %v11540_v57, %s13734_s24  ;;  %v5531_v61 = vpop.f32.mrb[145].mxu0 }
0x1147   :  { %5586 = vrot.lane.b32.xlu1 %v5521_v26, %s13734_s24 }
0x1149   :  { %v11543_v14 = vpop.f32.mrb[146].mxu0 }
0x114a   :  { %5596 = vrot.lane.b32.xlu0 %v11543_v14, %s13734_s24  ;;  %v5541_v33 = vpop.f32.mrb[147].mxu0 }
0x114b   :  { %5590 = vrot.lane.b32.xlu1 %v5531_v61, %s13734_s24 }
0x114f   :  { %5594 = vrot.lane.b32.xlu1 %v5541_v33, %s13734_s24 }
0x11a0   :  { %v5569_v22 = vpop.permute.xlu0 %5568 }
0x11a1   :  { %v5615_v9 = vsel %vm984_vm4, %v16290_v15, %v5569_v22  ;;  %v5567_v26 = vpop.permute.xlu1 %5566 }
0x11a2   :  { %v5631_v57 = vsel %vm1001_vm5, %v5615_v9, %v16343_v47  ;;  %v5614_v61 = vsel %vm984_vm4, %v16292_v34, %v5567_v26 }
0x11a3   :  { %v5630_v14 = vsel %vm1001_vm5, %v5614_v61, %v16349_v25  ;;  %v5647_v50 = vsel %vm1018_vm6, %v5631_v57, %v14188_v53 }
0x11a4   :  { %v5573_v33 = vpop.permute.xlu0 %5572  ;;  %v5646_v21 = vsel %vm1018_vm6, %v5630_v14, %v14192_v56  ;;  %v18201_v14 = vld [vmem:[#allocation9_spill] sm:$0xff] }
0x11a5   :  { %v5617_v15 = vsel %vm984_vm4, %v16294_v51, %v5573_v33  ;;  %11562 = vmatprep.mubr.msk.f32.mxu1 %vm1048_vm7, %v5646_v21  ;;  %v5571_v22 = vpop.permute.xlu1 %5570 }
0x11a6   :  { %v5633_v9 = vsel %vm1001_vm5, %v5617_v15, %v16345_v5  ;;  %v5616_v34 = vsel %vm984_vm4, %v16296_v52, %v5571_v22  ;;  %11563 = vmatmul.mubr.msk.f32.vlgmr.msra.gmra.mrb[142].mxu1 %vm1048_vm7, %v5647_v50 }
0x11a7   :  { %v5632_v26 = vsel %vm1001_vm5, %v5616_v34, %v16347_v11  ;;  %v5649_v33 = vsel %vm1018_vm6, %v5633_v9, %v18201_v14  ;;  %v18202_v34 = vld [vmem:[#allocation14_spill] sm:$0xff] }
0x11a8   :  { %v5577_v61 = vpop.permute.xlu0 %5576  ;;  %v5648_v57 = vsel %vm1018_vm6, %v5632_v26, %v14190_v54 }
0x11a9   :  { %v5619_v51 = vsel %vm984_vm4, %v16298_v32, %v5577_v61  ;;  %11565 = vmatprep.mubr.msk.f32.mxu1 %vm1048_vm7, %v5648_v57  ;;  %v5575_v21 = vpop.permute.xlu1 %5574  ;;  %v18203_v61 = vld [vmem:[#allocation13_spill] sm:$0xff] }
0x11aa   :  { %v5635_v52 = vsel %vm1001_vm5, %v5619_v51, %v16351_v28  ;;  %v5618_v50 = vsel %vm984_vm4, %v16300_v59, %v5575_v21  ;;  %11566 = vmatmul.mubr.msk.f32.gmra.mrb[144].mxu1 %vm1048_vm7, %v5649_v33 }
0x11ab   :  { %v5634_v15 = vsel %vm1001_vm5, %v5618_v50, %v16353_v3  ;;  %v5651_v57 = vsel %vm1018_vm6, %v5635_v52, %v18203_v61  ;;  %v18204_v50 = vld [vmem:[#allocation16_spill] sm:$0xff] }
0x11ac   :  { %v5581_v22 = vpop.permute.xlu0 %5580  ;;  %v5650_v32 = vsel %vm1018_vm6, %v5634_v15, %v18202_v34 }
0x11ad   :  { %v5621_v26 = vsel %vm984_vm4, %v16302_v16, %v5581_v22  ;;  %11568 = vmatprep.mubr.msk.f32.mxu1 %vm1048_vm7, %v5650_v32  ;;  %v5579_v9 = vpop.permute.xlu1 %5578  ;;  %v18205_v22 = vld [vmem:[#allocation15_spill] sm:$0xff] }
0x11ae   :  { %v5637_v59 = vsel %vm1001_vm5, %v5621_v26, %v16355_v40  ;;  %v5620_v51 = vsel %vm984_vm4, %v16304_v1, %v5579_v9  ;;  %11569 = vmatmul.mubr.msk.f32.gmra.mrb[146].mxu1 %vm1048_vm7, %v5651_v57  ;;  %v18206_v57 = vld [vmem:[#allocation17_spill] sm:$0xff] }
0x11af   :  { %v5636_v21 = vsel %vm1001_vm5, %v5620_v51, %v16357_v55  ;;  %v5653_v32 = vsel %vm1018_vm6, %v5637_v59, %v18205_v22 }
0x11b0   :  { %v5585_v33 = vpop.permute.xlu0 %5584  ;;  %v5652_v16 = vsel %vm1018_vm6, %v5636_v21, %v18204_v50  ;;  %v18207_v21 = vld [vmem:[#allocation18_spill] sm:$0xff] }
0x11b1   :  { %v5623_v15 = vsel %vm984_vm4, %v16306_v12, %v5585_v33  ;;  %11571 = vmatprep.mubr.msk.f32.mxu1 %vm1048_vm7, %v5652_v16  ;;  %v5583_v52 = vpop.permute.xlu1 %5582 }
0x11b2   :  { %v5639_v1 = vsel %vm1001_vm5, %v5623_v15, %v16359_v42  ;;  %v5622_v26 = vsel %vm984_vm4, %v16308_v38, %v5583_v52  ;;  %11572 = vmatmul.mubr.msk.f32.gmra.mrb[148].mxu1 %vm1048_vm7, %v5653_v32 }
0x11b3   :  { %v5638_v9 = vsel %vm1001_vm5, %v5622_v26, %v16361_v43  ;;  %v5655_v59 = vsel %vm1018_vm6, %v5639_v1, %v18207_v21 }
0x11b4   :  { %v5654_v12 = vsel %vm1018_vm6, %v5638_v9, %v18206_v57  ;;  %v18208_v9 = vld [vmem:[#allocation19_spill] sm:$0xff] }
0x11b5   :  { %11574 = vmatprep.mubr.msk.f32.mxu1 %vm1048_vm7, %v5654_v12  ;;  %v5589_v51 = vpop.permute.xlu1 %5588 }
0x11b6   :  { %11575 = vmatmul.mubr.msk.f32.gmra.mrb[150].mxu1 %vm1048_vm7, %v5655_v59  ;;  %v5625_v33 = vsel %vm984_vm4, %v16310_v60, %v5589_v51  ;;  %v18209_v51 = vld [vmem:[#allocation20_spill] sm:$0xff] }
0x11b7   :  { %v5641_v15 = vsel %vm1001_vm5, %v5625_v33, %v16363_v30 }
0x11b8   :  { %v5593_v38 = vpop.permute.xlu0 %5592  ;;  %v5657_v59 = vsel %vm1018_vm6, %v5641_v15, %v18209_v51 }
0x11b9   :  { %v5587_v16 = vpop.permute.xlu1 %5586  ;;  %v5627_v32 = vsel %vm984_vm4, %v16318_v49, %v5593_v38 }
0x11ba   :  { %v5624_v52 = vsel %vm984_vm4, %v16312_v63, %v5587_v16  ;;  %v5643_v33 = vsel %vm1001_vm5, %v5627_v32, %v16367_v45  ;;  %v18210_v16 = vld [vmem:[#allocation21_spill] sm:$0xff] }
0x11bb   :  { %v5640_v26 = vsel %vm1001_vm5, %v5624_v52, %v16365_v62 }
0x11bc   :  { %v5597_v1 = vpop.permute.xlu0 %5596  ;;  %v5656_v12 = vsel %vm1018_vm6, %v5640_v26, %v18208_v9  ;;  %v18211_v26 = vld [vmem:[#allocation22_spill] sm:$0xff] }
0x11bd   :  { %11577 = vmatprep.mubr.msk.f32.mxu1 %vm1048_vm7, %v5656_v12  ;;  %v5591_v60 = vpop.permute.xlu1 %5590  ;;  %v5629_v49 = vsel %vm984_vm4, %v16323_v41, %v5597_v1  ;;  %v5659_v32 = vsel %vm1018_vm6, %v5643_v33, %v18211_v26  ;;  %v18212_v1 = vld [vmem:[#allocation23_spill] sm:$0xff]  ;;  %v9805_v33 = vld [vmem:[%s18036_s8 + $0x40] sm:$0xff] }
0x11be   :  { %v5626_v63 = vsel %vm984_vm4, %v16321_v27, %v5591_v60  ;;  %11578 = vmatmul.mubr.msk.f32.gmra.mrb[152].mxu1 %vm1048_vm7, %v5657_v59  ;;  %v5645_v27 = vsel %vm1001_vm5, %v5629_v49, %v16371_v48  ;;  %v18213_v59 = vld [vmem:[#allocation24_spill] sm:$0xff] }
0x11bf   :  { %v5642_v38 = vsel %vm1001_vm5, %v5626_v63, %v16369_v19  ;;  %v5661_v63 = vsel %vm1018_vm6, %v5645_v27, %v18213_v59  ;;  %v9842_v27 = vld [vmem:[%s18037_s11 + $0x48] sm:$0xff] }
0x11c0   :  { %v5658_v52 = vsel %vm1018_vm6, %v5642_v38, %v18210_v16  ;;  %v9807_v38 = vld [vmem:[%s18036_s8 + $0x50] sm:$0xff] }
0x11c1   :  { %11580 = vmatprep.mubr.msk.f32.mxu1 %vm1048_vm7, %v5658_v52  ;;  %v5595_v15 = vpop.permute.xlu1 %5594  ;;  %v9808_v52 = vld [vmem:[%s18036_s8 + $0x58] sm:$0xff] }
0x11c2   :  { %v5628_v12 = vsel %vm984_vm4, %v16325_v46, %v5595_v15  ;;  %11581 = vmatmul.mubr.msk.f32.gmra.mrb[154].mxu1 %vm1048_vm7, %v5659_v32  ;;  %v9806_v46 = vld [vmem:[%s18036_s8 + $0x48] sm:$0xff]  ;;  %v12335_v15 = vpack.c.bf16 %v9808_v52, %v9807_v38  ;;  %v9841_v32 = vld [vmem:[%s18037_s11 + $0x40] sm:$0xff] }
0x11c3   :  { %v5644_v41 = vsel %vm1001_vm5, %v5628_v12, %v16373_v17  ;;  %v12331_v49 = vpack.c.bf16 %v9806_v46, %v9805_v33  ;;  %v12339_v12 = vpack.c.bf16 %v9842_v27, %v9841_v32 }
0x11c4   :  { %v5660_v60 = vsel %vm1018_vm6, %v5644_v41, %v18212_v1  ;;  %v16508_v41 = vld [vmem:[%s18038_s13 + $0x10] sm:$0x1f] }
0x11c5   :  { %11583 = vmatprep.mubr.msk.f32.mxu1 %vm1048_vm7, %v5660_v60  ;;  %12332 = vmatprep.subr.bf16.mxu1 %v12331_v49  ;;  %v18214_v60 = vld [vmem:[#allocation26_spill] sm:$0xff] }
0x11c6   :  { %11584 = vmatmul.mubr.msk.f32.gmra.mrb[156].mxu1 %vm1048_vm7, %v5661_v63  ;;  %12340 = vmatprep.subr.bf16.mxu0 %v12339_v12  ;;  %v16512_v63 = vrot.slane %v16508_v41, %v18214_v60 }
0x11c7   :  { %12334 = vmatpush3.bf16.msra.mxu1 %v12331_v49  ;;  %12342 = vmatpush3.bf16.msra.mxu0 %v12339_v12 }
0x11c8   :  { %12336 = vmatprep.subr.bf16.mxu1 %v12335_v15 }
0x11cb   :  { %12338 = vmatpush3.bf16.msra.mxu1 %v12335_v15 }
0x1279   :  { %v11564_v33 = vpop.f32.mrb[142].mxu1 }
0x127a   :  { %v16515_v46 = vadd.f32 %v11564_v33, %v16512_v63  ;;  %v5793_v49 = vpop.f32.mrb[143].mxu1 }
0x127b   :  { %v16518_v38 = vadd.f32 %v5793_v49, %v16512_v63 }
0x127c   :  { %v9790_v52 = vmul.f32 -1.442695, %v16515_v46 }
0x127d   :  { %v9789_v15 = vmul.f32 -1.442695, %v16518_v38  ;;  %v11567_v32 = vpop.f32.mrb[144].mxu1 }
0x127e   :  { %13057 = vpow2.f32 %v9790_v52  ;;  %v16523_v27 = vadd.f32 %v11567_v32, %v16512_v63  ;;  %v5803_v12 = vpop.f32.mrb[145].mxu1 }
0x127f   :  { %13059 = vpow2.f32 %v9789_v15  ;;  %v16526_v60 = vadd.f32 %v5803_v12, %v16512_v63 }
0x1280   :  { %v9792_v33 = vmul.f32 -1.442695, %v16523_v27 }
0x1281   :  { %v9791_v59 = vmul.f32 -1.442695, %v16526_v60  ;;  %v11570_v49 = vpop.f32.mrb[146].mxu1 }
0x1282   :  { %13061 = vpow2.f32 %v9792_v33  ;;  %v16531_v1 = vadd.f32 %v11570_v49, %v16512_v63  ;;  %v5813_v26 = vpop.f32.mrb[147].mxu1 }
0x1283   :  { %13063 = vpow2.f32 %v9791_v59  ;;  %v16534_v52 = vadd.f32 %v5813_v26, %v16512_v63 }
0x1284   :  { %v9794_v32 = vmul.f32 -1.442695, %v16531_v1 }
0x1285   :  { %v9793_v15 = vmul.f32 -1.442695, %v16534_v52  ;;  %v11573_v12 = vpop.f32.mrb[148].mxu1 }
0x1286   :  { %13065 = vpow2.f32 %v9794_v32  ;;  %v16539_v16 = vadd.f32 %v11573_v12, %v16512_v63  ;;  %v5823_v51 = vpop.f32.mrb[149].mxu1 }
0x1287   :  { %13067 = vpow2.f32 %v9793_v15  ;;  %v16542_v33 = vadd.f32 %v5823_v51, %v16512_v63 }
0x1288   :  { %v13058_v49 = vpop.eup %13057  ;;  %v9796_v59 = vmul.f32 -1.442695, %v16539_v16 }
0x1289   :  { %v13060_v9 = vpop.eup %13059  ;;  %v5921_v26 = vadd.f32 1.0, %v13058_v49  ;;  %v9795_v21 = vmul.f32 -1.442695, %v16542_v33  ;;  %v11576_v57 = vpop.f32.mrb[150].mxu1 }
0x128a   :  { %v5920_v22 = vadd.f32 1.0, %v13060_v9  ;;  %13069 = vpow2.f32 %v9796_v59  ;;  %v16547_v32 = vadd.f32 %v11576_v57, %v16512_v63  ;;  %v5833_v12 = vpop.f32.mrb[151].mxu1 }
0x128b   :  { %13071 = vrcp.f32 %v5921_v26  ;;  %v16550_v15 = vadd.f32 %v5833_v12, %v16512_v63 }
0x128c   :  { %v13062_v51 = vpop.eup %13061  ;;  %13073 = vrcp.f32 %v5920_v22  ;;  %v9798_v50 = vmul.f32 -1.442695, %v16547_v32 }
0x128d   :  { %v13064_v61 = vpop.eup %13063  ;;  %v5923_v34 = vadd.f32 1.0, %v13062_v51  ;;  %13075 = vpow2.f32 %v9795_v21  ;;  %v9797_v49 = vmul.f32 -1.442695, %v16550_v15 }
0x128e   :  { %v5922_v14 = vadd.f32 1.0, %v13064_v61  ;;  %13077 = vpow2.f32 %v9798_v50 }
0x128f   :  { %13079 = vrcp.f32 %v5923_v34 }
0x1290   :  { %v13066_v9 = vpop.eup %13065  ;;  %13081 = vrcp.f32 %v5922_v14 }
0x1291   :  { %v13068_v57 = vpop.eup %13067  ;;  %v5925_v59 = vadd.f32 1.0, %v13066_v9  ;;  %13083 = vpow2.f32 %v9797_v49  ;;  %v11579_v26 = vpop.f32.mrb[152].mxu1 }
0x1292   :  { %v5924_v12 = vadd.f32 1.0, %v13068_v57  ;;  %v16555_v54 = vadd.f32 %v11579_v26, %v16512_v63  ;;  %v5843_v22 = vpop.f32.mrb[153].mxu1 }
0x1293   :  { %13085 = vrcp.f32 %v5925_v59  ;;  %v16558_v51 = vadd.f32 %v5843_v22, %v16512_v63 }
0x1294   :  { %v13070_v21 = vpop.eup %13069  ;;  %13087 = vrcp.f32 %v5924_v12  ;;  %v9800_v61 = vmul.f32 -1.442695, %v16555_v54 }
0x1295   :  { %v13072_v34 = vpop.eup %13071  ;;  %v5927_v50 = vadd.f32 1.0, %v13070_v21  ;;  %v9799_v14 = vmul.f32 -1.442695, %v16558_v51  ;;  %v11582_v9 = vpop.f32.mrb[154].mxu1 }
0x1296   :  { %v13074_v49 = vpop.eup %13073  ;;  %13089 = vpow2.f32 %v9800_v61  ;;  %v16563_v57 = vadd.f32 %v11582_v9, %v16512_v63  ;;  %v5853_v26 = vpop.f32.mrb[155].mxu1  ;;  %v5969_v56 = vmul.f32 %v13072_v34, %v16515_v46 }
0x1297   :  { %v13076_v53 = vpop.eup %13075  ;;  %v5968_v59 = vmul.f32 %v13074_v49, %v16518_v38  ;;  %v16567_v22 = vadd.f32 %v5853_v26, %v16512_v63  ;;  %13091 = vpow2.f32 %v9799_v14 }
0x1298   :  { %v13078_v12 = vpop.eup %13077  ;;  %v5926_v44 = vadd.f32 1.0, %v13076_v53  ;;  %v9802_v21 = vmul.f32 -1.442695, %v16563_v57  ;;  %13093 = vrcp.f32 %v5927_v50 }
0x1299   :  { %v13080_v35 = vpop.eup %13079  ;;  %v5929_v61 = vadd.f32 1.0, %v13078_v12  ;;  %v9801_v9 = vmul.f32 -1.442695, %v16567_v22  ;;  %v11585_v7 = vpop.f32.mrb[156].mxu1  ;;  %11594 = vmatprep.mubr.msk.f32.mxu1 %vm984_vm4, %v5968_v59 }
0x129a   :  { %v13082_v4 = vpop.eup %13081  ;;  %13095 = vrcp.f32 %v5926_v44  ;;  %v16574_v38 = vadd.f32 %v11585_v7, %v16512_v63  ;;  %v5863_v49 = vpop.f32.mrb[157].mxu1  ;;  %11595 = vmatmul.mubr.msk.f32.vlgmr.msra.gmra.mrb[158].mxu1 %vm984_vm4, %v5969_v56  ;;  %v5971_v50 = vmul.f32 %v13080_v35, %v16523_v27 }
0x129b   :  { %v13084_v53 = vpop.eup %13083  ;;  %v5970_v46 = vmul.f32 %v13082_v4, %v16526_v60  ;;  %13097 = vrcp.f32 %v5929_v61  ;;  %v5864_v34 = vadd.f32 %v5863_v49, %v16512_v63 }
0x129c   :  { %v5928_v14 = vadd.f32 1.0, %v13084_v53  ;;  %13099 = vpow2.f32 %v9802_v21  ;;  %v9804_v26 = vmul.f32 -1.442695, %v16574_v38 }
0x129d   :  { %v13086_v59 = vpop.eup %13085  ;;  %13101 = vpow2.f32 %v9801_v9  ;;  %v9803_v44 = vmul.f32 -1.442695, %v5864_v34  ;;  %11597 = vmatprep.mubr.msk.f32.mxu1 %vm984_vm4, %v5970_v46 }
0x129e   :  { %v13088_v7 = vpop.eup %13087  ;;  %13103 = vrcp.f32 %v5928_v14  ;;  %11598 = vmatmul.mubr.msk.f32.gmra.mrb[160].mxu1 %vm984_vm4, %v5971_v50  ;;  %v5973_v60 = vmul.f32 %v13086_v59, %v16531_v1 }
0x129f   :  { %v5972_v56 = vmul.f32 %v13088_v7, %v16534_v52  ;;  %13105 = vpow2.f32 %v9804_v26 }
0x12a0   :  { %v13090_v4 = vpop.eup %13089  ;;  %13107 = vpow2.f32 %v9803_v44 }
0x12a1   :  { %v5931_v35 = vadd.f32 1.0, %v13090_v4  ;;  %11600 = vmatprep.mubr.msk.f32.mxu1 %vm984_vm4, %v5972_v56  ;;  %v13092_v63 = vpop.eup %13091 }
0x12a2   :  { %11601 = vmatmul.mubr.msk.f32.gmra.mrb[162].mxu1 %vm984_vm4, %v5973_v60  ;;  %v13094_v27 = vpop.eup %13093  ;;  %v5930_v12 = vadd.f32 1.0, %v13092_v63 }
0x12a3   :  { %13109 = vrcp.f32 %v5931_v35  ;;  %v5975_v49 = vmul.f32 %v13094_v27, %v16539_v16 }
0x12a4   :  { %v13096_v21 = vpop.eup %13095  ;;  %13111 = vrcp.f32 %v5930_v12 }
0x12a5   :  { %v13098_v61 = vpop.eup %13097  ;;  %v5974_v9 = vmul.f32 %v13096_v21, %v16542_v33 }
0x12a6   :  { %v13100_v52 = vpop.eup %13099  ;;  %v5977_v44 = vmul.f32 %v13098_v61, %v16547_v32 }
0x12a7   :  { %v13102_v53 = vpop.eup %13101  ;;  %v5933_v1 = vadd.f32 1.0, %v13100_v52  ;;  %11603 = vmatprep.mubr.msk.f32.mxu1 %vm984_vm4, %v5974_v9  ;;  %v9879_v9 = vld [vmem:[%s18039_s12 + $0x50] sm:$0xff]  ;;  %v9880_v52 = vld [vmem:[%s18039_s12 + $0x58] sm:$0xff] }
0x12a8   :  { %v13104_v46 = vpop.eup %13103  ;;  %v5932_v50 = vadd.f32 1.0, %v13102_v53  ;;  %11604 = vmatmul.mubr.msk.f32.gmra.mrb[164].mxu1 %vm984_vm4, %v5975_v49  ;;  %v12351_v49 = vpack.c.bf16 %v9880_v52, %v9879_v9  ;;  %v18215_v53 = vld [vmem:[#allocation27_spill] sm:$0xff] }
0x12a9   :  { %v13106_v14 = vpop.eup %13105  ;;  %v5976_v26 = vmul.f32 %v13104_v46, %v16550_v15  ;;  %13113 = vrcp.f32 %v5933_v1  ;;  %v16626_v1 = vrot.slane %v16508_v41, %v18215_v53 }
0x12aa   :  { %v13108_v59 = vpop.eup %13107  ;;  %13115 = vrcp.f32 %v5932_v50  ;;  %v5935_v33 = vadd.f32 1.0, %v13106_v14 }
0x12ab   :  { %v5934_v7 = vadd.f32 1.0, %v13108_v59  ;;  %11606 = vmatprep.mubr.msk.f32.mxu1 %vm984_vm4, %v5976_v26 }
0x12ac   :  { %13117 = vrcp.f32 %v5935_v33  ;;  %11607 = vmatmul.mubr.msk.f32.gmra.mrb[166].mxu1 %vm984_vm4, %v5977_v44 }
0x12ad   :  { %13119 = vrcp.f32 %v5934_v7  ;;  %v13110_v16 = vpop.eup %13109 }
0x12ae   :  { %v13112_v56 = vpop.eup %13111  ;;  %v5979_v60 = vmul.f32 %v13110_v16, %v16555_v54  ;;  %v9877_v54 = vld [vmem:[%s18039_s12 + $0x40] sm:$0xff] }
0x12af   :  { %v5978_v4 = vmul.f32 %v13112_v56, %v16558_v51 }
0x12b1   :  { %11609 = vmatprep.mubr.msk.f32.mxu1 %vm984_vm4, %v5978_v4 }
0x12b2   :  { %11610 = vmatmul.mubr.msk.f32.gmra.mrb[168].mxu1 %vm984_vm4, %v5979_v60 }
0x12b3   :  { %v13114_v15 = vpop.eup %13113 }
0x12b4   :  { %v13116_v32 = vpop.eup %13115  ;;  %v5981_v27 = vmul.f32 %v13114_v15, %v16563_v57  ;;  %v9878_v57 = vld [vmem:[%s18039_s12 + $0x48] sm:$0xff] }
0x12b5   :  { %v5980_v35 = vmul.f32 %v13116_v32, %v16567_v22  ;;  %v9843_v22 = vld [vmem:[%s18037_s11 + $0x50] sm:$0xff] }
0x12b6   :  { %v13118_v63 = vpop.eup %13117 }
0x12b7   :  { %v13120_v12 = vpop.eup %13119  ;;  %11612 = vmatprep.mubr.msk.f32.mxu1 %vm984_vm4, %v5980_v35  ;;  %v5983_v51 = vmul.f32 %v13118_v63, %v16574_v38  ;;  %v9844_v38 = vld [vmem:[%s18037_s11 + $0x58] sm:$0xff] }
0x12b8   :  { %v5982_v21 = vmul.f32 %v13120_v12, %v5864_v34  ;;  %11613 = vmatmul.mubr.msk.f32.gmra.mrb[170].mxu1 %vm984_vm4, %v5981_v27  ;;  %v12347_v34 = vpack.c.bf16 %v9878_v57, %v9877_v54  ;;  %v12343_v61 = vpack.c.bf16 %v9844_v38, %v9843_v22 }
0x12ba   :  { %11615 = vmatprep.mubr.msk.f32.mxu1 %vm984_vm4, %v5982_v21  ;;  %12348 = vmatprep.subr.bf16.mxu1 %v12347_v34 }
0x12bb   :  { %12344 = vmatprep.subr.bf16.mxu0 %v12343_v61  ;;  %12350 = vmatpush3.bf16.msra.mxu1 %v12347_v34 }
0x12bc   :  { %11616 = vmatmul.mubr.msk.f32.gmra.mrb[172].mxu1 %vm984_vm4, %v5983_v51  ;;  %12346 = vmatpush3.bf16.msra.mxu0 %v12343_v61 }
0x12bd   :  { %12352 = vmatprep.subr.bf16.mxu1 %v12351_v49 }
0x12bf   :  { %12354 = vmatpush3.bf16.msra.mxu1 %v12351_v49 }
0x136d   :  { %v11596_v46 = vpop.f32.mrb[158].mxu1 }
0x136e   :  { %v16629_v50 = vadd.f32 %v11596_v46, %v16626_v1  ;;  %v6107_v14 = vpop.f32.mrb[159].mxu1 }
0x136f   :  { %v16632_v26 = vadd.f32 %v6107_v14, %v16626_v1 }
0x1370   :  { %v9826_v59 = vmul.f32 -1.442695, %v16629_v50 }
0x1371   :  { %v9825_v44 = vmul.f32 -1.442695, %v16632_v26  ;;  %v11599_v33 = vpop.f32.mrb[160].mxu1 }
0x1372   :  { %13121 = vpow2.f32 %v9826_v59  ;;  %v16637_v7 = vadd.f32 %v11599_v33, %v16626_v1  ;;  %v6117_v16 = vpop.f32.mrb[161].mxu1 }
0x1373   :  { %13123 = vpow2.f32 %v9825_v44  ;;  %v16640_v56 = vadd.f32 %v6117_v16, %v16626_v1 }
0x1374   :  { %v9828_v4 = vmul.f32 -1.442695, %v16637_v7 }
0x1375   :  { %v9827_v60 = vmul.f32 -1.442695, %v16640_v56  ;;  %v11602_v15 = vpop.f32.mrb[162].mxu1 }
0x1376   :  { %13125 = vpow2.f32 %v9828_v4  ;;  %v16645_v32 = vadd.f32 %v11602_v15, %v16626_v1  ;;  %v6127_v35 = vpop.f32.mrb[163].mxu1 }
0x1377   :  { %13127 = vpow2.f32 %v9827_v60  ;;  %v16648_v63 = vadd.f32 %v6127_v35, %v16626_v1 }
0x1378   :  { %v9830_v27 = vmul.f32 -1.442695, %v16645_v32 }
0x1379   :  { %v9829_v12 = vmul.f32 -1.442695, %v16648_v63 }
0x137a   :  { %13129 = vpow2.f32 %v9830_v27 }
0x137b   :  { %13131 = vpow2.f32 %v9829_v12  ;;  %v11605_v21 = vpop.f32.mrb[164].mxu1 }
0x137c   :  { %v13122_v51 = vpop.eup %13121  ;;  %v16653_v54 = vadd.f32 %v11605_v21, %v16626_v1  ;;  %v6137_v57 = vpop.f32.mrb[165].mxu1 }
0x137d   :  { %v13124_v22 = vpop.eup %13123  ;;  %v6235_v38 = vadd.f32 1.0, %v13122_v51  ;;  %v16656_v34 = vadd.f32 %v6137_v57, %v16626_v1 }
0x137e   :  { %v6234_v61 = vadd.f32 1.0, %v13124_v22  ;;  %v9832_v9 = vmul.f32 -1.442695, %v16653_v54 }
0x137f   :  { %13133 = vrcp.f32 %v6235_v38  ;;  %v9831_v52 = vmul.f32 -1.442695, %v16656_v34  ;;  %v11608_v49 = vpop.f32.mrb[166].mxu1 }
0x1380   :  { %v13126_v46 = vpop.eup %13125  ;;  %13135 = vrcp.f32 %v6234_v61  ;;  %v16661_v14 = vadd.f32 %v11608_v49, %v16626_v1  ;;  %v6147_v59 = vpop.f32.mrb[167].mxu1 }
0x1381   :  { %v13128_v44 = vpop.eup %13127  ;;  %v6237_v33 = vadd.f32 1.0, %v13126_v46  ;;  %13137 = vpow2.f32 %v9832_v9  ;;  %v16664_v16 = vadd.f32 %v6147_v59, %v16626_v1 }
0x1382   :  { %v6236_v4 = vadd.f32 1.0, %v13128_v44  ;;  %13139 = vpow2.f32 %v9831_v52  ;;  %v9834_v60 = vmul.f32 -1.442695, %v16661_v14 }
0x1383   :  { %13141 = vrcp.f32 %v6237_v33  ;;  %v9833_v15 = vmul.f32 -1.442695, %v16664_v16 }
0x1384   :  { %v13130_v35 = vpop.eup %13129  ;;  %13143 = vrcp.f32 %v6236_v4 }
0x1385   :  { %v13132_v27 = vpop.eup %13131  ;;  %v6239_v12 = vadd.f32 1.0, %v13130_v35  ;;  %13145 = vpow2.f32 %v9834_v60  ;;  %v11611_v51 = vpop.f32.mrb[168].mxu1 }
0x1386   :  { %v6238_v21 = vadd.f32 1.0, %v13132_v27  ;;  %13147 = vpow2.f32 %v9833_v15  ;;  %v16669_v57 = vadd.f32 %v11611_v51, %v16626_v1  ;;  %v6157_v22 = vpop.f32.mrb[169].mxu1 }
0x1387   :  { %13149 = vrcp.f32 %v6239_v12  ;;  %v16672_v38 = vadd.f32 %v6157_v22, %v16626_v1 }
0x1388   :  { %13151 = vrcp.f32 %v6238_v21  ;;  %v9836_v9 = vmul.f32 -1.442695, %v16669_v57 }
0x1389   :  { %v13134_v61 = vpop.eup %13133  ;;  %v9835_v46 = vmul.f32 -1.442695, %v16672_v38 }
0x138a   :  { %v13136_v52 = vpop.eup %13135  ;;  %v6283_v49 = vmul.f32 %v13134_v61, %v16629_v50  ;;  %13153 = vpow2.f32 %v9836_v9 }
0x138b   :  { %v13138_v59 = vpop.eup %13137  ;;  %v6282_v44 = vmul.f32 %v13136_v52, %v16632_v26  ;;  %v11614_v33 = vpop.f32.mrb[170].mxu1  ;;  %13155 = vpow2.f32 %v9835_v46 }
0x138c   :  { %v13140_v4 = vpop.eup %13139  ;;  %v6241_v60 = vadd.f32 1.0, %v13138_v59  ;;  %v16679_v15 = vadd.f32 %v11614_v33, %v16626_v1  ;;  %v6167_v35 = vpop.f32.mrb[171].mxu1 }
0x138d   :  { %v13142_v27 = vpop.eup %13141  ;;  %v6240_v12 = vadd.f32 1.0, %v13140_v4  ;;  %v16682_v21 = vadd.f32 %v6167_v35, %v16626_v1  ;;  %11626 = vmatprep.mubr.msk.f32.mxu0 %vm984_vm4, %v6282_v44  ;;  %v16685_v50 = vpack.c.bf16 %v6283_v49, %v6282_v44 }
0x138e   :  { %v13144_v51 = vpop.eup %13143  ;;  %v6285_v26 = vmul.f32 %v13142_v27, %v16637_v7  ;;  %13157 = vrcp.f32 %v6241_v60  ;;  %v9838_v22 = vmul.f32 -1.442695, %v16679_v15  ;;  %11627 = vmatmul.mubr.msk.f32.vlgmr.msra.gmra.mrb[148].mxu0 %vm984_vm4, %v6283_v49 }
0x138f   :  { %v13146_v61 = vpop.eup %13145  ;;  %v6284_v9 = vmul.f32 %v13144_v51, %v16640_v56  ;;  %13159 = vrcp.f32 %v6240_v12  ;;  %v9837_v52 = vmul.f32 -1.442695, %v16682_v21  ;;  %v11617_v46 = vpop.f32.mrb[172].mxu1  ;;  %12388 = vmatprep.subr.bf16.mxu1 %v16685_v50 }
0x1390   :  { %v13148_v59 = vpop.eup %13147  ;;  %v6243_v44 = vadd.f32 1.0, %v13146_v61  ;;  %13161 = vpow2.f32 %v9838_v22  ;;  %v16694_v33 = vadd.f32 %v11617_v46, %v16626_v1  ;;  %v6177_v7 = vpop.f32.mrb[173].mxu1 }
0x1391   :  { %v13150_v4 = vpop.eup %13149  ;;  %v6242_v60 = vadd.f32 1.0, %v13148_v59  ;;  %13163 = vpow2.f32 %v9837_v52  ;;  %v16697_v49 = vadd.f32 %v6177_v7, %v16626_v1  ;;  %11629 = vmatprep.mubr.msk.f32.mxu0 %vm984_vm4, %v6284_v9  ;;  %v16700_v56 = vpack.c.bf16 %v6285_v26, %v6284_v9 }
0x1392   :  { %v13152_v35 = vpop.eup %13151  ;;  %v6287_v27 = vmul.f32 %v13150_v4, %v16645_v32  ;;  %13165 = vrcp.f32 %v6243_v44  ;;  %v9840_v12 = vmul.f32 -1.442695, %v16694_v33  ;;  %11630 = vmatmul.mubr.msk.f32.gmra.mrb[150].mxu0 %vm984_vm4, %v6285_v26 }
0x1393   :  { %v6286_v51 = vmul.f32 %v13152_v35, %v16648_v63  ;;  %13167 = vrcp.f32 %v6242_v60  ;;  %v9839_v22 = vmul.f32 -1.442695, %v16697_v49 }
0x1394   :  { %13169 = vpow2.f32 %v9840_v12  ;;  %v13154_v1 = vpop.eup %13153 }
0x1395   :  { %13171 = vpow2.f32 %v9839_v22  ;;  %11632 = vmatprep.mubr.msk.f32.mxu0 %vm984_vm4, %v6286_v51  ;;  %v16708_v61 = vpack.c.bf16 %v6287_v27, %v6286_v51  ;;  %v13156_v9 = vpop.eup %13155  ;;  %v6245_v52 = vadd.f32 1.0, %v13154_v1 }
0x1396   :  { %11633 = vmatmul.mubr.msk.f32.gmra.mrb[152].mxu0 %vm984_vm4, %v6287_v27  ;;  %v6244_v32 = vadd.f32 1.0, %v13156_v9 }
0x1397   :  { %13173 = vrcp.f32 %v6245_v52 }
0x1398   :  { %v13158_v46 = vpop.eup %13157  ;;  %13175 = vrcp.f32 %v6244_v32 }
0x1399   :  { %v13160_v26 = vpop.eup %13159  ;;  %v6289_v63 = vmul.f32 %v13158_v46, %v16653_v54 }
0x139a   :  { %v13162_v59 = vpop.eup %13161  ;;  %v6288_v44 = vmul.f32 %v13160_v26, %v16656_v34 }
0x139b   :  { %v13164_v7 = vpop.eup %13163  ;;  %v6247_v4 = vadd.f32 1.0, %v13162_v59 }
0x139c   :  { %v13166_v60 = vpop.eup %13165  ;;  %v6246_v35 = vadd.f32 1.0, %v13164_v7  ;;  %11635 = vmatprep.mubr.msk.f32.mxu0 %vm984_vm4, %v6288_v44  ;;  %v16714_v12 = vpack.c.bf16 %v6289_v63, %v6288_v44 }
0x139d   :  { %v13168_v51 = vpop.eup %13167  ;;  %v6291_v27 = vmul.f32 %v13166_v60, %v16661_v14  ;;  %13177 = vrcp.f32 %v6247_v4  ;;  %11636 = vmatmul.mubr.msk.f32.gmra.mrb[154].mxu0 %vm984_vm4, %v6289_v63 }
0x139e   :  { %v13170_v22 = vpop.eup %13169  ;;  %v6290_v54 = vmul.f32 %v13168_v51, %v16664_v16  ;;  %13179 = vrcp.f32 %v6246_v35 }
0x139f   :  { %v13172_v1 = vpop.eup %13171  ;;  %v6249_v34 = vadd.f32 1.0, %v13170_v22 }
0x13a0   :  { %v6248_v9 = vadd.f32 1.0, %v13172_v1  ;;  %11638 = vmatprep.mubr.msk.f32.mxu0 %vm984_vm4, %v6290_v54  ;;  %v16720_v52 = vpack.c.bf16 %v6291_v27, %v6290_v54 }
0x13a1   :  { %13181 = vrcp.f32 %v6249_v34  ;;  %11639 = vmatmul.mubr.msk.f32.gmra.mrb[156].mxu0 %vm984_vm4, %v6291_v27  ;;  %v13174_v32 = vpop.eup %13173 }
0x13a2   :  { %13183 = vrcp.f32 %v6248_v9  ;;  %v13176_v14 = vpop.eup %13175  ;;  %v6293_v46 = vmul.f32 %v13174_v32, %v16669_v57 }
0x13a3   :  { %v6292_v26 = vmul.f32 %v13176_v14, %v16672_v38 }
0x13a5   :  { %11641 = vmatprep.mubr.msk.f32.mxu0 %vm984_vm4, %v6292_v26  ;;  %v16726_v16 = vpack.c.bf16 %v6293_v46, %v6292_v26 }
0x13a6   :  { %11642 = vmatmul.mubr.msk.f32.gmra.mrb[158].mxu0 %vm984_vm4, %v6293_v46 }
0x13a7   :  { %v13178_v63 = vpop.eup %13177 }
0x13a8   :  { %v13180_v59 = vpop.eup %13179  ;;  %v6295_v44 = vmul.f32 %v13178_v63, %v16679_v15  ;;  %v16744_v15 = vld [vmem:[%s18040_s4] sm:$0xff] }
0x13a9   :  { %v6294_v7 = vmul.f32 %v13180_v59, %v16682_v21  ;;  %v18216_v21 = vld [vmem:[#allocation28_spill] sm:$0xff] }
0x13ab   :  { %v13182_v4 = vpop.eup %13181  ;;  %11644 = vmatprep.mubr.msk.f32.mxu0 %vm984_vm4, %v6294_v7  ;;  %v16732_v60 = vpack.c.bf16 %v6295_v44, %v6294_v7 }
0x13ac   :  { %v13184_v57 = vpop.eup %13183  ;;  %v6297_v38 = vmul.f32 %v13182_v4, %v16694_v33  ;;  %11645 = vmatmul.mubr.msk.f32.gmra.mrb[160].mxu0 %vm984_vm4, %v6295_v44  ;;  %v16749_v33 = vrot.slane %v16508_v41, %v18216_v21 }
0x13ad   :  { %v6296_v35 = vmul.f32 %v13184_v57, %v16697_v49 }
0x13af   :  { %11647 = vmatprep.mubr.msk.f32.mxu0 %vm984_vm4, %v6296_v35  ;;  %v16738_v51 = vpack.c.bf16 %v6297_v38, %v6296_v35 }
0x13b0   :  { %11648 = vmatmul.mubr.msk.f32.gmra.mrb[162].mxu0 %vm984_vm4, %v6297_v38 }
0x13b1   :  { %11714 = vmatprep.mubr.f32.mxu0 %v16744_v15 }
0x1461   :  { %v11628_v27 = vpop.f32.mrb[148].mxu0 }
0x1462   :  { %v16752_v49 = vadd.f32 %v11628_v27, %v16749_v33  ;;  %v6421_v22 = vpop.f32.mrb[149].mxu0 }
0x1463   :  { %v16755_v54 = vadd.f32 %v6421_v22, %v16749_v33 }
0x1464   :  { %v9862_v1 = vmul.f32 -1.442695, %v16752_v49 }
0x1465   :  { %v9861_v34 = vmul.f32 -1.442695, %v16755_v54  ;;  %v11631_v9 = vpop.f32.mrb[150].mxu0 }
0x1466   :  { %13185 = vpow2.f32 %v9862_v1  ;;  %v16760_v32 = vadd.f32 %v11631_v9, %v16749_v33  ;;  %v6431_v14 = vpop.f32.mrb[151].mxu0 }
0x1467   :  { %13187 = vpow2.f32 %v9861_v34  ;;  %v16763_v41 = vadd.f32 %v6431_v14, %v16749_v33 }
0x1468   :  { %v9864_v46 = vmul.f32 -1.442695, %v16760_v32 }
0x1469   :  { %v9863_v26 = vmul.f32 -1.442695, %v16763_v41  ;;  %v11634_v63 = vpop.f32.mrb[152].mxu0 }
0x146a   :  { %13189 = vpow2.f32 %v9864_v46  ;;  %v16768_v59 = vadd.f32 %v11634_v63, %v16749_v33  ;;  %v6441_v44 = vpop.f32.mrb[153].mxu0 }
0x146b   :  { %13191 = vpow2.f32 %v9863_v26  ;;  %v16771_v7 = vadd.f32 %v6441_v44, %v16749_v33 }
0x146c   :  { %v9866_v4 = vmul.f32 -1.442695, %v16768_v59 }
0x146d   :  { %v9865_v57 = vmul.f32 -1.442695, %v16771_v7 }
0x146e   :  { %13193 = vpow2.f32 %v9866_v4 }
0x146f   :  { %13195 = vpow2.f32 %v9865_v57 }
0x1470   :  { %v13186_v38 = vpop.eup %13185  ;;  %v11637_v35 = vpop.f32.mrb[154].mxu0 }
0x1471   :  { %v13188_v27 = vpop.eup %13187  ;;  %v6549_v22 = vadd.f32 1.0, %v13186_v38  ;;  %v16776_v1 = vadd.f32 %v11637_v35, %v16749_v33  ;;  %v6451_v34 = vpop.f32.mrb[155].mxu0 }
0x1472   :  { %v6548_v9 = vadd.f32 1.0, %v13188_v27  ;;  %v16779_v14 = vadd.f32 %v6451_v34, %v16749_v33 }
0x1473   :  { %13197 = vrcp.f32 %v6549_v22  ;;  %v9868_v46 = vmul.f32 -1.442695, %v16776_v1 }
0x1474   :  { %v13190_v26 = vpop.eup %13189  ;;  %13199 = vrcp.f32 %v6548_v9  ;;  %v9867_v63 = vmul.f32 -1.442695, %v16779_v14  ;;  %v11640_v44 = vpop.f32.mrb[156].mxu0 }
0x1475   :  { %v13192_v4 = vpop.eup %13191  ;;  %v6551_v57 = vadd.f32 1.0, %v13190_v26  ;;  %13201 = vpow2.f32 %v9868_v46  ;;  %v16784_v38 = vadd.f32 %v11640_v44, %v16749_v33  ;;  %v6461_v35 = vpop.f32.mrb[157].mxu0 }
0x1476   :  { %v6550_v21 = vadd.f32 1.0, %v13192_v4  ;;  %13203 = vpow2.f32 %v9867_v63  ;;  %v16787_v27 = vadd.f32 %v6461_v35, %v16749_v33 }
0x1477   :  { %13205 = vrcp.f32 %v6551_v57  ;;  %v9870_v22 = vmul.f32 -1.442695, %v16784_v38 }
0x1478   :  { %v13194_v34 = vpop.eup %13193  ;;  %13207 = vrcp.f32 %v6550_v21  ;;  %v9869_v9 = vmul.f32 -1.442695, %v16787_v27 }
0x1479   :  { %v13196_v53 = vpop.eup %13195  ;;  %v6553_v58 = vadd.f32 1.0, %v13194_v34  ;;  %13209 = vpow2.f32 %v9870_v22  ;;  %v11643_v26 = vpop.f32.mrb[158].mxu0 }
0x147a   :  { %v6552_v46 = vadd.f32 1.0, %v13196_v53  ;;  %13211 = vpow2.f32 %v9869_v9  ;;  %v16792_v44 = vadd.f32 %v11643_v26, %v16749_v33  ;;  %v6471_v63 = vpop.f32.mrb[159].mxu0 }
0x147b   :  { %13213 = vrcp.f32 %v6553_v58  ;;  %v16795_v4 = vadd.f32 %v6471_v63, %v16749_v33 }
0x147c   :  { %13215 = vrcp.f32 %v6552_v46  ;;  %v9872_v21 = vmul.f32 -1.442695, %v16792_v44 }
0x147d   :  { %v13198_v57 = vpop.eup %13197  ;;  %v9871_v23 = vmul.f32 -1.442695, %v16795_v4 }
0x147e   :  { %v13200_v35 = vpop.eup %13199  ;;  %13217 = vpow2.f32 %v9872_v21  ;;  %v6597_v9 = vmul.f32 %v13198_v57, %v16752_v49 }
0x147f   :  { %v13202_v34 = vpop.eup %13201  ;;  %v6596_v53 = vmul.f32 %v13200_v35, %v16755_v54  ;;  %v11646_v22 = vpop.f32.mrb[160].mxu0  ;;  %13219 = vpow2.f32 %v9871_v23 }
0x1480   :  { %v13204_v58 = vpop.eup %13203  ;;  %v6555_v26 = vadd.f32 1.0, %v13202_v34  ;;  %v16802_v46 = vadd.f32 %v11646_v22, %v16749_v33  ;;  %v6481_v63 = vpop.f32.mrb[161].mxu0 }
0x1481   :  { %v13206_v39 = vpop.eup %13205  ;;  %v6554_v24 = vadd.f32 1.0, %v13204_v58  ;;  %v16805_v18 = vadd.f32 %v6481_v63, %v16749_v33  ;;  %11658 = vmatprep.mubr.msk.f32.mxu1 %vm984_vm4, %v6596_v53 }
0x1482   :  { %v13208_v13 = vpop.eup %13207  ;;  %13221 = vrcp.f32 %v6555_v26  ;;  %v9874_v54 = vmul.f32 -1.442695, %v16802_v46  ;;  %11659 = vmatmul.mubr.msk.f32.vlgmr.msra.gmra.mrb[174].mxu1 %vm984_vm4, %v6597_v9  ;;  %v6599_v34 = vmul.f32 %v13206_v39, %v16760_v32 }
0x1483   :  { %v13210_v49 = vpop.eup %13209  ;;  %v6598_v23 = vmul.f32 %v13208_v13, %v16763_v41  ;;  %13223 = vrcp.f32 %v6554_v24  ;;  %v9873_v57 = vmul.f32 -1.442695, %v16805_v18  ;;  %v11649_v21 = vpop.f32.mrb[162].mxu0  ;;  %12390 = vmatpush3.bf16.msra.mxu1 %v16685_v50 }
0x1484   :  { %v13212_v35 = vpop.eup %13211  ;;  %v6557_v22 = vadd.f32 1.0, %v13210_v49  ;;  %13225 = vpow2.f32 %v9874_v54  ;;  %v16815_v53 = vadd.f32 %v11649_v21, %v16749_v33  ;;  %v6491_v58 = vpop.f32.mrb[163].mxu0  ;;  %12392 = vmatprep.subr.bf16.mxu1 %v16700_v56 }
0x1485   :  { %v13214_v9 = vpop.eup %13213  ;;  %v6556_v26 = vadd.f32 1.0, %v13212_v35  ;;  %13227 = vpow2.f32 %v9873_v57  ;;  %v16819_v13 = vadd.f32 %v6491_v58, %v16749_v33  ;;  %11661 = vmatprep.mubr.msk.f32.mxu1 %vm984_vm4, %v6598_v23 }
0x1486   :  { %v13216_v24 = vpop.eup %13215  ;;  %13229 = vrcp.f32 %v6557_v22  ;;  %v9876_v39 = vmul.f32 -1.442695, %v16815_v53  ;;  %11662 = vmatmul.mubr.msk.f32.gmra.mrb[176].mxu1 %vm984_vm4, %v6599_v34  ;;  %v6601_v41 = vmul.f32 %v13214_v9, %v16768_v59 }
0x1487   :  { %v6600_v50 = vmul.f32 %v13216_v24, %v16771_v7  ;;  %13231 = vrcp.f32 %v6556_v26  ;;  %v9875_v32 = vmul.f32 -1.442695, %v16819_v13  ;;  %12394 = vmatpush3.bf16.msra.mxu1 %v16700_v56 }
0x1488   :  { %13233 = vpow2.f32 %v9876_v39  ;;  %12396 = vmatprep.subr.bf16.mxu1 %v16708_v61  ;;  %v13218_v33 = vpop.eup %13217 }
0x1489   :  { %13235 = vpow2.f32 %v9875_v32  ;;  %11664 = vmatprep.mubr.msk.f32.mxu1 %vm984_vm4, %v6600_v50  ;;  %v13220_v63 = vpop.eup %13219  ;;  %v6559_v54 = vadd.f32 1.0, %v13218_v33 }
0x148a   :  { %11665 = vmatmul.mubr.msk.f32.gmra.mrb[178].mxu1 %vm984_vm4, %v6601_v41  ;;  %v6558_v49 = vadd.f32 1.0, %v13220_v63 }
0x148b   :  { %12398 = vmatpush3.bf16.msra.mxu1 %v16708_v61  ;;  %13237 = vrcp.f32 %v6559_v54  ;;  %v5193_v54 = vand.u32 2147483648, %v16343_v47 }
0x148c   :  { %v13222_v7 = vpop.eup %13221  ;;  %12400 = vmatprep.subr.bf16.mxu1 %v16714_v12  ;;  %13239 = vrcp.f32 %v6558_v49  ;;  %v5186_v49 = vand.u32 2147483648, %v16349_v25 }
0x148d   :  { %v13224_v56 = vpop.eup %13223  ;;  %v6603_v21 = vmul.f32 %v13222_v7, %v16776_v1 }
0x148e   :  { %v13226_v59 = vpop.eup %13225  ;;  %v6602_v23 = vmul.f32 %v13224_v56, %v16779_v14 }
0x148f   :  { %v13228_v57 = vpop.eup %13227  ;;  %v6561_v35 = vadd.f32 1.0, %v13226_v59  ;;  %12402 = vmatpush3.bf16.msra.mxu1 %v16714_v12 }
0x1490   :  { %v13230_v34 = vpop.eup %13229  ;;  %v6560_v22 = vadd.f32 1.0, %v13228_v57  ;;  %11667 = vmatprep.mubr.msk.f32.mxu1 %vm984_vm4, %v6602_v23  ;;  %12404 = vmatprep.subr.bf16.mxu1 %v16720_v52 }
0x1491   :  { %v13232_v61 = vpop.eup %13231  ;;  %13241 = vrcp.f32 %v6561_v35  ;;  %11668 = vmatmul.mubr.msk.f32.gmra.mrb[180].mxu1 %vm984_vm4, %v6603_v21  ;;  %v6605_v1 = vmul.f32 %v13230_v34, %v16784_v38  ;;  %v5207_v35 = vand.u32 2147483648, %v16345_v5  ;;  %v5200_v34 = vand.u32 2147483648, %v16347_v11 }
0x1492   :  { %v13234_v58 = vpop.eup %13233  ;;  %v6604_v9 = vmul.f32 %v13232_v61, %v16787_v27  ;;  %13243 = vrcp.f32 %v6560_v22 }
0x1493   :  { %v13236_v14 = vpop.eup %13235  ;;  %v6563_v26 = vadd.f32 1.0, %v13234_v58  ;;  %12406 = vmatpush3.bf16.msra.mxu1 %v16720_v52 }
0x1494   :  { %v6562_v12 = vadd.f32 1.0, %v13236_v14  ;;  %11670 = vmatprep.mubr.msk.f32.mxu1 %vm984_vm4, %v6604_v9  ;;  %12408 = vmatprep.subr.bf16.mxu1 %v16726_v16 }
0x1495   :  { %13245 = vrcp.f32 %v6563_v26  ;;  %11671 = vmatmul.mubr.msk.f32.gmra.mrb[182].mxu1 %vm984_vm4, %v6605_v1  ;;  %v13238_v24 = vpop.eup %13237  ;;  %v5214_v1 = vand.u32 2147483648, %v16353_v3 }
0x1496   :  { %13247 = vrcp.f32 %v6562_v12  ;;  %v13240_v39 = vpop.eup %13239  ;;  %v6607_v38 = vmul.f32 %v13238_v24, %v16792_v44  ;;  %v5221_v24 = vand.u32 2147483648, %v16351_v28 }
0x1497   :  { %12410 = vmatpush3.bf16.msra.mxu1 %v16726_v16  ;;  %v6606_v27 = vmul.f32 %v13240_v39, %v16795_v4  ;;  %13249 = vrsqrt.f32 %v16343_v47 }
0x1498   :  { %12412 = vmatprep.subr.bf16.mxu1 %v16732_v60  ;;  %13251 = vrsqrt.f32 %v16349_v25 }
0x1499   :  { %11673 = vmatprep.mubr.msk.f32.mxu1 %vm984_vm4, %v6606_v27  ;;  %13253 = vrsqrt.f32 %v16345_v5 }
0x149a   :  { %11674 = vmatmul.mubr.msk.f32.gmra.mrb[184].mxu1 %vm984_vm4, %v6607_v38  ;;  %13255 = vrsqrt.f32 %v16347_v11 }
0x149b   :  { %v13242_v52 = vpop.eup %13241  ;;  %12414 = vmatpush3.bf16.msra.mxu1 %v16732_v60  ;;  %v13681_v60 = vld [vmem:[%s18033_s3] sm:$0xff]  ;;  %13257 = vrsqrt.f32 %v16351_v28 }
0x149c   :  { %v13244_v50 = vpop.eup %13243  ;;  %12416 = vmatprep.subr.bf16.mxu1 %v16738_v51  ;;  %v6609_v16 = vmul.f32 %v13242_v52, %v16802_v46  ;;  %13259 = vrsqrt.f32 %v16353_v3 }
0x149d   :  { %v6608_v32 = vmul.f32 %v13244_v50, %v16805_v18  ;;  %v16866_v18 = vld [vmem:[%s18040_s4 + $0x8] sm:$0xff]  ;;  %13261 = vrsqrt.f32 %v16355_v40 }
0x149e   :  { %13263 = vrsqrt.f32 %v16357_v55 }
0x149f   :  { %v13246_v41 = vpop.eup %13245  ;;  %11676 = vmatprep.mubr.msk.f32.mxu1 %vm984_vm4, %v6608_v32  ;;  %12418 = vmatpush3.bf16.msra.mxu1 %v16738_v51  ;;  %13265 = vrsqrt.f32 %v16359_v42 }
0x14a0   :  { %v13248_v4 = vpop.eup %13247  ;;  %11677 = vmatmul.mubr.msk.f32.gmra.mrb[186].mxu1 %vm984_vm4, %v6609_v16  ;;  %v6611_v33 = vmul.f32 %v13246_v41, %v16815_v53  ;;  %13267 = vrsqrt.f32 %v16361_v43 }
0x14a1   :  { %v6610_v44 = vmul.f32 %v13248_v4, %v16819_v13  ;;  %v13250_v51 = vpop.eup %13249  ;;  %13269 = vrsqrt.f32 %v16365_v62  ;;  %v5235_v4 = vand.u32 2147483648, %v16355_v40 }
0x14a2   :  { %v5189_v46 = vmul.f32 %v13250_v51, %v16343_v47  ;;  %13271 = vrsqrt.f32 %v16363_v30 }
0x14a3   :  { %11679 = vmatprep.mubr.msk.f32.mxu1 %vm984_vm4, %v6610_v44  ;;  %13273 = vrsqrt.f32 %v16367_v45 }
0x14a4   :  { %11680 = vmatmul.mubr.msk.f32.gmra.mrb[188].mxu1 %vm984_vm4, %v6611_v33  ;;  %v5191_v56 = vsel %vm5190_vm9, %v16343_v47, %v5189_v46  ;;  %vm5211_vm9 = vcmp.eq.f32.partialorder %v16353_v3, inf }
0x14a5   :  { %11749 = vmatprep.mubr.f32.mxu1 %v16744_v15  ;;  %v13252_v15 = vpop.eup %13251  ;;  %v5194_v47 = vsel %vm5192_vm11, %v5193_v54, %v5191_v56  ;;  %vm5213_vm11 = vcmp.eq.f32.partialorder %v16353_v3, 0.0 }
0x14a6   :  { %v13254_v53 = vpop.eup %13253  ;;  %v5182_v13 = vmul.f32 %v13252_v15, %v16349_v25  ;;  %v5294_v26 = vadd.f32 1.0, %v5194_v47 }
0x14a7   :  { %v13256_v63 = vpop.eup %13255  ;;  %v5203_v7 = vmul.f32 %v13254_v53, %v16345_v5 }
0x14a8   :  { %11750 = vmatmul.mubr.f32.vlgmr.msra.gmra.mrb[190].mxu1 %v16866_v18  ;;  %v13258_v59 = vpop.eup %13257  ;;  %v5196_v23 = vmul.f32 %v13256_v63, %v16347_v11  ;;  %v5184_v57 = vsel %vm5183_vm10, %v16349_v25, %v5182_v13  ;;  %vm5220_vm10 = vcmp.eq.f32.partialorder %v16351_v28, 0.0  ;;  %13275 = vrcp.f32 %v5294_v26 }
0x14a9   :  { %11814 = vmatprep.mubr.msk.f32.mxu1 %vm195_vm2, %v13681_v60  ;;  %v13260_v21 = vpop.eup %13259  ;;  %v5217_v22 = vmul.f32 %v13258_v59, %v16351_v28  ;;  %v5187_v61 = vsel %vm5185_vm13, %v5186_v49, %v5184_v57  ;;  %v5205_v58 = vsel %vm5204_vm12, %v16345_v5, %v5203_v7  ;;  %vm5232_vm12 = vcmp.eq.f32.partialorder %v16355_v40, inf }
0x14aa   :  { %v5210_v25 = vmul.f32 %v13260_v21, %v16353_v3  ;;  %v5198_v9 = vsel %vm5197_vm14, %v16347_v11, %v5196_v23  ;;  %v13262_v14 = vpop.eup %13261  ;;  %v5293_v5 = vadd.f32 1.0, %v5187_v61  ;;  %v5208_v39 = vsel %vm5206_vm15, %v5207_v35, %v5205_v58 }
0x14ab   :  { %v13264_v12 = vpop.eup %13263  ;;  %v5201_v27 = vsel %vm5199_vm8, %v5200_v34, %v5198_v9  ;;  %v5219_v38 = vsel %vm5218_vm1, %v16351_v28, %v5217_v22  ;;  %v5231_v11 = vmul.f32 %v13262_v14, %v16355_v40  ;;  %v5296_v32 = vadd.f32 1.0, %v5208_v39 }
0x14ac   :  { %v5212_v52 = vsel %vm5211_vm9, %v16353_v3, %v5210_v25  ;;  %v5224_v50 = vmul.f32 %v13264_v12, %v16357_v55  ;;  %vm5225_vm13 = vcmp.eq.f32.partialorder %v16357_v55, inf  ;;  %13277 = vrcp.f32 %v5293_v5  ;;  %v13266_v28 = vpop.eup %13265 }
0x14ad   :  { %v5295_v16 = vadd.f32 1.0, %v5201_v27  ;;  %v5222_v41 = vsel %vm5220_vm10, %v5221_v24, %v5219_v38  ;;  %v5215_v44 = vsel %vm5213_vm11, %v5214_v1, %v5212_v52  ;;  %v13268_v33 = vpop.eup %13267  ;;  %v5228_v60 = vand.u32 2147483648, %v16357_v55 }
0x14ae   :  { %13279 = vrsqrt.f32 %v16369_v19  ;;  %v5233_v3 = vsel %vm5232_vm12, %v16355_v40, %v5231_v11  ;;  %vm5234_vm14 = vcmp.eq.f32.partialorder %v16355_v40, 0.0  ;;  %v5298_v51 = vadd.f32 1.0, %v5222_v41  ;;  %v13270_v54 = vpop.eup %13269 }
0x14af   :  { %13281 = vrcp.f32 %v5296_v32  ;;  %v5226_v15 = vsel %vm5225_vm13, %v16357_v55, %v5224_v50  ;;  %vm5227_vm15 = vcmp.eq.f32.partialorder %v16357_v55, 0.0  ;;  %v5245_v46 = vmul.f32 %v13266_v28, %v16359_v42  ;;  %v13272_v49 = vpop.eup %13271 }
0x14b0   :  { %13283 = vrcp.f32 %v5295_v16  ;;  %v5297_v53 = vadd.f32 1.0, %v5215_v44  ;;  %vm5246_vm1 = vcmp.eq.f32.partialorder %v16359_v42, inf  ;;  %v5238_v13 = vmul.f32 %v13268_v33, %v16361_v43  ;;  %v13274_v56 = vpop.eup %13273 }
0x14b1   :  { %13285 = vrsqrt.f32 %v16371_v48  ;;  %v5236_v63 = vsel %vm5234_vm14, %v5235_v4, %v5233_v3  ;;  %vm5239_vm8 = vcmp.eq.f32.partialorder %v16361_v43, inf  ;;  %v5229_v40 = vsel %vm5227_vm15, %v5228_v60, %v5226_v15 }
0x14b2   :  { %13287 = vrsqrt.f32 %v16373_v17  ;;  %v5249_v55 = vand.u32 2147483648, %v16359_v42  ;;  %v5242_v7 = vand.u32 2147483648, %v16361_v43  ;;  %v5300_v59 = vadd.f32 1.0, %v5236_v63  ;;  %v13276_v57 = vpop.eup %13275 }
0x14b3   :  { %13289 = vrcp.f32 %v5298_v51  ;;  %v5247_v23 = vsel %vm5246_vm1, %v16359_v42, %v5245_v46  ;;  %vm5248_vm9 = vcmp.eq.f32.partialorder %v16359_v42, 0.0  ;;  %v5299_v35 = vadd.f32 1.0, %v5229_v40 }
0x14b4   :  { %13291 = vrcp.f32 %v5297_v53  ;;  %v5240_v34 = vsel %vm5239_vm8, %v16361_v43, %v5238_v13  ;;  %vm5241_vm10 = vcmp.eq.f32.partialorder %v16361_v43, 0.0  ;;  %v5259_v22 = vmul.f32 %v13272_v49, %v16363_v30 }
0x14b5   :  { %vm5260_vm11 = vcmp.eq.f32.partialorder %v16363_v30, inf  ;;  %v5252_v25 = vmul.f32 %v13270_v54, %v16365_v62  ;;  %v5250_v14 = vsel %vm5248_vm9, %v5249_v55, %v5247_v23  ;;  %vm5253_vm12 = vcmp.eq.f32.partialorder %v16365_v62, inf }
0x14b6   :  { %v13278_v47 = vpop.eup %13277  ;;  %13293 = vrcp.f32 %v5300_v59  ;;  %v5243_v42 = vsel %vm5241_vm10, %v5242_v7, %v5240_v34  ;;  %v5263_v43 = vand.u32 2147483648, %v16363_v30  ;;  %v5256_v12 = vand.u32 2147483648, %v16365_v62 }
0x14b7   :  { %v5273_v24 = vmul.f32 %v13274_v56, %v16367_v45  ;;  %13295 = vrcp.f32 %v5299_v35  ;;  %v5302_v11 = vadd.f32 1.0, %v5250_v14  ;;  %v5261_v52 = vsel %vm5260_vm11, %v16363_v30, %v5259_v22 }
0x14b8   :  { %v13280_v1 = vpop.eup %13279  ;;  %vm5262_vm13 = vcmp.eq.f32.partialorder %v16363_v30, 0.0  ;;  %v5301_v16 = vadd.f32 1.0, %v5243_v42  ;;  %v5254_v41 = vsel %vm5253_vm12, %v16365_v62, %v5252_v25  ;;  %vm5255_vm14 = vcmp.eq.f32.partialorder %v16365_v62, 0.0 }
0x14b9   :  { %v13282_v26 = vpop.eup %13281  ;;  %vm5274_vm15 = vcmp.eq.f32.partialorder %v16367_v45, inf  ;;  %v5266_v4 = vmul.f32 %v13280_v1, %v16369_v19  ;;  %vm5267_vm1 = vcmp.eq.f32.partialorder %v16369_v19, inf  ;;  %v5277_v33 = vand.u32 2147483648, %v16367_v45 }
0x14ba   :  { %v13284_v39 = vpop.eup %13283  ;;  %v5270_v60 = vand.u32 2147483648, %v16369_v19  ;;  %vm5288_vm8 = vcmp.eq.f32.partialorder %v16371_v48, inf  ;;  %v5264_v51 = vsel %vm5262_vm13, %v5263_v43, %v5261_v52  ;;  %13297 = vrcp.f32 %v5302_v11 }
0x14bb   :  { %v13286_v50 = vpop.eup %13285  ;;  %v5257_v63 = vsel %vm5255_vm14, %v5256_v12, %v5254_v41  ;;  %13299 = vrcp.f32 %v5301_v16  ;;  %v5275_v40 = vsel %vm5274_vm15, %v16367_v45, %v5273_v24  ;;  %vm5276_vm9 = vcmp.eq.f32.partialorder %v16367_v45, 0.0 }
0x14bc   :  { %v13288_v28 = vpop.eup %13287  ;;  %v5287_v46 = vmul.f32 %v13286_v50, %v16371_v48  ;;  %v5304_v49 = vadd.f32 1.0, %v5264_v51  ;;  %v5268_v55 = vsel %vm5267_vm1, %v16369_v19, %v5266_v4  ;;  %vm5269_vm10 = vcmp.eq.f32.partialorder %v16369_v19, 0.0 }
0x14bd   :  { %v13290_v44 = vpop.eup %13289  ;;  %v5280_v30 = vmul.f32 %v13288_v28, %v16373_v17  ;;  %vm5281_vm11 = vcmp.eq.f32.partialorder %v16373_v17, inf  ;;  %v5303_v62 = vadd.f32 1.0, %v5257_v63  ;;  %v5291_v56 = vand.u32 2147483648, %v16371_v48 }
0x14be   :  { %v13292_v15 = vpop.eup %13291  ;;  %v5278_v59 = vsel %vm5276_vm9, %v5277_v33, %v5275_v40  ;;  %v5284_v45 = vand.u32 2147483648, %v16373_v17  ;;  %vm5290_vm12 = vcmp.eq.f32.partialorder %v16371_v48, 0.0  ;;  %13301 = vrcp.f32 %v5304_v49 }
0x14bf   :  { %v5282_v19 = vsel %vm5281_vm11, %v16373_v17, %v5280_v30  ;;  %vm5283_vm13 = vcmp.eq.f32.partialorder %v16373_v17, 0.0  ;;  %13303 = vrcp.f32 %v5303_v62  ;;  %v5306_v22 = vadd.f32 1.0, %v5278_v59 }
0x14c0   :  { %v13294_v7 = vpop.eup %13293 }
0x14c1   :  { %v13296_v23 = vpop.eup %13295  ;;  %13305 = vrcp.f32 %v5306_v22  ;;  %v18217_v22 = vld [vmem:[#allocation8_spill] sm:$0xff] }
0x14c4   :  { %v13298_v14 = vpop.eup %13297 }
0x14c5   :  { %v13300_v42 = vpop.eup %13299 }
0x14c8   :  { %v13302_v24 = vpop.eup %13301 }
0x1555   :  { %v11660_v21 = vpop.f32.mrb[174].mxu1 }
0x1556   :  { %v6811_v61 = vmul.f32 %v13276_v57, %v11660_v21  ;;  %v6731_v58 = vpop.f32.mrb[175].mxu1  ;;  %v5271_v57 = vsel %vm5269_vm10, %v5270_v60, %v5268_v55  ;;  %v5289_v21 = vsel %vm5288_vm8, %v16371_v48, %v5287_v46 }
0x1557   :  { %v6810_v9 = vmul.f32 %v13278_v47, %v6731_v58  ;;  %v5305_v58 = vadd.f32 1.0, %v5271_v57  ;;  %v5292_v25 = vsel %vm5290_vm12, %v5291_v56, %v5289_v21 }
0x1558   :  { %6833 = vperm.xlu0 %12528, %v6811_v61   ;;  %v5308_v43 = vadd.f32 1.0, %v5292_v25 }
0x1559   :  { %6828 = vperm.xlu1 %12527, %v6810_v9   ;;  %v11663_v5 = vpop.f32.mrb[176].mxu1  ;;  %v5285_v9 = vsel %vm5283_vm13, %v5284_v45, %v5282_v19  ;;  %13307 = vrcp.f32 %v5305_v58 }
0x155a   :  { %v6813_v27 = vmul.f32 %v13282_v26, %v11663_v5  ;;  %v6741_v38 = vpop.f32.mrb[177].mxu1  ;;  %v5307_v17 = vadd.f32 1.0, %v5285_v9  ;;  %13309 = vrcp.f32 %v5308_v43  ;;  %v18221_v43 = vld [vmem:[#allocation29_spill] sm:$0xff] }
0x155b   :  { %v6812_v32 = vmul.f32 %v13284_v39, %v6741_v38  ;;  %v13304_v39 = vpop.eup %13303 }
0x155c   :  { %6843 = vperm.xlu0 %12528, %v6813_v27   ;;  %13311 = vrcp.f32 %v5307_v17  ;;  %v13306_v52 = vpop.eup %13305 }
0x155d   :  { %6838 = vperm.xlu1 %12527, %v6812_v32   ;;  %v11666_v3 = vpop.f32.mrb[178].mxu1 }
0x155e   :  { %v6815_v53 = vmul.f32 %v13290_v44, %v11666_v3  ;;  %v6751_v13 = vpop.f32.mrb[179].mxu1 }
0x155f   :  { %v6814_v54 = vmul.f32 %v13292_v15, %v6751_v13 }
0x1560   :  { %6853 = vperm.xlu0 %12528, %v6815_v53  }
0x1561   :  { %6848 = vperm.xlu1 %12527, %v6814_v54  }
0x1563   :  { %v13308_v32 = vpop.eup %13307 }
0x1564   :  { %v11669_v35 = vpop.f32.mrb[180].mxu1  ;;  %v13310_v4 = vpop.eup %13309 }
0x1565   :  { %v6817_v34 = vmul.f32 %v13294_v7, %v11669_v35  ;;  %v6761_v47 = vpop.f32.mrb[181].mxu1 }
0x1566   :  { %v6816_v61 = vmul.f32 %v13296_v23, %v6761_v47  ;;  %v13312_v33 = vpop.eup %13311 }
0x1567   :  { %6863 = vperm.xlu0 %12528, %v6817_v34  }
0x1568   :  { %6858 = vperm.xlu1 %12527, %v6816_v61   ;;  %v11672_v1 = vpop.f32.mrb[182].mxu1 }
0x1569   :  { %v6819_v48 = vmul.f32 %v13298_v14, %v11672_v1  ;;  %v6771_v26 = vpop.f32.mrb[183].mxu1  ;;  %v18219_v14 = vld [vmem:[#allocation2_spill] sm:$0xff] }
0x156a   :  { %v6818_v12 = vmul.f32 %v13300_v42, %v6771_v26 }
0x156b   :  { %6873 = vperm.xlu0 %12528, %v6819_v48  }
0x156c   :  { %6868 = vperm.xlu1 %12527, %v6818_v12  }
0x156d   :  { %v11675_v5 = vpop.f32.mrb[184].mxu1 }
0x156e   :  { %v6821_v27 = vmul.f32 %v13302_v24, %v11675_v5  ;;  %v6781_v38 = vpop.f32.mrb[185].mxu1  ;;  %v9897_v24 = vld [vmem:[%s18041_s9 + $0x80] sm:$0xff]  ;;  %v9898_v5 = vld [vmem:[%s18041_s9 + $0x88] sm:$0xff] }
0x156f   :  { %v6820_v11 = vmul.f32 %v13304_v39, %v6781_v38  ;;  %v18222_v39 = vld [vmem:[#allocation32_spill] sm:$0xff] }
0x1570   :  { %6883 = vperm.xlu0 %12528, %v6821_v27  }
0x1571   :  { %6878 = vperm.xlu1 %12527, %v6820_v11   ;;  %v12419_v11 = vpack.c.bf16 %v9898_v5, %v9897_v24  ;;  %v13696_v24 = vld [vmem:[%s18032_s2 + $0x68] sm:$0xff]  ;;  %v13697_v5 = vld [vmem:[%s18032_s2 + $0x70] sm:$0xff] }
0x1573   :  { %v11678_v50 = vpop.f32.mrb[186].mxu1 }
0x1574   :  { %v6823_v16 = vmul.f32 %v13306_v52, %v11678_v50  ;;  %v6791_v41 = vpop.f32.mrb[187].mxu1  ;;  %v9899_v52 = vld [vmem:[%s18041_s9 + $0x90] sm:$0xff]  ;;  %v9900_v50 = vld [vmem:[%s18041_s9 + $0x98] sm:$0xff] }
0x1575   :  { %v6822_v28 = vmul.f32 %v13308_v32, %v6791_v41  ;;  %v9901_v41 = vld [vmem:[%s18041_s9 + $0xa0] sm:$0xff] }
0x1576   :  { %6893 = vperm.xlu0 %12528, %v6823_v16   ;;  %v12423_v16 = vpack.c.bf16 %v9900_v50, %v9899_v52 }
0x1577   :  { %6888 = vperm.xlu1 %12527, %v6822_v28   ;;  %v11681_v44 = vpop.f32.mrb[188].mxu1  ;;  %v9902_v28 = vld [vmem:[%s18041_s9 + $0xa8] sm:$0xff] }
0x1578   :  { %v6825_v60 = vmul.f32 %v13310_v4, %v11681_v44  ;;  %v6801_v3 = vpop.f32.mrb[189].mxu1  ;;  %v18223_v4 = vld [vmem:[#allocation7_spill] sm:$0xff] }
0x1579   :  { %v6824_v51 = vmul.f32 %v13312_v33, %v6801_v3  ;;  %v12427_v33 = vpack.c.bf16 %v9902_v28, %v9901_v41  ;;  %v9904_v3 = vld [vmem:[%s18041_s9 + $0xb8] sm:$0xff] }
0x157a   :  { %6903 = vperm.xlu0 %12528, %v6825_v60   ;;  %v9903_v60 = vld [vmem:[%s18041_s9 + $0xb0] sm:$0xff] }
0x157b   :  { %6898 = vperm.xlu1 %12527, %v6824_v51   ;;  %v11751_v15 = vpop.f32.mrb[190].mxu1  ;;  %v12431_v51 = vpack.c.bf16 %v9904_v3, %v9903_v60 }
0x157c   :  { %v7065_v46 = vpop.f32.mrb[191].mxu1 }
0x157e   :  { %7078 = vrot.lane.b32.xlu0 %v11751_v15, %s13734_s24 }
0x157f   :  { %7076 = vrot.lane.b32.xlu1 %v7065_v46, %s13734_s24 }
0x15d7   :  { %v6834_v53 = vpop.permute.xlu0 %6833 }
0x15d8   :  { %v6907_v13 = vmul.f32 %v16060_v31, %v6834_v53  ;;  %v6829_v63 = vpop.permute.xlu1 %6828  ;;  %v9909_v53 = vld [vmem:[%s18042_s10 + $0x40] sm:$0xff] }
0x15d9   :  { %v6906_v54 = vmul.f32 %v6829_v63, %v16064_v10 }
0x15db   :  { %v12355_v40 = vpack.c.bf16 %v6907_v13, %v6906_v54  ;;  %v6844_v30 = vpop.permute.xlu0 %6843  ;;  %v9910_v13 = vld [vmem:[%s18042_s10 + $0x48] sm:$0xff]  ;;  %v9911_v54 = vld [vmem:[%s18042_s10 + $0x50] sm:$0xff] }
0x15dc   :  { %v6909_v49 = vmul.f32 %v16071_v20, %v6844_v30  ;;  %v6839_v55 = vpop.permute.xlu1 %6838  ;;  %v12435_v63 = vpack.c.bf16 %v9910_v13, %v9909_v53 }
0x15dd   :  { %v6908_v62 = vmul.f32 %v6839_v55, %v16076_v0  ;;  %12356 = vmatprep.subr.bf16.mxu0 %v12355_v40  ;;  %v18225_v55 = vld [vmem:[#allocation33_spill] sm:$0xff] }
0x15de   :  { %12358 = vmatpush3.bf16.msra.mxu0 %v12355_v40  ;;  %v9912_v40 = vld [vmem:[%s18042_s10 + $0x58] sm:$0xff] }
0x15df   :  { %v12359_v7 = vpack.c.bf16 %v6909_v49, %v6908_v62  ;;  %v6854_v56 = vpop.permute.xlu0 %6853  ;;  %v12439_v30 = vpack.c.bf16 %v9912_v40, %v9911_v54  ;;  %v13700_v40 = vld [vmem:[%s18033_s3 + $0x10] sm:$0xff] }
0x15e0   :  { %v6911_v59 = vmul.f32 %v16085_v6, %v6854_v56  ;;  %v6849_v23 = vpop.permute.xlu1 %6848  ;;  %v18227_v56 = vld [vmem:[#allocation34_spill] sm:$0xff] }
0x15e1   :  { %v6910_v45 = vmul.f32 %v6849_v23, %v16094_v37  ;;  %12360 = vmatprep.subr.bf16.mxu0 %v12359_v7 }
0x15e2   :  { %12362 = vmatpush3.bf16.msra.mxu0 %v12359_v7 }
0x15e3   :  { %v12363_v31 = vpack.c.bf16 %v6911_v59, %v6910_v45  ;;  %v13682_v45 = vld [vmem:[%s18038_s13 + $0x10] sm:$0x1f] }
0x15e5   :  { %12364 = vmatprep.subr.bf16.mxu0 %v12363_v31 }
0x15e6   :  { %v6864_v10 = vpop.permute.xlu0 %6863  ;;  %12366 = vmatpush3.bf16.msra.mxu0 %v12363_v31  ;;  %v18229_v31 = vld [vmem:[#allocation6_spill] sm:$0xff] }
0x15e7   :  { %v6913_v20 = vmul.f32 %v16102_v2, %v6864_v10  ;;  %v6859_v57 = vpop.permute.xlu1 %6858  ;;  %v18218_v2 = vld [vmem:[#allocation3_spill] sm:$0xff]  ;;  %v7096_v10 = vrot.slane %v13682_v45, %v18229_v31  ;;  %v13702_v31 = vld [vmem:[%s18033_s3 + $0x20] sm:$0xff] }
0x15e8   :  { %v6912_v0 = vmul.f32 %v6859_v57, %v16112_v29 }
0x15ea   :  { %v12367_v21 = vpack.c.bf16 %v6913_v20, %v6912_v0  ;;  %v6874_v35 = vpop.permute.xlu0 %6873 }
0x15eb   :  { %v6915_v19 = vmul.f32 %v16120_v8, %v6874_v35  ;;  %v6869_v34 = vpop.permute.xlu1 %6868  ;;  %v18220_v8 = vld [vmem:[#allocation25_spill] sm:$0xff] }
0x15ec   :  { %v6914_v6 = vmul.f32 %v6869_v34, %v16130_v36  ;;  %12368 = vmatprep.subr.bf16.mxu0 %v12367_v21 }
0x15ed   :  { %12370 = vmatpush3.bf16.msra.mxu0 %v12367_v21 }
0x15ee   :  { %v12371_v37 = vpack.c.bf16 %v6915_v19, %v6914_v6 }
0x15ef   :  { %v6884_v47 = vpop.permute.xlu0 %6883 }
0x15f0   :  { %12372 = vmatprep.subr.bf16.mxu0 %v12371_v37  ;;  %v6917_v61 = vmul.f32 %v18217_v22, %v6884_v47  ;;  %v6879_v58 = vpop.permute.xlu1 %6878 }
0x15f1   :  { %12374 = vmatpush3.bf16.msra.mxu0 %v12371_v37  ;;  %v6916_v25 = vmul.f32 %v6879_v58, %v18218_v2 }
0x15f3   :  { %v12375_v9 = vpack.c.bf16 %v6917_v61, %v6916_v25  ;;  %v13683_v25 = vld [vmem:[%s18032_s2] sm:$0xff] }
0x15f5   :  { %v6894_v29 = vpop.permute.xlu0 %6893  ;;  %12376 = vmatprep.subr.bf16.mxu0 %v12375_v9 }
0x15f6   :  { %v6919_v1 = vmul.f32 %v18219_v14, %v6894_v29  ;;  %v6889_v42 = vpop.permute.xlu1 %6888  ;;  %12378 = vmatpush3.bf16.msra.mxu0 %v12375_v9  ;;  %v13684_v9 = vld [vmem:[%s18032_s2 + $0x8] sm:$0xff]  ;;  %v13685_v29 = vld [vmem:[%s18032_s2 + $0x10] sm:$0xff]  ;;  %v13686_v14 = vld [vmem:[%s18032_s2 + $0x18] sm:$0xff] }
0x15f7   :  { %v6918_v48 = vmul.f32 %v6889_v42, %v18220_v8  ;;  %v13688_v42 = vld [vmem:[%s18032_s2 + $0x28] sm:$0xff]  ;;  %v13689_v8 = vld [vmem:[%s18032_s2 + $0x30] sm:$0xff] }
0x15f9   :  { %v12379_v36 = vpack.c.bf16 %v6919_v1, %v6918_v48  ;;  %v6904_v26 = vpop.permute.xlu0 %6903  ;;  %v13687_v1 = vld [vmem:[%s18032_s2 + $0x20] sm:$0xff]  ;;  %v13690_v48 = vld [vmem:[%s18032_s2 + $0x38] sm:$0xff] }
0x15fa   :  { %v6921_v12 = vmul.f32 %v18221_v43, %v6904_v26  ;;  %v6899_v17 = vpop.permute.xlu1 %6898  ;;  %v13692_v26 = vld [vmem:[%s18032_s2 + $0x48] sm:$0xff]  ;;  %v13693_v43 = vld [vmem:[%s18032_s2 + $0x50] sm:$0xff] }
0x15fb   :  { %v6920_v27 = vmul.f32 %v6899_v17, %v18222_v39  ;;  %12380 = vmatprep.subr.bf16.mxu0 %v12379_v36  ;;  %v13695_v17 = vld [vmem:[%s18032_s2 + $0x60] sm:$0xff]  ;;  %v13698_v39 = vld [vmem:[%s18032_s2 + $0x78] sm:$0xff] }
0x15fc   :  { %12382 = vmatpush3.bf16.msra.mxu0 %v12379_v36  ;;  %v13691_v36 = vld [vmem:[%s18032_s2 + $0x40] sm:$0xff] }
0x15fd   :  { %v12383_v38 = vpack.c.bf16 %v6921_v12, %v6920_v27  ;;  %v7079_v15 = vpop.permute.xlu0 %7078  ;;  %v13694_v12 = vld [vmem:[%s18032_s2 + $0x58] sm:$0xff]  ;;  %v18230_v27 = vld [vmem:[#allocation30_spill] sm:$0xff] }
0x15fe   :  { %v7077_v32 = vpop.permute.xlu1 %7076 }
0x15ff   :  { %12384 = vmatprep.subr.bf16.mxu0 %v12383_v38  ;;  %v7082_v44 = vsel %vm984_vm4, %v18223_v4, %v7077_v32 }
0x1600   :  { %12386 = vmatpush3.bf16.msra.mxu0 %v12383_v38  ;;  %v7283_v38 = vrot.slane %v13682_v45, %v18230_v27  ;;  %v13710_v27 = vld [vmem:[%s18033_s3 + $0x60] sm:$0xff] }
0x1601   :  { %12420 = vmatprep.subr.bf16.mxu0 %v12419_v11 }
0x1603   :  { %11715 = vmatmul.mubr.f32.vlgmr.msra.gmra.mrb[164].mxu0 %v16866_v18  ;;  %v18224_v18 = vld [vmem:[#allocation35_spill] sm:$0xff] }
0x1604   :  { %12422 = vmatpush3.bf16.msra.mxu0 %v12419_v11  ;;  %11768 = vmatprep.mubr.msk.f32.mxu0 %vm1001_vm5, %v7082_v44  ;;  %v7083_v46 = vsel %vm984_vm4, %v18224_v18, %v7079_v15 }
0x1605   :  { %12424 = vmatprep.subr.bf16.mxu0 %v12423_v16 }
0x1608   :  { %12426 = vmatpush3.bf16.msra.mxu0 %v12423_v16 }
0x1609   :  { %12428 = vmatprep.subr.bf16.mxu0 %v12427_v33 }
0x160c   :  { %12430 = vmatpush3.bf16.msra.mxu0 %v12427_v33 }
0x160d   :  { %12432 = vmatprep.subr.bf16.mxu0 %v12431_v51 }
0x1610   :  { %12434 = vmatpush3.bf16.msra.mxu0 %v12431_v51 }
0x1611   :  { %12436 = vmatprep.subr.bf16.mxu0 %v12435_v63 }
0x1613   :  { %11769 = vmatmul.mubr.msk.f32.vlgmr.msra.gmra.mrb[166].mxu0 %vm1001_vm5, %v7083_v46 }
0x1614   :  { %12438 = vmatpush3.bf16.msra.mxu0 %v12435_v63  ;;  %v13699_v63 = vld [vmem:[%s18033_s3 + $0x8] sm:$0xff] }
0x1615   :  { %12440 = vmatprep.subr.bf16.mxu0 %v12439_v30 }
0x1618   :  { %12442 = vmatpush3.bf16.msra.mxu0 %v12439_v30 }
0x16d6   :  { %v11716_v49 = vpop.f32.mrb[164].mxu0 }
0x16d7   :  { %v17045_v62 = vadd.f32 %v11716_v49, %v18225_v55  ;;  %v6988_v7 = vpop.f32.mrb[165].mxu0 }
0x16d8   :  { %v17048_v59 = vadd.f32 %v6988_v7, %v18227_v56  ;;  %v13701_v56 = vld [vmem:[%s18033_s3 + $0x18] sm:$0xff] }
0x16d9   :  { %18226 = vst [vmem:[#allocation31_spill] sm:$0xff] %v17045_v62 }
0x16da   :  { %18228 = vst [vmem:[#allocation4_spill] sm:$0xff] %v17048_v59  ;;  %v12443_v23 = vpack.c.bf16 %v17045_v62, %v17048_v59 }
0x16dc   :  { %12444 = vmatprep.subr.bf16.mxu0 %v12443_v23 }
0x16e6   :  { %v11770_v20 = vpop.f32.mrb[166].mxu0 }
0x16e7   :  { %v7175_v57 = vadd.f32 %v11770_v20, %v7096_v10  ;;  %v7169_v0 = vpop.f32.mrb[167].mxu0 }
0x16e8   :  { %v7170_v21 = vadd.f32 %v7169_v0, %v7096_v10 }
0x16e9   :  { %v9908_v35 = vmul.f32 -1.442695, %v7175_v57 }
0x16ea   :  { %v9907_v19 = vmul.f32 -1.442695, %v7170_v21 }
0x16eb   :  { %13313 = vpow2.f32 %v9908_v35 }
0x16ec   :  { %13315 = vpow2.f32 %v9907_v19 }
0x16f5   :  { %v13314_v34 = vpop.eup %13313 }
0x16f6   :  { %v13316_v6 = vpop.eup %13315  ;;  %v7185_v37 = vadd.f32 1.0, %v13314_v34  ;;  %v13704_v34 = vld [vmem:[%s18033_s3 + $0x30] sm:$0xff] }
0x16f7   :  { %v7184_v47 = vadd.f32 1.0, %v13316_v6 }
0x16f8   :  { %13317 = vrcp.f32 %v7185_v37 }
0x16f9   :  { %13319 = vrcp.f32 %v7184_v47 }
0x1702   :  { %v13318_v22 = vpop.eup %13317 }
0x1703   :  { %v13320_v61 = vpop.eup %13319  ;;  %v7191_v2 = vmul.f32 %v13318_v22, %v7175_v57 }
0x1704   :  { %v7190_v58 = vmul.f32 %v13320_v61, %v7170_v21  ;;  %v13703_v21 = vld [vmem:[%s18033_s3 + $0x28] sm:$0xff]  ;;  %v13705_v61 = vld [vmem:[%s18033_s3 + $0x38] sm:$0xff] }
0x1706   :  { %11779 = vmatprep.mubr.msk.f32.mxu0 %vm984_vm4, %v7190_v58 }
0x1707   :  { %11780 = vmatmul.mubr.msk.f32.vlgmr.msra.gmra.mrb[168].mxu0 %vm984_vm4, %v7191_v2 }
0x1708   :  { %12446 = vmatpush3.bf16.msra.mxu0 %v12443_v23  ;;  %11786 = vmatprep.mubr.msk.f32.mxu0 %vm195_vm2, %v13683_v25  ;;  %v13706_v25 = vld [vmem:[%s18033_s3 + $0x40] sm:$0xff] }
0x170b   :  { %11787 = vmatmul.mubr.msk.f32.vlgmr.msra.gmra.mrb[170].mxu0 %vm195_vm2, %v13684_v9 }
0x170c   :  { %11789 = vmatprep.mubr.msk.f32.mxu0 %vm195_vm2, %v13685_v29 }
0x170f   :  { %11790 = vmatmul.mubr.msk.f32.gmra.mrb[172].mxu0 %vm195_vm2, %v13686_v14 }
0x1710   :  { %11792 = vmatprep.mubr.msk.f32.mxu0 %vm195_vm2, %v13687_v1 }
0x1713   :  { %11793 = vmatmul.mubr.msk.f32.gmra.mrb[174].mxu0 %vm195_vm2, %v13688_v42  ;;  %v13707_v42 = vld [vmem:[%s18033_s3 + $0x48] sm:$0xff] }
0x1714   :  { %11795 = vmatprep.mubr.msk.f32.mxu0 %vm195_vm2, %v13689_v8 }
0x1717   :  { %11796 = vmatmul.mubr.msk.f32.gmra.mrb[176].mxu0 %vm195_vm2, %v13690_v48 }
0x1718   :  { %11798 = vmatprep.mubr.msk.f32.mxu0 %vm195_vm2, %v13691_v36  ;;  %v13708_v36 = vld [vmem:[%s18033_s3 + $0x50] sm:$0xff] }
0x171b   :  { %11799 = vmatmul.mubr.msk.f32.gmra.mrb[178].mxu0 %vm195_vm2, %v13692_v26 }
0x171c   :  { %11801 = vmatprep.mubr.msk.f32.mxu0 %vm195_vm2, %v13693_v43 }
0x171f   :  { %11802 = vmatmul.mubr.msk.f32.gmra.mrb[180].mxu0 %vm195_vm2, %v13694_v12 }
0x1720   :  { %11804 = vmatprep.mubr.msk.f32.mxu0 %vm195_vm2, %v13695_v17 }
0x1723   :  { %11805 = vmatmul.mubr.msk.f32.gmra.mrb[182].mxu0 %vm195_vm2, %v13696_v24  ;;  %v13709_v24 = vld [vmem:[%s18033_s3 + $0x58] sm:$0xff] }
0x1724   :  { %11807 = vmatprep.mubr.msk.f32.mxu0 %vm195_vm2, %v13697_v5 }
0x1727   :  { %11808 = vmatmul.mubr.msk.f32.gmra.mrb[184].mxu0 %vm195_vm2, %v13698_v39 }
0x17da   :  { %v11781_v11 = vpop.f32.mrb[168].mxu0 }
0x17db   :  { %v7279_v52 = vadd.f32 %v11781_v11, %v18224_v18  ;;  %v7269_v50 = vpop.f32.mrb[169].mxu0 }
0x17dc   :  { %v7278_v32 = vadd.f32 %v7269_v50, %v18223_v4 }
0x17dd   :  { %v7285_v16 = vadd.f32 %v7283_v38, %v7279_v52 }
0x17de   :  { %v7284_v41 = vadd.f32 %v7283_v38, %v7278_v32  ;;  %v17125_v28 = vpop.f32.mrb[170].mxu0  ;;  %v13711_v32 = vld [vmem:[%s18033_s3 + $0x68] sm:$0xff] }
0x17df   :  { %v7434_v44 = vmul.f32 %v17125_v28, %v17125_v28  ;;  %v17129_v33 = vpop.f32.mrb[171].mxu0 }
0x17e0   :  { %v12447_v60 = vpack.c.bf16 %v7285_v16, %v7284_v41  ;;  %v7433_v3 = vmul.f32 %v17129_v33, %v17129_v33  ;;  %v13712_v41 = vld [vmem:[%s18033_s3 + $0x70] sm:$0xff] }
0x17e1   :  { %v7452_v51 = vsel %vm405_vm3, %v7434_v44, 0.0 }
0x17e2   :  { %12448 = vmatprep.subr.bf16.mxu1 %v12447_v60  ;;  %7453 = vadd.xlane.f32.xlu0 %v7452_v51  ;;  %v17134_v15 = vpop.f32.mrb[172].mxu0  ;;  %v7449_v4 = vsel %vm405_vm3, %v7433_v3, 0.0  ;;  %v13714_v3 = vld [vmem:[%s18033_s3 + $0x80] sm:$0xff]  ;;  %v13715_v51 = vld [vmem:[%s18033_s3 + $0x88] sm:$0xff] }
0x17e3   :  { %12450 = vmatpush3.bf16.msra.mxu1 %v12447_v60  ;;  %v7436_v18 = vmul.f32 %v17134_v15, %v17134_v15  ;;  %7450 = vadd.xlane.f32.xlu1 %v7449_v4  ;;  %v17139_v46 = vpop.f32.mrb[173].mxu0  ;;  %v13713_v60 = vld [vmem:[%s18033_s3 + $0x78] sm:$0xff]  ;;  %v13716_v4 = vld [vmem:[%s18033_s3 + $0x90] sm:$0xff] }
0x17e4   :  { %v7435_v53 = vmul.f32 %v17139_v46, %v17139_v46 }
0x17e5   :  { %v7458_v13 = vsel %vm405_vm3, %v7436_v18, 0.0  ;;  %v13717_v18 = vld [vmem:[%s18033_s3 + $0x98] sm:$0xff] }
0x17e6   :  { %11815 = vmatmul.mubr.msk.f32.vlgmr.msra.gmra.mrb[192].mxu1 %vm195_vm2, %v13699_v63  ;;  %7459 = vadd.xlane.f32.xlu0 %v7458_v13  ;;  %v17148_v54 = vpop.f32.mrb[174].mxu0  ;;  %v7455_v49 = vsel %vm405_vm3, %v7435_v53, 0.0  ;;  %v13718_v53 = vld [vmem:[%s18033_s3 + $0xa0] sm:$0xff]  ;;  %v13719_v13 = vld [vmem:[%s18033_s3 + $0xa8] sm:$0xff]  ;;  %v13720_v63 = vld [vmem:[%s18033_s3 + $0xb0] sm:$0xff] }
0x17e7   :  { %11817 = vmatprep.mubr.msk.f32.mxu1 %vm195_vm2, %v13700_v40  ;;  %v7438_v30 = vmul.f32 %v17148_v54, %v17148_v54  ;;  %v17157_v55 = vpop.f32.mrb[175].mxu0  ;;  %v13721_v40 = vld [vmem:[%s18033_s3 + $0xb8] sm:$0xff] }
0x17e8   :  { %v7437_v7 = vmul.f32 %v17157_v55, %v17157_v55 }
0x17e9   :  { %v7464_v20 = vsel %vm405_vm3, %v7438_v30, 0.0  ;;  %v13722_v30 = vld [vmem:[%s18033_s3 + $0xc0] sm:$0xff] }
0x17ea   :  { %11818 = vmatmul.mubr.msk.f32.gmra.mrb[194].mxu1 %vm195_vm2, %v13701_v56  ;;  %7456 = vadd.xlane.f32.xlu0 %v7455_v49  ;;  %v17165_v23 = vpop.f32.mrb[176].mxu0  ;;  %v7461_v45 = vsel %vm405_vm3, %v7437_v7, 0.0  ;;  %v13723_v49 = vld [vmem:[%s18033_s3 + $0xc8] sm:$0xff]  ;;  %v13724_v7 = vld [vmem:[%s18033_s3 + $0xd0] sm:$0xff]  ;;  %v13725_v56 = vld [vmem:[%s18033_s3 + $0xd8] sm:$0xff] }
0x17eb   :  { %11820 = vmatprep.mubr.msk.f32.mxu1 %vm195_vm2, %v13702_v31  ;;  %v7440_v10 = vmul.f32 %v17165_v23, %v17165_v23  ;;  %7462 = vadd.xlane.f32.xlu1 %v7461_v45  ;;  %v17175_v57 = vpop.f32.mrb[177].mxu0  ;;  %v13726_v45 = vld [vmem:[%s18033_s3 + $0xe0] sm:$0xff]  ;;  %v13727_v31 = vld [vmem:[%s18033_s3 + $0xe8] sm:$0xff] }
0x17ec   :  { %v7439_v0 = vmul.f32 %v17175_v57, %v17175_v57 }
0x17ed   :  { %v7470_v37 = vsel %vm405_vm3, %v7440_v10, 0.0  ;;  %v13728_v10 = vld [vmem:[%s18033_s3 + $0xf0] sm:$0xff] }
0x17ee   :  { %11821 = vmatmul.mubr.msk.f32.gmra.mrb[196].mxu1 %vm195_vm2, %v13703_v21  ;;  %7465 = vadd.xlane.f32.xlu0 %v7464_v20  ;;  %v17183_v35 = vpop.f32.mrb[178].mxu0  ;;  %v7467_v19 = vsel %vm405_vm3, %v7439_v0, 0.0  ;;  %v13729_v20 = vld [vmem:[%s18033_s3 + $0xf8] sm:$0xff]  ;;  %v9965_v21 = vld [vmem:[%s18035_s7 + $0xe0] sm:$0xff] }
0x17ef   :  { %11823 = vmatprep.mubr.msk.f32.mxu1 %vm195_vm2, %v13704_v34  ;;  %v7442_v6 = vmul.f32 %v17183_v35, %v17183_v35  ;;  %7468 = vadd.xlane.f32.xlu1 %v7467_v19  ;;  %v17193_v47 = vpop.f32.mrb[179].mxu0  ;;  %v9964_v0 = vld [vmem:[%s18035_s7 + $0xd8] sm:$0xff]  ;;  %v9966_v19 = vld [vmem:[%s18035_s7 + $0xe8] sm:$0xff]  ;;  %v9967_v34 = vld [vmem:[%s18035_s7 + $0xf0] sm:$0xff] }
0x17f0   :  { %v7441_v22 = vmul.f32 %v17193_v47, %v17193_v47 }
0x17f1   :  { %v7476_v29 = vsel %vm405_vm3, %v7442_v6, 0.0  ;;  %v12451_v6 = vpack.c.bf16 %v9965_v21, %v9964_v0 }
0x17f2   :  { %11824 = vmatmul.mubr.msk.f32.gmra.mrb[198].mxu1 %vm195_vm2, %v13705_v61  ;;  %7471 = vadd.xlane.f32.xlu0 %v7470_v37  ;;  %v17201_v58 = vpop.f32.mrb[180].mxu0  ;;  %v7473_v2 = vsel %vm405_vm3, %v7441_v22, 0.0  ;;  %v12455_v37 = vpack.c.bf16 %v9967_v34, %v9966_v19  ;;  %v9968_v22 = vld [vmem:[%s18035_s7 + $0xf8] sm:$0xff]  ;;  %v9969_v61 = vld [vmem:[%s18035_s7 + $0x100] sm:$0xff] }
0x17f3   :  { %11826 = vmatprep.mubr.msk.f32.mxu1 %vm195_vm2, %v13706_v25  ;;  %v7444_v9 = vmul.f32 %v17201_v58, %v17201_v58  ;;  %7474 = vadd.xlane.f32.xlu1 %v7473_v2  ;;  %v17211_v14 = vpop.f32.mrb[181].mxu0  ;;  %v12459_v2 = vpack.c.bf16 %v9969_v61, %v9968_v22  ;;  %v9970_v25 = vld [vmem:[%s18035_s7 + $0x108] sm:$0xff] }
0x17f4   :  { %v7443_v1 = vmul.f32 %v17211_v14, %v17211_v14  ;;  %12452 = vmatprep.subr.bf16.mxu0 %v12451_v6 }
0x17f5   :  { %v7482_v43 = vsel %vm405_vm3, %v7444_v9, 0.0  ;;  %12454 = vmatpush3.bf16.msra.mxu0 %v12451_v6  ;;  %v9971_v9 = vld [vmem:[%s18035_s7 + $0x110] sm:$0xff] }
0x17f6   :  { %11827 = vmatmul.mubr.msk.f32.gmra.mrb[200].mxu1 %vm195_vm2, %v13707_v42  ;;  %7477 = vadd.xlane.f32.xlu0 %v7476_v29  ;;  %v17219_v8 = vpop.f32.mrb[182].mxu0  ;;  %v7479_v48 = vsel %vm405_vm3, %v7443_v1, 0.0  ;;  %v12463_v29 = vpack.c.bf16 %v9971_v9, %v9970_v25 }
0x17f7   :  { %11829 = vmatprep.mubr.msk.f32.mxu1 %vm195_vm2, %v13708_v36  ;;  %v7446_v26 = vmul.f32 %v17219_v8, %v17219_v8  ;;  %7480 = vadd.xlane.f32.xlu1 %v7479_v48  ;;  %v17229_v12 = vpop.f32.mrb[183].mxu0 }
0x17f8   :  { %v7445_v17 = vmul.f32 %v17229_v12, %v17229_v12  ;;  %12456 = vmatprep.subr.bf16.mxu0 %v12455_v37 }
0x17f9   :  { %v7488_v11 = vsel %vm405_vm3, %v7446_v26, 0.0  ;;  %12458 = vmatpush3.bf16.msra.mxu0 %v12455_v37 }
0x17fa   :  { %11830 = vmatmul.mubr.msk.f32.gmra.mrb[202].mxu1 %vm195_vm2, %v13709_v24  ;;  %7483 = vadd.xlane.f32.xlu0 %v7482_v43  ;;  %v17237_v5 = vpop.f32.mrb[184].mxu0  ;;  %v7485_v39 = vsel %vm405_vm3, %v7445_v17, 0.0 }
0x17fb   :  { %11832 = vmatprep.mubr.msk.f32.mxu1 %vm195_vm2, %v13710_v27  ;;  %v7448_v38 = vmul.f32 %v17237_v5, %v17237_v5  ;;  %7486 = vadd.xlane.f32.xlu1 %v7485_v39  ;;  %v17247_v52 = vpop.f32.mrb[185].mxu0 }
0x17fc   :  { %v7447_v50 = vmul.f32 %v17247_v52, %v17247_v52  ;;  %12460 = vmatprep.subr.bf16.mxu0 %v12459_v2 }
0x17fd   :  { %v7494_v44 = vsel %vm405_vm3, %v7448_v38, 0.0  ;;  %12462 = vmatpush3.bf16.msra.mxu0 %v12459_v2 }
0x17fe   :  { %11833 = vmatmul.mubr.msk.f32.gmra.mrb[204].mxu1 %vm195_vm2, %v13711_v32  ;;  %7489 = vadd.xlane.f32.xlu0 %v7488_v11  ;;  %v7491_v16 = vsel %vm405_vm3, %v7447_v50, 0.0  ;;  %v9972_v50 = vld [vmem:[%s18035_s7 + $0x118] sm:$0x3] }
0x17ff   :  { %11835 = vmatprep.mubr.msk.f32.mxu1 %vm195_vm2, %v13712_v41  ;;  %7492 = vadd.xlane.f32.xlu1 %v7491_v16 }
0x1800   :  { %12464 = vmatprep.subr.bf16.mxu0 %v12463_v29 }
0x1801   :  { %12466 = vmatpush3.bf16.msra.mxu0 %v12463_v29 }
0x1802   :  { %11836 = vmatmul.mubr.msk.f32.gmra.mrb[206].mxu1 %vm195_vm2, %v13713_v60  ;;  %7495 = vadd.xlane.f32.xlu0 %v7494_v44 }
0x1803   :  { %11838 = vmatprep.mubr.msk.f32.mxu1 %vm195_vm2, %v13714_v3  ;;  %11878 = vmatprep.subr.msk.mxu0 %vm116_vm0, %v9972_v50 }
0x1805   :  { %11879 = vmatpush3.msk.msra.mxu0 %vm116_vm0, %v9972_v50 }
0x1806   :  { %11839 = vmatmul.mubr.msk.f32.gmra.mrb[208].mxu1 %vm195_vm2, %v13715_v51 }
0x1807   :  { %11841 = vmatprep.mubr.msk.f32.mxu1 %vm195_vm2, %v13716_v4 }
0x180a   :  { %11842 = vmatmul.mubr.msk.f32.gmra.mrb[210].mxu1 %vm195_vm2, %v13717_v18 }
0x180b   :  { %11844 = vmatprep.mubr.msk.f32.mxu1 %vm195_vm2, %v13718_v53 }
0x180e   :  { %11845 = vmatmul.mubr.msk.f32.gmra.mrb[212].mxu1 %vm195_vm2, %v13719_v13 }
0x180f   :  { %11847 = vmatprep.mubr.msk.f32.mxu1 %vm195_vm2, %v13720_v63 }
0x1812   :  { %11848 = vmatmul.mubr.msk.f32.gmra.mrb[214].mxu1 %vm195_vm2, %v13721_v40 }
0x1813   :  { %11850 = vmatprep.mubr.msk.f32.mxu1 %vm195_vm2, %v13722_v30 }
0x1816   :  { %11851 = vmatmul.mubr.msk.f32.gmra.mrb[216].mxu1 %vm195_vm2, %v13723_v49 }
0x1817   :  { %11853 = vmatprep.mubr.msk.f32.mxu1 %vm195_vm2, %v13724_v7 }
0x181a   :  { %11854 = vmatmul.mubr.msk.f32.gmra.mrb[218].mxu1 %vm195_vm2, %v13725_v56 }
0x181b   :  { %11856 = vmatprep.mubr.msk.f32.mxu1 %vm195_vm2, %v13726_v45 }
0x181e   :  { %11857 = vmatmul.mubr.msk.f32.gmra.mrb[220].mxu1 %vm195_vm2, %v13727_v31 }
0x181f   :  { %11859 = vmatprep.mubr.msk.f32.mxu1 %vm195_vm2, %v13728_v10 }
0x1822   :  { %11860 = vmatmul.mubr.msk.f32.gmra.mrb[222].mxu1 %vm195_vm2, %v13729_v20 }
0x186f   :  { %v17406_v20 = vpop.xlane.xlu0 %7453 }
0x1870   :  { %v17412_v19 = vpop.xlane.xlu1 %7450  ;;  %vm7506_vm0 = vcmp.eq.f32.partialorder %v17406_v20, inf }
0x1871   :  { %vm7499_vm2 = vcmp.eq.f32.partialorder %v17412_v19, inf }
0x1873   :  { %v17408_v0 = vpop.xlane.xlu0 %7459 }
0x1874   :  { %vm7522_vm14 = vcmp.eq.f32.partialorder %v17408_v0, 0.0 }
0x1877   :  { %v17410_v21 = vpop.xlane.xlu0 %7456 }
0x1878   :  { %v17416_v6 = vpop.xlane.xlu1 %7462  ;;  %vm7515_vm1 = vcmp.eq.f32.partialorder %v17410_v21, 0.0 }
0x1879   :  { %vm7527_vm8 = vcmp.eq.f32.partialorder %v17416_v6, inf  ;;  %vm7529_vm10 = vcmp.eq.f32.partialorder %v17416_v6, 0.0 }
0x187b   :  { %v17414_v34 = vpop.xlane.xlu0 %7465 }
0x187c   :  { %v17420_v22 = vpop.xlane.xlu1 %7468  ;;  %vm7534_vm15 = vcmp.eq.f32.partialorder %v17414_v34, inf  ;;  %vm7536_vm9 = vcmp.eq.f32.partialorder %v17414_v34, 0.0 }
0x187d   :  { %vm7541_vm12 = vcmp.eq.f32.partialorder %v17420_v22, inf }
0x187f   :  { %v17418_v37 = vpop.xlane.xlu0 %7471 }
0x1880   :  { %v17424_v2 = vpop.xlane.xlu1 %7474  ;;  %vm7548_vm11 = vcmp.eq.f32.partialorder %v17418_v37, inf  ;;  %vm7550_vm13 = vcmp.eq.f32.partialorder %v17418_v37, 0.0 }
0x1883   :  { %v17422_v61 = vpop.xlane.xlu0 %7477 }
0x1884   :  { %v17428_v9 = vpop.xlane.xlu1 %7480 }
0x1887   :  { %v17426_v25 = vpop.xlane.xlu0 %7483 }
0x1888   :  { %v17432_v50 = vpop.xlane.xlu1 %7486 }
0x188b   :  { %v17430_v29 = vpop.xlane.xlu0 %7489 }
0x18b9   :  { %v17353_v1 = vpop.f32.mrb[192].mxu1 }
0x18ba   :  { %v17355_v42 = vpop.f32.mrb[193].mxu1 }
0x18bd   :  { %v17357_v48 = vpop.f32.mrb[194].mxu1 }
0x18be   :  { %v17359_v36 = vpop.f32.mrb[195].mxu1 }
0x18c1   :  { %v17361_v26 = vpop.f32.mrb[196].mxu1 }
0x18c2   :  { %v17363_v43 = vpop.f32.mrb[197].mxu1 }
0x18c5   :  { %v17365_v17 = vpop.f32.mrb[198].mxu1 }
0x18c6   :  { %v17367_v24 = vpop.f32.mrb[199].mxu1 }
0x18c9   :  { %v17369_v39 = vpop.f32.mrb[200].mxu1 }
0x18ca   :  { %v17371_v27 = vpop.f32.mrb[201].mxu1 }
0x18cd   :  { %v17373_v38 = vpop.f32.mrb[202].mxu1 }
0x18ce   :  { %v17375_v11 = vpop.f32.mrb[203].mxu1 }
0x18d1   :  { %v17381_v32 = vpop.f32.mrb[204].mxu1 }
0x18d2   :  { %v17384_v16 = vpop.f32.mrb[205].mxu1 }
0x18d5   :  { %v17386_v41 = vpop.f32.mrb[206].mxu1 }
0x18d6   :  { %v17388_v44 = vpop.f32.mrb[207].mxu1 }
0x18d9   :  { %v11840_v60 = vpop.f32.mrb[208].mxu1 }
0x18da   :  { %7884 = vrot.lane.b32.xlu0 %v11840_v60, %s13734_s24  ;;  %v7787_v3 = vpop.f32.mrb[209].mxu1  ;;  %v17434_v60 = vpop.xlane.xlu0 %7495 }
0x18db   :  { %7882 = vrot.lane.b32.xlu1 %v7787_v3, %s13734_s24  ;;  %v17436_v3 = vpop.xlane.xlu1 %7492 }
0x18dd   :  { %v11843_v51 = vpop.f32.mrb[210].mxu1 }
0x18de   :  { %7888 = vrot.lane.b32.xlu0 %v11843_v51, %s13734_s24  ;;  %v7797_v4 = vpop.f32.mrb[211].mxu1 }
0x18df   :  { %7886 = vrot.lane.b32.xlu1 %v7797_v4, %s13734_s24 }
0x18e1   :  { %v11846_v18 = vpop.f32.mrb[212].mxu1 }
0x18e2   :  { %7892 = vrot.lane.b32.xlu0 %v11846_v18, %s13734_s24  ;;  %v7807_v53 = vpop.f32.mrb[213].mxu1 }
0x18e3   :  { %7890 = vrot.lane.b32.xlu1 %v7807_v53, %s13734_s24 }
0x18e5   :  { %v11849_v13 = vpop.f32.mrb[214].mxu1 }
0x18e6   :  { %7896 = vrot.lane.b32.xlu0 %v11849_v13, %s13734_s24  ;;  %v7817_v63 = vpop.f32.mrb[215].mxu1 }
0x18e7   :  { %7894 = vrot.lane.b32.xlu1 %v7817_v63, %s13734_s24 }
0x18e9   :  { %v11852_v40 = vpop.f32.mrb[216].mxu1 }
0x18ea   :  { %7900 = vrot.lane.b32.xlu0 %v11852_v40, %s13734_s24  ;;  %v7827_v30 = vpop.f32.mrb[217].mxu1 }
0x18eb   :  { %7898 = vrot.lane.b32.xlu1 %v7827_v30, %s13734_s24  ;;  %v18231_v30 = vld [vmem:[#allocation12_spill] sm:$0xff] }
0x18ed   :  { %v11855_v49 = vpop.f32.mrb[218].mxu1 }
0x18ee   :  { %v7837_v7 = vpop.f32.mrb[219].mxu1 }
0x18ef   :  { %7904 = vrot.lane.b32.xlu1 %v11855_v49, %s13734_s24 }
0x18f1   :  { %v11858_v56 = vpop.f32.mrb[220].mxu1 }
0x18f2   :  { %7908 = vrot.lane.b32.xlu0 %v11858_v56, %s13734_s24  ;;  %v7847_v45 = vpop.f32.mrb[221].mxu1 }
0x18f3   :  { %7902 = vrot.lane.b32.xlu1 %v7837_v7, %s13734_s24  ;;  %v18232_v7 = vld [vmem:[#allocation10_spill] sm:$0xff] }
0x18f5   :  { %v11861_v31 = vpop.f32.mrb[222].mxu1 }
0x18f6   :  { %7912 = vrot.lane.b32.xlu0 %v11861_v31, %s13734_s24  ;;  %v7857_v10 = vpop.f32.mrb[223].mxu1 }
0x18f7   :  { %7906 = vrot.lane.b32.xlu1 %v7847_v45, %s13734_s24 }
0x18fb   :  { %7910 = vrot.lane.b32.xlu1 %v7857_v10, %s13734_s24 }
0x194c   :  { %v7885_v51 = vpop.permute.xlu0 %7884 }
0x194d   :  { %v7931_v4 = vsel %vm984_vm4, %v17353_v1, %v7885_v51  ;;  %v7883_v18 = vpop.permute.xlu1 %7882 }
0x194e   :  { %v7947_v53 = vsel %vm1001_vm5, %v7931_v4, %v17406_v20  ;;  %v7930_v13 = vsel %vm984_vm4, %v17355_v42, %v7883_v18  ;;  %v18233_v4 = vld [vmem:[#allocation11_spill] sm:$0xff] }
0x194f   :  { %v7946_v63 = vsel %vm1001_vm5, %v7930_v13, %v17412_v19  ;;  %v7963_v56 = vsel %vm1018_vm6, %v7947_v53, %v18232_v7  ;;  %v18234_v13 = vld [vmem:[#allocation9_spill] sm:$0xff]  ;;  %v18235_v7 = vld [vmem:[#allocation14_spill] sm:$0xff] }
0x1950   :  { %v7889_v40 = vpop.permute.xlu0 %7888  ;;  %v7962_v49 = vsel %vm1018_vm6, %v7946_v63, %v18231_v30 }
0x1951   :  { %v7933_v1 = vsel %vm984_vm4, %v17357_v48, %v7889_v40  ;;  %11880 = vmatprep.mubr.msk.f32.mxu0 %vm1048_vm7, %v7962_v49  ;;  %v7887_v45 = vpop.permute.xlu1 %7886 }
0x1952   :  { %v7949_v31 = vsel %vm1001_vm5, %v7933_v1, %v17408_v0  ;;  %v7932_v42 = vsel %vm984_vm4, %v17359_v36, %v7887_v45  ;;  %11881 = vmatmul.mubr.msk.f32.vlgmr.msra.gmra.mrb[186].mxu0 %vm1048_vm7, %v7963_v56  ;;  %v18236_v45 = vld [vmem:[#allocation13_spill] sm:$0xff] }
0x1953   :  { %v7948_v10 = vsel %vm1001_vm5, %v7932_v42, %v17410_v21  ;;  %v7965_v63 = vsel %vm1018_vm6, %v7949_v31, %v18234_v13 }
0x1954   :  { %v7893_v51 = vpop.permute.xlu0 %7892  ;;  %v7964_v18 = vsel %vm1018_vm6, %v7948_v10, %v18233_v4  ;;  %v18237_v4 = vld [vmem:[#allocation16_spill] sm:$0xff] }
0x1955   :  { %v7935_v48 = vsel %vm984_vm4, %v17361_v26, %v7893_v51  ;;  %11883 = vmatprep.mubr.msk.f32.mxu0 %vm1048_vm7, %v7964_v18  ;;  %v7891_v53 = vpop.permute.xlu1 %7890 }
0x1956   :  { %v7951_v36 = vsel %vm1001_vm5, %v7935_v48, %v17414_v34  ;;  %v7934_v40 = vsel %vm984_vm4, %v17363_v43, %v7891_v53  ;;  %11884 = vmatmul.mubr.msk.f32.gmra.mrb[188].mxu0 %vm1048_vm7, %v7965_v63  ;;  %v18238_v53 = vld [vmem:[#allocation15_spill] sm:$0xff] }
0x1957   :  { %v7950_v30 = vsel %vm1001_vm5, %v7934_v40, %v17416_v6  ;;  %v7967_v31 = vsel %vm1018_vm6, %v7951_v36, %v18236_v45  ;;  %v18239_v40 = vld [vmem:[#allocation17_spill] sm:$0xff] }
0x1958   :  { %v7897_v49 = vpop.permute.xlu0 %7896  ;;  %v7966_v26 = vsel %vm1018_vm6, %v7950_v30, %v18235_v7 }
0x1959   :  { %v7937_v56 = vsel %vm984_vm4, %v17365_v17, %v7897_v49  ;;  %11886 = vmatprep.mubr.msk.f32.mxu0 %vm1048_vm7, %v7966_v26  ;;  %v7895_v1 = vpop.permute.xlu1 %7894  ;;  %v18240_v49 = vld [vmem:[#allocation18_spill] sm:$0xff] }
0x195a   :  { %v7953_v43 = vsel %vm1001_vm5, %v7937_v56, %v17418_v37  ;;  %v7936_v42 = vsel %vm984_vm4, %v17367_v24, %v7895_v1  ;;  %11887 = vmatmul.mubr.msk.f32.gmra.mrb[190].mxu0 %vm1048_vm7, %v7967_v31 }
0x195b   :  { %v7952_v10 = vsel %vm1001_vm5, %v7936_v42, %v17420_v22  ;;  %v7969_v13 = vsel %vm1018_vm6, %v7953_v43, %v18238_v53  ;;  %v18243_v53 = vld [vmem:[#allocation21_spill] sm:$0xff] }
0x195c   :  { %v7901_v51 = vpop.permute.xlu0 %7900  ;;  %v7968_v17 = vsel %vm1018_vm6, %v7952_v10, %v18237_v4  ;;  %v18241_v10 = vld [vmem:[#allocation19_spill] sm:$0xff]  ;;  %v18242_v4 = vld [vmem:[#allocation20_spill] sm:$0xff] }
0x195d   :  { %v7939_v18 = vsel %vm984_vm4, %v17369_v39, %v7901_v51  ;;  %11889 = vmatprep.mubr.msk.f32.mxu0 %vm1048_vm7, %v7968_v17  ;;  %v7899_v48 = vpop.permute.xlu1 %7898 }
0x195e   :  { %v7955_v24 = vsel %vm1001_vm5, %v7939_v18, %v17422_v61  ;;  %v7938_v63 = vsel %vm984_vm4, %v17371_v27, %v7899_v48  ;;  %11890 = vmatmul.mubr.msk.f32.gmra.mrb[192].mxu0 %vm1048_vm7, %v7969_v13 }
0x195f   :  { %v7954_v36 = vsel %vm1001_vm5, %v7938_v63, %v17424_v2  ;;  %v7971_v7 = vsel %vm1018_vm6, %v7955_v24, %v18240_v49  ;;  %v18244_v63 = vld [vmem:[#allocation22_spill] sm:$0xff]  ;;  %v18246_v49 = vld [vmem:[#allocation24_spill] sm:$0xff] }
0x1960   :  { %v7970_v39 = vsel %vm1018_vm6, %v7954_v36, %v18239_v40 }
0x1961   :  { %11892 = vmatprep.mubr.msk.f32.mxu0 %vm1048_vm7, %v7970_v39  ;;  %v7905_v30 = vpop.permute.xlu1 %7904  ;;  %v18245_v39 = vld [vmem:[#allocation23_spill] sm:$0xff] }
0x1962   :  { %11893 = vmatmul.mubr.msk.f32.gmra.mrb[194].mxu0 %vm1048_vm7, %v7971_v7  ;;  %v7941_v26 = vsel %vm984_vm4, %v17373_v38, %v7905_v30 }
0x1963   :  { %v7957_v1 = vsel %vm1001_vm5, %v7941_v26, %v17426_v25  ;;  %v10006_v26 = vld [vmem:[%s18036_s8 + $0x60] sm:$0xff] }
0x1964   :  { %v7909_v27 = vpop.permute.xlu0 %7908  ;;  %v7973_v17 = vsel %vm1018_vm6, %v7957_v1, %v18242_v4  ;;  %v10009_v1 = vld [vmem:[%s18036_s8 + $0x78] sm:$0xff] }
0x1965   :  { %v7903_v56 = vpop.permute.xlu1 %7902  ;;  %v7943_v31 = vsel %vm984_vm4, %v17381_v32, %v7909_v27 }
0x1966   :  { %v7940_v45 = vsel %vm984_vm4, %v17375_v11, %v7903_v56  ;;  %v7959_v18 = vsel %vm1001_vm5, %v7943_v31, %v17430_v29  ;;  %v10008_v56 = vld [vmem:[%s18036_s8 + $0x70] sm:$0xff]  ;;  %v10042_v31 = vld [vmem:[%s18037_s11 + $0x60] sm:$0xff] }
0x1967   :  { %v7956_v43 = vsel %vm1001_vm5, %v7940_v45, %v17428_v9  ;;  %v7975_v36 = vsel %vm1018_vm6, %v7959_v18, %v18244_v63  ;;  %v12471_v45 = vpack.c.bf16 %v10009_v1, %v10008_v56 }
0x1968   :  { %v7913_v42 = vpop.permute.xlu0 %7912  ;;  %v7972_v51 = vsel %vm1018_vm6, %v7956_v43, %v18241_v10  ;;  %v10043_v43 = vld [vmem:[%s18037_s11 + $0x68] sm:$0xff]  ;;  %v17571_v10 = vld [vmem:[%s18038_s13 + $0x18] sm:$0x1f] }
0x1969   :  { %11895 = vmatprep.mubr.msk.f32.mxu0 %vm1048_vm7, %v7972_v51  ;;  %v7907_v38 = vpop.permute.xlu1 %7906  ;;  %v7945_v32 = vsel %vm984_vm4, %v17386_v41, %v7913_v42  ;;  %v12475_v42 = vpack.c.bf16 %v10043_v43, %v10042_v31  ;;  %v18247_v51 = vld [vmem:[#allocation26_spill] sm:$0xff] }
0x196a   :  { %v7942_v11 = vsel %vm984_vm4, %v17384_v16, %v7907_v38  ;;  %11896 = vmatmul.mubr.msk.f32.gmra.mrb[196].mxu0 %vm1048_vm7, %v7973_v17  ;;  %v7961_v16 = vsel %vm1001_vm5, %v7945_v32, %v17434_v60  ;;  %v17575_v38 = vrot.slane %v17571_v10, %v18247_v51 }
0x196b   :  { %v7958_v48 = vsel %vm1001_vm5, %v7942_v11, %v17432_v50  ;;  %v7977_v7 = vsel %vm1018_vm6, %v7961_v16, %v18246_v49  ;;  %12476 = vmatprep.subr.bf16.mxu1 %v12475_v42 }
0x196c   :  { %v7974_v13 = vsel %vm1018_vm6, %v7958_v48, %v18243_v53  ;;  %12478 = vmatpush3.bf16.msra.mxu1 %v12475_v42 }
0x196d   :  { %11898 = vmatprep.mubr.msk.f32.mxu0 %vm1048_vm7, %v7974_v13  ;;  %v7911_v24 = vpop.permute.xlu1 %7910 }
0x196e   :  { %v7944_v40 = vsel %vm984_vm4, %v17388_v44, %v7911_v24  ;;  %11899 = vmatmul.mubr.msk.f32.gmra.mrb[198].mxu0 %vm1048_vm7, %v7975_v36  ;;  %v10007_v44 = vld [vmem:[%s18036_s8 + $0x68] sm:$0xff] }
0x196f   :  { %v7960_v41 = vsel %vm1001_vm5, %v7944_v40, %v17436_v3  ;;  %v12467_v27 = vpack.c.bf16 %v10007_v44, %v10006_v26  ;;  %vm7520_vm5 = vcmp.eq.f32.partialorder %v17408_v0, inf }
0x1970   :  { %v7976_v30 = vsel %vm1018_vm6, %v7960_v41, %v18245_v39  ;;  %vm7501_vm6 = vcmp.eq.f32.partialorder %v17412_v19, 0.0 }
0x1971   :  { %11901 = vmatprep.mubr.msk.f32.mxu0 %vm1048_vm7, %v7976_v30  ;;  %12468 = vmatprep.subr.bf16.mxu0 %v12467_v27 }
0x1972   :  { %11902 = vmatmul.mubr.msk.f32.gmra.mrb[200].mxu0 %vm1048_vm7, %v7977_v7  ;;  %vm7513_vm7 = vcmp.eq.f32.partialorder %v17410_v21, inf }
0x1973   :  { %12470 = vmatpush3.bf16.msra.mxu0 %v12467_v27 }
0x1974   :  { %12472 = vmatprep.subr.bf16.mxu0 %v12471_v45 }
0x1977   :  { %12474 = vmatpush3.bf16.msra.mxu0 %v12471_v45 }
0x1a25   :  { %v11882_v4 = vpop.f32.mrb[186].mxu0 }
0x1a26   :  { %v17578_v17 = vadd.f32 %v11882_v4, %v17575_v38  ;;  %v8109_v18 = vpop.f32.mrb[187].mxu0 }
0x1a27   :  { %v17581_v11 = vadd.f32 %v8109_v18, %v17575_v38 }
0x1a28   :  { %v9991_v32 = vmul.f32 -1.442695, %v17578_v17 }
0x1a29   :  { %v9990_v48 = vmul.f32 -1.442695, %v17581_v11  ;;  %v11885_v53 = vpop.f32.mrb[188].mxu0 }
0x1a2a   :  { %13321 = vpow2.f32 %v9991_v32  ;;  %v17586_v13 = vadd.f32 %v11885_v53, %v17575_v38  ;;  %v8119_v24 = vpop.f32.mrb[189].mxu0 }
0x1a2b   :  { %13323 = vpow2.f32 %v9990_v48  ;;  %v17589_v63 = vadd.f32 %v8119_v24, %v17575_v38 }
0x1a2c   :  { %v9993_v36 = vmul.f32 -1.442695, %v17586_v13 }
0x1a2d   :  { %v9992_v16 = vmul.f32 -1.442695, %v17589_v63  ;;  %v11888_v40 = vpop.f32.mrb[190].mxu0 }
0x1a2e   :  { %13325 = vpow2.f32 %v9993_v36  ;;  %v17594_v41 = vadd.f32 %v11888_v40, %v17575_v38  ;;  %v8129_v39 = vpop.f32.mrb[191].mxu0 }
0x1a2f   :  { %13327 = vpow2.f32 %v9992_v16  ;;  %v17597_v30 = vadd.f32 %v8129_v39, %v17575_v38 }
0x1a30   :  { %v9995_v49 = vmul.f32 -1.442695, %v17594_v41 }
0x1a31   :  { %v9994_v7 = vmul.f32 -1.442695, %v17597_v30  ;;  %v11891_v26 = vpop.f32.mrb[192].mxu0 }
0x1a32   :  { %13329 = vpow2.f32 %v9995_v49  ;;  %v17602_v44 = vadd.f32 %v11891_v26, %v17575_v38  ;;  %v8139_v27 = vpop.f32.mrb[193].mxu0 }
0x1a33   :  { %13331 = vpow2.f32 %v9994_v7  ;;  %v17605_v56 = vadd.f32 %v8139_v27, %v17575_v38 }
0x1a34   :  { %v13322_v1 = vpop.eup %13321  ;;  %v9997_v45 = vmul.f32 -1.442695, %v17602_v44 }
0x1a35   :  { %v13324_v31 = vpop.eup %13323  ;;  %v8237_v43 = vadd.f32 1.0, %v13322_v1  ;;  %v9996_v42 = vmul.f32 -1.442695, %v17605_v56  ;;  %v11894_v51 = vpop.f32.mrb[194].mxu0 }
0x1a36   :  { %v8236_v4 = vadd.f32 1.0, %v13324_v31  ;;  %13333 = vpow2.f32 %v9997_v45  ;;  %v17610_v18 = vadd.f32 %v11894_v51, %v17575_v38  ;;  %v8149_v32 = vpop.f32.mrb[195].mxu0 }
0x1a37   :  { %13335 = vrcp.f32 %v8237_v43  ;;  %v17613_v48 = vadd.f32 %v8149_v32, %v17575_v38 }
0x1a38   :  { %v13326_v53 = vpop.eup %13325  ;;  %13337 = vrcp.f32 %v8236_v4  ;;  %v9999_v24 = vmul.f32 -1.442695, %v17610_v18 }
0x1a39   :  { %v13328_v36 = vpop.eup %13327  ;;  %v8239_v16 = vadd.f32 1.0, %v13326_v53  ;;  %13339 = vpow2.f32 %v9996_v42  ;;  %v9998_v40 = vmul.f32 -1.442695, %v17613_v48 }
0x1a3a   :  { %v8238_v39 = vadd.f32 1.0, %v13328_v36  ;;  %13341 = vpow2.f32 %v9999_v24 }
0x1a3b   :  { %13343 = vrcp.f32 %v8239_v16 }
0x1a3c   :  { %v13330_v49 = vpop.eup %13329  ;;  %13345 = vrcp.f32 %v8238_v39 }
0x1a3d   :  { %v13332_v7 = vpop.eup %13331  ;;  %v8241_v26 = vadd.f32 1.0, %v13330_v49  ;;  %13347 = vpow2.f32 %v9998_v40  ;;  %v11897_v27 = vpop.f32.mrb[196].mxu0 }
0x1a3e   :  { %v8240_v1 = vadd.f32 1.0, %v13332_v7  ;;  %v17618_v45 = vadd.f32 %v11897_v27, %v17575_v38  ;;  %v8159_v31 = vpop.f32.mrb[197].mxu0 }
0x1a3f   :  { %13349 = vrcp.f32 %v8241_v26  ;;  %v17621_v43 = vadd.f32 %v8159_v31, %v17575_v38 }
0x1a40   :  { %v13334_v42 = vpop.eup %13333  ;;  %13351 = vrcp.f32 %v8240_v1  ;;  %v10001_v51 = vmul.f32 -1.442695, %v17618_v45 }
0x1a41   :  { %v13336_v4 = vpop.eup %13335  ;;  %v8243_v32 = vadd.f32 1.0, %v13334_v42  ;;  %v10000_v53 = vmul.f32 -1.442695, %v17621_v43  ;;  %v11900_v24 = vpop.f32.mrb[198].mxu0 }
0x1a42   :  { %v13338_v36 = vpop.eup %13337  ;;  %13353 = vpow2.f32 %v10001_v51  ;;  %v17626_v16 = vadd.f32 %v11900_v24, %v17575_v38  ;;  %v8169_v40 = vpop.f32.mrb[199].mxu0  ;;  %v8285_v27 = vmul.f32 %v13336_v4, %v17578_v17 }
0x1a43   :  { %v13340_v39 = vpop.eup %13339  ;;  %v8284_v49 = vmul.f32 %v13338_v36, %v17581_v11  ;;  %v17630_v7 = vadd.f32 %v8169_v40, %v17575_v38  ;;  %13355 = vpow2.f32 %v10000_v53 }
0x1a44   :  { %v13342_v26 = vpop.eup %13341  ;;  %v8242_v1 = vadd.f32 1.0, %v13340_v39  ;;  %v10003_v31 = vmul.f32 -1.442695, %v17626_v16  ;;  %13357 = vrcp.f32 %v8243_v32 }
0x1a45   :  { %v13344_v42 = vpop.eup %13343  ;;  %v8245_v51 = vadd.f32 1.0, %v13342_v26  ;;  %v10002_v24 = vmul.f32 -1.442695, %v17630_v7  ;;  %v11903_v59 = vpop.f32.mrb[200].mxu0  ;;  %11912 = vmatprep.mubr.msk.f32.mxu0 %vm984_vm4, %v8284_v49 }
0x1a46   :  { %v13346_v62 = vpop.eup %13345  ;;  %13359 = vrcp.f32 %v8242_v1  ;;  %v17637_v11 = vadd.f32 %v11903_v59, %v17575_v38  ;;  %v8179_v36 = vpop.f32.mrb[201].mxu0  ;;  %11913 = vmatmul.mubr.msk.f32.vlgmr.msra.gmra.mrb[202].mxu0 %vm984_vm4, %v8285_v27  ;;  %v8287_v53 = vmul.f32 %v13344_v42, %v17586_v13 }
0x1a47   :  { %v13348_v17 = vpop.eup %13347  ;;  %v8286_v4 = vmul.f32 %v13346_v62, %v17589_v63  ;;  %13361 = vrcp.f32 %v8245_v51  ;;  %v8180_v32 = vadd.f32 %v8179_v36, %v17575_v38 }
0x1a48   :  { %v8244_v40 = vadd.f32 1.0, %v13348_v17  ;;  %13363 = vpow2.f32 %v10003_v31  ;;  %v10005_v39 = vmul.f32 -1.442695, %v17637_v11 }
0x1a49   :  { %v13350_v49 = vpop.eup %13349  ;;  %13365 = vpow2.f32 %v10002_v24  ;;  %v10004_v26 = vmul.f32 -1.442695, %v8180_v32  ;;  %11915 = vmatprep.mubr.msk.f32.mxu0 %vm984_vm4, %v8286_v4 }
0x1a4a   :  { %v13352_v59 = vpop.eup %13351  ;;  %13367 = vrcp.f32 %v8244_v40  ;;  %11916 = vmatmul.mubr.msk.f32.gmra.mrb[204].mxu0 %vm984_vm4, %v8287_v53  ;;  %v8289_v38 = vmul.f32 %v13350_v49, %v17594_v41 }
0x1a4b   :  { %v8288_v62 = vmul.f32 %v13352_v59, %v17597_v30  ;;  %13369 = vpow2.f32 %v10005_v39 }
0x1a4c   :  { %v13354_v63 = vpop.eup %13353  ;;  %13371 = vpow2.f32 %v10004_v26 }
0x1a4d   :  { %v8247_v13 = vadd.f32 1.0, %v13354_v63  ;;  %11918 = vmatprep.mubr.msk.f32.mxu0 %vm984_vm4, %v8288_v62  ;;  %v13356_v27 = vpop.eup %13355 }
0x1a4e   :  { %11919 = vmatmul.mubr.msk.f32.gmra.mrb[206].mxu0 %vm984_vm4, %v8289_v38  ;;  %v13358_v1 = vpop.eup %13357  ;;  %v8246_v31 = vadd.f32 1.0, %v13356_v27 }
0x1a4f   :  { %13373 = vrcp.f32 %v8247_v13  ;;  %v8291_v36 = vmul.f32 %v13358_v1, %v17602_v44 }
0x1a50   :  { %v13360_v42 = vpop.eup %13359  ;;  %13375 = vrcp.f32 %v8246_v31 }
0x1a51   :  { %v13362_v51 = vpop.eup %13361  ;;  %v8290_v24 = vmul.f32 %v13360_v42, %v17605_v56 }
0x1a52   :  { %v13364_v30 = vpop.eup %13363  ;;  %v8293_v26 = vmul.f32 %v13362_v51, %v17610_v18 }
0x1a53   :  { %v13366_v17 = vpop.eup %13365  ;;  %v8249_v41 = vadd.f32 1.0, %v13364_v30  ;;  %11921 = vmatprep.mubr.msk.f32.mxu0 %vm984_vm4, %v8290_v24 }
0x1a54   :  { %v13368_v4 = vpop.eup %13367  ;;  %v8248_v53 = vadd.f32 1.0, %v13366_v17  ;;  %11922 = vmatmul.mubr.msk.f32.gmra.mrb[208].mxu0 %vm984_vm4, %v8291_v36 }
0x1a55   :  { %v13370_v40 = vpop.eup %13369  ;;  %v8292_v39 = vmul.f32 %v13368_v4, %v17613_v48  ;;  %13377 = vrcp.f32 %v8249_v41 }
0x1a56   :  { %v13372_v49 = vpop.eup %13371  ;;  %13379 = vrcp.f32 %v8248_v53  ;;  %v8251_v56 = vadd.f32 1.0, %v13370_v40 }
0x1a57   :  { %v8250_v59 = vadd.f32 1.0, %v13372_v49  ;;  %11924 = vmatprep.mubr.msk.f32.mxu0 %vm984_vm4, %v8292_v39 }
0x1a58   :  { %13381 = vrcp.f32 %v8251_v56  ;;  %11925 = vmatmul.mubr.msk.f32.gmra.mrb[210].mxu0 %vm984_vm4, %v8293_v26 }
0x1a59   :  { %13383 = vrcp.f32 %v8250_v59  ;;  %v13374_v44 = vpop.eup %13373 }
0x1a5a   :  { %v13376_v62 = vpop.eup %13375  ;;  %v8295_v38 = vmul.f32 %v13374_v44, %v17618_v45  ;;  %v10044_v45 = vld [vmem:[%s18037_s11 + $0x70] sm:$0xff] }
0x1a5b   :  { %v8294_v63 = vmul.f32 %v13376_v62, %v17621_v43 }
0x1a5d   :  { %11927 = vmatprep.mubr.msk.f32.mxu0 %vm984_vm4, %v8294_v63 }
0x1a5e   :  { %11928 = vmatmul.mubr.msk.f32.gmra.mrb[212].mxu0 %vm984_vm4, %v8295_v38 }
0x1a5f   :  { %v13378_v48 = vpop.eup %13377 }
0x1a60   :  { %v13380_v18 = vpop.eup %13379  ;;  %v8297_v1 = vmul.f32 %v13378_v48, %v17626_v16  ;;  %v10045_v16 = vld [vmem:[%s18037_s11 + $0x78] sm:$0xff] }
0x1a61   :  { %v8296_v13 = vmul.f32 %v13380_v18, %v17630_v7  ;;  %v12479_v7 = vpack.c.bf16 %v10045_v16, %v10044_v45 }
0x1a62   :  { %v13382_v27 = vpop.eup %13381 }
0x1a63   :  { %v13384_v31 = vpop.eup %13383  ;;  %11930 = vmatprep.mubr.msk.f32.mxu0 %vm984_vm4, %v8296_v13  ;;  %v8299_v43 = vmul.f32 %v13382_v27, %v17637_v11  ;;  %12480 = vmatprep.subr.bf16.mxu1 %v12479_v7 }
0x1a64   :  { %v8298_v42 = vmul.f32 %v13384_v31, %v8180_v32  ;;  %11931 = vmatmul.mubr.msk.f32.gmra.mrb[214].mxu0 %vm984_vm4, %v8297_v1  ;;  %12482 = vmatpush3.bf16.msra.mxu1 %v12479_v7  ;;  %v18248_v32 = vld [vmem:[#allocation27_spill] sm:$0xff] }
0x1a65   :  { %v17677_v51 = vrot.slane %v17571_v10, %v18248_v32 }
0x1a66   :  { %11933 = vmatprep.mubr.msk.f32.mxu0 %vm984_vm4, %v8298_v42 }
0x1a68   :  { %11934 = vmatmul.mubr.msk.f32.gmra.mrb[216].mxu0 %vm984_vm4, %v8299_v43 }
0x1b19   :  { %v11914_v11 = vpop.f32.mrb[202].mxu0 }
0x1b1a   :  { %v17680_v24 = vadd.f32 %v11914_v11, %v17677_v51  ;;  %v8423_v30 = vpop.f32.mrb[203].mxu0 }
0x1b1b   :  { %v17683_v36 = vadd.f32 %v8423_v30, %v17677_v51 }
0x1b1c   :  { %v10027_v17 = vmul.f32 -1.442695, %v17680_v24 }
0x1b1d   :  { %v10026_v41 = vmul.f32 -1.442695, %v17683_v36  ;;  %v11917_v4 = vpop.f32.mrb[204].mxu0 }
0x1b1e   :  { %13385 = vpow2.f32 %v10027_v17  ;;  %v17688_v53 = vadd.f32 %v11917_v4, %v17677_v51  ;;  %v8433_v40 = vpop.f32.mrb[205].mxu0 }
0x1b1f   :  { %13387 = vpow2.f32 %v10026_v41  ;;  %v17691_v39 = vadd.f32 %v8433_v40, %v17677_v51 }
0x1b20   :  { %v10029_v49 = vmul.f32 -1.442695, %v17688_v53 }
0x1b21   :  { %v10028_v26 = vmul.f32 -1.442695, %v17691_v39  ;;  %v11920_v56 = vpop.f32.mrb[206].mxu0 }
0x1b22   :  { %13389 = vpow2.f32 %v10029_v49  ;;  %v17696_v59 = vadd.f32 %v11920_v56, %v17677_v51  ;;  %v8443_v44 = vpop.f32.mrb[207].mxu0 }
0x1b23   :  { %13391 = vpow2.f32 %v10028_v26  ;;  %v17699_v62 = vadd.f32 %v8443_v44, %v17677_v51 }
0x1b24   :  { %v10031_v63 = vmul.f32 -1.442695, %v17696_v59 }
0x1b25   :  { %v10030_v38 = vmul.f32 -1.442695, %v17699_v62 }
0x1b26   :  { %13393 = vpow2.f32 %v10031_v63 }
0x1b27   :  { %13395 = vpow2.f32 %v10030_v38  ;;  %v11923_v48 = vpop.f32.mrb[208].mxu0 }
0x1b28   :  { %v13386_v18 = vpop.eup %13385  ;;  %v17704_v13 = vadd.f32 %v11923_v48, %v17677_v51  ;;  %v8453_v27 = vpop.f32.mrb[209].mxu0 }
0x1b29   :  { %v13388_v1 = vpop.eup %13387  ;;  %v8551_v31 = vadd.f32 1.0, %v13386_v18  ;;  %v17707_v42 = vadd.f32 %v8453_v27, %v17677_v51 }
0x1b2a   :  { %v8550_v43 = vadd.f32 1.0, %v13388_v1  ;;  %v10033_v45 = vmul.f32 -1.442695, %v17704_v13 }
0x1b2b   :  { %13397 = vrcp.f32 %v8551_v31  ;;  %v10032_v16 = vmul.f32 -1.442695, %v17707_v42  ;;  %v11926_v7 = vpop.f32.mrb[210].mxu0 }
0x1b2c   :  { %v13390_v32 = vpop.eup %13389  ;;  %13399 = vrcp.f32 %v8550_v43  ;;  %v17712_v11 = vadd.f32 %v11926_v7, %v17677_v51  ;;  %v8463_v30 = vpop.f32.mrb[211].mxu0 }
0x1b2d   :  { %v13392_v17 = vpop.eup %13391  ;;  %v8553_v41 = vadd.f32 1.0, %v13390_v32  ;;  %13401 = vpow2.f32 %v10033_v45  ;;  %v17715_v4 = vadd.f32 %v8463_v30, %v17677_v51 }
0x1b2e   :  { %v8552_v40 = vadd.f32 1.0, %v13392_v17  ;;  %13403 = vpow2.f32 %v10032_v16  ;;  %v10035_v49 = vmul.f32 -1.442695, %v17712_v11 }
0x1b2f   :  { %13405 = vrcp.f32 %v8553_v41  ;;  %v10034_v26 = vmul.f32 -1.442695, %v17715_v4 }
0x1b30   :  { %v13394_v56 = vpop.eup %13393  ;;  %13407 = vrcp.f32 %v8552_v40 }
0x1b31   :  { %v13396_v44 = vpop.eup %13395  ;;  %v8555_v63 = vadd.f32 1.0, %v13394_v56  ;;  %13409 = vpow2.f32 %v10035_v49  ;;  %v11929_v48 = vpop.f32.mrb[212].mxu0 }
0x1b32   :  { %v8554_v38 = vadd.f32 1.0, %v13396_v44  ;;  %13411 = vpow2.f32 %v10034_v26  ;;  %v17720_v18 = vadd.f32 %v11929_v48, %v17677_v51  ;;  %v8473_v27 = vpop.f32.mrb[213].mxu0 }
0x1b33   :  { %13413 = vrcp.f32 %v8555_v63  ;;  %v17723_v1 = vadd.f32 %v8473_v27, %v17677_v51 }
0x1b34   :  { %13415 = vrcp.f32 %v8554_v38  ;;  %v10037_v43 = vmul.f32 -1.442695, %v17720_v18 }
0x1b35   :  { %v13398_v31 = vpop.eup %13397  ;;  %v10036_v16 = vmul.f32 -1.442695, %v17723_v1 }
0x1b36   :  { %v13400_v45 = vpop.eup %13399  ;;  %13417 = vpow2.f32 %v10037_v43  ;;  %v8599_v41 = vmul.f32 %v13398_v31, %v17680_v24 }
0x1b37   :  { %v13402_v7 = vpop.eup %13401  ;;  %v8598_v32 = vmul.f32 %v13400_v45, %v17683_v36  ;;  %v11932_v30 = vpop.f32.mrb[214].mxu0  ;;  %13419 = vpow2.f32 %v10036_v16 }
0x1b38   :  { %v13404_v17 = vpop.eup %13403  ;;  %v8557_v40 = vadd.f32 1.0, %v13402_v7  ;;  %v17730_v49 = vadd.f32 %v11932_v30, %v17677_v51  ;;  %v8483_v26 = vpop.f32.mrb[215].mxu0 }
0x1b39   :  { %v13406_v56 = vpop.eup %13405  ;;  %v8556_v44 = vadd.f32 1.0, %v13404_v17  ;;  %v17733_v63 = vadd.f32 %v8483_v26, %v17677_v51  ;;  %11944 = vmatprep.mubr.msk.f32.mxu1 %vm984_vm4, %v8598_v32 }
0x1b3a   :  { %v13408_v38 = vpop.eup %13407  ;;  %13421 = vrcp.f32 %v8557_v40  ;;  %v10039_v36 = vmul.f32 -1.442695, %v17730_v49  ;;  %11945 = vmatmul.mubr.msk.f32.vlgmr.msra.gmra.mrb[224].mxu1 %vm984_vm4, %v8599_v41  ;;  %v8601_v45 = vmul.f32 %v13406_v56, %v17688_v53 }
0x1b3b   :  { %v13410_v24 = vpop.eup %13409  ;;  %v8600_v48 = vmul.f32 %v13408_v38, %v17691_v39  ;;  %13423 = vrcp.f32 %v8556_v44  ;;  %v10038_v27 = vmul.f32 -1.442695, %v17733_v63  ;;  %v11935_v31 = vpop.f32.mrb[216].mxu0 }
0x1b3c   :  { %v13412_v43 = vpop.eup %13411  ;;  %v8559_v16 = vadd.f32 1.0, %v13410_v24  ;;  %13425 = vpow2.f32 %v10039_v36  ;;  %v17742_v7 = vadd.f32 %v11935_v31, %v17677_v51  ;;  %v8493_v32 = vpop.f32.mrb[217].mxu0 }
0x1b3d   :  { %v13414_v30 = vpop.eup %13413  ;;  %v8558_v17 = vadd.f32 1.0, %v13412_v43  ;;  %13427 = vpow2.f32 %v10038_v27  ;;  %v8494_v41 = vadd.f32 %v8493_v32, %v17677_v51  ;;  %11947 = vmatprep.mubr.msk.f32.mxu1 %vm984_vm4, %v8600_v48 }
0x1b3e   :  { %v13416_v39 = vpop.eup %13415  ;;  %13429 = vrcp.f32 %v8559_v16  ;;  %v10041_v40 = vmul.f32 -1.442695, %v17742_v7  ;;  %11948 = vmatmul.mubr.msk.f32.gmra.mrb[226].mxu1 %vm984_vm4, %v8601_v45  ;;  %v8603_v56 = vmul.f32 %v13414_v30, %v17696_v59 }
0x1b3f   :  { %v8602_v53 = vmul.f32 %v13416_v39, %v17699_v62  ;;  %13431 = vrcp.f32 %v8558_v17  ;;  %v10040_v26 = vmul.f32 -1.442695, %v8494_v41 }
0x1b40   :  { %13433 = vpow2.f32 %v10041_v40  ;;  %v13418_v44 = vpop.eup %13417 }
0x1b41   :  { %13435 = vpow2.f32 %v10040_v26  ;;  %11950 = vmatprep.mubr.msk.f32.mxu1 %vm984_vm4, %v8602_v53  ;;  %v13420_v51 = vpop.eup %13419  ;;  %v8561_v38 = vadd.f32 1.0, %v13418_v44 }
0x1b42   :  { %11951 = vmatmul.mubr.msk.f32.gmra.mrb[228].mxu1 %vm984_vm4, %v8603_v56  ;;  %v8560_v36 = vadd.f32 1.0, %v13420_v51 }
0x1b43   :  { %13437 = vrcp.f32 %v8561_v38 }
0x1b44   :  { %v13422_v24 = vpop.eup %13421  ;;  %13439 = vrcp.f32 %v8560_v36 }
0x1b45   :  { %v13424_v48 = vpop.eup %13423  ;;  %v8605_v59 = vmul.f32 %v13422_v24, %v17704_v13 }
0x1b46   :  { %v13426_v27 = vpop.eup %13425  ;;  %v8604_v62 = vmul.f32 %v13424_v48, %v17707_v42 }
0x1b47   :  { %v13428_v31 = vpop.eup %13427  ;;  %v8563_v43 = vadd.f32 1.0, %v13426_v27  ;;  %v10081_v27 = vld [vmem:[%s18039_s12 + $0x78] sm:$0xff] }
0x1b48   :  { %v13430_v45 = vpop.eup %13429  ;;  %v8562_v16 = vadd.f32 1.0, %v13428_v31  ;;  %11953 = vmatprep.mubr.msk.f32.mxu1 %vm984_vm4, %v8604_v62  ;;  %v18249_v31 = vld [vmem:[#allocation28_spill] sm:$0xff] }
0x1b49   :  { %v13432_v32 = vpop.eup %13431  ;;  %13441 = vrcp.f32 %v8563_v43  ;;  %11954 = vmatmul.mubr.msk.f32.gmra.mrb[230].mxu1 %vm984_vm4, %v8605_v59  ;;  %v8607_v40 = vmul.f32 %v13430_v45, %v17712_v11  ;;  %v17788_v59 = vrot.slane %v17571_v10, %v18249_v31 }
0x1b4a   :  { %v13434_v30 = vpop.eup %13433  ;;  %v8606_v17 = vmul.f32 %v13432_v32, %v17715_v4  ;;  %13443 = vrcp.f32 %v8562_v16 }
0x1b4b   :  { %v13436_v39 = vpop.eup %13435  ;;  %v8565_v42 = vadd.f32 1.0, %v13434_v30 }
0x1b4c   :  { %v8564_v53 = vadd.f32 1.0, %v13436_v39  ;;  %11956 = vmatprep.mubr.msk.f32.mxu1 %vm984_vm4, %v8606_v17 }
0x1b4d   :  { %13445 = vrcp.f32 %v8565_v42  ;;  %11957 = vmatmul.mubr.msk.f32.gmra.mrb[232].mxu1 %vm984_vm4, %v8607_v40  ;;  %v13438_v13 = vpop.eup %13437 }
0x1b4e   :  { %13447 = vrcp.f32 %v8564_v53  ;;  %v13440_v26 = vpop.eup %13439  ;;  %v8609_v44 = vmul.f32 %v13438_v13, %v17720_v18  ;;  %v13730_v18 = vld [vmem:[%s18040_s4] sm:$0xff] }
0x1b4f   :  { %v8608_v56 = vmul.f32 %v13440_v26, %v17723_v1 }
0x1b51   :  { %11959 = vmatprep.mubr.msk.f32.mxu1 %vm984_vm4, %v8608_v56 }
0x1b52   :  { %11960 = vmatmul.mubr.msk.f32.gmra.mrb[234].mxu1 %vm984_vm4, %v8609_v44 }
0x1b53   :  { %v13442_v4 = vpop.eup %13441 }
0x1b54   :  { %v13444_v11 = vpop.eup %13443  ;;  %v8611_v38 = vmul.f32 %v13442_v4, %v17730_v49  ;;  %v10078_v49 = vld [vmem:[%s18039_s12 + $0x60] sm:$0xff] }
0x1b55   :  { %v8610_v51 = vmul.f32 %v13444_v11, %v17733_v63  ;;  %v10079_v63 = vld [vmem:[%s18039_s12 + $0x68] sm:$0xff] }
0x1b57   :  { %v13446_v36 = vpop.eup %13445  ;;  %11962 = vmatprep.mubr.msk.f32.mxu1 %vm984_vm4, %v8610_v51 }
0x1b58   :  { %v13448_v24 = vpop.eup %13447  ;;  %11963 = vmatmul.mubr.msk.f32.gmra.mrb[236].mxu1 %vm984_vm4, %v8611_v38  ;;  %v8613_v1 = vmul.f32 %v13446_v36, %v17742_v7  ;;  %v10080_v7 = vld [vmem:[%s18039_s12 + $0x70] sm:$0xff] }
0x1b59   :  { %v8612_v48 = vmul.f32 %v13448_v24, %v8494_v41  ;;  %v12483_v41 = vpack.c.bf16 %v10079_v63, %v10078_v49  ;;  %v12487_v62 = vpack.c.bf16 %v10081_v27, %v10080_v7 }
0x1b5b   :  { %11965 = vmatprep.mubr.msk.f32.mxu1 %vm984_vm4, %v8612_v48  ;;  %12484 = vmatprep.subr.bf16.mxu0 %v12483_v41 }
0x1b5c   :  { %11966 = vmatmul.mubr.msk.f32.gmra.mrb[238].mxu1 %vm984_vm4, %v8613_v1  ;;  %12486 = vmatpush3.bf16.msra.mxu0 %v12483_v41 }
0x1b5d   :  { %12032 = vmatprep.mubr.f32.mxu1 %v13730_v18  ;;  %12488 = vmatprep.subr.bf16.mxu0 %v12487_v62 }
0x1b60   :  { %12490 = vmatpush3.bf16.msra.mxu0 %v12487_v62 }
0x1c0d   :  { %v11946_v43 = vpop.f32.mrb[224].mxu1 }
0x1c0e   :  { %v17791_v45 = vadd.f32 %v11946_v43, %v17788_v59  ;;  %v8737_v16 = vpop.f32.mrb[225].mxu1 }
0x1c0f   :  { %v17794_v32 = vadd.f32 %v8737_v16, %v17788_v59 }
0x1c10   :  { %v10063_v30 = vmul.f32 -1.442695, %v17791_v45 }
0x1c11   :  { %v10062_v17 = vmul.f32 -1.442695, %v17794_v32  ;;  %v11949_v39 = vpop.f32.mrb[226].mxu1 }
0x1c12   :  { %13449 = vpow2.f32 %v10063_v30  ;;  %v17799_v40 = vadd.f32 %v11949_v39, %v17788_v59  ;;  %v8747_v42 = vpop.f32.mrb[227].mxu1 }
0x1c13   :  { %13451 = vpow2.f32 %v10062_v17  ;;  %v17802_v10 = vadd.f32 %v8747_v42, %v17788_v59 }
0x1c14   :  { %v10065_v53 = vmul.f32 -1.442695, %v17799_v40 }
0x1c15   :  { %v10064_v13 = vmul.f32 -1.442695, %v17802_v10  ;;  %v11952_v26 = vpop.f32.mrb[228].mxu1 }
0x1c16   :  { %13453 = vpow2.f32 %v10065_v53  ;;  %v17807_v56 = vadd.f32 %v11952_v26, %v17788_v59  ;;  %v8757_v44 = vpop.f32.mrb[229].mxu1 }
0x1c17   :  { %13455 = vpow2.f32 %v10064_v13  ;;  %v17810_v4 = vadd.f32 %v8757_v44, %v17788_v59 }
0x1c18   :  { %v10067_v11 = vmul.f32 -1.442695, %v17807_v56 }
0x1c19   :  { %v10066_v51 = vmul.f32 -1.442695, %v17810_v4 }
0x1c1a   :  { %13457 = vpow2.f32 %v10067_v11 }
0x1c1b   :  { %13459 = vpow2.f32 %v10066_v51 }
0x1c1c   :  { %v13450_v38 = vpop.eup %13449  ;;  %v11955_v36 = vpop.f32.mrb[230].mxu1 }
0x1c1d   :  { %v13452_v24 = vpop.eup %13451  ;;  %v8865_v48 = vadd.f32 1.0, %v13450_v38  ;;  %v17815_v1 = vadd.f32 %v11955_v36, %v17788_v59  ;;  %v8767_v18 = vpop.f32.mrb[231].mxu1 }
0x1c1e   :  { %v8864_v49 = vadd.f32 1.0, %v13452_v24  ;;  %v17818_v63 = vadd.f32 %v8767_v18, %v17788_v59 }
0x1c1f   :  { %13461 = vrcp.f32 %v8865_v48  ;;  %v10069_v41 = vmul.f32 -1.442695, %v17815_v1 }
0x1c20   :  { %v13454_v7 = vpop.eup %13453  ;;  %13463 = vrcp.f32 %v8864_v49  ;;  %v10068_v27 = vmul.f32 -1.442695, %v17818_v63  ;;  %v11958_v62 = vpop.f32.mrb[232].mxu1 }
0x1c21   :  { %v13456_v31 = vpop.eup %13455  ;;  %v8867_v43 = vadd.f32 1.0, %v13454_v7  ;;  %13465 = vpow2.f32 %v10069_v41  ;;  %v17823_v16 = vadd.f32 %v11958_v62, %v17788_v59  ;;  %v8777_v30 = vpop.f32.mrb[233].mxu1 }
0x1c22   :  { %v8866_v17 = vadd.f32 1.0, %v13456_v31  ;;  %13467 = vpow2.f32 %v10068_v27  ;;  %v17826_v39 = vadd.f32 %v8777_v30, %v17788_v59 }
0x1c23   :  { %13469 = vrcp.f32 %v8867_v43  ;;  %v10071_v42 = vmul.f32 -1.442695, %v17823_v16 }
0x1c24   :  { %v13458_v53 = vpop.eup %13457  ;;  %13471 = vrcp.f32 %v8866_v17  ;;  %v10070_v13 = vmul.f32 -1.442695, %v17826_v39 }
0x1c25   :  { %v13460_v26 = vpop.eup %13459  ;;  %v8869_v44 = vadd.f32 1.0, %v13458_v53  ;;  %13473 = vpow2.f32 %v10071_v42  ;;  %v11961_v51 = vpop.f32.mrb[234].mxu1 }
0x1c26   :  { %v8868_v11 = vadd.f32 1.0, %v13460_v26  ;;  %13475 = vpow2.f32 %v10070_v13  ;;  %v17831_v38 = vadd.f32 %v11961_v51, %v17788_v59  ;;  %v8787_v36 = vpop.f32.mrb[235].mxu1 }
0x1c27   :  { %13477 = vrcp.f32 %v8869_v44  ;;  %v17834_v24 = vadd.f32 %v8787_v36, %v17788_v59 }
0x1c28   :  { %13479 = vrcp.f32 %v8868_v11  ;;  %v10073_v18 = vmul.f32 -1.442695, %v17831_v38 }
0x1c29   :  { %v13462_v48 = vpop.eup %13461  ;;  %v10072_v41 = vmul.f32 -1.442695, %v17834_v24 }
0x1c2a   :  { %v13464_v49 = vpop.eup %13463  ;;  %13481 = vpow2.f32 %v10073_v18  ;;  %v8913_v43 = vmul.f32 %v13462_v48, %v17791_v45 }
0x1c2b   :  { %v13466_v7 = vpop.eup %13465  ;;  %v8912_v27 = vmul.f32 %v13464_v49, %v17794_v32  ;;  %v11964_v62 = vpop.f32.mrb[236].mxu1  ;;  %13483 = vpow2.f32 %v10072_v41 }
0x1c2c   :  { %v13468_v31 = vpop.eup %13467  ;;  %v8871_v30 = vadd.f32 1.0, %v13466_v7  ;;  %v17841_v17 = vadd.f32 %v11964_v62, %v17788_v59  ;;  %v8797_v42 = vpop.f32.mrb[237].mxu1 }
0x1c2d   :  { %v13470_v53 = vpop.eup %13469  ;;  %v8870_v13 = vadd.f32 1.0, %v13468_v31  ;;  %v17844_v26 = vadd.f32 %v8797_v42, %v17788_v59  ;;  %11976 = vmatprep.mubr.msk.f32.mxu0 %vm984_vm4, %v8912_v27 }
0x1c2e   :  { %v13472_v44 = vpop.eup %13471  ;;  %13485 = vrcp.f32 %v8871_v30  ;;  %v10075_v32 = vmul.f32 -1.442695, %v17841_v17  ;;  %11977 = vmatmul.mubr.msk.f32.vlgmr.msra.gmra.mrb[218].mxu0 %vm984_vm4, %v8913_v43  ;;  %v8915_v18 = vmul.f32 %v13470_v53, %v17799_v40 }
0x1c2f   :  { %v13474_v45 = vpop.eup %13473  ;;  %v8914_v11 = vmul.f32 %v13472_v44, %v17802_v10  ;;  %13487 = vrcp.f32 %v8870_v13  ;;  %v10074_v51 = vmul.f32 -1.442695, %v17844_v26  ;;  %v11967_v36 = vpop.f32.mrb[238].mxu1 }
0x1c30   :  { %v13476_v48 = vpop.eup %13475  ;;  %v8873_v49 = vadd.f32 1.0, %v13474_v45  ;;  %13489 = vpow2.f32 %v10075_v32  ;;  %v17853_v41 = vadd.f32 %v11967_v36, %v17788_v59  ;;  %v8807_v7 = vpop.f32.mrb[239].mxu1 }
0x1c31   :  { %v13478_v27 = vpop.eup %13477  ;;  %v8872_v62 = vadd.f32 1.0, %v13476_v48  ;;  %13491 = vpow2.f32 %v10074_v51  ;;  %v8808_v31 = vadd.f32 %v8807_v7, %v17788_v59  ;;  %11979 = vmatprep.mubr.msk.f32.mxu0 %vm984_vm4, %v8914_v11 }
0x1c32   :  { %v13480_v10 = vpop.eup %13479  ;;  %13493 = vrcp.f32 %v8873_v49  ;;  %v10077_v43 = vmul.f32 -1.442695, %v17853_v41  ;;  %11980 = vmatmul.mubr.msk.f32.gmra.mrb[220].mxu0 %vm984_vm4, %v8915_v18  ;;  %v8917_v42 = vmul.f32 %v13478_v27, %v17807_v56 }
0x1c33   :  { %v8916_v40 = vmul.f32 %v13480_v10, %v17810_v4  ;;  %13495 = vrcp.f32 %v8872_v62  ;;  %v10076_v30 = vmul.f32 -1.442695, %v8808_v31 }
0x1c34   :  { %13497 = vpow2.f32 %v10077_v43  ;;  %v13482_v53 = vpop.eup %13481 }
0x1c35   :  { %13499 = vpow2.f32 %v10076_v30  ;;  %11982 = vmatprep.mubr.msk.f32.mxu0 %vm984_vm4, %v8916_v40  ;;  %v13484_v59 = vpop.eup %13483  ;;  %v8875_v13 = vadd.f32 1.0, %v13482_v53 }
0x1c36   :  { %11983 = vmatmul.mubr.msk.f32.gmra.mrb[222].mxu0 %vm984_vm4, %v8917_v42  ;;  %v8874_v44 = vadd.f32 1.0, %v13484_v59 }
0x1c37   :  { %13501 = vrcp.f32 %v8875_v13 }
0x1c38   :  { %v13486_v32 = vpop.eup %13485  ;;  %13503 = vrcp.f32 %v8874_v44 }
0x1c39   :  { %v13488_v45 = vpop.eup %13487  ;;  %v8919_v56 = vmul.f32 %v13486_v32, %v17815_v1 }
0x1c3a   :  { %v13490_v11 = vpop.eup %13489  ;;  %v8918_v4 = vmul.f32 %v13488_v45, %v17818_v63 }
0x1c3b   :  { %v13492_v51 = vpop.eup %13491  ;;  %v8877_v36 = vadd.f32 1.0, %v13490_v11  ;;  %v7509_v11 = vand.u32 2147483648, %v17406_v20 }
0x1c3c   :  { %v13494_v48 = vpop.eup %13493  ;;  %v8876_v18 = vadd.f32 1.0, %v13492_v51  ;;  %11985 = vmatprep.mubr.msk.f32.mxu0 %vm984_vm4, %v8918_v4  ;;  %v7502_v4 = vand.u32 2147483648, %v17412_v19 }
0x1c3d   :  { %v13496_v49 = vpop.eup %13495  ;;  %13505 = vrcp.f32 %v8877_v36  ;;  %11986 = vmatmul.mubr.msk.f32.gmra.mrb[224].mxu0 %vm984_vm4, %v8919_v56  ;;  %v8921_v10 = vmul.f32 %v13494_v48, %v17823_v16 }
0x1c3e   :  { %v13498_v7 = vpop.eup %13497  ;;  %v8920_v27 = vmul.f32 %v13496_v49, %v17826_v39  ;;  %13507 = vrcp.f32 %v8876_v18 }
0x1c3f   :  { %v13500_v62 = vpop.eup %13499  ;;  %v8879_v63 = vadd.f32 1.0, %v13498_v7  ;;  %v7523_v7 = vand.u32 2147483648, %v17408_v0 }
0x1c40   :  { %v8878_v43 = vadd.f32 1.0, %v13500_v62  ;;  %11988 = vmatprep.mubr.msk.f32.mxu0 %vm984_vm4, %v8920_v27  ;;  %v7516_v27 = vand.u32 2147483648, %v17410_v21 }
0x1c41   :  { %13509 = vrcp.f32 %v8879_v63  ;;  %11989 = vmatmul.mubr.msk.f32.gmra.mrb[226].mxu0 %vm984_vm4, %v8921_v10  ;;  %v13502_v1 = vpop.eup %13501 }
0x1c42   :  { %13511 = vrcp.f32 %v8878_v43  ;;  %v13504_v40 = vpop.eup %13503  ;;  %v8923_v42 = vmul.f32 %v13502_v1, %v17831_v38 }
0x1c43   :  { %v8922_v30 = vmul.f32 %v13504_v40, %v17834_v24  ;;  %13513 = vrsqrt.f32 %v17406_v20  ;;  %v7530_v40 = vand.u32 2147483648, %v17416_v6 }
0x1c44   :  { %13515 = vrsqrt.f32 %v17412_v19 }
0x1c45   :  { %11991 = vmatprep.mubr.msk.f32.mxu0 %vm984_vm4, %v8922_v30  ;;  %13517 = vrsqrt.f32 %v17408_v0 }
0x1c46   :  { %11992 = vmatmul.mubr.msk.f32.gmra.mrb[228].mxu0 %vm984_vm4, %v8923_v42  ;;  %13519 = vrsqrt.f32 %v17410_v21 }
0x1c47   :  { %v13506_v39 = vpop.eup %13505  ;;  %13521 = vrsqrt.f32 %v17414_v34 }
0x1c48   :  { %v13508_v16 = vpop.eup %13507  ;;  %v8925_v59 = vmul.f32 %v13506_v39, %v17841_v17  ;;  %13523 = vrsqrt.f32 %v17416_v6  ;;  %v7537_v39 = vand.u32 2147483648, %v17414_v34 }
0x1c49   :  { %v8924_v53 = vmul.f32 %v13508_v16, %v17844_v26  ;;  %13525 = vrsqrt.f32 %v17418_v37 }
0x1c4a   :  { %13527 = vrsqrt.f32 %v17420_v22 }
0x1c4b   :  { %v13510_v13 = vpop.eup %13509  ;;  %11994 = vmatprep.mubr.msk.f32.mxu0 %vm984_vm4, %v8924_v53  ;;  %13529 = vrsqrt.f32 %v17422_v61 }
0x1c4c   :  { %v13512_v44 = vpop.eup %13511  ;;  %11995 = vmatmul.mubr.msk.f32.gmra.mrb[230].mxu0 %vm984_vm4, %v8925_v59  ;;  %v8927_v24 = vmul.f32 %v13510_v13, %v17853_v41  ;;  %13531 = vrsqrt.f32 %v17424_v2 }
0x1c4d   :  { %v8926_v32 = vmul.f32 %v13512_v44, %v8808_v31  ;;  %v13514_v38 = vpop.eup %13513  ;;  %13533 = vrsqrt.f32 %v17428_v9 }
0x1c4e   :  { %v13516_v17 = vpop.eup %13515  ;;  %v7505_v26 = vmul.f32 %v13514_v38, %v17406_v20  ;;  %13535 = vrsqrt.f32 %v17426_v25 }
0x1c4f   :  { %11997 = vmatprep.mubr.msk.f32.mxu0 %vm984_vm4, %v8926_v32  ;;  %v13518_v41 = vpop.eup %13517  ;;  %v7498_v31 = vmul.f32 %v13516_v17, %v17412_v19  ;;  %13537 = vrsqrt.f32 %v17430_v29  ;;  %v7551_v17 = vand.u32 2147483648, %v17418_v37 }
0x1c50   :  { %11998 = vmatmul.mubr.msk.f32.gmra.mrb[232].mxu0 %vm984_vm4, %v8927_v24  ;;  %v13520_v45 = vpop.eup %13519  ;;  %v7519_v51 = vmul.f32 %v13518_v41, %v17408_v0  ;;  %v7507_v56 = vsel %vm7506_vm0, %v17406_v20, %v7505_v26  ;;  %vm7508_vm4 = vcmp.eq.f32.partialorder %v17406_v20, 0.0  ;;  %vm7543_vm0 = vcmp.eq.f32.partialorder %v17420_v22, 0.0 }
0x1c51   :  { %v13522_v36 = vpop.eup %13521  ;;  %v7512_v48 = vmul.f32 %v13520_v45, %v17410_v21  ;;  %v7500_v18 = vsel %vm7499_vm2, %v17412_v19, %v7498_v31  ;;  %v7510_v20 = vsel %vm7508_vm4, %v7509_v11, %v7507_v56  ;;  %v7544_v31 = vand.u32 2147483648, %v17420_v22 }
0x1c52   :  { %v13524_v49 = vpop.eup %13523  ;;  %v7533_v62 = vmul.f32 %v13522_v36, %v17414_v34  ;;  %v7503_v10 = vsel %vm7501_vm6, %v7502_v4, %v7500_v18  ;;  %v7521_v63 = vsel %vm7520_vm5, %v17408_v0, %v7519_v51  ;;  %v7610_v30 = vadd.f32 1.0, %v7510_v20 }
0x1c53   :  { %v7526_v19 = vmul.f32 %v13524_v49, %v17416_v6  ;;  %v7514_v43 = vsel %vm7513_vm7, %v17410_v21, %v7512_v48  ;;  %v13526_v1 = vpop.eup %13525  ;;  %v7609_v0 = vadd.f32 1.0, %v7503_v10  ;;  %v7524_v16 = vsel %vm7522_vm14, %v7523_v7, %v7521_v63 }
0x1c54   :  { %v13528_v42 = vpop.eup %13527  ;;  %v7517_v53 = vsel %vm7515_vm1, %v7516_v27, %v7514_v43  ;;  %v7535_v59 = vsel %vm7534_vm15, %v17414_v34, %v7533_v62  ;;  %v7547_v21 = vmul.f32 %v13526_v1, %v17418_v37  ;;  %13539 = vrcp.f32 %v7610_v30 }
0x1c55   :  { %v7528_v13 = vsel %vm7527_vm8, %v17416_v6, %v7526_v19  ;;  %v7540_v44 = vmul.f32 %v13528_v42, %v17420_v22  ;;  %v7612_v32 = vadd.f32 1.0, %v7524_v16  ;;  %13541 = vrcp.f32 %v7609_v0  ;;  %v13530_v34 = vpop.eup %13529 }
0x1c56   :  { %v7611_v24 = vadd.f32 1.0, %v7517_v53  ;;  %v7538_v38 = vsel %vm7536_vm9, %v7537_v39, %v7535_v59  ;;  %v7531_v26 = vsel %vm7529_vm10, %v7530_v40, %v7528_v13  ;;  %v13532_v41 = vpop.eup %13531  ;;  %13543 = vrsqrt.f32 %v17432_v50 }
0x1c57   :  { %v7549_v6 = vsel %vm7548_vm11, %v17418_v37, %v7547_v21  ;;  %13545 = vrcp.f32 %v7612_v32  ;;  %v7614_v45 = vadd.f32 1.0, %v7538_v38  ;;  %v7542_v11 = vsel %vm7541_vm12, %v17420_v22, %v7540_v44  ;;  %v13534_v48 = vpop.eup %13533 }
0x1c58   :  { %v7561_v4 = vmul.f32 %v13530_v34, %v17422_v61  ;;  %13547 = vrcp.f32 %v7611_v24  ;;  %v7613_v51 = vadd.f32 1.0, %v7531_v26  ;;  %vm7562_vm2 = vcmp.eq.f32.partialorder %v17422_v61, inf  ;;  %v13536_v18 = vpop.eup %13535 }
0x1c59   :  { %v7554_v56 = vmul.f32 %v13532_v41, %v17424_v2  ;;  %13549 = vrsqrt.f32 %v17434_v60  ;;  %v7552_v36 = vsel %vm7550_vm13, %v7551_v17, %v7549_v6  ;;  %vm7555_vm4 = vcmp.eq.f32.partialorder %v17424_v2, inf  ;;  %v13538_v7 = vpop.eup %13537 }
0x1c5a   :  { %13551 = vrsqrt.f32 %v17436_v3  ;;  %v7545_v37 = vsel %vm7543_vm0, %v7544_v31, %v7542_v11  ;;  %v7565_v22 = vand.u32 2147483648, %v17422_v61  ;;  %v7558_v49 = vand.u32 2147483648, %v17424_v2 }
0x1c5b   :  { %13553 = vrcp.f32 %v7614_v45  ;;  %v7616_v27 = vadd.f32 1.0, %v7552_v36  ;;  %v7563_v20 = vsel %vm7562_vm2, %v17422_v61, %v7561_v4  ;;  %vm7564_vm5 = vcmp.eq.f32.partialorder %v17422_v61, 0.0 }
0x1c5c   :  { %13555 = vrcp.f32 %v7613_v51  ;;  %v7615_v63 = vadd.f32 1.0, %v7545_v37  ;;  %v7556_v19 = vsel %vm7555_vm4, %v17424_v2, %v7554_v56  ;;  %vm7557_vm6 = vcmp.eq.f32.partialorder %v17424_v2, 0.0 }
0x1c5d   :  { %v7575_v1 = vmul.f32 %v13536_v18, %v17426_v25  ;;  %vm7576_vm7 = vcmp.eq.f32.partialorder %v17426_v25, inf  ;;  %v7568_v42 = vmul.f32 %v13534_v48, %v17428_v9  ;;  %v7566_v0 = vsel %vm7564_vm5, %v7565_v22, %v7563_v20 }
0x1c5e   :  { %v13540_v62 = vpop.eup %13539  ;;  %vm7569_vm14 = vcmp.eq.f32.partialorder %v17428_v9, inf  ;;  %13557 = vrcp.f32 %v7616_v27  ;;  %v7559_v61 = vsel %vm7557_vm6, %v7558_v49, %v7556_v19  ;;  %v7579_v2 = vand.u32 2147483648, %v17426_v25 }
0x1c5f   :  { %v13542_v43 = vpop.eup %13541  ;;  %v7572_v59 = vand.u32 2147483648, %v17428_v9  ;;  %v7589_v21 = vmul.f32 %v13538_v7, %v17430_v29  ;;  %13559 = vrcp.f32 %v7615_v63  ;;  %v7618_v38 = vadd.f32 1.0, %v7566_v0 }
0x1c60   :  { %v13544_v16 = vpop.eup %13543  ;;  %v7577_v34 = vsel %vm7576_vm7, %v17426_v25, %v7575_v1  ;;  %vm7578_vm15 = vcmp.eq.f32.partialorder %v17426_v25, 0.0  ;;  %v7617_v41 = vadd.f32 1.0, %v7559_v61  ;;  %v7570_v31 = vsel %vm7569_vm14, %v17428_v9, %v7568_v42 }
0x1c61   :  { %v13546_v53 = vpop.eup %13545  ;;  %vm7571_vm1 = vcmp.eq.f32.partialorder %v17428_v9, 0.0  ;;  %vm7590_vm8 = vcmp.eq.f32.partialorder %v17430_v29, inf  ;;  %v7582_v45 = vmul.f32 %v13544_v16, %v17432_v50  ;;  %vm7583_vm9 = vcmp.eq.f32.partialorder %v17432_v50, inf }
0x1c62   :  { %v13548_v44 = vpop.eup %13547  ;;  %v7593_v4 = vand.u32 2147483648, %v17430_v29  ;;  %v7586_v51 = vand.u32 2147483648, %v17432_v50  ;;  %vm7604_vm10 = vcmp.eq.f32.partialorder %v17434_v60, inf  ;;  %v7580_v36 = vsel %vm7578_vm15, %v7579_v2, %v7577_v34 }
0x1c63   :  { %v13550_v17 = vpop.eup %13549  ;;  %13561 = vrcp.f32 %v7618_v38  ;;  %v7573_v49 = vsel %vm7571_vm1, %v7572_v59, %v7570_v31  ;;  %v7591_v27 = vsel %vm7590_vm8, %v17430_v29, %v7589_v21  ;;  %vm7592_vm11 = vcmp.eq.f32.partialorder %v17430_v29, 0.0 }
0x1c64   :  { %v13552_v6 = vpop.eup %13551  ;;  %v7603_v37 = vmul.f32 %v13550_v17, %v17434_v60  ;;  %13563 = vrcp.f32 %v7617_v41  ;;  %v7620_v20 = vadd.f32 1.0, %v7580_v36  ;;  %vm7585_vm12 = vcmp.eq.f32.partialorder %v17432_v50, 0.0 }
0x1c65   :  { %v13554_v11 = vpop.eup %13553  ;;  %v7596_v25 = vmul.f32 %v13552_v6, %v17436_v3  ;;  %vm7597_vm13 = vcmp.eq.f32.partialorder %v17436_v3, inf  ;;  %v7619_v9 = vadd.f32 1.0, %v7573_v49  ;;  %v7607_v63 = vand.u32 2147483648, %v17434_v60 }
0x1c66   :  { %v13556_v48 = vpop.eup %13555  ;;  %v7594_v19 = vsel %vm7592_vm11, %v7593_v4, %v7591_v27  ;;  %v7600_v29 = vand.u32 2147483648, %v17436_v3  ;;  %vm7606_vm0 = vcmp.eq.f32.partialorder %v17434_v60, 0.0  ;;  %13565 = vrcp.f32 %v7620_v20 }
0x1c67   :  { %vm7599_vm2 = vcmp.eq.f32.partialorder %v17436_v3, 0.0  ;;  %13567 = vrcp.f32 %v7619_v9  ;;  %v7622_v0 = vadd.f32 1.0, %v7594_v19 }
0x1c69   :  { %13569 = vrcp.f32 %v7622_v0 }
0x1d01   :  { %v11978_v10 = vpop.f32.mrb[218].mxu0 }
0x1d02   :  { %v9127_v40 = vmul.f32 %v13540_v62, %v11978_v10  ;;  %v9047_v30 = vpop.f32.mrb[219].mxu0  ;;  %v7584_v62 = vsel %vm7583_vm9, %v17432_v50, %v7582_v45  ;;  %v13558_v10 = vpop.eup %13557  ;;  %v7598_v50 = vsel %vm7597_vm13, %v17436_v3, %v7596_v25 }
0x1d03   :  { %v9126_v39 = vmul.f32 %v13542_v43, %v9047_v30  ;;  %v13560_v43 = vpop.eup %13559  ;;  %v7587_v1 = vsel %vm7585_vm12, %v7586_v51, %v7584_v62  ;;  %v7601_v2 = vsel %vm7599_vm2, %v7600_v29, %v7598_v50 }
0x1d04   :  { %9149 = vperm.xlu0 %12528, %v9127_v40   ;;  %v7605_v40 = vsel %vm7604_vm10, %v17434_v60, %v7603_v37  ;;  %v7621_v61 = vadd.f32 1.0, %v7587_v1  ;;  %v13562_v59 = vpop.eup %13561  ;;  %v7623_v3 = vadd.f32 1.0, %v7601_v2 }
0x1d05   :  { %9144 = vperm.xlu1 %12527, %v9126_v39   ;;  %v11981_v13 = vpop.f32.mrb[220].mxu0 }
0x1d06   :  { %v9129_v32 = vmul.f32 %v13546_v53, %v11981_v13  ;;  %v9057_v24 = vpop.f32.mrb[221].mxu0  ;;  %v7608_v53 = vsel %vm7606_vm0, %v7607_v63, %v7605_v40  ;;  %v13564_v13 = vpop.eup %13563  ;;  %13571 = vrcp.f32 %v7621_v61 }
0x1d07   :  { %v9128_v26 = vmul.f32 %v13548_v44, %v9057_v24  ;;  %v13566_v38 = vpop.eup %13565 }
0x1d08   :  { %9159 = vperm.xlu0 %12528, %v9129_v32   ;;  %v7624_v32 = vadd.f32 1.0, %v7608_v53  ;;  %v13568_v17 = vpop.eup %13567 }
0x1d09   :  { %9154 = vperm.xlu1 %12527, %v9128_v26   ;;  %v11984_v56 = vpop.f32.mrb[222].mxu0  ;;  %v13570_v6 = vpop.eup %13569 }
0x1d0a   :  { %v9131_v18 = vmul.f32 %v13554_v11, %v11984_v56  ;;  %v9067_v22 = vpop.f32.mrb[223].mxu0  ;;  %13573 = vrcp.f32 %v7624_v32 }
0x1d0b   :  { %v9130_v7 = vmul.f32 %v13556_v48, %v9067_v22  ;;  %13575 = vrcp.f32 %v7623_v3 }
0x1d0c   :  { %9169 = vperm.xlu0 %12528, %v9131_v18  }
0x1d0d   :  { %9164 = vperm.xlu1 %12527, %v9130_v7  }
0x1d10   :  { %v11987_v30 = vpop.f32.mrb[224].mxu0  ;;  %v13572_v11 = vpop.eup %13571 }
0x1d11   :  { %v9133_v42 = vmul.f32 %v13558_v10, %v11987_v30  ;;  %v9077_v39 = vpop.f32.mrb[225].mxu0 }
0x1d12   :  { %v9132_v16 = vmul.f32 %v13560_v43, %v9077_v39 }
0x1d13   :  { %9179 = vperm.xlu0 %12528, %v9133_v42  }
0x1d14   :  { %9174 = vperm.xlu1 %12527, %v9132_v16   ;;  %v11990_v21 = vpop.f32.mrb[226].mxu0  ;;  %v13574_v36 = vpop.eup %13573 }
0x1d15   :  { %v9135_v60 = vmul.f32 %v13562_v59, %v11990_v21  ;;  %v9087_v44 = vpop.f32.mrb[227].mxu0  ;;  %v13576_v37 = vpop.eup %13575 }
0x1d16   :  { %v9134_v24 = vmul.f32 %v13564_v13, %v9087_v44 }
0x1d17   :  { %9189 = vperm.xlu0 %12528, %v9135_v60  }
0x1d18   :  { %9184 = vperm.xlu1 %12527, %v9134_v24  }
0x1d19   :  { %v11993_v34 = vpop.f32.mrb[228].mxu0 }
0x1d1a   :  { %v9137_v26 = vmul.f32 %v13566_v38, %v11993_v34  ;;  %v9097_v41 = vpop.f32.mrb[229].mxu0  ;;  %v18251_v34 = vld [vmem:[#allocation4_spill] sm:$0xff] }
0x1d1b   :  { %v9136_v31 = vmul.f32 %v13568_v17, %v9097_v41 }
0x1d1c   :  { %9199 = vperm.xlu0 %12528, %v9137_v26   ;;  %v13733_v26 = vld [vmem:[%s18031_s1] sm:$0xff] }
0x1d1d   :  { %9194 = vperm.xlu1 %12527, %v9136_v31  }
0x1d1f   :  { %v11996_v45 = vpop.f32.mrb[230].mxu0 }
0x1d20   :  { %v9139_v4 = vmul.f32 %v13570_v6, %v11996_v45  ;;  %v9107_v51 = vpop.f32.mrb[231].mxu0 }
0x1d21   :  { %v9138_v56 = vmul.f32 %v13572_v11, %v9107_v51 }
0x1d22   :  { %9209 = vperm.xlu0 %12528, %v9139_v4  }
0x1d23   :  { %9204 = vperm.xlu1 %12527, %v9138_v56   ;;  %v11999_v48 = vpop.f32.mrb[232].mxu0 }
0x1d24   :  { %v9141_v18 = vmul.f32 %v13574_v36, %v11999_v48  ;;  %v9117_v22 = vpop.f32.mrb[233].mxu0 }
0x1d25   :  { %v9140_v49 = vmul.f32 %v13576_v37, %v9117_v22 }
0x1d26   :  { %9219 = vperm.xlu0 %12528, %v9141_v18  }
0x1d27   :  { %9214 = vperm.xlu1 %12527, %v9140_v49  }
0x1d83   :  { %v9150_v7 = vpop.permute.xlu0 %9149 }
0x1d84   :  { %v9223_v27 = vmul.f32 %v17125_v28, %v9150_v7  ;;  %v9145_v25 = vpop.permute.xlu1 %9144 }
0x1d85   :  { %v9222_v20 = vmul.f32 %v9145_v25, %v17129_v33 }
0x1d87   :  { %v12491_v62 = vpack.c.bf16 %v9223_v27, %v9222_v20  ;;  %v9160_v9 = vpop.permute.xlu0 %9159 }
0x1d88   :  { %v9225_v10 = vmul.f32 %v17134_v15, %v9160_v9  ;;  %v9155_v63 = vpop.permute.xlu1 %9154 }
0x1d89   :  { %v9224_v19 = vmul.f32 %v9155_v63, %v17139_v46  ;;  %12492 = vmatprep.subr.bf16.mxu1 %v12491_v62 }
0x1d8a   :  { %12494 = vmatpush3.bf16.msra.mxu1 %v12491_v62 }
0x1d8b   :  { %v12495_v43 = vpack.c.bf16 %v9225_v10, %v9224_v19  ;;  %v9170_v29 = vpop.permute.xlu0 %9169 }
0x1d8c   :  { %v9227_v1 = vmul.f32 %v17148_v54, %v9170_v29  ;;  %v9165_v40 = vpop.permute.xlu1 %9164 }
0x1d8d   :  { %v9226_v30 = vmul.f32 %v9165_v40, %v17157_v55  ;;  %12496 = vmatprep.subr.bf16.mxu1 %v12495_v43 }
0x1d8e   :  { %12498 = vmatpush3.bf16.msra.mxu1 %v12495_v43 }
0x1d8f   :  { %v12499_v28 = vpack.c.bf16 %v9227_v1, %v9226_v30 }
0x1d91   :  { %12500 = vmatprep.subr.bf16.mxu1 %v12499_v28 }
0x1d92   :  { %v9180_v33 = vpop.permute.xlu0 %9179  ;;  %12502 = vmatpush3.bf16.msra.mxu1 %v12499_v28 }
0x1d93   :  { %v9229_v15 = vmul.f32 %v17165_v23, %v9180_v33  ;;  %v9175_v50 = vpop.permute.xlu1 %9174 }
0x1d94   :  { %v9228_v46 = vmul.f32 %v9175_v50, %v17175_v57 }
0x1d96   :  { %v12503_v42 = vpack.c.bf16 %v9229_v15, %v9228_v46  ;;  %v9190_v39 = vpop.permute.xlu0 %9189 }
0x1d97   :  { %v9231_v0 = vmul.f32 %v17183_v35, %v9190_v39  ;;  %v9185_v16 = vpop.permute.xlu1 %9184 }
0x1d98   :  { %v9230_v54 = vmul.f32 %v9185_v16, %v17193_v47  ;;  %12504 = vmatprep.subr.bf16.mxu1 %v12503_v42 }
0x1d99   :  { %12506 = vmatpush3.bf16.msra.mxu1 %v12503_v42 }
0x1d9a   :  { %v12507_v55 = vpack.c.bf16 %v9231_v0, %v9230_v54 }
0x1d9b   :  { %v9200_v61 = vpop.permute.xlu0 %9199 }
0x1d9c   :  { %12508 = vmatprep.subr.bf16.mxu1 %v12507_v55  ;;  %v9233_v53 = vmul.f32 %v17201_v58, %v9200_v61  ;;  %v9195_v2 = vpop.permute.xlu1 %9194 }
0x1d9d   :  { %12510 = vmatpush3.bf16.msra.mxu1 %v12507_v55  ;;  %v9232_v23 = vmul.f32 %v9195_v2, %v17211_v14  ;;  %v13731_v14 = vld [vmem:[%s18040_s4 + $0x8] sm:$0xff] }
0x1d9f   :  { %v12511_v59 = vpack.c.bf16 %v9233_v53, %v9232_v23 }
0x1da1   :  { %v9210_v57 = vpop.permute.xlu0 %9209  ;;  %12512 = vmatprep.subr.bf16.mxu1 %v12511_v59 }
0x1da2   :  { %v9235_v21 = vmul.f32 %v17219_v8, %v9210_v57  ;;  %v9205_v13 = vpop.permute.xlu1 %9204  ;;  %12514 = vmatpush3.bf16.msra.mxu1 %v12511_v59 }
0x1da3   :  { %v9234_v35 = vmul.f32 %v9205_v13, %v17229_v12  ;;  %v18250_v12 = vld [vmem:[#allocation31_spill] sm:$0xff] }
0x1da5   :  { %v12515_v47 = vpack.c.bf16 %v9235_v21, %v9234_v35  ;;  %v9220_v60 = vpop.permute.xlu0 %9219 }
0x1da6   :  { %v9237_v44 = vmul.f32 %v17237_v5, %v9220_v60  ;;  %v9215_v32 = vpop.permute.xlu1 %9214  ;;  %v13732_v5 = vld [vmem:[%s18031_s1 + $0x8] sm:$0xff] }
0x1da7   :  { %v9236_v24 = vmul.f32 %v9215_v32, %v17247_v52  ;;  %12516 = vmatprep.subr.bf16.mxu1 %v12515_v47 }
0x1da8   :  { %12518 = vmatpush3.bf16.msra.mxu1 %v12515_v47 }
0x1da9   :  { %v12519_v58 = vpack.c.bf16 %v9237_v44, %v9236_v24 }
0x1dab   :  { %12520 = vmatprep.subr.bf16.mxu1 %v12519_v58 }
0x1dac   :  { %12522 = vmatpush3.bf16.msra.mxu1 %v12519_v58 }
0x1daf   :  { %12033 = vmatmul.mubr.f32.vlgmr.msra.gmra.mrb[240].mxu1 %v13731_v14 }
0x1e82   :  { %v12034_v8 = vpop.f32.mrb[240].mxu1 }
0x1e83   :  { %v9314_v3 = vadd.f32 %v12034_v8, %v18250_v12  ;;  %v9304_v38 = vpop.f32.mrb[241].mxu1 }
0x1e84   :  { %v9313_v17 = vadd.f32 %v9304_v38, %v18251_v34 }
0x1e85   :  { %v9316_v52 = vsub.f32 %v9314_v3, %v13732_v5 }
0x1e86   :  { %v9315_v41 = vsub.f32 %v9313_v17, %v13733_v26 }
0x1e87   :  { %v9328_v31 = vsel %vm405_vm3, %v9316_v52, 0.0 }
0x1e88   :  { %v9329_v6 = vrot.slane %v9328_v31, 4  ;;  %v9317_v45 = vsel %vm405_vm3, %v9315_v41, 0.0 }
0x1e89   :  { %v9318_v11 = vrot.slane %v9317_v45, 4 }
0x1e8a   :  { %v9330_v4 = vadd.f32 %v9329_v6, %v9328_v31 }
0x1e8b   :  { %v9319_v51 = vadd.f32 %v9318_v11, %v9317_v45 }
0x1e8c   :  { %v9331_v56 = vrot.slane %v9330_v4, 2 }
0x1e8d   :  { %v9320_v36 = vrot.slane %v9319_v51, 2 }
0x1e8e   :  { %v9332_v48 = vadd.f32 %v9331_v56, %v9330_v4 }
0x1e8f   :  { %v9321_v37 = vadd.f32 %v9320_v36, %v9319_v51 }
0x1e90   :  { %v9333_v18 = vrot.slane %v9332_v48, 1 }
0x1e91   :  { %v9322_v22 = vrot.slane %v9321_v37, 1 }
0x1e92   :  { %v9334_v49 = vadd.f32 %v9333_v18, %v9332_v48 }
0x1e93   :  { %v9323_v7 = vadd.f32 %v9322_v22, %v9321_v37 }
0x1e94   :  { %v9335_v27 = vmul.f32 0.125, %v9334_v49 }
0x1e95   :  { %v9325_v25 = vmul.f32 0.125, %v9323_v7 }
0x1e96   :  { %v9336_v20 = vsub.f32 %v9316_v52, %v9335_v27 }
0x1e97   :  { %v9326_v62 = vsub.f32 %v9315_v41, %v9325_v25 }
0x1e98   :  { %9337 = vst.msk [vmem:[%s18043_s14 + $0x8] sm:$0xff] %vm405_vm3, %v9336_v20 }
0x1e99   :  { %9327 = vst.msk [vmem:[%s18043_s14] sm:$0xff] %vm405_vm3, %v9326_v62 }

</bundles_post_ra>
